<compile_context>
chip_gen: v7x
topology: tpu7x:2x2x1
jax: 0.10.0
libtpu: 0.0.40
codegen_flags: <defaults>
</compile_context>

<pallas_src>
import functools

import jax
import jax.numpy as jnp
from jax.experimental import pallas as pl
from jax.experimental.pallas import tpu as pltpu


# ----------------------------------------------------------------------------
# Fused forward kernel factory.
# ----------------------------------------------------------------------------
def _make_fused_kernel(N, H, W):
    NHW = N * H * W
    HW = H * W

    def conv3x3_relu_into(xpad_ref, w_ref, b_ref, acc_ref):
        """3x3 'same' conv on a zero-padded NHWC scratch buffer.

        Accumulates 9 shifted (NHW, Cin) x (Cin, Cout) MXU matmuls into a VMEM
        scratch accumulator (ref accumulation -> MRB-friendly on v7x); bias is
        folded into the first tap; returns ReLU(acc) as an (NHW, Cout) value.
        """
        cin = w_ref.shape[2]
        xt = xpad_ref[...]                                   # (N, H+2, W+2, Cin)
        first = True
        for ky in range(3):
            for kx in range(3):
                patch = xt[:, ky:ky + H, kx:kx + W, :].reshape(NHW, cin)
                t = jnp.dot(patch, w_ref[ky, kx],
                            preferred_element_type=jnp.float32)
                if first:
                    acc_ref[...] = t + b_ref[...]            # bias folded into init
                    first = False
                else:
                    acc_ref[...] += t
        return jnp.maximum(acc_ref[...], 0.0)                # (NHW, Cout)

    def head_contrib(act, wbig_ref):
        """sum_c act[:, c] * wbig[c]  -> per-row FC contributions (NHW, out).

        wbig[c, n*HW+hw, j] == fc_w[c*HW+hw, j], i.e. the PyTorch NCHW
        channel-major flatten is pre-folded into the weight table.
        """
        n_ch = act.shape[-1]
        contrib = act[:, 0:1] * wbig_ref[0]
        for c in range(1, n_ch):
            contrib = contrib + act[:, c:c + 1] * wbig_ref[c]
        return contrib

    def kernel(x_ref,
               c1w_ref, c1b_ref, c2w_ref, c2b_ref, c3w_ref, c3b_ref,
               aw_ref, ab_ref, afw_ref, afb_ref,
               vw_ref, vb_ref, vfw_ref, vfb_ref, v2w_ref, v2b_ref,
               o_act_ref, o_val_ref,
               xpad0_ref, xpad1_ref, xpad2_ref,
               acc1_ref, acc2_ref, acc3_ref):
        c1 = c1w_ref.shape[-1]
        c2 = c2w_ref.shape[-1]

        # ---- stage input into zero-padded NHWC scratch --------------------
        xpad0_ref[...] = jnp.zeros_like(xpad0_ref)
        xpad0_ref[:, 1:H + 1, 1:W + 1, :] = x_ref[...]

        # ---- conv1 (4->32) + ReLU -----------------------------------------
        y1 = conv3x3_relu_into(xpad0_ref, c1w_ref, c1b_ref, acc1_ref)
        xpad1_ref[...] = jnp.zeros_like(xpad1_ref)
        xpad1_ref[:, 1:H + 1, 1:W + 1, :] = y1.reshape(N, H, W, c1)

        # ---- conv2 (32->64) + ReLU ----------------------------------------
        y2 = conv3x3_relu_into(xpad1_ref, c2w_ref, c2b_ref, acc2_ref)
        xpad2_ref[...] = jnp.zeros_like(xpad2_ref)
        xpad2_ref[:, 1:H + 1, 1:W + 1, :] = y2.reshape(N, H, W, c2)

        # ---- conv3 (64->128) + ReLU ---------------------------------------
        y3 = conv3x3_relu_into(xpad2_ref, c3w_ref, c3b_ref, acc3_ref)  # (NHW,128)

        # Batch-selection matrix: sel[n, r] = 1 iff row r belongs to sample n.
        r_idx = jax.lax.broadcasted_iota(jnp.int32, (N, NHW), 1)
        n_idx = jax.lax.broadcasted_iota(jnp.int32, (N, NHW), 0)
        lo = n_idx * HW
        sel = jnp.logical_and(r_idx >= lo, r_idx < lo + HW).astype(jnp.float32)

        # ---- policy head: 1x1 conv + ReLU, FC (flatten folded), log_softmax
        a = jnp.maximum(
            jnp.dot(y3, aw_ref[...], preferred_element_type=jnp.float32)
            + ab_ref[...], 0.0)                               # (NHW, state_dim)
        contrib_a = head_contrib(a, afw_ref)                  # (NHW, n_actions)
        logits = jnp.dot(sel, contrib_a,
                         preferred_element_type=jnp.float32) + afb_ref[...]
        m = jnp.max(logits, axis=-1, keepdims=True)
        z = logits - m
        lse = jnp.log(jnp.sum(jnp.exp(z), axis=-1, keepdims=True))
        o_act_ref[...] = z - lse                              # (N, n_actions)

        # ---- value head: 1x1 conv + ReLU, FC + ReLU, FC + tanh -------------
        v = jnp.maximum(
            jnp.dot(y3, vw_ref[...], preferred_element_type=jnp.float32)
            + vb_ref[...], 0.0)                               # (NHW, 2)
        contrib_v = head_contrib(v, vfw_ref)                  # (NHW, 64)
        h = jnp.maximum(
            jnp.dot(sel, contrib_v, preferred_element_type=jnp.float32)
            + vfb_ref[...], 0.0)                              # (N, 64)
        val = jnp.dot(h, v2w_ref[...],
                      preferred_element_type=jnp.float32) + v2b_ref[...]
        o_val_ref[...] = jnp.tanh(val)                        # (N, 1)

    return kernel


# ----------------------------------------------------------------------------
# Public forward pass.  Only cheap parameter re-arrangement happens in XLA.
# ----------------------------------------------------------------------------
@functools.partial(jax.jit, static_argnames=("state_dim", "n_actions"))
def network_forward(x_nchw, params, *, state_dim, n_actions):
    N, c_in, H, W = x_nchw.shape
    assert H * W == n_actions
    NHW = N * H * W

    c1 = params["conv1_w"].shape[-1]
    c2 = params["conv2_w"].shape[-1]
    c3 = params["conv3_w"].shape[-1]
    v_ch = params["val_conv1_w"].shape[-1]
    v_hid = params["val_fc1_w"].shape[-1]

    x_nhwc = jnp.transpose(x_nchw, (0, 2, 3, 1)).astype(jnp.float32)

    # Fold PyTorch's NCHW channel-major flatten (index = c*HW + hw) into the FC
    # weights: per-channel (N*HW, out) tables, tiled over the batch dimension.
    afw_big = jnp.tile(
        params["act_fc1_w"].reshape(state_dim, n_actions, n_actions), (1, N, 1))
    vfw_big = jnp.tile(
        params["val_fc1_w"].reshape(v_ch, n_actions, v_hid), (1, N, 1))

    kernel = _make_fused_kernel(N, H, W)

    out_shapes = (jax.ShapeDtypeStruct((N, n_actions), jnp.float32),
                  jax.ShapeDtypeStruct((N, 1), jnp.float32))

    scratch_shapes = [
        pltpu.VMEM((N, H + 2, W + 2, c_in), jnp.float32),   # padded input
        pltpu.VMEM((N, H + 2, W + 2, c1), jnp.float32),     # padded conv1 out
        pltpu.VMEM((N, H + 2, W + 2, c2), jnp.float32),     # padded conv2 out
        pltpu.VMEM((NHW, c1), jnp.float32),                 # conv1 accumulator
        pltpu.VMEM((NHW, c2), jnp.float32),                 # conv2 accumulator
        pltpu.VMEM((NHW, c3), jnp.float32),                 # conv3 accumulator
    ]

    x_act, x_val = pl.pallas_call(
        kernel,
        out_shape=out_shapes,
        scratch_shapes=scratch_shapes,
    )(
        x_nhwc,
        params["conv1_w"], params["conv1_b"].reshape(1, c1),
        params["conv2_w"], params["conv2_b"].reshape(1, c2),
        params["conv3_w"], params["conv3_b"].reshape(1, c3),
        params["act_conv1_w"], params["act_conv1_b"].reshape(1, state_dim),
        afw_big, params["act_fc1_b"].reshape(1, n_actions),
        params["val_conv1_w"], params["val_conv1_b"].reshape(1, v_ch),
        vfw_big, params["val_fc1_b"].reshape(1, v_hid),
        params["val_fc2_w"], params["val_fc2_b"].reshape(1, 1),
    )
    return x_act, x_val


# ----------------------------------------------------------------------------
# Parameter init (synthetic, deterministic; conv weights stored HWIO).
# ----------------------------------------------------------------------------
def init_params(key, state_dim, n_actions):
    ks = jax.random.split(key, 16)

    def init(k, shape, scale=0.05):
        return (scale * jax.random.normal(k, shape)).astype(jnp.float32)

    return {
        "conv1_w": init(ks[0], (3, 3, 4, 32)),   "conv1_b": init(ks[1], (32,)),
        "conv2_w": init(ks[2], (3, 3, 32, 64)),  "conv2_b": init(ks[3], (64,)),
        "conv3_w": init(ks[4], (3, 3, 64, 128)), "conv3_b": init(ks[5], (128,)),
        "act_conv1_w": init(ks[6], (128, state_dim)),
        "act_conv1_b": init(ks[7], (state_dim,)),
        "act_fc1_w": init(ks[8], (state_dim * n_actions, n_actions)),
        "act_fc1_b": init(ks[9], (n_actions,)),
        "val_conv1_w": init(ks[10], (128, 2)),
        "val_conv1_b": init(ks[11], (2,)),
        "val_fc1_w": init(ks[12], (2 * n_actions, 64)),
        "val_fc1_b": init(ks[13], (64,)),
        "val_fc2_w": init(ks[14], (64, 1)),
        "val_fc2_b": init(ks[15], (1,)),
    }


# ----------------------------------------------------------------------------
# Pure-JAX reference (mirrors the PyTorch module exactly).
# ----------------------------------------------------------------------------
def _reference_forward(x_nchw, params):
    N = x_nchw.shape[0]
    hp = jax.lax.Precision.HIGHEST
    x = jnp.transpose(x_nchw, (0, 2, 3, 1))
    dn = ("NHWC", "HWIO", "NHWC")
    for i in (1, 2, 3):
        x = jax.lax.conv_general_dilated(
            x, params[f"conv{i}_w"], (1, 1), "SAME",
            dimension_numbers=dn, precision=hp)
        x = jax.nn.relu(x + params[f"conv{i}_b"])
    xa = jax.nn.relu(jnp.einsum("nhwc,cd->nhwd", x, params["act_conv1_w"],
                                precision=hp) + params["act_conv1_b"])
    xa = jnp.transpose(xa, (0, 3, 1, 2)).reshape(N, -1)       # NCHW flatten
    act = jax.nn.log_softmax(
        jnp.dot(xa, params["act_fc1_w"], precision=hp) + params["act_fc1_b"],
        axis=-1)
    xv = jax.nn.relu(jnp.einsum("nhwc,cd->nhwd", x, params["val_conv1_w"],
                                precision=hp) + params["val_conv1_b"])
    xv = jnp.transpose(xv, (0, 3, 1, 2)).reshape(N, -1)       # NCHW flatten
    hv = jax.nn.relu(jnp.dot(xv, params["val_fc1_w"], precision=hp)
                     + params["val_fc1_b"])
    val = jnp.tanh(jnp.dot(hv, params["val_fc2_w"], precision=hp)
                   + params["val_fc2_b"])
    return act, val


if __name__ == "__main__":
    key = jax.random.PRNGKey(0)
    N, H, W = 2, 8, 8
    state_dim, n_actions = 4, H * W

    pkey, xkey = jax.random.split(key)
    params = init_params(pkey, state_dim, n_actions)
    x = jax.random.normal(xkey, (N, 4, H, W), jnp.float32)    # NCHW input

    x_act, x_val = network_forward(x, params,
                                   state_dim=state_dim, n_actions=n_actions)
    jax.block_until_ready((x_act, x_val))

    assert x_act.shape == (N, n_actions)
    assert x_val.shape == (N, 1)
    # log_softmax rows must sum to 1 in prob space; value bounded by tanh.
    assert jnp.allclose(jnp.sum(jnp.exp(x_act), axis=-1), 1.0, atol=1e-4)
    assert jnp.all(jnp.abs(x_val) <= 1.0)

    # Numerical check against a pure-JAX reference of the PyTorch module.
    ref_act, ref_val = _reference_forward(x, params)
    assert jnp.allclose(x_act, ref_act, atol=5e-3, rtol=5e-3)
    assert jnp.allclose(x_val, ref_val, atol=5e-3, rtol=5e-3)

    print("KERNEL_OK")
</pallas_src>

<mosaic_0001>
module attributes {stable_mosaic.version = 11 : i64} {
  func.func @kernel(%arg0: memref<2x8x8x4xf32, #tpu.memory_space<vmem>>, %arg1: memref<3x3x4x32xf32, #tpu.memory_space<vmem>>, %arg2: memref<1x32xf32, #tpu.memory_space<vmem>>, %arg3: memref<3x3x32x64xf32, #tpu.memory_space<vmem>>, %arg4: memref<1x64xf32, #tpu.memory_space<vmem>>, %arg5: memref<3x3x64x128xf32, #tpu.memory_space<vmem>>, %arg6: memref<1x128xf32, #tpu.memory_space<vmem>>, %arg7: memref<128x4xf32, #tpu.memory_space<vmem>>, %arg8: memref<1x4xf32, #tpu.memory_space<vmem>>, %arg9: memref<4x128x64xf32, #tpu.memory_space<vmem>>, %arg10: memref<1x64xf32, #tpu.memory_space<vmem>>, %arg11: memref<128x2xf32, #tpu.memory_space<vmem>>, %arg12: memref<1x2xf32, #tpu.memory_space<vmem>>, %arg13: memref<2x128x64xf32, #tpu.memory_space<vmem>>, %arg14: memref<1x64xf32, #tpu.memory_space<vmem>>, %arg15: memref<64x1xf32, #tpu.memory_space<vmem>>, %arg16: memref<1x1xf32, #tpu.memory_space<vmem>>, %arg17: memref<2x64xf32, #tpu.memory_space<vmem>>, %arg18: memref<2x1xf32, #tpu.memory_space<vmem>>, %arg19: memref<2x10x10x4xf32, #tpu.memory_space<vmem>>, %arg20: memref<2x10x10x32xf32, #tpu.memory_space<vmem>>, %arg21: memref<2x10x10x64xf32, #tpu.memory_space<vmem>>, %arg22: memref<128x32xf32, #tpu.memory_space<vmem>>, %arg23: memref<128x64xf32, #tpu.memory_space<vmem>>, %arg24: memref<128x128xf32, #tpu.memory_space<vmem>>) attributes {dimension_semantics = [], scalar_prefetch = 0 : i64, scratch_operands = 6 : i64, tpu.core_type = #tpu.core_type<tc>} {
    %cst = arith.constant 0.000000e+00 : f32
    %0 = vector.broadcast %cst : f32 to vector<2x10x10x4xf32>
    %c0 = arith.constant 0 : index
    %c0_0 = arith.constant 0 : index
    %c0_1 = arith.constant 0 : index
    %c0_2 = arith.constant 0 : index
    %1 = vector.load %arg19[%c0, %c0_0, %c0_1, %c0_2] : memref<2x10x10x4xf32, #tpu.memory_space<vmem>>, vector<2x10x10x4xf32>
    tpu.vector_store %arg19[%c0, %c0_0, %c0_1, %c0_2], %0 {strides = array<i32>} : memref<2x10x10x4xf32, #tpu.memory_space<vmem>>, vector<2x10x10x4xf32>,
    %c0_3 = arith.constant 0 : index
    %c0_4 = arith.constant 0 : index
    %c0_5 = arith.constant 0 : index
    %c0_6 = arith.constant 0 : index
    %2 = vector.load %arg0[%c0_3, %c0_4, %c0_5, %c0_6] : memref<2x8x8x4xf32, #tpu.memory_space<vmem>>, vector<2x8x8x4xf32>
    %c0_7 = arith.constant 0 : index
    %c1 = arith.constant 1 : index
    %c1_8 = arith.constant 1 : index
    %c0_9 = arith.constant 0 : index
    %3 = vector.load %arg19[%c0_7, %c1, %c1_8, %c0_9] : memref<2x10x10x4xf32, #tpu.memory_space<vmem>>, vector<2x8x8x4xf32>
    tpu.vector_store %arg19[%c0_7, %c1, %c1_8, %c0_9], %2 {strides = array<i32>} : memref<2x10x10x4xf32, #tpu.memory_space<vmem>>, vector<2x8x8x4xf32>,
    %c0_10 = arith.constant 0 : index
    %c0_11 = arith.constant 0 : index
    %c0_12 = arith.constant 0 : index
    %c0_13 = arith.constant 0 : index
    %4 = vector.load %arg19[%c0_10, %c0_11, %c0_12, %c0_13] : memref<2x10x10x4xf32, #tpu.memory_space<vmem>>, vector<2x10x10x4xf32>
    %5 = vector.extract_strided_slice %4 {offsets = [0, 0, 0, 0], sizes = [2, 8, 8, 4], strides = [1, 1, 1, 1]} : vector<2x10x10x4xf32> to vector<2x8x8x4xf32>
    %6 = vector.shape_cast %5 : vector<2x8x8x4xf32> to vector<128x4xf32>
    %c0_14 = arith.constant 0 : index
    %c0_15 = arith.constant 0 : index
    %c0_16 = arith.constant 0 : index
    %c0_17 = arith.constant 0 : index
    %7 = vector.load %arg1[%c0_14, %c0_15, %c0_16, %c0_17] : memref<3x3x4x32xf32, #tpu.memory_space<vmem>>, vector<1x1x4x32xf32>
    %8 = vector.shape_cast %7 : vector<1x1x4x32xf32> to vector<4x32xf32>
    %cst_18 = arith.constant dense<0.000000e+00> : vector<128x32xf32>
    %9 = tpu.matmul %6, %8, %cst_18 {dimension_numbers = #tpu.dot_dimension_numbers<[1], [0], [0], [1], [0, 0, 1, 1], [], []>} : vector<128x4xf32>, vector<4x32xf32>, vector<128x32xf32> -> vector<128x32xf32>
    %c0_19 = arith.constant 0 : index
    %c0_20 = arith.constant 0 : index
    %10 = vector.load %arg2[%c0_19, %c0_20] : memref<1x32xf32, #tpu.memory_space<vmem>>, vector<1x32xf32>
    %11 = vector.broadcast %10 : vector<1x32xf32> to vector<128x32xf32>
    %12 = arith.addf %9, %11 : vector<128x32xf32>
    %c0_21 = arith.constant 0 : index
    %c0_22 = arith.constant 0 : index
    %13 = vector.load %arg22[%c0_21, %c0_22] : memref<128x32xf32, #tpu.memory_space<vmem>>, vector<128x32xf32>
    tpu.vector_store %arg22[%c0_21, %c0_22], %12 {strides = array<i32>} : memref<128x32xf32, #tpu.memory_space<vmem>>, vector<128x32xf32>,
    %14 = vector.extract_strided_slice %4 {offsets = [0, 0, 1, 0], sizes = [2, 8, 8, 4], strides = [1, 1, 1, 1]} : vector<2x10x10x4xf32> to vector<2x8x8x4xf32>
    %15 = vector.shape_cast %14 : vector<2x8x8x4xf32> to vector<128x4xf32>
    %c0_23 = arith.constant 0 : index
    %c1_24 = arith.constant 1 : index
    %c0_25 = arith.constant 0 : index
    %c0_26 = arith.constant 0 : index
    %16 = vector.load %arg1[%c0_23, %c1_24, %c0_25, %c0_26] : memref<3x3x4x32xf32, #tpu.memory_space<vmem>>, vector<1x1x4x32xf32>
    %17 = vector.shape_cast %16 : vector<1x1x4x32xf32> to vector<4x32xf32>
    %cst_27 = arith.constant dense<0.000000e+00> : vector<128x32xf32>
    %18 = tpu.matmul %15, %17, %cst_27 {dimension_numbers = #tpu.dot_dimension_numbers<[1], [0], [0], [1], [0, 0, 1, 1], [], []>} : vector<128x4xf32>, vector<4x32xf32>, vector<128x32xf32> -> vector<128x32xf32>
    %c0_28 = arith.constant 0 : index
    %c0_29 = arith.constant 0 : index
    %19 = vector.load %arg22[%c0_28, %c0_29] : memref<128x32xf32, #tpu.memory_space<vmem>>, vector<128x32xf32>
    %20 = arith.addf %19, %18 : vector<128x32xf32>
    %c0_30 = arith.constant 0 : index
    %c0_31 = arith.constant 0 : index
    %21 = vector.load %arg22[%c0_30, %c0_31] : memref<128x32xf32, #tpu.memory_space<vmem>>, vector<128x32xf32>
    tpu.vector_store %arg22[%c0_30, %c0_31], %20 {strides = array<i32>} : memref<128x32xf32, #tpu.memory_space<vmem>>, vector<128x32xf32>,
    %22 = vector.extract_strided_slice %4 {offsets = [0, 0, 2, 0], sizes = [2, 8, 8, 4], strides = [1, 1, 1, 1]} : vector<2x10x10x4xf32> to vector<2x8x8x4xf32>
    %23 = vector.shape_cast %22 : vector<2x8x8x4xf32> to vector<128x4xf32>
    %c0_32 = arith.constant 0 : index
    %c2 = arith.constant 2 : index
    %c0_33 = arith.constant 0 : index
    %c0_34 = arith.constant 0 : index
    %24 = vector.load %arg1[%c0_32, %c2, %c0_33, %c0_34] : memref<3x3x4x32xf32, #tpu.memory_space<vmem>>, vector<1x1x4x32xf32>
    %25 = vector.shape_cast %24 : vector<1x1x4x32xf32> to vector<4x32xf32>
    %cst_35 = arith.constant dense<0.000000e+00> : vector<128x32xf32>
    %26 = tpu.matmul %23, %25, %cst_35 {dimension_numbers = #tpu.dot_dimension_numbers<[1], [0], [0], [1], [0, 0, 1, 1], [], []>} : vector<128x4xf32>, vector<4x32xf32>, vector<128x32xf32> -> vector<128x32xf32>
    %c0_36 = arith.constant 0 : index
    %c0_37 = arith.constant 0 : index
    %27 = vector.load %arg22[%c0_36, %c0_37] : memref<128x32xf32, #tpu.memory_space<vmem>>, vector<128x32xf32>
    %28 = arith.addf %27, %26 : vector<128x32xf32>
    %c0_38 = arith.constant 0 : index
    %c0_39 = arith.constant 0 : index
    %29 = vector.load %arg22[%c0_38, %c0_39] : memref<128x32xf32, #tpu.memory_space<vmem>>, vector<128x32xf32>
    tpu.vector_store %arg22[%c0_38, %c0_39], %28 {strides = array<i32>} : memref<128x32xf32, #tpu.memory_space<vmem>>, vector<128x32xf32>,
    %30 = vector.extract_strided_slice %4 {offsets = [0, 1, 0, 0], sizes = [2, 8, 8, 4], strides = [1, 1, 1, 1]} : vector<2x10x10x4xf32> to vector<2x8x8x4xf32>
    %31 = vector.shape_cast %30 : vector<2x8x8x4xf32> to vector<128x4xf32>
    %c1_40 = arith.constant 1 : index
    %c0_41 = arith.constant 0 : index
    %c0_42 = arith.constant 0 : index
    %c0_43 = arith.constant 0 : index
    %32 = vector.load %arg1[%c1_40, %c0_41, %c0_42, %c0_43] : memref<3x3x4x32xf32, #tpu.memory_space<vmem>>, vector<1x1x4x32xf32>
    %33 = vector.shape_cast %32 : vector<1x1x4x32xf32> to vector<4x32xf32>
    %cst_44 = arith.constant dense<0.000000e+00> : vector<128x32xf32>
    %34 = tpu.matmul %31, %33, %cst_44 {dimension_numbers = #tpu.dot_dimension_numbers<[1], [0], [0], [1], [0, 0, 1, 1], [], []>} : vector<128x4xf32>, vector<4x32xf32>, vector<128x32xf32> -> vector<128x32xf32>
    %c0_45 = arith.constant 0 : index
    %c0_46 = arith.constant 0 : index
    %35 = vector.load %arg22[%c0_45, %c0_46] : memref<128x32xf32, #tpu.memory_space<vmem>>, vector<128x32xf32>
    %36 = arith.addf %35, %34 : vector<128x32xf32>
    %c0_47 = arith.constant 0 : index
    %c0_48 = arith.constant 0 : index
    %37 = vector.load %arg22[%c0_47, %c0_48] : memref<128x32xf32, #tpu.memory_space<vmem>>, vector<128x32xf32>
    tpu.vector_store %arg22[%c0_47, %c0_48], %36 {strides = array<i32>} : memref<128x32xf32, #tpu.memory_space<vmem>>, vector<128x32xf32>,
    %38 = vector.extract_strided_slice %4 {offsets = [0, 1, 1, 0], sizes = [2, 8, 8, 4], strides = [1, 1, 1, 1]} : vector<2x10x10x4xf32> to vector<2x8x8x4xf32>
    %39 = vector.shape_cast %38 : vector<2x8x8x4xf32> to vector<128x4xf32>
    %c1_49 = arith.constant 1 : index
    %c1_50 = arith.constant 1 : index
    %c0_51 = arith.constant 0 : index
    %c0_52 = arith.constant 0 : index
    %40 = vector.load %arg1[%c1_49, %c1_50, %c0_51, %c0_52] : memref<3x3x4x32xf32, #tpu.memory_space<vmem>>, vector<1x1x4x32xf32>
    %41 = vector.shape_cast %40 : vector<1x1x4x32xf32> to vector<4x32xf32>
    %cst_53 = arith.constant dense<0.000000e+00> : vector<128x32xf32>
    %42 = tpu.matmul %39, %41, %cst_53 {dimension_numbers = #tpu.dot_dimension_numbers<[1], [0], [0], [1], [0, 0, 1, 1], [], []>} : vector<128x4xf32>, vector<4x32xf32>, vector<128x32xf32> -> vector<128x32xf32>
    %c0_54 = arith.constant 0 : index
    %c0_55 = arith.constant 0 : index
    %43 = vector.load %arg22[%c0_54, %c0_55] : memref<128x32xf32, #tpu.memory_space<vmem>>, vector<128x32xf32>
    %44 = arith.addf %43, %42 : vector<128x32xf32>
    %c0_56 = arith.constant 0 : index
    %c0_57 = arith.constant 0 : index
    %45 = vector.load %arg22[%c0_56, %c0_57] : memref<128x32xf32, #tpu.memory_space<vmem>>, vector<128x32xf32>
    tpu.vector_store %arg22[%c0_56, %c0_57], %44 {strides = array<i32>} : memref<128x32xf32, #tpu.memory_space<vmem>>, vector<128x32xf32>,
    %46 = vector.extract_strided_slice %4 {offsets = [0, 1, 2, 0], sizes = [2, 8, 8, 4], strides = [1, 1, 1, 1]} : vector<2x10x10x4xf32> to vector<2x8x8x4xf32>
    %47 = vector.shape_cast %46 : vector<2x8x8x4xf32> to vector<128x4xf32>
    %c1_58 = arith.constant 1 : index
    %c2_59 = arith.constant 2 : index
    %c0_60 = arith.constant 0 : index
    %c0_61 = arith.constant 0 : index
    %48 = vector.load %arg1[%c1_58, %c2_59, %c0_60, %c0_61] : memref<3x3x4x32xf32, #tpu.memory_space<vmem>>, vector<1x1x4x32xf32>
    %49 = vector.shape_cast %48 : vector<1x1x4x32xf32> to vector<4x32xf32>
    %cst_62 = arith.constant dense<0.000000e+00> : vector<128x32xf32>
    %50 = tpu.matmul %47, %49, %cst_62 {dimension_numbers = #tpu.dot_dimension_numbers<[1], [0], [0], [1], [0, 0, 1, 1], [], []>} : vector<128x4xf32>, vector<4x32xf32>, vector<128x32xf32> -> vector<128x32xf32>
    %c0_63 = arith.constant 0 : index
    %c0_64 = arith.constant 0 : index
    %51 = vector.load %arg22[%c0_63, %c0_64] : memref<128x32xf32, #tpu.memory_space<vmem>>, vector<128x32xf32>
    %52 = arith.addf %51, %50 : vector<128x32xf32>
    %c0_65 = arith.constant 0 : index
    %c0_66 = arith.constant 0 : index
    %53 = vector.load %arg22[%c0_65, %c0_66] : memref<128x32xf32, #tpu.memory_space<vmem>>, vector<128x32xf32>
    tpu.vector_store %arg22[%c0_65, %c0_66], %52 {strides = array<i32>} : memref<128x32xf32, #tpu.memory_space<vmem>>, vector<128x32xf32>,
    %54 = vector.extract_strided_slice %4 {offsets = [0, 2, 0, 0], sizes = [2, 8, 8, 4], strides = [1, 1, 1, 1]} : vector<2x10x10x4xf32> to vector<2x8x8x4xf32>
    %55 = vector.shape_cast %54 : vector<2x8x8x4xf32> to vector<128x4xf32>
    %c2_67 = arith.constant 2 : index
    %c0_68 = arith.constant 0 : index
    %c0_69 = arith.constant 0 : index
    %c0_70 = arith.constant 0 : index
    %56 = vector.load %arg1[%c2_67, %c0_68, %c0_69, %c0_70] : memref<3x3x4x32xf32, #tpu.memory_space<vmem>>, vector<1x1x4x32xf32>
    %57 = vector.shape_cast %56 : vector<1x1x4x32xf32> to vector<4x32xf32>
    %cst_71 = arith.constant dense<0.000000e+00> : vector<128x32xf32>
    %58 = tpu.matmul %55, %57, %cst_71 {dimension_numbers = #tpu.dot_dimension_numbers<[1], [0], [0], [1], [0, 0, 1, 1], [], []>} : vector<128x4xf32>, vector<4x32xf32>, vector<128x32xf32> -> vector<128x32xf32>
    %c0_72 = arith.constant 0 : index
    %c0_73 = arith.constant 0 : index
    %59 = vector.load %arg22[%c0_72, %c0_73] : memref<128x32xf32, #tpu.memory_space<vmem>>, vector<128x32xf32>
    %60 = arith.addf %59, %58 : vector<128x32xf32>
    %c0_74 = arith.constant 0 : index
    %c0_75 = arith.constant 0 : index
    %61 = vector.load %arg22[%c0_74, %c0_75] : memref<128x32xf32, #tpu.memory_space<vmem>>, vector<128x32xf32>
    tpu.vector_store %arg22[%c0_74, %c0_75], %60 {strides = array<i32>} : memref<128x32xf32, #tpu.memory_space<vmem>>, vector<128x32xf32>,
    %62 = vector.extract_strided_slice %4 {offsets = [0, 2, 1, 0], sizes = [2, 8, 8, 4], strides = [1, 1, 1, 1]} : vector<2x10x10x4xf32> to vector<2x8x8x4xf32>
    %63 = vector.shape_cast %62 : vector<2x8x8x4xf32> to vector<128x4xf32>
    %c2_76 = arith.constant 2 : index
    %c1_77 = arith.constant 1 : index
    %c0_78 = arith.constant 0 : index
    %c0_79 = arith.constant 0 : index
    %64 = vector.load %arg1[%c2_76, %c1_77, %c0_78, %c0_79] : memref<3x3x4x32xf32, #tpu.memory_space<vmem>>, vector<1x1x4x32xf32>
    %65 = vector.shape_cast %64 : vector<1x1x4x32xf32> to vector<4x32xf32>
    %cst_80 = arith.constant dense<0.000000e+00> : vector<128x32xf32>
    %66 = tpu.matmul %63, %65, %cst_80 {dimension_numbers = #tpu.dot_dimension_numbers<[1], [0], [0], [1], [0, 0, 1, 1], [], []>} : vector<128x4xf32>, vector<4x32xf32>, vector<128x32xf32> -> vector<128x32xf32>
    %c0_81 = arith.constant 0 : index
    %c0_82 = arith.constant 0 : index
    %67 = vector.load %arg22[%c0_81, %c0_82] : memref<128x32xf32, #tpu.memory_space<vmem>>, vector<128x32xf32>
    %68 = arith.addf %67, %66 : vector<128x32xf32>
    %c0_83 = arith.constant 0 : index
    %c0_84 = arith.constant 0 : index
    %69 = vector.load %arg22[%c0_83, %c0_84] : memref<128x32xf32, #tpu.memory_space<vmem>>, vector<128x32xf32>
    tpu.vector_store %arg22[%c0_83, %c0_84], %68 {strides = array<i32>} : memref<128x32xf32, #tpu.memory_space<vmem>>, vector<128x32xf32>,
    %70 = vector.extract_strided_slice %4 {offsets = [0, 2, 2, 0], sizes = [2, 8, 8, 4], strides = [1, 1, 1, 1]} : vector<2x10x10x4xf32> to vector<2x8x8x4xf32>
    %71 = vector.shape_cast %70 : vector<2x8x8x4xf32> to vector<128x4xf32>
    %c2_85 = arith.constant 2 : index
    %c2_86 = arith.constant 2 : index
    %c0_87 = arith.constant 0 : index
    %c0_88 = arith.constant 0 : index
    %72 = vector.load %arg1[%c2_85, %c2_86, %c0_87, %c0_88] : memref<3x3x4x32xf32, #tpu.memory_space<vmem>>, vector<1x1x4x32xf32>
    %73 = vector.shape_cast %72 : vector<1x1x4x32xf32> to vector<4x32xf32>
    %cst_89 = arith.constant dense<0.000000e+00> : vector<128x32xf32>
    %74 = tpu.matmul %71, %73, %cst_89 {dimension_numbers = #tpu.dot_dimension_numbers<[1], [0], [0], [1], [0, 0, 1, 1], [], []>} : vector<128x4xf32>, vector<4x32xf32>, vector<128x32xf32> -> vector<128x32xf32>
    %c0_90 = arith.constant 0 : index
    %c0_91 = arith.constant 0 : index
    %75 = vector.load %arg22[%c0_90, %c0_91] : memref<128x32xf32, #tpu.memory_space<vmem>>, vector<128x32xf32>
    %76 = arith.addf %75, %74 : vector<128x32xf32>
    %c0_92 = arith.constant 0 : index
    %c0_93 = arith.constant 0 : index
    %77 = vector.load %arg22[%c0_92, %c0_93] : memref<128x32xf32, #tpu.memory_space<vmem>>, vector<128x32xf32>
    tpu.vector_store %arg22[%c0_92, %c0_93], %76 {strides = array<i32>} : memref<128x32xf32, #tpu.memory_space<vmem>>, vector<128x32xf32>,
    %c0_94 = arith.constant 0 : index
    %c0_95 = arith.constant 0 : index
    %78 = vector.load %arg22[%c0_94, %c0_95] : memref<128x32xf32, #tpu.memory_space<vmem>>, vector<128x32xf32>
    %cst_96 = arith.constant 0.000000e+00 : f32
    %79 = vector.broadcast %cst_96 : f32 to vector<128x32xf32>
    %80 = arith.maximumf %78, %79 : vector<128x32xf32>
    %cst_97 = arith.constant 0.000000e+00 : f32
    %81 = vector.broadcast %cst_97 : f32 to vector<2x10x10x32xf32>
    %c0_98 = arith.constant 0 : index
    %c0_99 = arith.constant 0 : index
    %c0_100 = arith.constant 0 : index
    %c0_101 = arith.constant 0 : index
    %82 = vector.load %arg20[%c0_98, %c0_99, %c0_100, %c0_101] : memref<2x10x10x32xf32, #tpu.memory_space<vmem>>, vector<2x10x10x32xf32>
    tpu.vector_store %arg20[%c0_98, %c0_99, %c0_100, %c0_101], %81 {strides = array<i32>} : memref<2x10x10x32xf32, #tpu.memory_space<vmem>>, vector<2x10x10x32xf32>,
    %83 = vector.shape_cast %80 : vector<128x32xf32> to vector<2x8x8x32xf32>
    %c0_102 = arith.constant 0 : index
    %c1_103 = arith.constant 1 : index
    %c1_104 = arith.constant 1 : index
    %c0_105 = arith.constant 0 : index
    %84 = vector.load %arg20[%c0_102, %c1_103, %c1_104, %c0_105] : memref<2x10x10x32xf32, #tpu.memory_space<vmem>>, vector<2x8x8x32xf32>
    tpu.vector_store %arg20[%c0_102, %c1_103, %c1_104, %c0_105], %83 {strides = array<i32>} : memref<2x10x10x32xf32, #tpu.memory_space<vmem>>, vector<2x8x8x32xf32>,
    %c0_106 = arith.constant 0 : index
    %c0_107 = arith.constant 0 : index
    %c0_108 = arith.constant 0 : index
    %c0_109 = arith.constant 0 : index
    %85 = vector.load %arg20[%c0_106, %c0_107, %c0_108, %c0_109] : memref<2x10x10x32xf32, #tpu.memory_space<vmem>>, vector<2x10x10x32xf32>
    %86 = vector.extract_strided_slice %85 {offsets = [0, 0, 0, 0], sizes = [2, 8, 8, 32], strides = [1, 1, 1, 1]} : vector<2x10x10x32xf32> to vector<2x8x8x32xf32>
    %87 = vector.shape_cast %86 : vector<2x8x8x32xf32> to vector<128x32xf32>
    %c0_110 = arith.constant 0 : index
    %c0_111 = arith.constant 0 : index
    %c0_112 = arith.constant 0 : index
    %c0_113 = arith.constant 0 : index
    %88 = vector.load %arg3[%c0_110, %c0_111, %c0_112, %c0_113] : memref<3x3x32x64xf32, #tpu.memory_space<vmem>>, vector<1x1x32x64xf32>
    %89 = vector.shape_cast %88 : vector<1x1x32x64xf32> to vector<32x64xf32>
    %cst_114 = arith.constant dense<0.000000e+00> : vector<128x64xf32>
    %90 = tpu.matmul %87, %89, %cst_114 {dimension_numbers = #tpu.dot_dimension_numbers<[1], [0], [0], [1], [0, 0, 1, 1], [], []>} : vector<128x32xf32>, vector<32x64xf32>, vector<128x64xf32> -> vector<128x64xf32>
    %c0_115 = arith.constant 0 : index
    %c0_116 = arith.constant 0 : index
    %91 = vector.load %arg4[%c0_115, %c0_116] : memref<1x64xf32, #tpu.memory_space<vmem>>, vector<1x64xf32>
    %92 = vector.broadcast %91 : vector<1x64xf32> to vector<128x64xf32>
    %93 = arith.addf %90, %92 : vector<128x64xf32>
    %c0_117 = arith.constant 0 : index
    %c0_118 = arith.constant 0 : index
    %94 = vector.load %arg23[%c0_117, %c0_118] : memref<128x64xf32, #tpu.memory_space<vmem>>, vector<128x64xf32>
    tpu.vector_store %arg23[%c0_117, %c0_118], %93 {strides = array<i32>} : memref<128x64xf32, #tpu.memory_space<vmem>>, vector<128x64xf32>,
    %95 = vector.extract_strided_slice %85 {offsets = [0, 0, 1, 0], sizes = [2, 8, 8, 32], strides = [1, 1, 1, 1]} : vector<2x10x10x32xf32> to vector<2x8x8x32xf32>
    %96 = vector.shape_cast %95 : vector<2x8x8x32xf32> to vector<128x32xf32>
    %c0_119 = arith.constant 0 : index
    %c1_120 = arith.constant 1 : index
    %c0_121 = arith.constant 0 : index
    %c0_122 = arith.constant 0 : index
    %97 = vector.load %arg3[%c0_119, %c1_120, %c0_121, %c0_122] : memref<3x3x32x64xf32, #tpu.memory_space<vmem>>, vector<1x1x32x64xf32>
    %98 = vector.shape_cast %97 : vector<1x1x32x64xf32> to vector<32x64xf32>
    %cst_123 = arith.constant dense<0.000000e+00> : vector<128x64xf32>
    %99 = tpu.matmul %96, %98, %cst_123 {dimension_numbers = #tpu.dot_dimension_numbers<[1], [0], [0], [1], [0, 0, 1, 1], [], []>} : vector<128x32xf32>, vector<32x64xf32>, vector<128x64xf32> -> vector<128x64xf32>
    %c0_124 = arith.constant 0 : index
    %c0_125 = arith.constant 0 : index
    %100 = vector.load %arg23[%c0_124, %c0_125] : memref<128x64xf32, #tpu.memory_space<vmem>>, vector<128x64xf32>
    %101 = arith.addf %100, %99 : vector<128x64xf32>
    %c0_126 = arith.constant 0 : index
    %c0_127 = arith.constant 0 : index
    %102 = vector.load %arg23[%c0_126, %c0_127] : memref<128x64xf32, #tpu.memory_space<vmem>>, vector<128x64xf32>
    tpu.vector_store %arg23[%c0_126, %c0_127], %101 {strides = array<i32>} : memref<128x64xf32, #tpu.memory_space<vmem>>, vector<128x64xf32>,
    %103 = vector.extract_strided_slice %85 {offsets = [0, 0, 2, 0], sizes = [2, 8, 8, 32], strides = [1, 1, 1, 1]} : vector<2x10x10x32xf32> to vector<2x8x8x32xf32>
    %104 = vector.shape_cast %103 : vector<2x8x8x32xf32> to vector<128x32xf32>
    %c0_128 = arith.constant 0 : index
    %c2_129 = arith.constant 2 : index
    %c0_130 = arith.constant 0 : index
    %c0_131 = arith.constant 0 : index
    %105 = vector.load %arg3[%c0_128, %c2_129, %c0_130, %c0_131] : memref<3x3x32x64xf32, #tpu.memory_space<vmem>>, vector<1x1x32x64xf32>
    %106 = vector.shape_cast %105 : vector<1x1x32x64xf32> to vector<32x64xf32>
    %cst_132 = arith.constant dense<0.000000e+00> : vector<128x64xf32>
    %107 = tpu.matmul %104, %106, %cst_132 {dimension_numbers = #tpu.dot_dimension_numbers<[1], [0], [0], [1], [0, 0, 1, 1], [], []>} : vector<128x32xf32>, vector<32x64xf32>, vector<128x64xf32> -> vector<128x64xf32>
    %c0_133 = arith.constant 0 : index
    %c0_134 = arith.constant 0 : index
    %108 = vector.load %arg23[%c0_133, %c0_134] : memref<128x64xf32, #tpu.memory_space<vmem>>, vector<128x64xf32>
    %109 = arith.addf %108, %107 : vector<128x64xf32>
    %c0_135 = arith.constant 0 : index
    %c0_136 = arith.constant 0 : index
    %110 = vector.load %arg23[%c0_135, %c0_136] : memref<128x64xf32, #tpu.memory_space<vmem>>, vector<128x64xf32>
    tpu.vector_store %arg23[%c0_135, %c0_136], %109 {strides = array<i32>} : memref<128x64xf32, #tpu.memory_space<vmem>>, vector<128x64xf32>,
    %111 = vector.extract_strided_slice %85 {offsets = [0, 1, 0, 0], sizes = [2, 8, 8, 32], strides = [1, 1, 1, 1]} : vector<2x10x10x32xf32> to vector<2x8x8x32xf32>
    %112 = vector.shape_cast %111 : vector<2x8x8x32xf32> to vector<128x32xf32>
    %c1_137 = arith.constant 1 : index
    %c0_138 = arith.constant 0 : index
    %c0_139 = arith.constant 0 : index
    %c0_140 = arith.constant 0 : index
    %113 = vector.load %arg3[%c1_137, %c0_138, %c0_139, %c0_140] : memref<3x3x32x64xf32, #tpu.memory_space<vmem>>, vector<1x1x32x64xf32>
    %114 = vector.shape_cast %113 : vector<1x1x32x64xf32> to vector<32x64xf32>
    %cst_141 = arith.constant dense<0.000000e+00> : vector<128x64xf32>
    %115 = tpu.matmul %112, %114, %cst_141 {dimension_numbers = #tpu.dot_dimension_numbers<[1], [0], [0], [1], [0, 0, 1, 1], [], []>} : vector<128x32xf32>, vector<32x64xf32>, vector<128x64xf32> -> vector<128x64xf32>
    %c0_142 = arith.constant 0 : index
    %c0_143 = arith.constant 0 : index
    %116 = vector.load %arg23[%c0_142, %c0_143] : memref<128x64xf32, #tpu.memory_space<vmem>>, vector<128x64xf32>
    %117 = arith.addf %116, %115 : vector<128x64xf32>
    %c0_144 = arith.constant 0 : index
    %c0_145 = arith.constant 0 : index
    %118 = vector.load %arg23[%c0_144, %c0_145] : memref<128x64xf32, #tpu.memory_space<vmem>>, vector<128x64xf32>
    tpu.vector_store %arg23[%c0_144, %c0_145], %117 {strides = array<i32>} : memref<128x64xf32, #tpu.memory_space<vmem>>, vector<128x64xf32>,
    %119 = vector.extract_strided_slice %85 {offsets = [0, 1, 1, 0], sizes = [2, 8, 8, 32], strides = [1, 1, 1, 1]} : vector<2x10x10x32xf32> to vector<2x8x8x32xf32>
    %120 = vector.shape_cast %119 : vector<2x8x8x32xf32> to vector<128x32xf32>
    %c1_146 = arith.constant 1 : index
    %c1_147 = arith.constant 1 : index
    %c0_148 = arith.constant 0 : index
    %c0_149 = arith.constant 0 : index
    %121 = vector.load %arg3[%c1_146, %c1_147, %c0_148, %c0_149] : memref<3x3x32x64xf32, #tpu.memory_space<vmem>>, vector<1x1x32x64xf32>
    %122 = vector.shape_cast %121 : vector<1x1x32x64xf32> to vector<32x64xf32>
    %cst_150 = arith.constant dense<0.000000e+00> : vector<128x64xf32>
    %123 = tpu.matmul %120, %122, %cst_150 {dimension_numbers = #tpu.dot_dimension_numbers<[1], [0], [0], [1], [0, 0, 1, 1], [], []>} : vector<128x32xf32>, vector<32x64xf32>, vector<128x64xf32> -> vector<128x64xf32>
    %c0_151 = arith.constant 0 : index
    %c0_152 = arith.constant 0 : index
    %124 = vector.load %arg23[%c0_151, %c0_152] : memref<128x64xf32, #tpu.memory_space<vmem>>, vector<128x64xf32>
    %125 = arith.addf %124, %123 : vector<128x64xf32>
    %c0_153 = arith.constant 0 : index
    %c0_154 = arith.constant 0 : index
    %126 = vector.load %arg23[%c0_153, %c0_154] : memref<128x64xf32, #tpu.memory_space<vmem>>, vector<128x64xf32>
    tpu.vector_store %arg23[%c0_153, %c0_154], %125 {strides = array<i32>} : memref<128x64xf32, #tpu.memory_space<vmem>>, vector<128x64xf32>,
    %127 = vector.extract_strided_slice %85 {offsets = [0, 1, 2, 0], sizes = [2, 8, 8, 32], strides = [1, 1, 1, 1]} : vector<2x10x10x32xf32> to vector<2x8x8x32xf32>
    %128 = vector.shape_cast %127 : vector<2x8x8x32xf32> to vector<128x32xf32>
    %c1_155 = arith.constant 1 : index
    %c2_156 = arith.constant 2 : index
    %c0_157 = arith.constant 0 : index
    %c0_158 = arith.constant 0 : index
    %129 = vector.load %arg3[%c1_155, %c2_156, %c0_157, %c0_158] : memref<3x3x32x64xf32, #tpu.memory_space<vmem>>, vector<1x1x32x64xf32>
    %130 = vector.shape_cast %129 : vector<1x1x32x64xf32> to vector<32x64xf32>
    %cst_159 = arith.constant dense<0.000000e+00> : vector<128x64xf32>
    %131 = tpu.matmul %128, %130, %cst_159 {dimension_numbers = #tpu.dot_dimension_numbers<[1], [0], [0], [1], [0, 0, 1, 1], [], []>} : vector<128x32xf32>, vector<32x64xf32>, vector<128x64xf32> -> vector<128x64xf32>
    %c0_160 = arith.constant 0 : index
    %c0_161 = arith.constant 0 : index
    %132 = vector.load %arg23[%c0_160, %c0_161] : memref<128x64xf32, #tpu.memory_space<vmem>>, vector<128x64xf32>
    %133 = arith.addf %132, %131 : vector<128x64xf32>
    %c0_162 = arith.constant 0 : index
    %c0_163 = arith.constant 0 : index
    %134 = vector.load %arg23[%c0_162, %c0_163] : memref<128x64xf32, #tpu.memory_space<vmem>>, vector<128x64xf32>
    tpu.vector_store %arg23[%c0_162, %c0_163], %133 {strides = array<i32>} : memref<128x64xf32, #tpu.memory_space<vmem>>, vector<128x64xf32>,
    %135 = vector.extract_strided_slice %85 {offsets = [0, 2, 0, 0], sizes = [2, 8, 8, 32], strides = [1, 1, 1, 1]} : vector<2x10x10x32xf32> to vector<2x8x8x32xf32>
    %136 = vector.shape_cast %135 : vector<2x8x8x32xf32> to vector<128x32xf32>
    %c2_164 = arith.constant 2 : index
    %c0_165 = arith.constant 0 : index
    %c0_166 = arith.constant 0 : index
    %c0_167 = arith.constant 0 : index
    %137 = vector.load %arg3[%c2_164, %c0_165, %c0_166, %c0_167] : memref<3x3x32x64xf32, #tpu.memory_space<vmem>>, vector<1x1x32x64xf32>
    %138 = vector.shape_cast %137 : vector<1x1x32x64xf32> to vector<32x64xf32>
    %cst_168 = arith.constant dense<0.000000e+00> : vector<128x64xf32>
    %139 = tpu.matmul %136, %138, %cst_168 {dimension_numbers = #tpu.dot_dimension_numbers<[1], [0], [0], [1], [0, 0, 1, 1], [], []>} : vector<128x32xf32>, vector<32x64xf32>, vector<128x64xf32> -> vector<128x64xf32>
    %c0_169 = arith.constant 0 : index
    %c0_170 = arith.constant 0 : index
    %140 = vector.load %arg23[%c0_169, %c0_170] : memref<128x64xf32, #tpu.memory_space<vmem>>, vector<128x64xf32>
    %141 = arith.addf %140, %139 : vector<128x64xf32>
    %c0_171 = arith.constant 0 : index
    %c0_172 = arith.constant 0 : index
    %142 = vector.load %arg23[%c0_171, %c0_172] : memref<128x64xf32, #tpu.memory_space<vmem>>, vector<128x64xf32>
    tpu.vector_store %arg23[%c0_171, %c0_172], %141 {strides = array<i32>} : memref<128x64xf32, #tpu.memory_space<vmem>>, vector<128x64xf32>,
    %143 = vector.extract_strided_slice %85 {offsets = [0, 2, 1, 0], sizes = [2, 8, 8, 32], strides = [1, 1, 1, 1]} : vector<2x10x10x32xf32> to vector<2x8x8x32xf32>
    %144 = vector.shape_cast %143 : vector<2x8x8x32xf32> to vector<128x32xf32>
    %c2_173 = arith.constant 2 : index
    %c1_174 = arith.constant 1 : index
    %c0_175 = arith.constant 0 : index
    %c0_176 = arith.constant 0 : index
    %145 = vector.load %arg3[%c2_173, %c1_174, %c0_175, %c0_176] : memref<3x3x32x64xf32, #tpu.memory_space<vmem>>, vector<1x1x32x64xf32>
    %146 = vector.shape_cast %145 : vector<1x1x32x64xf32> to vector<32x64xf32>
    %cst_177 = arith.constant dense<0.000000e+00> : vector<128x64xf32>
    %147 = tpu.matmul %144, %146, %cst_177 {dimension_numbers = #tpu.dot_dimension_numbers<[1], [0], [0], [1], [0, 0, 1, 1], [], []>} : vector<128x32xf32>, vector<32x64xf32>, vector<128x64xf32> -> vector<128x64xf32>
    %c0_178 = arith.constant 0 : index
    %c0_179 = arith.constant 0 : index
    %148 = vector.load %arg23[%c0_178, %c0_179] : memref<128x64xf32, #tpu.memory_space<vmem>>, vector<128x64xf32>
    %149 = arith.addf %148, %147 : vector<128x64xf32>
    %c0_180 = arith.constant 0 : index
    %c0_181 = arith.constant 0 : index
    %150 = vector.load %arg23[%c0_180, %c0_181] : memref<128x64xf32, #tpu.memory_space<vmem>>, vector<128x64xf32>
    tpu.vector_store %arg23[%c0_180, %c0_181], %149 {strides = array<i32>} : memref<128x64xf32, #tpu.memory_space<vmem>>, vector<128x64xf32>,
    %151 = vector.extract_strided_slice %85 {offsets = [0, 2, 2, 0], sizes = [2, 8, 8, 32], strides = [1, 1, 1, 1]} : vector<2x10x10x32xf32> to vector<2x8x8x32xf32>
    %152 = vector.shape_cast %151 : vector<2x8x8x32xf32> to vector<128x32xf32>
    %c2_182 = arith.constant 2 : index
    %c2_183 = arith.constant 2 : index
    %c0_184 = arith.constant 0 : index
    %c0_185 = arith.constant 0 : index
    %153 = vector.load %arg3[%c2_182, %c2_183, %c0_184, %c0_185] : memref<3x3x32x64xf32, #tpu.memory_space<vmem>>, vector<1x1x32x64xf32>
    %154 = vector.shape_cast %153 : vector<1x1x32x64xf32> to vector<32x64xf32>
    %cst_186 = arith.constant dense<0.000000e+00> : vector<128x64xf32>
    %155 = tpu.matmul %152, %154, %cst_186 {dimension_numbers = #tpu.dot_dimension_numbers<[1], [0], [0], [1], [0, 0, 1, 1], [], []>} : vector<128x32xf32>, vector<32x64xf32>, vector<128x64xf32> -> vector<128x64xf32>
    %c0_187 = arith.constant 0 : index
    %c0_188 = arith.constant 0 : index
    %156 = vector.load %arg23[%c0_187, %c0_188] : memref<128x64xf32, #tpu.memory_space<vmem>>, vector<128x64xf32>
    %157 = arith.addf %156, %155 : vector<128x64xf32>
    %c0_189 = arith.constant 0 : index
    %c0_190 = arith.constant 0 : index
    %158 = vector.load %arg23[%c0_189, %c0_190] : memref<128x64xf32, #tpu.memory_space<vmem>>, vector<128x64xf32>
    tpu.vector_store %arg23[%c0_189, %c0_190], %157 {strides = array<i32>} : memref<128x64xf32, #tpu.memory_space<vmem>>, vector<128x64xf32>,
    %c0_191 = arith.constant 0 : index
    %c0_192 = arith.constant 0 : index
    %159 = vector.load %arg23[%c0_191, %c0_192] : memref<128x64xf32, #tpu.memory_space<vmem>>, vector<128x64xf32>
    %cst_193 = arith.constant 0.000000e+00 : f32
    %160 = vector.broadcast %cst_193 : f32 to vector<128x64xf32>
    %161 = arith.maximumf %159, %160 : vector<128x64xf32>
    %cst_194 = arith.constant 0.000000e+00 : f32
    %162 = vector.broadcast %cst_194 : f32 to vector<2x10x10x64xf32>
    %c0_195 = arith.constant 0 : index
    %c0_196 = arith.constant 0 : index
    %c0_197 = arith.constant 0 : index
    %c0_198 = arith.constant 0 : index
    %163 = vector.load %arg21[%c0_195, %c0_196, %c0_197, %c0_198] : memref<2x10x10x64xf32, #tpu.memory_space<vmem>>, vector<2x10x10x64xf32>
    tpu.vector_store %arg21[%c0_195, %c0_196, %c0_197, %c0_198], %162 {strides = array<i32>} : memref<2x10x10x64xf32, #tpu.memory_space<vmem>>, vector<2x10x10x64xf32>,
    %164 = vector.shape_cast %161 : vector<128x64xf32> to vector<2x8x8x64xf32>
    %c0_199 = arith.constant 0 : index
    %c1_200 = arith.constant 1 : index
    %c1_201 = arith.constant 1 : index
    %c0_202 = arith.constant 0 : index
    %165 = vector.load %arg21[%c0_199, %c1_200, %c1_201, %c0_202] : memref<2x10x10x64xf32, #tpu.memory_space<vmem>>, vector<2x8x8x64xf32>
    tpu.vector_store %arg21[%c0_199, %c1_200, %c1_201, %c0_202], %164 {strides = array<i32>} : memref<2x10x10x64xf32, #tpu.memory_space<vmem>>, vector<2x8x8x64xf32>,
    %c0_203 = arith.constant 0 : index
    %c0_204 = arith.constant 0 : index
    %c0_205 = arith.constant 0 : index
    %c0_206 = arith.constant 0 : index
    %166 = vector.load %arg21[%c0_203, %c0_204, %c0_205, %c0_206] : memref<2x10x10x64xf32, #tpu.memory_space<vmem>>, vector<2x10x10x64xf32>
    %167 = vector.extract_strided_slice %166 {offsets = [0, 0, 0, 0], sizes = [2, 8, 8, 64], strides = [1, 1, 1, 1]} : vector<2x10x10x64xf32> to vector<2x8x8x64xf32>
    %168 = vector.shape_cast %167 : vector<2x8x8x64xf32> to vector<128x64xf32>
    %c0_207 = arith.constant 0 : index
    %c0_208 = arith.constant 0 : index
    %c0_209 = arith.constant 0 : index
    %c0_210 = arith.constant 0 : index
    %169 = vector.load %arg5[%c0_207, %c0_208, %c0_209, %c0_210] : memref<3x3x64x128xf32, #tpu.memory_space<vmem>>, vector<1x1x64x128xf32>
    %170 = vector.shape_cast %169 : vector<1x1x64x128xf32> to vector<64x128xf32>
    %cst_211 = arith.constant dense<0.000000e+00> : vector<128x128xf32>
    %171 = tpu.matmul %168, %170, %cst_211 {dimension_numbers = #tpu.dot_dimension_numbers<[1], [0], [0], [1], [0, 0, 1, 1], [], []>} : vector<128x64xf32>, vector<64x128xf32>, vector<128x128xf32> -> vector<128x128xf32>
    %c0_212 = arith.constant 0 : index
    %c0_213 = arith.constant 0 : index
    %172 = vector.load %arg6[%c0_212, %c0_213] : memref<1x128xf32, #tpu.memory_space<vmem>>, vector<1x128xf32>
    %173 = vector.broadcast %172 : vector<1x128xf32> to vector<128x128xf32>
    %174 = arith.addf %171, %173 : vector<128x128xf32>
    %c0_214 = arith.constant 0 : index
    %c0_215 = arith.constant 0 : index
    %175 = vector.load %arg24[%c0_214, %c0_215] : memref<128x128xf32, #tpu.memory_space<vmem>>, vector<128x128xf32>
    tpu.vector_store %arg24[%c0_214, %c0_215], %174 {strides = array<i32>} : memref<128x128xf32, #tpu.memory_space<vmem>>, vector<128x128xf32>,
    %176 = vector.extract_strided_slice %166 {offsets = [0, 0, 1, 0], sizes = [2, 8, 8, 64], strides = [1, 1, 1, 1]} : vector<2x10x10x64xf32> to vector<2x8x8x64xf32>
    %177 = vector.shape_cast %176 : vector<2x8x8x64xf32> to vector<128x64xf32>
    %c0_216 = arith.constant 0 : index
    %c1_217 = arith.constant 1 : index
    %c0_218 = arith.constant 0 : index
    %c0_219 = arith.constant 0 : index
    %178 = vector.load %arg5[%c0_216, %c1_217, %c0_218, %c0_219] : memref<3x3x64x128xf32, #tpu.memory_space<vmem>>, vector<1x1x64x128xf32>
    %179 = vector.shape_cast %178 : vector<1x1x64x128xf32> to vector<64x128xf32>
    %cst_220 = arith.constant dense<0.000000e+00> : vector<128x128xf32>
    %180 = tpu.matmul %177, %179, %cst_220 {dimension_numbers = #tpu.dot_dimension_numbers<[1], [0], [0], [1], [0, 0, 1, 1], [], []>} : vector<128x64xf32>, vector<64x128xf32>, vector<128x128xf32> -> vector<128x128xf32>
    %c0_221 = arith.constant 0 : index
    %c0_222 = arith.constant 0 : index
    %181 = vector.load %arg24[%c0_221, %c0_222] : memref<128x128xf32, #tpu.memory_space<vmem>>, vector<128x128xf32>
    %182 = arith.addf %181, %180 : vector<128x128xf32>
    %c0_223 = arith.constant 0 : index
    %c0_224 = arith.constant 0 : index
    %183 = vector.load %arg24[%c0_223, %c0_224] : memref<128x128xf32, #tpu.memory_space<vmem>>, vector<128x128xf32>
    tpu.vector_store %arg24[%c0_223, %c0_224], %182 {strides = array<i32>} : memref<128x128xf32, #tpu.memory_space<vmem>>, vector<128x128xf32>,
    %184 = vector.extract_strided_slice %166 {offsets = [0, 0, 2, 0], sizes = [2, 8, 8, 64], strides = [1, 1, 1, 1]} : vector<2x10x10x64xf32> to vector<2x8x8x64xf32>
    %185 = vector.shape_cast %184 : vector<2x8x8x64xf32> to vector<128x64xf32>
    %c0_225 = arith.constant 0 : index
    %c2_226 = arith.constant 2 : index
    %c0_227 = arith.constant 0 : index
    %c0_228 = arith.constant 0 : index
    %186 = vector.load %arg5[%c0_225, %c2_226, %c0_227, %c0_228] : memref<3x3x64x128xf32, #tpu.memory_space<vmem>>, vector<1x1x64x128xf32>
    %187 = vector.shape_cast %186 : vector<1x1x64x128xf32> to vector<64x128xf32>
    %cst_229 = arith.constant dense<0.000000e+00> : vector<128x128xf32>
    %188 = tpu.matmul %185, %187, %cst_229 {dimension_numbers = #tpu.dot_dimension_numbers<[1], [0], [0], [1], [0, 0, 1, 1], [], []>} : vector<128x64xf32>, vector<64x128xf32>, vector<128x128xf32> -> vector<128x128xf32>
    %c0_230 = arith.constant 0 : index
    %c0_231 = arith.constant 0 : index
    %189 = vector.load %arg24[%c0_230, %c0_231] : memref<128x128xf32, #tpu.memory_space<vmem>>, vector<128x128xf32>
    %190 = arith.addf %189, %188 : vector<128x128xf32>
    %c0_232 = arith.constant 0 : index
    %c0_233 = arith.constant 0 : index
    %191 = vector.load %arg24[%c0_232, %c0_233] : memref<128x128xf32, #tpu.memory_space<vmem>>, vector<128x128xf32>
    tpu.vector_store %arg24[%c0_232, %c0_233], %190 {strides = array<i32>} : memref<128x128xf32, #tpu.memory_space<vmem>>, vector<128x128xf32>,
    %192 = vector.extract_strided_slice %166 {offsets = [0, 1, 0, 0], sizes = [2, 8, 8, 64], strides = [1, 1, 1, 1]} : vector<2x10x10x64xf32> to vector<2x8x8x64xf32>
    %193 = vector.shape_cast %192 : vector<2x8x8x64xf32> to vector<128x64xf32>
    %c1_234 = arith.constant 1 : index
    %c0_235 = arith.constant 0 : index
    %c0_236 = arith.constant 0 : index
    %c0_237 = arith.constant 0 : index
    %194 = vector.load %arg5[%c1_234, %c0_235, %c0_236, %c0_237] : memref<3x3x64x128xf32, #tpu.memory_space<vmem>>, vector<1x1x64x128xf32>
    %195 = vector.shape_cast %194 : vector<1x1x64x128xf32> to vector<64x128xf32>
    %cst_238 = arith.constant dense<0.000000e+00> : vector<128x128xf32>
    %196 = tpu.matmul %193, %195, %cst_238 {dimension_numbers = #tpu.dot_dimension_numbers<[1], [0], [0], [1], [0, 0, 1, 1], [], []>} : vector<128x64xf32>, vector<64x128xf32>, vector<128x128xf32> -> vector<128x128xf32>
    %c0_239 = arith.constant 0 : index
    %c0_240 = arith.constant 0 : index
    %197 = vector.load %arg24[%c0_239, %c0_240] : memref<128x128xf32, #tpu.memory_space<vmem>>, vector<128x128xf32>
    %198 = arith.addf %197, %196 : vector<128x128xf32>
    %c0_241 = arith.constant 0 : index
    %c0_242 = arith.constant 0 : index
    %199 = vector.load %arg24[%c0_241, %c0_242] : memref<128x128xf32, #tpu.memory_space<vmem>>, vector<128x128xf32>
    tpu.vector_store %arg24[%c0_241, %c0_242], %198 {strides = array<i32>} : memref<128x128xf32, #tpu.memory_space<vmem>>, vector<128x128xf32>,
    %200 = vector.extract_strided_slice %166 {offsets = [0, 1, 1, 0], sizes = [2, 8, 8, 64], strides = [1, 1, 1, 1]} : vector<2x10x10x64xf32> to vector<2x8x8x64xf32>
    %201 = vector.shape_cast %200 : vector<2x8x8x64xf32> to vector<128x64xf32>
    %c1_243 = arith.constant 1 : index
    %c1_244 = arith.constant 1 : index
    %c0_245 = arith.constant 0 : index
    %c0_246 = arith.constant 0 : index
    %202 = vector.load %arg5[%c1_243, %c1_244, %c0_245, %c0_246] : memref<3x3x64x128xf32, #tpu.memory_space<vmem>>, vector<1x1x64x128xf32>
    %203 = vector.shape_cast %202 : vector<1x1x64x128xf32> to vector<64x128xf32>
    %cst_247 = arith.constant dense<0.000000e+00> : vector<128x128xf32>
    %204 = tpu.matmul %201, %203, %cst_247 {dimension_numbers = #tpu.dot_dimension_numbers<[1], [0], [0], [1], [0, 0, 1, 1], [], []>} : vector<128x64xf32>, vector<64x128xf32>, vector<128x128xf32> -> vector<128x128xf32>
    %c0_248 = arith.constant 0 : index
    %c0_249 = arith.constant 0 : index
    %205 = vector.load %arg24[%c0_248, %c0_249] : memref<128x128xf32, #tpu.memory_space<vmem>>, vector<128x128xf32>
    %206 = arith.addf %205, %204 : vector<128x128xf32>
    %c0_250 = arith.constant 0 : index
    %c0_251 = arith.constant 0 : index
    %207 = vector.load %arg24[%c0_250, %c0_251] : memref<128x128xf32, #tpu.memory_space<vmem>>, vector<128x128xf32>
    tpu.vector_store %arg24[%c0_250, %c0_251], %206 {strides = array<i32>} : memref<128x128xf32, #tpu.memory_space<vmem>>, vector<128x128xf32>,
    %208 = vector.extract_strided_slice %166 {offsets = [0, 1, 2, 0], sizes = [2, 8, 8, 64], strides = [1, 1, 1, 1]} : vector<2x10x10x64xf32> to vector<2x8x8x64xf32>
    %209 = vector.shape_cast %208 : vector<2x8x8x64xf32> to vector<128x64xf32>
    %c1_252 = arith.constant 1 : index
    %c2_253 = arith.constant 2 : index
    %c0_254 = arith.constant 0 : index
    %c0_255 = arith.constant 0 : index
    %210 = vector.load %arg5[%c1_252, %c2_253, %c0_254, %c0_255] : memref<3x3x64x128xf32, #tpu.memory_space<vmem>>, vector<1x1x64x128xf32>
    %211 = vector.shape_cast %210 : vector<1x1x64x128xf32> to vector<64x128xf32>
    %cst_256 = arith.constant dense<0.000000e+00> : vector<128x128xf32>
    %212 = tpu.matmul %209, %211, %cst_256 {dimension_numbers = #tpu.dot_dimension_numbers<[1], [0], [0], [1], [0, 0, 1, 1], [], []>} : vector<128x64xf32>, vector<64x128xf32>, vector<128x128xf32> -> vector<128x128xf32>
    %c0_257 = arith.constant 0 : index
    %c0_258 = arith.constant 0 : index
    %213 = vector.load %arg24[%c0_257, %c0_258] : memref<128x128xf32, #tpu.memory_space<vmem>>, vector<128x128xf32>
    %214 = arith.addf %213, %212 : vector<128x128xf32>
    %c0_259 = arith.constant 0 : index
    %c0_260 = arith.constant 0 : index
    %215 = vector.load %arg24[%c0_259, %c0_260] : memref<128x128xf32, #tpu.memory_space<vmem>>, vector<128x128xf32>
    tpu.vector_store %arg24[%c0_259, %c0_260], %214 {strides = array<i32>} : memref<128x128xf32, #tpu.memory_space<vmem>>, vector<128x128xf32>,
    %216 = vector.extract_strided_slice %166 {offsets = [0, 2, 0, 0], sizes = [2, 8, 8, 64], strides = [1, 1, 1, 1]} : vector<2x10x10x64xf32> to vector<2x8x8x64xf32>
    %217 = vector.shape_cast %216 : vector<2x8x8x64xf32> to vector<128x64xf32>
    %c2_261 = arith.constant 2 : index
    %c0_262 = arith.constant 0 : index
    %c0_263 = arith.constant 0 : index
    %c0_264 = arith.constant 0 : index
    %218 = vector.load %arg5[%c2_261, %c0_262, %c0_263, %c0_264] : memref<3x3x64x128xf32, #tpu.memory_space<vmem>>, vector<1x1x64x128xf32>
    %219 = vector.shape_cast %218 : vector<1x1x64x128xf32> to vector<64x128xf32>
    %cst_265 = arith.constant dense<0.000000e+00> : vector<128x128xf32>
    %220 = tpu.matmul %217, %219, %cst_265 {dimension_numbers = #tpu.dot_dimension_numbers<[1], [0], [0], [1], [0, 0, 1, 1], [], []>} : vector<128x64xf32>, vector<64x128xf32>, vector<128x128xf32> -> vector<128x128xf32>
    %c0_266 = arith.constant 0 : index
    %c0_267 = arith.constant 0 : index
    %221 = vector.load %arg24[%c0_266, %c0_267] : memref<128x128xf32, #tpu.memory_space<vmem>>, vector<128x128xf32>
    %222 = arith.addf %221, %220 : vector<128x128xf32>
    %c0_268 = arith.constant 0 : index
    %c0_269 = arith.constant 0 : index
    %223 = vector.load %arg24[%c0_268, %c0_269] : memref<128x128xf32, #tpu.memory_space<vmem>>, vector<128x128xf32>
    tpu.vector_store %arg24[%c0_268, %c0_269], %222 {strides = array<i32>} : memref<128x128xf32, #tpu.memory_space<vmem>>, vector<128x128xf32>,
    %224 = vector.extract_strided_slice %166 {offsets = [0, 2, 1, 0], sizes = [2, 8, 8, 64], strides = [1, 1, 1, 1]} : vector<2x10x10x64xf32> to vector<2x8x8x64xf32>
    %225 = vector.shape_cast %224 : vector<2x8x8x64xf32> to vector<128x64xf32>
    %c2_270 = arith.constant 2 : index
    %c1_271 = arith.constant 1 : index
    %c0_272 = arith.constant 0 : index
    %c0_273 = arith.constant 0 : index
    %226 = vector.load %arg5[%c2_270, %c1_271, %c0_272, %c0_273] : memref<3x3x64x128xf32, #tpu.memory_space<vmem>>, vector<1x1x64x128xf32>
    %227 = vector.shape_cast %226 : vector<1x1x64x128xf32> to vector<64x128xf32>
    %cst_274 = arith.constant dense<0.000000e+00> : vector<128x128xf32>
    %228 = tpu.matmul %225, %227, %cst_274 {dimension_numbers = #tpu.dot_dimension_numbers<[1], [0], [0], [1], [0, 0, 1, 1], [], []>} : vector<128x64xf32>, vector<64x128xf32>, vector<128x128xf32> -> vector<128x128xf32>
    %c0_275 = arith.constant 0 : index
    %c0_276 = arith.constant 0 : index
    %229 = vector.load %arg24[%c0_275, %c0_276] : memref<128x128xf32, #tpu.memory_space<vmem>>, vector<128x128xf32>
    %230 = arith.addf %229, %228 : vector<128x128xf32>
    %c0_277 = arith.constant 0 : index
    %c0_278 = arith.constant 0 : index
    %231 = vector.load %arg24[%c0_277, %c0_278] : memref<128x128xf32, #tpu.memory_space<vmem>>, vector<128x128xf32>
    tpu.vector_store %arg24[%c0_277, %c0_278], %230 {strides = array<i32>} : memref<128x128xf32, #tpu.memory_space<vmem>>, vector<128x128xf32>,
    %232 = vector.extract_strided_slice %166 {offsets = [0, 2, 2, 0], sizes = [2, 8, 8, 64], strides = [1, 1, 1, 1]} : vector<2x10x10x64xf32> to vector<2x8x8x64xf32>
    %233 = vector.shape_cast %232 : vector<2x8x8x64xf32> to vector<128x64xf32>
    %c2_279 = arith.constant 2 : index
    %c2_280 = arith.constant 2 : index
    %c0_281 = arith.constant 0 : index
    %c0_282 = arith.constant 0 : index
    %234 = vector.load %arg5[%c2_279, %c2_280, %c0_281, %c0_282] : memref<3x3x64x128xf32, #tpu.memory_space<vmem>>, vector<1x1x64x128xf32>
    %235 = vector.shape_cast %234 : vector<1x1x64x128xf32> to vector<64x128xf32>
    %cst_283 = arith.constant dense<0.000000e+00> : vector<128x128xf32>
    %236 = tpu.matmul %233, %235, %cst_283 {dimension_numbers = #tpu.dot_dimension_numbers<[1], [0], [0], [1], [0, 0, 1, 1], [], []>} : vector<128x64xf32>, vector<64x128xf32>, vector<128x128xf32> -> vector<128x128xf32>
    %c0_284 = arith.constant 0 : index
    %c0_285 = arith.constant 0 : index
    %237 = vector.load %arg24[%c0_284, %c0_285] : memref<128x128xf32, #tpu.memory_space<vmem>>, vector<128x128xf32>
    %238 = arith.addf %237, %236 : vector<128x128xf32>
    %c0_286 = arith.constant 0 : index
    %c0_287 = arith.constant 0 : index
    %239 = vector.load %arg24[%c0_286, %c0_287] : memref<128x128xf32, #tpu.memory_space<vmem>>, vector<128x128xf32>
    tpu.vector_store %arg24[%c0_286, %c0_287], %238 {strides = array<i32>} : memref<128x128xf32, #tpu.memory_space<vmem>>, vector<128x128xf32>,
    %c0_288 = arith.constant 0 : index
    %c0_289 = arith.constant 0 : index
    %240 = vector.load %arg24[%c0_288, %c0_289] : memref<128x128xf32, #tpu.memory_space<vmem>>, vector<128x128xf32>
    %cst_290 = arith.constant 0.000000e+00 : f32
    %241 = vector.broadcast %cst_290 : f32 to vector<128x128xf32>
    %242 = arith.maximumf %240, %241 : vector<128x128xf32>
    %243 = tpu.iota {dimensions = array<i32: 1>} : vector<2x128xi32>
    %244 = tpu.iota {dimensions = array<i32: 0>} : vector<2x128xi32>
    %c64_i32 = arith.constant 64 : i32
    %245 = vector.broadcast %c64_i32 : i32 to vector<2x128xi32>
    %246 = arith.muli %244, %245 : vector<2x128xi32>
    %247 = arith.cmpi sge, %243, %246 : vector<2x128xi32>
    %c64_i32_291 = arith.constant 64 : i32
    %248 = vector.broadcast %c64_i32_291 : i32 to vector<2x128xi32>
    %249 = arith.addi %246, %248 : vector<2x128xi32>
    %250 = arith.cmpi slt, %243, %249 : vector<2x128xi32>
    %251 = arith.andi %247, %250 : vector<2x128xi1>
    %252 = arith.extui %251 : vector<2x128xi1> to vector<2x128xi32>
    %253 = arith.sitofp %252 : vector<2x128xi32> to vector<2x128xf32>
    %c0_292 = arith.constant 0 : index
    %c0_293 = arith.constant 0 : index
    %254 = vector.load %arg7[%c0_292, %c0_293] : memref<128x4xf32, #tpu.memory_space<vmem>>, vector<128x4xf32>
    %cst_294 = arith.constant dense<0.000000e+00> : vector<128x4xf32>
    %255 = tpu.matmul %242, %254, %cst_294 {dimension_numbers = #tpu.dot_dimension_numbers<[1], [0], [0], [1], [0, 0, 1, 1], [], []>} : vector<128x128xf32>, vector<128x4xf32>, vector<128x4xf32> -> vector<128x4xf32>
    %c0_295 = arith.constant 0 : index
    %c0_296 = arith.constant 0 : index
    %256 = vector.load %arg8[%c0_295, %c0_296] : memref<1x4xf32, #tpu.memory_space<vmem>>, vector<1x4xf32>
    %257 = vector.broadcast %256 : vector<1x4xf32> to vector<128x4xf32>
    %258 = arith.addf %255, %257 : vector<128x4xf32>
    %cst_297 = arith.constant 0.000000e+00 : f32
    %259 = vector.broadcast %cst_297 : f32 to vector<128x4xf32>
    %260 = arith.maximumf %258, %259 : vector<128x4xf32>
    %261 = vector.extract_strided_slice %260 {offsets = [0, 0], sizes = [128, 1], strides = [1, 1]} : vector<128x4xf32> to vector<128x1xf32>
    %c0_298 = arith.constant 0 : index
    %c0_299 = arith.constant 0 : index
    %c0_300 = arith.constant 0 : index
    %262 = vector.load %arg9[%c0_298, %c0_299, %c0_300] : memref<4x128x64xf32, #tpu.memory_space<vmem>>, vector<1x128x64xf32>
    %263 = vector.shape_cast %262 : vector<1x128x64xf32> to vector<128x64xf32>
    %264 = vector.broadcast %261 : vector<128x1xf32> to vector<128x64xf32>
    %265 = arith.mulf %264, %263 : vector<128x64xf32>
    %266 = vector.extract_strided_slice %260 {offsets = [0, 1], sizes = [128, 1], strides = [1, 1]} : vector<128x4xf32> to vector<128x1xf32>
    %c1_301 = arith.constant 1 : index
    %c0_302 = arith.constant 0 : index
    %c0_303 = arith.constant 0 : index
    %267 = vector.load %arg9[%c1_301, %c0_302, %c0_303] : memref<4x128x64xf32, #tpu.memory_space<vmem>>, vector<1x128x64xf32>
    %268 = vector.shape_cast %267 : vector<1x128x64xf32> to vector<128x64xf32>
    %269 = vector.broadcast %266 : vector<128x1xf32> to vector<128x64xf32>
    %270 = arith.mulf %269, %268 : vector<128x64xf32>
    %271 = arith.addf %265, %270 : vector<128x64xf32>
    %272 = vector.extract_strided_slice %260 {offsets = [0, 2], sizes = [128, 1], strides = [1, 1]} : vector<128x4xf32> to vector<128x1xf32>
    %c2_304 = arith.constant 2 : index
    %c0_305 = arith.constant 0 : index
    %c0_306 = arith.constant 0 : index
    %273 = vector.load %arg9[%c2_304, %c0_305, %c0_306] : memref<4x128x64xf32, #tpu.memory_space<vmem>>, vector<1x128x64xf32>
    %274 = vector.shape_cast %273 : vector<1x128x64xf32> to vector<128x64xf32>
    %275 = vector.broadcast %272 : vector<128x1xf32> to vector<128x64xf32>
    %276 = arith.mulf %275, %274 : vector<128x64xf32>
    %277 = arith.addf %271, %276 : vector<128x64xf32>
    %278 = vector.extract_strided_slice %260 {offsets = [0, 3], sizes = [128, 1], strides = [1, 1]} : vector<128x4xf32> to vector<128x1xf32>
    %c3 = arith.constant 3 : index
    %c0_307 = arith.constant 0 : index
    %c0_308 = arith.constant 0 : index
    %279 = vector.load %arg9[%c3, %c0_307, %c0_308] : memref<4x128x64xf32, #tpu.memory_space<vmem>>, vector<1x128x64xf32>
    %280 = vector.shape_cast %279 : vector<1x128x64xf32> to vector<128x64xf32>
    %281 = vector.broadcast %278 : vector<128x1xf32> to vector<128x64xf32>
    %282 = arith.mulf %281, %280 : vector<128x64xf32>
    %283 = arith.addf %277, %282 : vector<128x64xf32>
    %cst_309 = arith.constant dense<0.000000e+00> : vector<2x64xf32>
    %284 = tpu.matmul %253, %283, %cst_309 {dimension_numbers = #tpu.dot_dimension_numbers<[1], [0], [0], [1], [0, 0, 1, 1], [], []>} : vector<2x128xf32>, vector<128x64xf32>, vector<2x64xf32> -> vector<2x64xf32>
    %c0_310 = arith.constant 0 : index
    %c0_311 = arith.constant 0 : index
    %285 = vector.load %arg10[%c0_310, %c0_311] : memref<1x64xf32, #tpu.memory_space<vmem>>, vector<1x64xf32>
    %286 = vector.broadcast %285 : vector<1x64xf32> to vector<2x64xf32>
    %287 = arith.addf %284, %286 : vector<2x64xf32>
    %cst_312 = arith.constant dense<0xFF800000> : vector<2xf32>
    %288 = vector.multi_reduction <maximumf>, %287, %cst_312 [1] : vector<2x64xf32> to vector<2xf32>
    %289 = vector.shape_cast %288 : vector<2xf32> to vector<2x1xf32>
    %290 = vector.broadcast %289 : vector<2x1xf32> to vector<2x64xf32>
    %291 = arith.subf %287, %290 : vector<2x64xf32>
    %292 = math.exp %291 : vector<2x64xf32>
    %cst_313 = arith.constant dense<0.000000e+00> : vector<2xf32>
    %293 = vector.multi_reduction <add>, %292, %cst_313 [1] : vector<2x64xf32> to vector<2xf32>
    %294 = vector.shape_cast %293 : vector<2xf32> to vector<2x1xf32>
    %295 = math.log %294 : vector<2x1xf32>
    %296 = vector.broadcast %295 : vector<2x1xf32> to vector<2x64xf32>
    %297 = arith.subf %291, %296 : vector<2x64xf32>
    %c0_314 = arith.constant 0 : index
    %c0_315 = arith.constant 0 : index
    %298 = vector.load %arg17[%c0_314, %c0_315] : memref<2x64xf32, #tpu.memory_space<vmem>>, vector<2x64xf32>
    tpu.vector_store %arg17[%c0_314, %c0_315], %297 {strides = array<i32>} : memref<2x64xf32, #tpu.memory_space<vmem>>, vector<2x64xf32>,
    %c0_316 = arith.constant 0 : index
    %c0_317 = arith.constant 0 : index
    %299 = vector.load %arg11[%c0_316, %c0_317] : memref<128x2xf32, #tpu.memory_space<vmem>>, vector<128x2xf32>
    %cst_318 = arith.constant dense<0.000000e+00> : vector<128x2xf32>
    %300 = tpu.matmul %242, %299, %cst_318 {dimension_numbers = #tpu.dot_dimension_numbers<[1], [0], [0], [1], [0, 0, 1, 1], [], []>} : vector<128x128xf32>, vector<128x2xf32>, vector<128x2xf32> -> vector<128x2xf32>
    %c0_319 = arith.constant 0 : index
    %c0_320 = arith.constant 0 : index
    %301 = vector.load %arg12[%c0_319, %c0_320] : memref<1x2xf32, #tpu.memory_space<vmem>>, vector<1x2xf32>
    %302 = vector.broadcast %301 : vector<1x2xf32> to vector<128x2xf32>
    %303 = arith.addf %300, %302 : vector<128x2xf32>
    %cst_321 = arith.constant 0.000000e+00 : f32
    %304 = vector.broadcast %cst_321 : f32 to vector<128x2xf32>
    %305 = arith.maximumf %303, %304 : vector<128x2xf32>
    %306 = vector.extract_strided_slice %305 {offsets = [0, 0], sizes = [128, 1], strides = [1, 1]} : vector<128x2xf32> to vector<128x1xf32>
    %c0_322 = arith.constant 0 : index
    %c0_323 = arith.constant 0 : index
    %c0_324 = arith.constant 0 : index
    %307 = vector.load %arg13[%c0_322, %c0_323, %c0_324] : memref<2x128x64xf32, #tpu.memory_space<vmem>>, vector<1x128x64xf32>
    %308 = vector.shape_cast %307 : vector<1x128x64xf32> to vector<128x64xf32>
    %309 = vector.broadcast %306 : vector<128x1xf32> to vector<128x64xf32>
    %310 = arith.mulf %309, %308 : vector<128x64xf32>
    %311 = vector.extract_strided_slice %305 {offsets = [0, 1], sizes = [128, 1], strides = [1, 1]} : vector<128x2xf32> to vector<128x1xf32>
    %c1_325 = arith.constant 1 : index
    %c0_326 = arith.constant 0 : index
    %c0_327 = arith.constant 0 : index
    %312 = vector.load %arg13[%c1_325, %c0_326, %c0_327] : memref<2x128x64xf32, #tpu.memory_space<vmem>>, vector<1x128x64xf32>
    %313 = vector.shape_cast %312 : vector<1x128x64xf32> to vector<128x64xf32>
    %314 = vector.broadcast %311 : vector<128x1xf32> to vector<128x64xf32>
    %315 = arith.mulf %314, %313 : vector<128x64xf32>
    %316 = arith.addf %310, %315 : vector<128x64xf32>
    %cst_328 = arith.constant dense<0.000000e+00> : vector<2x64xf32>
    %317 = tpu.matmul %253, %316, %cst_328 {dimension_numbers = #tpu.dot_dimension_numbers<[1], [0], [0], [1], [0, 0, 1, 1], [], []>} : vector<2x128xf32>, vector<128x64xf32>, vector<2x64xf32> -> vector<2x64xf32>
    %c0_329 = arith.constant 0 : index
    %c0_330 = arith.constant 0 : index
    %318 = vector.load %arg14[%c0_329, %c0_330] : memref<1x64xf32, #tpu.memory_space<vmem>>, vector<1x64xf32>
    %319 = vector.broadcast %318 : vector<1x64xf32> to vector<2x64xf32>
    %320 = arith.addf %317, %319 : vector<2x64xf32>
    %cst_331 = arith.constant 0.000000e+00 : f32
    %321 = vector.broadcast %cst_331 : f32 to vector<2x64xf32>
    %322 = arith.maximumf %320, %321 : vector<2x64xf32>
    %c0_332 = arith.constant 0 : index
    %c0_333 = arith.constant 0 : index
    %323 = vector.load %arg15[%c0_332, %c0_333] : memref<64x1xf32, #tpu.memory_space<vmem>>, vector<64x1xf32>
    %cst_334 = arith.constant dense<0.000000e+00> : vector<2x1xf32>
    %324 = tpu.matmul %322, %323, %cst_334 {dimension_numbers = #tpu.dot_dimension_numbers<[1], [0], [0], [1], [0, 0, 1, 1], [], []>} : vector<2x64xf32>, vector<64x1xf32>, vector<2x1xf32> -> vector<2x1xf32>
    %c0_335 = arith.constant 0 : index
    %c0_336 = arith.constant 0 : index
    %325 = vector.load %arg16[%c0_335, %c0_336] : memref<1x1xf32, #tpu.memory_space<vmem>>, vector<1x1xf32>
    %326 = vector.broadcast %325 : vector<1x1xf32> to vector<2x1xf32>
    %327 = arith.addf %324, %326 : vector<2x1xf32>
    %328 = math.tanh %327 : vector<2x1xf32>
    %c0_337 = arith.constant 0 : index
    %c0_338 = arith.constant 0 : index
    %329 = vector.load %arg18[%c0_337, %c0_338] : memref<2x1xf32, #tpu.memory_space<vmem>>, vector<2x1xf32>
    tpu.vector_store %arg18[%c0_337, %c0_338], %328 {strides = array<i32>} : memref<2x1xf32, #tpu.memory_space<vmem>>, vector<2x1xf32>,
    return
  }
}

</mosaic_0001>

<bundles_post_ra>
// kernel: network_forward.1
= control target key start
LH: loop header
LB: loop body
LE: loop exit
PB: predicated region body
PF: predicated region fallthrough
CT: control target
= control target key end

     0   :  { %s14545_s0 = inlined_call_operand.vmem [shape: f32[2,8,8,4], index: 0, kind: input, shape index: {}]   ;;  %s14546_s1 = inlined_call_operand.vmem [shape: f32[3,3,4,32], index: 1, kind: input, shape index: {}]   ;;  %s14547_s2 = inlined_call_operand.vmem [shape: f32[1,32], index: 2, kind: input, shape index: {}]   ;;  %s14548_s3 = inlined_call_operand.vmem [shape: f32[3,3,32,64], index: 3, kind: input, shape index: {}]   ;;  %s14549_s4 = inlined_call_operand.vmem [shape: f32[1,64], index: 4, kind: input, shape index: {}]   ;;  %s14550_s5 = inlined_call_operand.vmem [shape: f32[3,3,64,128], index: 5, kind: input, shape index: {}]   ;;  %s14551_s6 = inlined_call_operand.vmem [shape: f32[1,128], index: 6, kind: input, shape index: {}]   ;;  %s14552_s7 = inlined_call_operand.vmem [shape: f32[128,4], index: 7, kind: input, shape index: {}]   ;;  %s14553_s8 = inlined_call_operand.vmem [shape: f32[1,4], index: 8, kind: input, shape index: {}]   ;;  %s14554_s9 = inlined_call_operand.vmem [shape: f32[4,128,64], index: 9, kind: input, shape index: {}]   ;;  %s14555_s10 = inlined_call_operand.vmem [shape: f32[1,64], index: 10, kind: input, shape index: {}]   ;;  %s14556_s11 = inlined_call_operand.vmem [shape: f32[128,2], index: 11, kind: input, shape index: {}]   ;;  %s14557_s12 = inlined_call_operand.vmem [shape: f32[1,2], index: 12, kind: input, shape index: {}]   ;;  %s14558_s13 = inlined_call_operand.vmem [shape: f32[2,128,64], index: 13, kind: input, shape index: {}]   ;;  %s14559_s14 = inlined_call_operand.vmem [shape: f32[1,64], index: 14, kind: input, shape index: {}]   ;;  %s14560_s15 = inlined_call_operand.vmem [shape: f32[64,1], index: 15, kind: input, shape index: {}]   ;;  %s14561_s16 = inlined_call_operand.<no memory space> [shape: f32[1,1], index: 16, kind: input, shape index: {}]   ;;  %s14562_s17 = inlined_call_operand.hbm [shape: f32[2,64], index: 17, kind: output, shape index: {0}]   ;;  %s14563_s18 = inlined_call_operand.vmem [shape: f32[2,1], index: 18, kind: output, shape index: {1}]  }
   0x1   :  { %14570 = sst [smem:[#allocation12_spill]] %s14545_s0  ;;  %v24_v0 = vstv %s14561_s16 }
   0x2   :  { %14571 = sst [smem:[#allocation13_spill]] %s14546_s1  ;;  %25 = vst [vmem:[#allocation8] sm:$0x1] %v24_v0 }
   0x3   :  { %14572 = sst [smem:[#allocation14_spill]] %s14547_s2 }
   0x4   :  { %s14573_s0 = sld [smem:[#allocation13_spill]]  ;;  %vm232_vm0 = vcmask 1043456   ;;  %vm61_vm1 = vcmask 31744   ;;  %vm63_vm2 = vcmask 25600   ;;  %v10917_v2 = vmov 0.0   ;;  %s14574_s1 = sld [smem:[#allocation12_spill]] }
   0x5   :  { %62 = vst.msk [vmem:[#allocation2] sm:$0xff] %vm61_vm1, %v10917_v2  ;;  %65 = vst.msk [vmem:[#allocation2 + $0x10] sm:$0xff] %vm61_vm1, %v10917_v2 }
   0x6   :  { %67 = vst.msk [vmem:[#allocation2 + $0x20] sm:$0xff] %vm61_vm1, %v10917_v2  ;;  %69 = vst.msk [vmem:[#allocation2 + $0x30] sm:$0xff] %vm61_vm1, %v10917_v2 }
   0x7   :  { %71 = vst.msk [vmem:[#allocation2 + $0x40] sm:$0xff] %vm61_vm1, %v10917_v2  ;;  %73 = vst.msk [vmem:[#allocation2 + $0x50] sm:$0xff] %vm61_vm1, %v10917_v2 }
   0x8   :  { %75 = vst.msk [vmem:[#allocation2 + $0x60] sm:$0xff] %vm61_vm1, %v10917_v2  ;;  %77 = vst.msk [vmem:[#allocation2 + $0x70] sm:$0xff] %vm61_vm1, %v10917_v2 }
   0x9   :  { %79 = vst.msk [vmem:[#allocation2 + $0x80] sm:$0xff] %vm61_vm1, %v10917_v2  ;;  %81 = vst.msk [vmem:[#allocation2 + $0x90] sm:$0xff] %vm61_vm1, %v10917_v2 }
   0xa   :  { %v176_v1 = vld [vmem:[%s14573_s0] sm:$0xf]  ;;  %83 = vst.msk [vmem:[#allocation2 + $0xa0] sm:$0xff] %vm61_vm1, %v10917_v2  ;;  %85 = vst.msk [vmem:[#allocation2 + $0xb0] sm:$0xff] %vm61_vm1, %v10917_v2  ;;  %v7967_v4 = vld [vmem:[%s14573_s0 + $0x4] sm:$0xf] }
   0xb   :  { %9226 = vmatprep.subr.msk.mxu1 %vm232_vm0, %v176_v1  ;;  %87 = vst.msk [vmem:[#allocation2 + $0xc0] sm:$0xff] %vm61_vm1, %v10917_v2  ;;  %89 = vst.msk [vmem:[#allocation2 + $0xd0] sm:$0xff] %vm61_vm1, %v10917_v2  ;;  %v103_v3 = vld [vmem:[%s14574_s1] sm:$0xff]  ;;  %v104_v5 = vld [vmem:[%s14574_s1 + $0x8] sm:$0xff] }
   0xc   :  { %91 = vst.msk [vmem:[#allocation2 + $0xe0] sm:$0xff] %vm61_vm1, %v10917_v2  ;;  %93 = vst.msk [vmem:[#allocation2 + $0xf0] sm:$0xff] %vm61_vm1, %v10917_v2  ;;  %9227 = vmatpush3.msk.msra.mxu1 %vm232_vm0, %v176_v1  ;;  %v105_v6 = vld [vmem:[%s14574_s1 + $0x10] sm:$0xff]  ;;  %v106_v7 = vld [vmem:[%s14574_s1 + $0x18] sm:$0xff] }
   0xd   :  { %95 = vst.msk [vmem:[#allocation2 + $0x100] sm:$0xff] %vm61_vm1, %v10917_v2  ;;  %97 = vst.msk [vmem:[#allocation2 + $0x110] sm:$0xff] %vm61_vm1, %v10917_v2  ;;  %v107_v8 = vld [vmem:[%s14574_s1 + $0x20] sm:$0xff]  ;;  %9252 = vmatprep.subr.msk.mxu1 %vm232_vm0, %v7967_v4  ;;  %v108_v9 = vld [vmem:[%s14574_s1 + $0x28] sm:$0xff] }
   0xe   :  { %99 = vst.msk [vmem:[#allocation2 + $0x120] sm:$0xff] %vm61_vm1, %v10917_v2  ;;  %101 = vst.msk [vmem:[#allocation2 + $0x130] sm:$0xff] %vm61_vm1, %v10917_v2  ;;  %v109_v10 = vld [vmem:[%s14574_s1 + $0x30] sm:$0xff]  ;;  %v111_v11 = vld [vmem:[%s14574_s1 + $0x40] sm:$0xff] }
   0xf   :  { %66 = vst.msk [vmem:[#allocation2 + $0x18] sm:$0x3] %vm63_vm2, %v10917_v2  ;;  %64 = vst.msk [vmem:[#allocation2 + $0x8] sm:$0x3] %vm63_vm2, %v10917_v2  ;;  %v112_v12 = vld [vmem:[%s14574_s1 + $0x48] sm:$0xff]  ;;  %v113_v13 = vld [vmem:[%s14574_s1 + $0x50] sm:$0xff] }
  0x10   :  { %68 = vst.msk [vmem:[#allocation2 + $0x28] sm:$0x3] %vm63_vm2, %v10917_v2  ;;  %70 = vst.msk [vmem:[#allocation2 + $0x38] sm:$0x3] %vm63_vm2, %v10917_v2  ;;  %v114_v14 = vld [vmem:[%s14574_s1 + $0x58] sm:$0xff]  ;;  %v115_v15 = vld [vmem:[%s14574_s1 + $0x60] sm:$0xff] }
  0x11   :  { %72 = vst.msk [vmem:[#allocation2 + $0x48] sm:$0x3] %vm63_vm2, %v10917_v2  ;;  %74 = vst.msk [vmem:[#allocation2 + $0x58] sm:$0x3] %vm63_vm2, %v10917_v2  ;;  %v116_v16 = vld [vmem:[%s14574_s1 + $0x68] sm:$0xff]  ;;  %v117_v17 = vld [vmem:[%s14574_s1 + $0x70] sm:$0xff] }
  0x12   :  { %76 = vst.msk [vmem:[#allocation2 + $0x68] sm:$0x3] %vm63_vm2, %v10917_v2  ;;  %78 = vst.msk [vmem:[#allocation2 + $0x78] sm:$0x3] %vm63_vm2, %v10917_v2  ;;  %v11172_v18 = vld [vmem:[%s14573_s0 + $0x10] sm:$0xf] }
  0x13   :  { %80 = vst.msk [vmem:[#allocation2 + $0x88] sm:$0x3] %vm63_vm2, %v10917_v2  ;;  %82 = vst.msk [vmem:[#allocation2 + $0x98] sm:$0x3] %vm63_vm2, %v10917_v2  ;;  %9330 = vmatprep.subr.msk.mxu0 %vm232_vm0, %v11172_v18  ;;  %v110_v19 = vld [vmem:[%s14574_s1 + $0x38] sm:$0xff] }
  0x14   :  { %84 = vst.msk [vmem:[#allocation2 + $0xa8] sm:$0x3] %vm63_vm2, %v10917_v2  ;;  %86 = vst.msk [vmem:[#allocation2 + $0xb8] sm:$0x3] %vm63_vm2, %v10917_v2  ;;  %v118_v20 = vld [vmem:[%s14574_s1 + $0x78] sm:$0xff] }
  0x15   :  { %88 = vst.msk [vmem:[#allocation2 + $0xc8] sm:$0x3] %vm63_vm2, %v10917_v2  ;;  %90 = vst.msk [vmem:[#allocation2 + $0xd8] sm:$0x3] %vm63_vm2, %v10917_v2 }
  0x16   :  { %92 = vst.msk [vmem:[#allocation2 + $0xe8] sm:$0x3] %vm63_vm2, %v10917_v2  ;;  %94 = vst.msk [vmem:[#allocation2 + $0xf8] sm:$0x3] %vm63_vm2, %v10917_v2 }
  0x17   :  { %96 = vst.msk [vmem:[#allocation2 + $0x108] sm:$0x3] %vm63_vm2, %v10917_v2  ;;  %98 = vst.msk [vmem:[#allocation2 + $0x118] sm:$0x3] %vm63_vm2, %v10917_v2 }
  0x18   :  { %100 = vst.msk [vmem:[#allocation2 + $0x128] sm:$0x3] %vm63_vm2, %v10917_v2  ;;  %102 = vst.msk [vmem:[#allocation2 + $0x138] sm:$0x3] %vm63_vm2, %v10917_v2 }
  0x19   :  { %120 = vst.msk [vmem:[#allocation2 + $0x11] sm:$0xff] %vm61_vm1, %v103_v3  ;;  %121 = vst.msk [vmem:[#allocation2 + $0x21] sm:$0xff] %vm61_vm1, %v104_v5 }
  0x1a   :  { %122 = vst.msk [vmem:[#allocation2 + $0x31] sm:$0xff] %vm61_vm1, %v105_v6  ;;  %123 = vst.msk [vmem:[#allocation2 + $0x41] sm:$0xff] %vm61_vm1, %v106_v7 }
  0x1b   :  { %124 = vst.msk [vmem:[#allocation2 + $0x51] sm:$0xff] %vm61_vm1, %v107_v8  ;;  %125 = vst.msk [vmem:[#allocation2 + $0x61] sm:$0xff] %vm61_vm1, %v108_v9 }
  0x1c   :  { %126 = vst.msk [vmem:[#allocation2 + $0x71] sm:$0xff] %vm61_vm1, %v109_v10  ;;  %128 = vst.msk [vmem:[#allocation2 + $0xb1] sm:$0xff] %vm61_vm1, %v111_v11 }
  0x1d   :  { %129 = vst.msk [vmem:[#allocation2 + $0xc1] sm:$0xff] %vm61_vm1, %v112_v12  ;;  %130 = vst.msk [vmem:[#allocation2 + $0xd1] sm:$0xff] %vm61_vm1, %v113_v13 }
  0x1e   :  { %131 = vst.msk [vmem:[#allocation2 + $0xe1] sm:$0xff] %vm61_vm1, %v114_v14  ;;  %132 = vst.msk [vmem:[#allocation2 + $0xf1] sm:$0xff] %vm61_vm1, %v115_v15 }
  0x1f   :  { %133 = vst.msk [vmem:[#allocation2 + $0x101] sm:$0xff] %vm61_vm1, %v116_v16  ;;  %134 = vst.msk [vmem:[#allocation2 + $0x111] sm:$0xff] %vm61_vm1, %v117_v17 }
  0x20   :  { %26 = vsyncpa [#allocation10], 0  ;;  %v11182_v21 = vld [vmem:[#allocation2] sm:$0xff]  ;;  %9331 = vmatpush3.msk.msra.mxu0 %vm232_vm0, %v11172_v18  ;;  %127 = vst.msk [vmem:[#allocation2 + $0x81] sm:$0xff] %vm61_vm1, %v110_v19  ;;  %v11190_v22 = vld [vmem:[#allocation2 + $0x10] sm:$0xff]  ;;  %vm414_vm3 = vcmask 1046528  }
  0x21   :  { %135 = vst.msk [vmem:[#allocation2 + $0x121] sm:$0xff] %vm61_vm1, %v118_v20  ;;  %9228 = vmatprep.mubr.msk.f32.mxu1 %vm61_vm1, %v11182_v21  ;;  %v11192_v23 = vld [vmem:[#allocation2 + $0x20] sm:$0xff]  ;;  %v11197_v24 = vld [vmem:[%s14573_s0 + $0x8] sm:$0xf]  ;;  %v11204_v25 = vld [vmem:[#allocation2 + $0x30] sm:$0xff]  ;;  %v418_v27 = vrot.slane %v11190_v22, 1 }
  0x22   :  { %9229 = vmatmul.mubr.msk.f32.vlgmr.msra.gmra.mrb[0].mxu1 %vm61_vm1, %v11190_v22  ;;  %v11206_v26 = vld [vmem:[#allocation2 + $0x40] sm:$0xff]  ;;  %v11211_v28 = vld [vmem:[#allocation2 + $0x50] sm:$0xff]  ;;  %v421_v29 = vrot.slane %v11192_v23, 1  ;;  %v11216_v30 = vld [vmem:[#allocation2 + $0x18] sm:$0x3]  ;;  %v424_v35 = vrot.slane %v11204_v25, 1 }
  0x23   :  { %9253 = vmatpush3.msk.msra.mxu1 %vm232_vm0, %v7967_v4  ;;  %9231 = vmatprep.mubr.msk.f32.mxu1 %vm61_vm1, %v11192_v23  ;;  %v11218_v31 = vld [vmem:[#allocation2 + $0x28] sm:$0x3]  ;;  %v11220_v32 = vld [vmem:[#allocation2 + $0x38] sm:$0x3]  ;;  %v419_v33 = vrot.slane %v11216_v30, 1  ;;  %v11230_v38 = vld [vmem:[#allocation2 + $0x60] sm:$0xff] }
  0x24   :  { %9278 = vmatprep.subr.msk.mxu1 %vm232_vm0, %v11197_v24  ;;  %v422_v34 = vrot.slane %v11218_v31, 1  ;;  %v425_v36 = vrot.slane %v11220_v32, 1  ;;  %v11228_v37 = vld [vmem:[#allocation2 + $0x48] sm:$0x3]  ;;  %v11232_v39 = vld [vmem:[#allocation2 + $0x58] sm:$0x3] }
  0x25   :  { %v420_v40 = vsel %vm414_vm3, %v418_v27, %v419_v33  ;;  %v427_v42 = vrot.slane %v11206_v26, 1  ;;  %v428_v43 = vrot.slane %v11228_v37, 1  ;;  %v11245_v44 = vld [vmem:[#allocation2 + $0x70] sm:$0xff]  ;;  %v430_v46 = vrot.slane %v11211_v28, 1  ;;  %v11252_v48 = vld [vmem:[#allocation2 + $0x68] sm:$0x3] }
  0x26   :  { %9232 = vmatmul.mubr.msk.f32.gmra.mrb[2].mxu1 %vm61_vm1, %v11204_v25  ;;  %v11238_v41 = vsel %vm414_vm3, %v421_v29, %v422_v34  ;;  %9332 = vmatprep.mubr.msk.f32.mxu0 %vm61_vm1, %v420_v40  ;;  %v11248_v45 = vsel %vm414_vm3, %v424_v35, %v425_v36  ;;  %v431_v47 = vrot.slane %v11232_v39, 1  ;;  %v11256_v49 = vld [vmem:[#allocation2 + $0xa0] sm:$0xff]  ;;  %v433_v51 = vrot.slane %v11230_v38, 1  ;;  %v11269_v53 = vld [vmem:[#allocation2 + $0xb0] sm:$0xff]  ;;  %v8057_v57 = vld [vmem:[%s14573_s0 + $0x18] sm:$0xf] }
  0x27   :  { %9234 = vmatprep.mubr.msk.f32.mxu1 %vm61_vm1, %v11206_v26  ;;  %9333 = vmatmul.mubr.msk.f32.vlgmr.msra.gmra.mrb[0].mxu0 %vm61_vm1, %v11238_v41  ;;  %v11263_v50 = vsel %vm414_vm3, %v427_v42, %v428_v43  ;;  %v434_v52 = vrot.slane %v11252_v48, 1  ;;  %v11276_v55 = vld [vmem:[#allocation2 + $0xc0] sm:$0xff]  ;;  %v11290_v58 = vld [vmem:[#allocation2 + $0xd0] sm:$0xff]  ;;  %v11299_v60 = vld [vmem:[#allocation2 + $0x8] sm:$0x3]  ;;  %v415_v62 = vrot.slane %v11182_v21, 1 }
  0x28   :  { %9335 = vmatprep.mubr.msk.f32.mxu0 %vm61_vm1, %v11248_v45  ;;  %v11272_v54 = vsel %vm414_vm3, %v430_v46, %v431_v47  ;;  %v11294_v59 = vld [vmem:[#allocation2 + $0xe0] sm:$0xff]  ;;  %9382 = vmatprep.subr.msk.mxu0 %vm232_vm0, %v8057_v57  ;;  %v11306_v61 = vld [vmem:[#allocation2 + $0xf0] sm:$0xff]  ;;  %v416_v0 = vrot.slane %v11299_v60, 1  ;;  %v11338_v5 = vld [vmem:[%s14573_s0 + $0xc] sm:$0xf]  ;;  %v436_v9 = vrot.slane %v11245_v44, 1 }
  0x29   :  { %v11283_v56 = vsel %vm414_vm3, %v433_v51, %v434_v52  ;;  %9383 = vmatpush3.msk.msra.mxu0 %vm232_vm0, %v8057_v57  ;;  %v11311_v63 = vld [vmem:[#allocation2 + $0x100] sm:$0xff]  ;;  %v11320_v1 = vld [vmem:[#allocation2 + $0x110] sm:$0xff]  ;;  %v11351_v7 = vld [vmem:[#allocation2 + $0x78] sm:$0x3]  ;;  %v439_v11 = vrot.slane %v11256_v49, 1  ;;  %v442_v16 = vrot.slane %v11269_v53, 1 }
  0x2a   :  { %9235 = vmatmul.mubr.msk.f32.gmra.mrb[4].mxu1 %vm61_vm1, %v11211_v28  ;;  %v417_v3 = vsel %vm414_vm3, %v415_v62, %v416_v0  ;;  %v8093_v4 = vld [vmem:[%s14573_s0 + $0x20] sm:$0xf]  ;;  %v11355_v8 = vld [vmem:[#allocation2 + $0xa8] sm:$0x3]  ;;  %v437_v10 = vrot.slane %v11351_v7, 1  ;;  %v11371_v15 = vld [vmem:[#allocation2 + $0x90] sm:$0xff] }
  0x2b   :  { %9237 = vmatprep.mubr.msk.f32.mxu1 %vm61_vm1, %v11230_v38  ;;  %9336 = vmatmul.mubr.msk.f32.gmra.mrb[2].mxu0 %vm61_vm1, %v11263_v50  ;;  %v11340_v6 = vld [vmem:[#allocation2 + $0x80] sm:$0xff]  ;;  %v440_v12 = vrot.slane %v11355_v8, 1  ;;  %v11365_v13 = vld [vmem:[#allocation2 + $0xb8] sm:$0x3]  ;;  %v11367_v14 = vld [vmem:[#allocation2 + $0xc8] sm:$0x3] }
  0x2c   :  { %9338 = vmatprep.mubr.msk.f32.mxu0 %vm61_vm1, %v11272_v54  ;;  %9434 = vmatprep.subr.msk.mxu0 %vm232_vm0, %v8093_v4  ;;  %v11377_v17 = vsel %vm414_vm3, %v436_v9, %v437_v10  ;;  %v443_v19 = vrot.slane %v11365_v13, 1  ;;  %v446_v27 = vrot.slane %v11367_v14, 1  ;;  %v11385_v29 = vld [vmem:[#allocation2 + $0xd8] sm:$0x3]  ;;  %v11389_v33 = vld [vmem:[#allocation2 + $0xe8] sm:$0x3] }
  0x2d   :  { %v441_v20 = vsel %vm414_vm3, %v439_v11, %v440_v12  ;;  %v448_v35 = vrot.slane %v11290_v58, 1  ;;  %v449_v36 = vrot.slane %v11385_v29, 1  ;;  %v451_v42 = vrot.slane %v11294_v59, 1  ;;  %v11406_v46 = vld [vmem:[#allocation2 + $0xf8] sm:$0x3]  ;;  %s14575_s23 = sld [smem:[#allocation14_spill]] }
  0x2e   :  { %9238 = vmatmul.mubr.msk.f32.gmra.mrb[6].mxu1 %vm61_vm1, %v11245_v44  ;;  %v11395_v34 = vsel %vm414_vm3, %v442_v16, %v443_v19  ;;  %v452_v43 = vrot.slane %v11389_v33, 1  ;;  %v11410_v47 = vld [vmem:[#allocation2 + $0x108] sm:$0x3]  ;;  %v454_v52 = vrot.slane %v11306_v61, 1  ;;  %v455_v57 = vrot.slane %v11406_v46, 1  ;;  %v11443_v19 = vld [vmem:[#allocation2 + $0x120] sm:$0xff] }
  0x2f   :  { %9240 = vmatprep.mubr.msk.f32.mxu1 %vm61_vm1, %v11256_v49  ;;  %9339 = vmatmul.mubr.msk.f32.gmra.mrb[4].mxu0 %vm61_vm1, %v11283_v56  ;;  %v11417_v51 = vsel %vm414_vm3, %v448_v35, %v449_v36  ;;  %v457_v0 = vrot.slane %v11311_v63, 1  ;;  %v460_v9 = vrot.slane %v11320_v1, 1  ;;  %v700_v12 = vrot.slane %v11192_v23, 2 }
  0x30   :  { %9384 = vmatprep.mubr.msk.f32.mxu0 %vm61_vm1, %v11192_v23  ;;  %v11424_v62 = vsel %vm414_vm3, %v451_v42, %v452_v43  ;;  %v11438_v10 = vsel %vm414_vm3, %v454_v52, %v455_v57  ;;  %v701_v16 = vrot.slane %v11218_v31, 2  ;;  %vm693_vm4 = vcmask 1045504   ;;  %v11460_v42 = vld [vmem:[#allocation2 + $0x130] sm:$0xff] }
  0x31   :  { %v697_v35 = vrot.slane %v11190_v22, 2  ;;  %v698_v31 = vrot.slane %v11216_v30, 2  ;;  %v703_v36 = vrot.slane %v11204_v25, 2  ;;  %v706_v52 = vrot.slane %v11206_v26, 2 }
  0x32   :  { %9241 = vmatmul.mubr.msk.f32.gmra.mrb[8].mxu1 %vm61_vm1, %v11269_v53  ;;  %v11468_v43 = vsel %vm693_vm4, %v700_v12, %v701_v16  ;;  %v707_v57 = vrot.slane %v11228_v37, 2  ;;  %v155_v37 = vld [vmem:[#allocation2 + $0x98] sm:$0x3]  ;;  %v710_v12 = vrot.slane %v11232_v39, 2  ;;  %vm381_vm5 = vcmask 261120  }
  0x33   :  { %9243 = vmatprep.mubr.msk.f32.mxu1 %vm61_vm1, %v11276_v55  ;;  %9385 = vmatmul.mubr.msk.f32.vlgmr.msra.gmra.mrb[6].mxu0 %vm61_vm1, %v11204_v25  ;;  %v1801_v16 = vrot.slane %v155_v37, 1  ;;  %2248 = vst.msk [vmem:[#allocation3] sm:$0xff] %vm381_vm5, %v10917_v2  ;;  %2251 = vst.msk [vmem:[#allocation3 + $0x10] sm:$0xff] %vm381_vm5, %v10917_v2  ;;  %vm2249_vm6 = vcmask 254976   ;;  %vm2550_vm7 = vcmask 523264   ;;  %vm4416_vm8 = vcmask 517120  }
  0x34   :  { %9387 = vmatprep.mubr.msk.f32.mxu0 %vm61_vm1, %v11206_v26  ;;  %9435 = vmatpush3.msk.msra.mxu0 %vm232_vm0, %v8093_v4  ;;  %v11428_v4 = vld [vmem:[#allocation2 + $0x118] sm:$0x3]  ;;  %2253 = vst.msk [vmem:[#allocation3 + $0x20] sm:$0xff] %vm381_vm5, %v10917_v2  ;;  %2255 = vst.msk [vmem:[#allocation3 + $0x30] sm:$0xff] %vm381_vm5, %v10917_v2  ;;  %vm10923_vm9 = vmmov 0  }
  0x35   :  { %v461_v11 = vrot.slane %v11428_v4, 1  ;;  %2257 = vst.msk [vmem:[#allocation3 + $0x40] sm:$0xff] %vm381_vm5, %v10917_v2  ;;  %2259 = vst.msk [vmem:[#allocation3 + $0x50] sm:$0xff] %vm381_vm5, %v10917_v2 }
  0x36   :  { %9244 = vmatmul.mubr.msk.f32.gmra.mrb[10].mxu1 %vm61_vm1, %v11290_v58  ;;  %2261 = vst.msk [vmem:[#allocation3 + $0x60] sm:$0xff] %vm381_vm5, %v10917_v2  ;;  %2263 = vst.msk [vmem:[#allocation3 + $0x70] sm:$0xff] %vm381_vm5, %v10917_v2 }
  0x37   :  { %9246 = vmatprep.mubr.msk.f32.mxu1 %vm61_vm1, %v11294_v59  ;;  %9388 = vmatmul.mubr.msk.f32.gmra.mrb[8].mxu0 %vm61_vm1, %v11211_v28  ;;  %2265 = vst.msk [vmem:[#allocation3 + $0x80] sm:$0xff] %vm381_vm5, %v10917_v2  ;;  %2267 = vst.msk [vmem:[#allocation3 + $0x90] sm:$0xff] %vm381_vm5, %v10917_v2 }
  0x38   :  { %9390 = vmatprep.mubr.msk.f32.mxu0 %vm61_vm1, %v11230_v38  ;;  %2269 = vst.msk [vmem:[#allocation3 + $0xa0] sm:$0xff] %vm381_vm5, %v10917_v2  ;;  %2271 = vst.msk [vmem:[#allocation3 + $0xb0] sm:$0xff] %vm381_vm5, %v10917_v2 }
  0x39   :  { %2273 = vst.msk [vmem:[#allocation3 + $0xc0] sm:$0xff] %vm381_vm5, %v10917_v2  ;;  %2275 = vst.msk [vmem:[#allocation3 + $0xd0] sm:$0xff] %vm381_vm5, %v10917_v2 }
  0x3a   :  { %9247 = vmatmul.mubr.msk.f32.gmra.mrb[12].mxu1 %vm61_vm1, %v11306_v61  ;;  %2277 = vst.msk [vmem:[#allocation3 + $0xe0] sm:$0xff] %vm381_vm5, %v10917_v2  ;;  %2279 = vst.msk [vmem:[#allocation3 + $0xf0] sm:$0xff] %vm381_vm5, %v10917_v2 }
  0x3b   :  { %9249 = vmatprep.mubr.msk.f32.mxu1 %vm61_vm1, %v11311_v63  ;;  %9391 = vmatmul.mubr.msk.f32.gmra.mrb[10].mxu0 %vm61_vm1, %v11245_v44  ;;  %2281 = vst.msk [vmem:[#allocation3 + $0x100] sm:$0xff] %vm381_vm5, %v10917_v2  ;;  %2283 = vst.msk [vmem:[#allocation3 + $0x110] sm:$0xff] %vm381_vm5, %v10917_v2 }
  0x3c   :  { %9393 = vmatprep.mubr.msk.f32.mxu0 %vm61_vm1, %v11340_v6  ;;  %2285 = vst.msk [vmem:[#allocation3 + $0x120] sm:$0xff] %vm381_vm5, %v10917_v2  ;;  %2287 = vst.msk [vmem:[#allocation3 + $0x130] sm:$0xff] %vm381_vm5, %v10917_v2 }
  0x3d   :  { %2252 = vst.msk [vmem:[#allocation3 + $0x18] sm:$0x3] %vm2249_vm6, %v10917_v2  ;;  %2250 = vst.msk [vmem:[#allocation3 + $0x8] sm:$0x3] %vm2249_vm6, %v10917_v2 }
  0x3e   :  { %9250 = vmatmul.mubr.msk.f32.gmra.mrb[14].mxu1 %vm61_vm1, %v11320_v1  ;;  %2254 = vst.msk [vmem:[#allocation3 + $0x28] sm:$0x3] %vm2249_vm6, %v10917_v2  ;;  %2256 = vst.msk [vmem:[#allocation3 + $0x38] sm:$0x3] %vm2249_vm6, %v10917_v2 }
  0x3f   :  { %9254 = vmatprep.mubr.msk.f32.mxu1 %vm61_vm1, %v417_v3  ;;  %9394 = vmatmul.mubr.msk.f32.gmra.mrb[12].mxu0 %vm61_vm1, %v11371_v15  ;;  %v458_v3 = vrot.slane %v11410_v47, 1  ;;  %2258 = vst.msk [vmem:[#allocation3 + $0x48] sm:$0x3] %vm2249_vm6, %v10917_v2  ;;  %2260 = vst.msk [vmem:[#allocation3 + $0x58] sm:$0x3] %vm2249_vm6, %v10917_v2 }
  0x40   :  { %9396 = vmatprep.mubr.msk.f32.mxu0 %vm61_vm1, %v11276_v55  ;;  %2262 = vst.msk [vmem:[#allocation3 + $0x68] sm:$0x3] %vm2249_vm6, %v10917_v2  ;;  %2264 = vst.msk [vmem:[#allocation3 + $0x78] sm:$0x3] %vm2249_vm6, %v10917_v2 }
  0x41   :  { %2266 = vst.msk [vmem:[#allocation3 + $0x88] sm:$0x3] %vm2249_vm6, %v10917_v2  ;;  %2268 = vst.msk [vmem:[#allocation3 + $0x98] sm:$0x3] %vm2249_vm6, %v10917_v2 }
  0x42   :  { %9255 = vmatmul.mubr.msk.f32.vlgmr.msra.gmra.mrb[16].mxu1 %vm61_vm1, %v420_v40  ;;  %2270 = vst.msk [vmem:[#allocation3 + $0xa8] sm:$0x3] %vm2249_vm6, %v10917_v2  ;;  %2272 = vst.msk [vmem:[#allocation3 + $0xb8] sm:$0x3] %vm2249_vm6, %v10917_v2 }
  0x43   :  { %9279 = vmatpush3.msk.msra.mxu1 %vm232_vm0, %v11197_v24  ;;  %9257 = vmatprep.mubr.msk.f32.mxu1 %vm61_vm1, %v11238_v41  ;;  %v445_v24 = vrot.slane %v11276_v55, 1  ;;  %2274 = vst.msk [vmem:[#allocation3 + $0xc8] sm:$0x3] %vm2249_vm6, %v10917_v2  ;;  %2276 = vst.msk [vmem:[#allocation3 + $0xd8] sm:$0x3] %vm2249_vm6, %v10917_v2 }
  0x44   :  { %9304 = vmatprep.subr.msk.mxu1 %vm232_vm0, %v11338_v5  ;;  %9397 = vmatmul.mubr.msk.f32.gmra.mrb[14].mxu0 %vm61_vm1, %v11290_v58  ;;  %2278 = vst.msk [vmem:[#allocation3 + $0xe8] sm:$0x3] %vm2249_vm6, %v10917_v2  ;;  %2280 = vst.msk [vmem:[#allocation3 + $0xf8] sm:$0x3] %vm2249_vm6, %v10917_v2 }
  0x45   :  { %v11402_v40 = vsel %vm414_vm3, %v445_v24, %v446_v27  ;;  %9399 = vmatprep.mubr.msk.f32.mxu0 %vm61_vm1, %v11294_v59  ;;  %v11449_v24 = vsel %vm414_vm3, %v457_v0, %v458_v3  ;;  %v695_v27 = vrot.slane %v11299_v60, 2  ;;  %v11465_v60 = vsel %vm414_vm3, %v460_v9, %v461_v11  ;;  %2282 = vst.msk [vmem:[#allocation3 + $0x108] sm:$0x3] %vm2249_vm6, %v10917_v2 }
  0x46   :  { %9258 = vmatmul.mubr.msk.f32.gmra.mrb[18].mxu1 %vm61_vm1, %v11248_v45  ;;  %v11481_v0 = vsel %vm693_vm4, %v697_v35, %v698_v31  ;;  %v11488_v9 = vsel %vm693_vm4, %v706_v52, %v707_v57  ;;  %v709_v11 = vrot.slane %v11211_v28, 2  ;;  %v716_v31 = vrot.slane %v11351_v7, 2  ;;  %2284 = vst.msk [vmem:[#allocation3 + $0x118] sm:$0x3] %vm2249_vm6, %v10917_v2  ;;  %2286 = vst.msk [vmem:[#allocation3 + $0x128] sm:$0x3] %vm2249_vm6, %v10917_v2 }
  0x47   :  { %9260 = vmatprep.mubr.msk.f32.mxu1 %vm61_vm1, %v11263_v50  ;;  %v2008_v7 = vrot.slane %v11371_v15, 2  ;;  %v718_v57 = vrot.slane %v11256_v49, 2  ;;  %v721_v49 = vrot.slane %v11269_v53, 2  ;;  %2288 = vst.msk [vmem:[#allocation3 + $0x138] sm:$0x3] %vm2249_vm6, %v10917_v2 }
  0x48   :  { %9400 = vmatmul.mubr.msk.f32.gmra.mrb[16].mxu0 %vm61_vm1, %v11306_v61  ;;  %v11508_v39 = vsel %vm693_vm4, %v709_v11, %v710_v12  ;;  %v724_v11 = vrot.slane %v11276_v55, 2  ;;  %v725_v12 = vrot.slane %v11367_v14, 2  ;;  %v727_v14 = vrot.slane %v11290_v58, 2  ;;  %4415 = vst.msk [vmem:[#allocation4] sm:$0xff] %vm2550_vm7, %v10917_v2  ;;  %4418 = vst.msk [vmem:[#allocation4 + $0x10] sm:$0xff] %vm2550_vm7, %v10917_v2 }
  0x49   :  { %9402 = vmatprep.mubr.msk.f32.mxu0 %vm61_vm1, %v11311_v63  ;;  %4420 = vst.msk [vmem:[#allocation4 + $0x20] sm:$0xff] %vm2550_vm7, %v10917_v2  ;;  %4422 = vst.msk [vmem:[#allocation4 + $0x30] sm:$0xff] %vm2550_vm7, %v10917_v2 }
  0x4a   :  { %9261 = vmatmul.mubr.msk.f32.gmra.mrb[20].mxu1 %vm61_vm1, %v11272_v54  ;;  %4424 = vst.msk [vmem:[#allocation4 + $0x40] sm:$0xff] %vm2550_vm7, %v10917_v2  ;;  %4426 = vst.msk [vmem:[#allocation4 + $0x50] sm:$0xff] %vm2550_vm7, %v10917_v2 }
  0x4b   :  { %9263 = vmatprep.mubr.msk.f32.mxu1 %vm61_vm1, %v11283_v56  ;;  %4428 = vst.msk [vmem:[#allocation4 + $0x60] sm:$0xff] %vm2550_vm7, %v10917_v2  ;;  %4430 = vst.msk [vmem:[#allocation4 + $0x70] sm:$0xff] %vm2550_vm7, %v10917_v2 }
  0x4c   :  { %9403 = vmatmul.mubr.msk.f32.gmra.mrb[18].mxu0 %vm61_vm1, %v11320_v1  ;;  %4432 = vst.msk [vmem:[#allocation4 + $0x80] sm:$0xff] %vm2550_vm7, %v10917_v2  ;;  %4434 = vst.msk [vmem:[#allocation4 + $0x90] sm:$0xff] %vm2550_vm7, %v10917_v2 }
  0x4d   :  { %9405 = vmatprep.mubr.msk.f32.mxu0 %vm61_vm1, %v11443_v19  ;;  %4436 = vst.msk [vmem:[#allocation4 + $0xa0] sm:$0xff] %vm2550_vm7, %v10917_v2  ;;  %4438 = vst.msk [vmem:[#allocation4 + $0xb0] sm:$0xff] %vm2550_vm7, %v10917_v2 }
  0x4e   :  { %9264 = vmatmul.mubr.msk.f32.gmra.mrb[22].mxu1 %vm61_vm1, %v11377_v17  ;;  %4440 = vst.msk [vmem:[#allocation4 + $0xc0] sm:$0xff] %vm2550_vm7, %v10917_v2  ;;  %4442 = vst.msk [vmem:[#allocation4 + $0xd0] sm:$0xff] %vm2550_vm7, %v10917_v2 }
  0x4f   :  { %9266 = vmatprep.mubr.msk.f32.mxu1 %vm61_vm1, %v441_v20  ;;  %v694_v20 = vrot.slane %v11182_v21, 2  ;;  %v704_v21 = vrot.slane %v11220_v32, 2  ;;  %v1800_v32 = vrot.slane %v11371_v15, 1  ;;  %v2009_v15 = vrot.slane %v155_v37, 2  ;;  %4444 = vst.msk [vmem:[#allocation4 + $0xe0] sm:$0xff] %vm2550_vm7, %v10917_v2  ;;  %4446 = vst.msk [vmem:[#allocation4 + $0xf0] sm:$0xff] %vm2550_vm7, %v10917_v2 }
  0x50   :  { %9406 = vmatmul.mubr.msk.f32.gmra.mrb[20].mxu0 %vm61_vm1, %v11460_v42  ;;  %4448 = vst.msk [vmem:[#allocation4 + $0x100] sm:$0xff] %vm2550_vm7, %v10917_v2  ;;  %4450 = vst.msk [vmem:[#allocation4 + $0x110] sm:$0xff] %vm2550_vm7, %v10917_v2 }
  0x51   :  { %v696_v30 = vsel %vm693_vm4, %v694_v20, %v695_v27  ;;  %9436 = vmatprep.mubr.msk.f32.mxu0 %vm61_vm1, %v11468_v43  ;;  %v11484_v3 = vsel %vm693_vm4, %v703_v36, %v704_v21  ;;  %v712_v20 = vrot.slane %v11230_v38, 2  ;;  %v713_v27 = vrot.slane %v11252_v48, 2  ;;  %v11512_v36 = vld [vmem:[#allocation2 + $0x88] sm:$0x3]  ;;  %4452 = vst.msk [vmem:[#allocation4 + $0x120] sm:$0xff] %vm2550_vm7, %v10917_v2  ;;  %4454 = vst.msk [vmem:[#allocation4 + $0x130] sm:$0xff] %vm2550_vm7, %v10917_v2 }
  0x52   :  { %9267 = vmatmul.mubr.msk.f32.gmra.mrb[24].mxu1 %vm61_vm1, %v11395_v34  ;;  %v11499_v35 = vsel %vm414_vm3, %v1800_v32, %v1801_v16  ;;  %v715_v48 = vrot.slane %v11245_v44, 2  ;;  %v1387_v52 = vrot.slane %v11512_v36, 2  ;;  %v719_v32 = vrot.slane %v11355_v8, 2  ;;  %4419 = vst.msk [vmem:[#allocation4 + $0x18] sm:$0x3] %vm4416_vm8, %v10917_v2 }
  0x53   :  { %9269 = vmatprep.mubr.msk.f32.mxu1 %vm61_vm1, %v11402_v40  ;;  %v11515_v21 = vsel %vm693_vm4, %v712_v20, %v713_v27  ;;  %v722_v8 = vrot.slane %v11365_v13, 2  ;;  %v2010_v20 = vsel %vm693_vm4, %v2008_v7, %v2009_v15  ;;  %v728_v27 = vrot.slane %v11385_v29, 2  ;;  %4417 = vst.msk [vmem:[#allocation4 + $0x8] sm:$0x3] %vm4416_vm8, %v10917_v2  ;;  %4421 = vst.msk [vmem:[#allocation4 + $0x28] sm:$0x3] %vm4416_vm8, %v10917_v2 }
  0x54   :  { %9437 = vmatmul.mubr.msk.f32.vlgmr.msra.gmra.mrb[22].mxu0 %vm61_vm1, %v11484_v3  ;;  %v720_v37 = vsel %vm693_vm4, %v718_v57, %v719_v32  ;;  %v1803_v13 = vrot.slane %v11460_v42, 1  ;;  %v734_v57 = vrot.slane %v11406_v46, 2  ;;  %v737_v15 = vrot.slane %v11410_v47, 2  ;;  %4423 = vst.msk [vmem:[#allocation4 + $0x38] sm:$0x3] %vm4416_vm8, %v10917_v2 }
  0x55   :  { %9439 = vmatprep.mubr.msk.f32.mxu0 %vm61_vm1, %v11488_v9  ;;  %v11566_v29 = vsel %vm693_vm4, %v721_v49, %v722_v8  ;;  %v11570_v7 = vsel %vm693_vm4, %v727_v14, %v728_v27  ;;  %v739_v47 = vrot.slane %v11320_v1, 2  ;;  %v740_v8 = vrot.slane %v11428_v4, 2  ;;  %4425 = vst.msk [vmem:[#allocation4 + $0x48] sm:$0x3] %vm4416_vm8, %v10917_v2  ;;  %4427 = vst.msk [vmem:[#allocation4 + $0x58] sm:$0x3] %vm4416_vm8, %v10917_v2 }
  0x56   :  { %9270 = vmatmul.mubr.msk.f32.gmra.mrb[26].mxu1 %vm61_vm1, %v11417_v51  ;;  %v1389_v27 = vrot.slane %v11443_v19, 2  ;;  %v2011_v4 = vrot.slane %v11460_v42, 2  ;;  %4429 = vst.msk [vmem:[#allocation4 + $0x68] sm:$0x3] %vm4416_vm8, %v10917_v2  ;;  %4431 = vst.msk [vmem:[#allocation4 + $0x78] sm:$0x3] %vm4416_vm8, %v10917_v2 }
  0x57   :  { %9272 = vmatprep.mubr.msk.f32.mxu1 %vm61_vm1, %v11424_v62  ;;  %4433 = vst.msk [vmem:[#allocation4 + $0x88] sm:$0x3] %vm4416_vm8, %v10917_v2  ;;  %4435 = vst.msk [vmem:[#allocation4 + $0x98] sm:$0x3] %vm4416_vm8, %v10917_v2 }
  0x58   :  { %9440 = vmatmul.mubr.msk.f32.gmra.mrb[24].mxu0 %vm61_vm1, %v11508_v39  ;;  %4437 = vst.msk [vmem:[#allocation4 + $0xa8] sm:$0x3] %vm4416_vm8, %v10917_v2  ;;  %4439 = vst.msk [vmem:[#allocation4 + $0xb8] sm:$0x3] %vm4416_vm8, %v10917_v2 }
  0x59   :  { %9442 = vmatprep.mubr.msk.f32.mxu0 %vm61_vm1, %v11515_v21  ;;  %4441 = vst.msk [vmem:[#allocation4 + $0xc8] sm:$0x3] %vm4416_vm8, %v10917_v2  ;;  %4443 = vst.msk [vmem:[#allocation4 + $0xd8] sm:$0x3] %vm4416_vm8, %v10917_v2 }
  0x5a   :  { %9273 = vmatmul.mubr.msk.f32.gmra.mrb[28].mxu1 %vm61_vm1, %v11438_v10  ;;  %4445 = vst.msk [vmem:[#allocation4 + $0xe8] sm:$0x3] %vm4416_vm8, %v10917_v2  ;;  %4447 = vst.msk [vmem:[#allocation4 + $0xf8] sm:$0x3] %vm4416_vm8, %v10917_v2 }
  0x5b   :  { %9275 = vmatprep.mubr.msk.f32.mxu1 %vm61_vm1, %v11449_v24  ;;  %4449 = vst.msk [vmem:[#allocation4 + $0x108] sm:$0x3] %vm4416_vm8, %v10917_v2  ;;  %4451 = vst.msk [vmem:[#allocation4 + $0x118] sm:$0x3] %vm4416_vm8, %v10917_v2 }
  0x5c   :  { %4453 = vst.msk [vmem:[#allocation4 + $0x128] sm:$0x3] %vm4416_vm8, %v10917_v2  ;;  %4455 = vst.msk [vmem:[#allocation4 + $0x138] sm:$0x3] %vm4416_vm8, %v10917_v2 }
  0x5e   :  { %9276 = vmatmul.mubr.msk.f32.gmra.mrb[30].mxu1 %vm61_vm1, %v11465_v60 }
  0x5f   :  { %9280 = vmatprep.mubr.msk.f32.mxu1 %vm61_vm1, %v696_v30  ;;  %v11532_v30 = vsel %vm693_vm4, %v715_v48, %v716_v31  ;;  %v11555_v48 = vsel %vm693_vm4, %v724_v11, %v725_v12  ;;  %v730_v31 = vrot.slane %v11294_v59, 2  ;;  %v736_v12 = vrot.slane %v11311_v63, 2 }
  0x60   :  { %9443 = vmatmul.mubr.msk.f32.gmra.mrb[26].mxu0 %vm61_vm1, %v11532_v30 }
  0x61   :  { %v11598_v14 = vsel %vm693_vm4, %v736_v12, %v737_v15 }
  0x62   :  { %9281 = vmatmul.mubr.msk.f32.vlgmr.msra.gmra.mrb[32].mxu1 %vm61_vm1, %v11481_v0 }
  0x63   :  { %9305 = vmatpush3.msk.msra.mxu1 %vm232_vm0, %v11338_v5  ;;  %9283 = vmatprep.mubr.msk.f32.mxu1 %vm61_vm1, %v11468_v43  ;;  %v1386_v5 = vrot.slane %v11340_v6, 2 }
  0x64   :  { %10649 = vmatprep.subr.msk.mxu1 %vm232_vm0, %v11172_v18 }
  0x65   :  { %v11538_v16 = vsel %vm693_vm4, %v1386_v5, %v1387_v52  ;;  %v731_v5 = vrot.slane %v11389_v33, 2  ;;  %v175_v52 = vld [vmem:[#allocation2 + $0x138] sm:$0x3]  ;;  %v733_v33 = vrot.slane %v11306_v61, 2 }
  0x66   :  { %9284 = vmatmul.mubr.msk.f32.gmra.mrb[34].mxu1 %vm61_vm1, %v11484_v3  ;;  %9445 = vmatprep.mubr.msk.f32.mxu0 %vm61_vm1, %v11538_v16  ;;  %v1804_v32 = vrot.slane %v175_v52, 1 }
  0x67   :  { %9286 = vmatprep.mubr.msk.f32.mxu1 %vm61_vm1, %v11488_v9  ;;  %9446 = vmatmul.mubr.msk.f32.gmra.mrb[28].mxu0 %vm61_vm1, %v2010_v20  ;;  %v11575_v11 = vsel %vm693_vm4, %v730_v31, %v731_v5  ;;  %v11591_v46 = vsel %vm693_vm4, %v733_v33, %v734_v57  ;;  %v11595_v20 = vld [vmem:[#allocation2 + $0x128] sm:$0x3]  ;;  %v11612_v31 = vsel %vm693_vm4, %v739_v47, %v740_v8  ;;  %v2012_v5 = vrot.slane %v175_v52, 2  ;;  %v8039_v52 = vld [vmem:[%s14573_s0 + $0x14] sm:$0xf] }
  0x68   :  { %9448 = vmatprep.mubr.msk.f32.mxu0 %vm61_vm1, %v11555_v48  ;;  %v11582_v49 = vsel %vm414_vm3, %v1803_v13, %v1804_v32 }
  0x69   :  { %v2013_v13 = vsel %vm693_vm4, %v2011_v4, %v2012_v5 }
  0x6a   :  { %9287 = vmatmul.mubr.msk.f32.gmra.mrb[36].mxu1 %vm61_vm1, %v11508_v39 }
  0x6b   :  { %9289 = vmatprep.mubr.msk.f32.mxu1 %vm61_vm1, %v11515_v21  ;;  %9449 = vmatmul.mubr.msk.f32.gmra.mrb[30].mxu0 %vm61_vm1, %v11570_v7 }
  0x6c   :  { %9451 = vmatprep.mubr.msk.f32.mxu0 %vm61_vm1, %v11575_v11 }
  0x6e   :  { %9290 = vmatmul.mubr.msk.f32.gmra.mrb[38].mxu1 %vm61_vm1, %v11532_v30 }
  0x6f   :  { %9292 = vmatprep.mubr.msk.f32.mxu1 %vm61_vm1, %v720_v37  ;;  %v1390_v37 = vrot.slane %v11595_v20, 2  ;;  %9452 = vmatmul.mubr.msk.f32.gmra.mrb[32].mxu0 %vm61_vm1, %v11591_v46 }
  0x70   :  { %9454 = vmatprep.mubr.msk.f32.mxu0 %vm61_vm1, %v11598_v14 }
  0x71   :  { %v11655_v42 = vsel %vm693_vm4, %v1389_v27, %v1390_v37 }
  0x72   :  { %9293 = vmatmul.mubr.msk.f32.gmra.mrb[40].mxu1 %vm61_vm1, %v11566_v29 }
  0x73   :  { %9295 = vmatprep.mubr.msk.f32.mxu1 %vm61_vm1, %v11555_v48  ;;  %9455 = vmatmul.mubr.msk.f32.gmra.mrb[34].mxu0 %vm61_vm1, %v11612_v31 }
  0x74   :  { %9457 = vmatprep.mubr.msk.f32.mxu0 %vm61_vm1, %v11655_v42 }
  0x76   :  { %9296 = vmatmul.mubr.msk.f32.gmra.mrb[42].mxu1 %vm61_vm1, %v11570_v7 }
  0x77   :  { %9298 = vmatprep.mubr.msk.f32.mxu1 %vm61_vm1, %v11575_v11  ;;  %9458 = vmatmul.mubr.msk.f32.gmra.mrb[36].mxu0 %vm61_vm1, %v2013_v13 }
  0x7a   :  { %9299 = vmatmul.mubr.msk.f32.gmra.mrb[44].mxu1 %vm61_vm1, %v11591_v46 }
  0x7b   :  { %9301 = vmatprep.mubr.msk.f32.mxu1 %vm61_vm1, %v11598_v14 }
  0x7e   :  { %9302 = vmatmul.mubr.msk.f32.gmra.mrb[46].mxu1 %vm61_vm1, %v11612_v31 }
  0x7f   :  { %9306 = vmatprep.mubr.msk.f32.mxu1 %vm61_vm1, %v11190_v22  ;;  %v1179_v22 = vrot.slane %v11512_v36, 1 }
  0x82   :  { %9307 = vmatmul.mubr.msk.f32.vlgmr.msra.gmra.mrb[48].mxu1 %vm61_vm1, %v11192_v23 }
  0x83   :  { %10650 = vmatpush3.msk.msra.mxu1 %vm232_vm0, %v11172_v18  ;;  %9309 = vmatprep.mubr.msk.f32.mxu1 %vm61_vm1, %v11204_v25  ;;  %v1178_v18 = vrot.slane %v11340_v6, 1  ;;  %v8075_v25 = vld [vmem:[%s14573_s0 + $0x1c] sm:$0xf] }
  0x84   :  { %9356 = vmatprep.subr.msk.mxu1 %vm232_vm0, %v8039_v52 }
  0x85   :  { %v1180_v23 = vsel %vm414_vm3, %v1178_v18, %v1179_v22 }
  0x86   :  { %9310 = vmatmul.mubr.msk.f32.gmra.mrb[50].mxu1 %vm61_vm1, %v11206_v26  ;;  %v1181_v26 = vrot.slane %v11443_v19, 1 }
  0x87   :  { %9312 = vmatprep.mubr.msk.f32.mxu1 %vm61_vm1, %v11211_v28  ;;  %v1182_v28 = vrot.slane %v11595_v20, 1 }
  0x8a   :  { %9313 = vmatmul.mubr.msk.f32.gmra.mrb[52].mxu1 %vm61_vm1, %v11230_v38  ;;  %v1183_v38 = vsel %vm414_vm3, %v1181_v26, %v1182_v28 }
  0x8b   :  { %9315 = vmatprep.mubr.msk.f32.mxu1 %vm61_vm1, %v11245_v44 }
  0x8e   :  { %9316 = vmatmul.mubr.msk.f32.gmra.mrb[54].mxu1 %vm61_vm1, %v11340_v6 }
  0x8f   :  { %9318 = vmatprep.mubr.msk.f32.mxu1 %vm61_vm1, %v11269_v53 }
  0x92   :  { %9319 = vmatmul.mubr.msk.f32.gmra.mrb[56].mxu1 %vm61_vm1, %v11276_v55 }
  0x93   :  { %9321 = vmatprep.mubr.msk.f32.mxu1 %vm61_vm1, %v11290_v58 }
  0x96   :  { %9322 = vmatmul.mubr.msk.f32.gmra.mrb[58].mxu1 %vm61_vm1, %v11294_v59 }
  0x97   :  { %9324 = vmatprep.mubr.msk.f32.mxu1 %vm61_vm1, %v11306_v61 }
  0x9a   :  { %9325 = vmatmul.mubr.msk.f32.gmra.mrb[60].mxu1 %vm61_vm1, %v11311_v63 }
  0x9b   :  { %9327 = vmatprep.mubr.msk.f32.mxu1 %vm61_vm1, %v11320_v1 }
  0x9e   :  { %9328 = vmatmul.mubr.msk.f32.gmra.mrb[62].mxu1 %vm61_vm1, %v11443_v19 }
  0x9f   :  { %9341 = vmatprep.mubr.msk.f32.mxu1 %vm61_vm1, %v11377_v17 }
  0xa2   :  { %9342 = vmatmul.mubr.msk.f32.vlgmr.msra.gmra.mrb[64].mxu1 %vm61_vm1, %v1180_v23 }
  0xa3   :  { %9357 = vmatpush3.msk.msra.mxu1 %vm232_vm0, %v8039_v52  ;;  %9344 = vmatprep.mubr.msk.f32.mxu1 %vm61_vm1, %v11395_v34 }
  0xa4   :  { %9408 = vmatprep.subr.msk.mxu1 %vm232_vm0, %v8075_v25 }
  0xa6   :  { %9345 = vmatmul.mubr.msk.f32.gmra.mrb[66].mxu1 %vm61_vm1, %v11402_v40 }
  0xa7   :  { %9347 = vmatprep.mubr.msk.f32.mxu1 %vm61_vm1, %v11417_v51 }
  0xaa   :  { %9348 = vmatmul.mubr.msk.f32.gmra.mrb[68].mxu1 %vm61_vm1, %v11424_v62 }
  0xab   :  { %9350 = vmatprep.mubr.msk.f32.mxu1 %vm61_vm1, %v11438_v10 }
  0xae   :  { %9351 = vmatmul.mubr.msk.f32.gmra.mrb[70].mxu1 %vm61_vm1, %v11449_v24 }
  0xaf   :  { %9353 = vmatprep.mubr.msk.f32.mxu1 %vm61_vm1, %v11465_v60 }
  0xb2   :  { %9354 = vmatmul.mubr.msk.f32.gmra.mrb[72].mxu1 %vm61_vm1, %v1183_v38 }
  0xb3   :  { %9358 = vmatprep.mubr.msk.f32.mxu1 %vm61_vm1, %v11481_v0 }
  0xb6   :  { %9359 = vmatmul.mubr.msk.f32.vlgmr.msra.gmra.mrb[74].mxu1 %vm61_vm1, %v11468_v43 }
  0xb7   :  { %9409 = vmatpush3.msk.msra.mxu1 %vm232_vm0, %v8075_v25  ;;  %9361 = vmatprep.mubr.msk.f32.mxu1 %vm61_vm1, %v11484_v3 }
  0xba   :  { %9362 = vmatmul.mubr.msk.f32.gmra.mrb[76].mxu1 %vm61_vm1, %v11488_v9 }
  0xbb   :  { %9364 = vmatprep.mubr.msk.f32.mxu1 %vm61_vm1, %v11508_v39 }
  0xbe   :  { %9365 = vmatmul.mubr.msk.f32.gmra.mrb[78].mxu1 %vm61_vm1, %v11515_v21 }
  0xbf   :  { %9367 = vmatprep.mubr.msk.f32.mxu1 %vm61_vm1, %v11532_v30 }
  0xc2   :  { %9368 = vmatmul.mubr.msk.f32.gmra.mrb[80].mxu1 %vm61_vm1, %v11538_v16 }
  0xc3   :  { %9370 = vmatprep.mubr.msk.f32.mxu1 %vm61_vm1, %v11566_v29 }
  0xc6   :  { %9371 = vmatmul.mubr.msk.f32.gmra.mrb[82].mxu1 %vm61_vm1, %v11555_v48 }
  0xc7   :  { %9373 = vmatprep.mubr.msk.f32.mxu1 %vm61_vm1, %v11570_v7 }
  0xca   :  { %9374 = vmatmul.mubr.msk.f32.gmra.mrb[84].mxu1 %vm61_vm1, %v11575_v11 }
  0xcb   :  { %9376 = vmatprep.mubr.msk.f32.mxu1 %vm61_vm1, %v11591_v46 }
  0xce   :  { %9377 = vmatmul.mubr.msk.f32.gmra.mrb[86].mxu1 %vm61_vm1, %v11598_v14 }
  0xcf   :  { %9379 = vmatprep.mubr.msk.f32.mxu1 %vm61_vm1, %v11612_v31 }
  0xd2   :  { %9380 = vmatmul.mubr.msk.f32.gmra.mrb[88].mxu1 %vm61_vm1, %v11655_v42 }
  0xd3   :  { %9410 = vmatprep.mubr.msk.f32.mxu1 %vm61_vm1, %v11238_v41  ;;  %v7949_v41 = vld [vmem:[%s14575_s23] ss:$0 sm:$0xff] }
  0xd6   :  { %9411 = vmatmul.mubr.msk.f32.vlgmr.msra.gmra.mrb[90].mxu1 %vm61_vm1, %v11248_v45 }
  0xd7   :  { %9413 = vmatprep.mubr.msk.f32.mxu1 %vm61_vm1, %v11263_v50 }
  0xda   :  { %9414 = vmatmul.mubr.msk.f32.gmra.mrb[92].mxu1 %vm61_vm1, %v11272_v54 }
  0xdb   :  { %9416 = vmatprep.mubr.msk.f32.mxu1 %vm61_vm1, %v11283_v56 }
  0xde   :  { %9417 = vmatmul.mubr.msk.f32.gmra.mrb[94].mxu1 %vm61_vm1, %v11377_v17 }
  0xdf   :  { %9419 = vmatprep.mubr.msk.f32.mxu1 %vm61_vm1, %v1180_v23 }
  0xe2   :  { %9420 = vmatmul.mubr.msk.f32.gmra.mrb[96].mxu1 %vm61_vm1, %v11499_v35 }
  0xe3   :  { %9422 = vmatprep.mubr.msk.f32.mxu1 %vm61_vm1, %v11402_v40 }
  0xe6   :  { %9423 = vmatmul.mubr.msk.f32.gmra.mrb[98].mxu1 %vm61_vm1, %v11417_v51 }
  0xe7   :  { %9425 = vmatprep.mubr.msk.f32.mxu1 %vm61_vm1, %v11424_v62 }
  0xea   :  { %9426 = vmatmul.mubr.msk.f32.gmra.mrb[100].mxu1 %vm61_vm1, %v11438_v10 }
  0xeb   :  { %9428 = vmatprep.mubr.msk.f32.mxu1 %vm61_vm1, %v11449_v24 }
  0xee   :  { %9429 = vmatmul.mubr.msk.f32.gmra.mrb[102].mxu1 %vm61_vm1, %v11465_v60 }
  0xef   :  { %9431 = vmatprep.mubr.msk.f32.mxu1 %vm61_vm1, %v1183_v38 }
  0xf2   :  { %9432 = vmatmul.mubr.msk.f32.gmra.mrb[104].mxu1 %vm61_vm1, %v11582_v49 }
  0xf5   :  { %v9230_v44 = vpop.f32.mrb[0].mxu1 }
  0xf6   :  { %v308_v45 = vadd.f32 %v9230_v44, %v7949_v41  ;;  %v302_v50 = vpop.f32.mrb[1].mxu1 }
  0xf7   :  { %v303_v53 = vadd.f32 %v7949_v41, %v302_v50 }
  0xf8   :  { %383 = vst.msk [vmem:[#allocation5 + $0x8] sm:$0xff] %vm381_vm5, %v308_v45 }
  0xf9   :  { %382 = vst.msk [vmem:[#allocation5] sm:$0xff] %vm381_vm5, %v303_v53  ;;  %v9233_v54 = vpop.f32.mrb[2].mxu1 }
  0xfa   :  { %v318_v55 = vadd.f32 %v9233_v54, %v7949_v41  ;;  %v312_v56 = vpop.f32.mrb[3].mxu1  ;;  %v11806_v1 = vpop.f32.mrb[0].mxu0 }
  0xfb   :  { %v313_v58 = vadd.f32 %v7949_v41, %v312_v56  ;;  %v11808_v17 = vpop.f32.mrb[1].mxu0 }
  0xfc   :  { %385 = vst.msk [vmem:[#allocation5 + $0x18] sm:$0xff] %vm381_vm5, %v318_v55 }
  0xfd   :  { %384 = vst.msk [vmem:[#allocation5 + $0x10] sm:$0xff] %vm381_vm5, %v313_v58  ;;  %v9236_v59 = vpop.f32.mrb[4].mxu1 }
  0xfe   :  { %v328_v61 = vadd.f32 %v9236_v59, %v7949_v41  ;;  %v322_v63 = vpop.f32.mrb[5].mxu1  ;;  %v11812_v62 = vpop.f32.mrb[2].mxu0 }
  0xff   :  { %v323_v6 = vadd.f32 %v7949_v41, %v322_v63  ;;  %v11814_v19 = vpop.f32.mrb[3].mxu0  ;;  %v646_v49 = vld [vmem:[#allocation5 + $0x8] sm:$0xff] }
 0x100   :  { %387 = vst.msk [vmem:[#allocation5 + $0x28] sm:$0xff] %vm381_vm5, %v328_v61  ;;  %v645_v8 = vld [vmem:[#allocation5] sm:$0xff] }
 0x101   :  { %386 = vst.msk [vmem:[#allocation5 + $0x20] sm:$0xff] %vm381_vm5, %v323_v6  ;;  %v9239_v34 = vpop.f32.mrb[6].mxu1 }
 0x102   :  { %v338_v40 = vadd.f32 %v9239_v34, %v7949_v41  ;;  %v332_v51 = vpop.f32.mrb[7].mxu1  ;;  %v11818_v0 = vpop.f32.mrb[4].mxu0 }
 0x103   :  { %v333_v10 = vadd.f32 %v7949_v41, %v332_v51  ;;  %v11820_v9 = vpop.f32.mrb[5].mxu0  ;;  %v648_v4 = vld [vmem:[#allocation5 + $0x18] sm:$0xff] }
 0x104   :  { %389 = vst.msk [vmem:[#allocation5 + $0x38] sm:$0xff] %vm381_vm5, %v338_v40  ;;  %v647_v5 = vld [vmem:[#allocation5 + $0x10] sm:$0xff] }
 0x105   :  { %388 = vst.msk [vmem:[#allocation5 + $0x30] sm:$0xff] %vm381_vm5, %v333_v10  ;;  %v9242_v24 = vpop.f32.mrb[8].mxu1 }
 0x106   :  { %v348_v60 = vadd.f32 %v9242_v24, %v7949_v41  ;;  %v342_v43 = vpop.f32.mrb[9].mxu1  ;;  %v11828_v32 = vpop.f32.mrb[6].mxu0 }
 0x107   :  { %v343_v3 = vadd.f32 %v7949_v41, %v342_v43  ;;  %v11830_v12 = vpop.f32.mrb[7].mxu0  ;;  %v650_v23 = vld [vmem:[#allocation5 + $0x28] sm:$0xff] }
 0x108   :  { %391 = vst.msk [vmem:[#allocation5 + $0x48] sm:$0xff] %vm381_vm5, %v348_v60  ;;  %v649_v28 = vld [vmem:[#allocation5 + $0x20] sm:$0xff] }
 0x109   :  { %390 = vst.msk [vmem:[#allocation5 + $0x40] sm:$0xff] %vm381_vm5, %v343_v3  ;;  %v9245_v35 = vpop.f32.mrb[10].mxu1 }
 0x10a   :  { %v358_v39 = vadd.f32 %v9245_v35, %v7949_v41  ;;  %v352_v36 = vpop.f32.mrb[11].mxu1  ;;  %v11834_v20 = vpop.f32.mrb[8].mxu0 }
 0x10b   :  { %v353_v21 = vadd.f32 %v7949_v41, %v352_v36  ;;  %v11836_v27 = vpop.f32.mrb[9].mxu0  ;;  %v652_v50 = vld [vmem:[#allocation5 + $0x38] sm:$0xff] }
 0x10c   :  { %393 = vst.msk [vmem:[#allocation5 + $0x58] sm:$0xff] %vm381_vm5, %v358_v39  ;;  %v651_v55 = vld [vmem:[#allocation5 + $0x30] sm:$0xff] }
 0x10d   :  { %392 = vst.msk [vmem:[#allocation5 + $0x50] sm:$0xff] %vm381_vm5, %v353_v21  ;;  %v9248_v30 = vpop.f32.mrb[12].mxu1 }
 0x10e   :  { %v368_v16 = vadd.f32 %v9248_v30, %v7949_v41  ;;  %v362_v48 = vpop.f32.mrb[13].mxu1  ;;  %v11840_v13 = vpop.f32.mrb[10].mxu0 }
 0x10f   :  { %v363_v29 = vadd.f32 %v7949_v41, %v362_v48  ;;  %v11842_v18 = vpop.f32.mrb[11].mxu0  ;;  %v654_v63 = vld [vmem:[#allocation5 + $0x48] sm:$0xff] }
 0x110   :  { %395 = vst.msk [vmem:[#allocation5 + $0x68] sm:$0xff] %vm381_vm5, %v368_v16  ;;  %v653_v40 = vld [vmem:[#allocation5 + $0x40] sm:$0xff]  ;;  %v2347_v48 = vld [vmem:[%s14548_s3 + $0x8] sm:$0xff] }
 0x111   :  { %394 = vst.msk [vmem:[#allocation5 + $0x60] sm:$0xff] %vm381_vm5, %v363_v29  ;;  %v9251_v7 = vpop.f32.mrb[14].mxu1  ;;  %v2346_v16 = vld [vmem:[%s14548_s3] sm:$0xff] }
 0x112   :  { %v378_v33 = vadd.f32 %v9251_v7, %v7949_v41  ;;  %v372_v57 = vpop.f32.mrb[15].mxu1  ;;  %v11846_v38 = vpop.f32.mrb[12].mxu0 }
 0x113   :  { %v373_v11 = vadd.f32 %v7949_v41, %v372_v57  ;;  %v11848_v44 = vpop.f32.mrb[13].mxu0  ;;  %v656_v43 = vld [vmem:[#allocation5 + $0x58] sm:$0xff] }
 0x114   :  { %397 = vst.msk [vmem:[#allocation5 + $0x78] sm:$0xff] %vm381_vm5, %v378_v33  ;;  %v655_v39 = vld [vmem:[#allocation5 + $0x50] sm:$0xff]  ;;  %v10309_v33 = vpack.c.bf16 %v2347_v48, %v2346_v16 }
 0x115   :  { %396 = vst.msk [vmem:[#allocation5 + $0x70] sm:$0xff] %vm381_vm5, %v373_v11  ;;  %v9256_v15 = vpop.f32.mrb[16].mxu1 }
 0x116   :  { %v662_v46 = vadd.f32 %v9256_v15, %v646_v49  ;;  %v566_v47 = vpop.f32.mrb[17].mxu1  ;;  %10310 = vmatprep.subr.bf16.mxu1 %v10309_v33 }
 0x117   :  { %v661_v14 = vadd.f32 %v645_v8, %v566_v47  ;;  %v11852_v56 = vpop.f32.mrb[14].mxu0  ;;  %v658_v7 = vld [vmem:[#allocation5 + $0x68] sm:$0xff]  ;;  %10312 = vmatpush3.bf16.msra.mxu1 %v10309_v33 }
 0x118   :  { %678 = vst.msk [vmem:[#allocation5 + $0x8] sm:$0xff] %vm381_vm5, %v662_v46  ;;  %v11854_v59 = vpop.f32.mrb[15].mxu0  ;;  %v657_v15 = vld [vmem:[#allocation5 + $0x60] sm:$0xff] }
 0x119   :  { %677 = vst.msk [vmem:[#allocation5] sm:$0xff] %vm381_vm5, %v661_v14  ;;  %v9259_v37 = vpop.f32.mrb[18].mxu1 }
 0x11a   :  { %v664_v31 = vadd.f32 %v9259_v37, %v648_v4  ;;  %v576_v42 = vpop.f32.mrb[19].mxu1 }
 0x11b   :  { %v663_v52 = vadd.f32 %v647_v5, %v576_v42  ;;  %v11858_v51 = vpop.f32.mrb[16].mxu0  ;;  %v660_v14 = vld [vmem:[#allocation5 + $0x78] sm:$0xff] }
 0x11c   :  { %680 = vst.msk [vmem:[#allocation5 + $0x18] sm:$0xff] %vm381_vm5, %v664_v31  ;;  %v11860_v24 = vpop.f32.mrb[17].mxu0  ;;  %v659_v31 = vld [vmem:[#allocation5 + $0x70] sm:$0xff] }
 0x11d   :  { %679 = vst.msk [vmem:[#allocation5 + $0x10] sm:$0xff] %vm381_vm5, %v663_v52  ;;  %v9262_v22 = vpop.f32.mrb[20].mxu1 }
 0x11e   :  { %v666_v25 = vadd.f32 %v9262_v22, %v650_v23  ;;  %v586_v26 = vpop.f32.mrb[21].mxu1 }
 0x11f   :  { %v665_v41 = vadd.f32 %v649_v28, %v586_v26  ;;  %v11864_v36 = vpop.f32.mrb[18].mxu0  ;;  %v925_v23 = vld [vmem:[#allocation5 + $0x8] sm:$0xff] }
 0x120   :  { %682 = vst.msk [vmem:[#allocation5 + $0x28] sm:$0xff] %vm381_vm5, %v666_v25  ;;  %v11866_v30 = vpop.f32.mrb[19].mxu0  ;;  %v924_v28 = vld [vmem:[#allocation5] sm:$0xff] }
 0x121   :  { %681 = vst.msk [vmem:[#allocation5 + $0x20] sm:$0xff] %vm381_vm5, %v665_v41  ;;  %v9265_v45 = vpop.f32.mrb[22].mxu1 }
 0x122   :  { %v668_v53 = vadd.f32 %v9265_v45, %v652_v50  ;;  %v596_v54 = vpop.f32.mrb[23].mxu1 }
 0x123   :  { %v667_v58 = vadd.f32 %v651_v55, %v596_v54  ;;  %v11876_v49 = vpop.f32.mrb[20].mxu0  ;;  %v927_v54 = vld [vmem:[#allocation5 + $0x18] sm:$0xff] }
 0x124   :  { %684 = vst.msk [vmem:[#allocation5 + $0x38] sm:$0xff] %vm381_vm5, %v668_v53  ;;  %v11878_v47 = vpop.f32.mrb[21].mxu0 }
 0x125   :  { %683 = vst.msk [vmem:[#allocation5 + $0x30] sm:$0xff] %vm381_vm5, %v667_v58  ;;  %v9268_v61 = vpop.f32.mrb[24].mxu1 }
 0x126   :  { %v670_v6 = vadd.f32 %v9268_v61, %v654_v63  ;;  %v606_v34 = vpop.f32.mrb[25].mxu1  ;;  %v926_v61 = vld [vmem:[#allocation5 + $0x10] sm:$0xff] }
 0x127   :  { %v669_v10 = vadd.f32 %v653_v40, %v606_v34  ;;  %v11882_v42 = vpop.f32.mrb[22].mxu0 }
 0x128   :  { %686 = vst.msk [vmem:[#allocation5 + $0x48] sm:$0xff] %vm381_vm5, %v670_v6  ;;  %v11884_v52 = vpop.f32.mrb[23].mxu0 }
 0x129   :  { %685 = vst.msk [vmem:[#allocation5 + $0x40] sm:$0xff] %vm381_vm5, %v669_v10  ;;  %v9271_v60 = vpop.f32.mrb[26].mxu1  ;;  %v929_v10 = vld [vmem:[#allocation5 + $0x28] sm:$0xff] }
 0x12a   :  { %v672_v3 = vadd.f32 %v9271_v60, %v656_v43  ;;  %v616_v35 = vpop.f32.mrb[27].mxu1 }
 0x12b   :  { %v671_v21 = vadd.f32 %v655_v39, %v616_v35  ;;  %v11888_v45 = vpop.f32.mrb[24].mxu0  ;;  %v931_v48 = vld [vmem:[#allocation5 + $0x38] sm:$0xff] }
 0x12c   :  { %688 = vst.msk [vmem:[#allocation5 + $0x58] sm:$0xff] %vm381_vm5, %v672_v3  ;;  %v11891_v50 = vpop.f32.mrb[25].mxu0  ;;  %v928_v3 = vld [vmem:[#allocation5 + $0x20] sm:$0xff] }
 0x12d   :  { %687 = vst.msk [vmem:[#allocation5 + $0x50] sm:$0xff] %vm381_vm5, %v671_v21  ;;  %v9274_v29 = vpop.f32.mrb[28].mxu1 }
 0x12e   :  { %v674_v57 = vadd.f32 %v9274_v29, %v658_v7  ;;  %v626_v11 = vpop.f32.mrb[29].mxu1  ;;  %v8128_v29 = vld [vmem:[%s14548_s3 + $0x20] sm:$0xff]  ;;  %v8129_v7 = vld [vmem:[%s14548_s3 + $0x28] sm:$0xff] }
 0x12f   :  { %v673_v46 = vadd.f32 %v657_v15, %v626_v11  ;;  %v930_v11 = vld [vmem:[#allocation5 + $0x30] sm:$0xff] }
 0x130   :  { %690 = vst.msk [vmem:[#allocation5 + $0x68] sm:$0xff] %vm381_vm5, %v674_v57  ;;  %v2348_v15 = vld [vmem:[%s14548_s3 + $0x10] sm:$0xff] }
 0x131   :  { %689 = vst.msk [vmem:[#allocation5 + $0x60] sm:$0xff] %vm381_vm5, %v673_v46  ;;  %v9277_v8 = vpop.f32.mrb[30].mxu1  ;;  %v2349_v46 = vld [vmem:[%s14548_s3 + $0x18] sm:$0xff] }
 0x132   :  { %v676_v37 = vadd.f32 %v9277_v8, %v660_v14  ;;  %v636_v4 = vpop.f32.mrb[31].mxu1  ;;  %v10317_v8 = vpack.c.bf16 %v8129_v7, %v8128_v29 }
 0x133   :  { %v675_v5 = vadd.f32 %v659_v31, %v636_v4  ;;  %v11894_v6 = vpop.f32.mrb[26].mxu0 }
 0x134   :  { %692 = vst.msk [vmem:[#allocation5 + $0x78] sm:$0xff] %vm381_vm5, %v676_v37  ;;  %v11897_v34 = vpop.f32.mrb[27].mxu0  ;;  %v10313_v37 = vpack.c.bf16 %v2349_v46, %v2348_v15  ;;  %10318 = vmatprep.subr.bf16.mxu0 %v10317_v8 }
 0x135   :  { %691 = vst.msk [vmem:[#allocation5 + $0x70] sm:$0xff] %vm381_vm5, %v675_v5  ;;  %v9282_v22 = vpop.f32.mrb[32].mxu1  ;;  %10320 = vmatpush3.bf16.msra.mxu0 %v10317_v8 }
 0x136   :  { %v941_v25 = vadd.f32 %v9282_v22, %v925_v23  ;;  %v845_v26 = vpop.f32.mrb[33].mxu1  ;;  %v933_v22 = vld [vmem:[#allocation5 + $0x48] sm:$0xff]  ;;  %10314 = vmatprep.subr.bf16.mxu1 %v10313_v37  ;;  %v8130_v23 = vld [vmem:[%s14548_s3 + $0x30] sm:$0xff] }
 0x137   :  { %v940_v41 = vadd.f32 %v924_v28, %v845_v26  ;;  %10316 = vmatpush3.bf16.msra.mxu1 %v10313_v37 }
 0x138   :  { %957 = vst.msk [vmem:[#allocation5 + $0x8] sm:$0xff] %vm381_vm5, %v941_v25  ;;  %v8131_v25 = vld [vmem:[%s14548_s3 + $0x38] sm:$0xff]  ;;  %v936_v8 = vld [vmem:[#allocation5 + $0x60] sm:$0xff] }
 0x139   :  { %956 = vst.msk [vmem:[#allocation5] sm:$0xff] %vm381_vm5, %v940_v41  ;;  %v9285_v53 = vpop.f32.mrb[34].mxu1  ;;  %v932_v41 = vld [vmem:[#allocation5 + $0x40] sm:$0xff] }
 0x13a   :  { %v943_v55 = vadd.f32 %v9285_v53, %v927_v54  ;;  %v855_v58 = vpop.f32.mrb[35].mxu1  ;;  %v11900_v39 = vpop.f32.mrb[28].mxu0  ;;  %v10321_v53 = vpack.c.bf16 %v8131_v25, %v8130_v23 }
 0x13b   :  { %v942_v63 = vadd.f32 %v926_v61, %v855_v58  ;;  %v11943_v21 = vpop.f32.mrb[29].mxu0  ;;  %v11972_v58 = vld [vmem:[#allocation3] sm:$0xff]  ;;  %v11974_v61 = vld [vmem:[#allocation3 + $0x8] sm:$0x3]  ;;  %v939_v23 = vld [vmem:[#allocation5 + $0x78] sm:$0xff] }
 0x13c   :  { %959 = vst.msk [vmem:[#allocation5 + $0x18] sm:$0xff] %vm381_vm5, %v943_v55  ;;  %9468 = vmatprep.mubr.msk.f32.mxu1 %vm381_vm5, %v11972_v58  ;;  %10322 = vmatprep.subr.bf16.mxu0 %v10321_v53 }
 0x13d   :  { %958 = vst.msk [vmem:[#allocation5 + $0x10] sm:$0xff] %vm381_vm5, %v942_v63  ;;  %v9288_v40 = vpop.f32.mrb[36].mxu1  ;;  %10324 = vmatpush3.bf16.msra.mxu0 %v10321_v53 }
 0x13e   :  { %v945_v60 = vadd.f32 %v9288_v40, %v929_v10  ;;  %v865_v43 = vpop.f32.mrb[37].mxu1  ;;  %v11958_v4 = vpop.f32.mrb[30].mxu0  ;;  %v2583_v40 = vrot.slane %v11972_v58, 1  ;;  %v2584_v10 = vrot.slane %v11974_v61, 1 }
 0x13f   :  { %v944_v35 = vadd.f32 %v928_v3, %v865_v43  ;;  %v11961_v31 = vpop.f32.mrb[31].mxu0  ;;  %v935_v43 = vld [vmem:[#allocation5 + $0x58] sm:$0xff] }
 0x140   :  { %961 = vst.msk [vmem:[#allocation5 + $0x28] sm:$0xff] %vm381_vm5, %v945_v60 }
 0x141   :  { %960 = vst.msk [vmem:[#allocation5 + $0x20] sm:$0xff] %vm381_vm5, %v944_v35  ;;  %v9291_v16 = vpop.f32.mrb[38].mxu1 }
 0x142   :  { %v947_v33 = vadd.f32 %v9291_v16, %v931_v48  ;;  %v875_v57 = vpop.f32.mrb[39].mxu1  ;;  %v11970_v55 = vpop.f32.mrb[32].mxu0  ;;  %v934_v16 = vld [vmem:[#allocation5 + $0x50] sm:$0xff]  ;;  %v2585_v48 = vsel %vm414_vm3, %v2583_v40, %v2584_v10  ;;  %v8148_v40 = vld [vmem:[%s14548_s3 + $0x40] sm:$0xff]  ;;  %v8149_v10 = vld [vmem:[%s14548_s3 + $0x48] sm:$0xff] }
 0x143   :  { %v946_v14 = vadd.f32 %v930_v11, %v875_v57  ;;  %v11977_v63 = vpop.f32.mrb[33].mxu0  ;;  %9500 = vmatprep.mubr.msk.f32.mxu0 %vm381_vm5, %v2585_v48  ;;  %v937_v11 = vld [vmem:[#allocation5 + $0x68] sm:$0xff] }
 0x144   :  { %963 = vst.msk [vmem:[#allocation5 + $0x38] sm:$0xff] %vm381_vm5, %v947_v33 }
 0x145   :  { %962 = vst.msk [vmem:[#allocation5 + $0x30] sm:$0xff] %vm381_vm5, %v946_v14  ;;  %v9294_v5 = vpop.f32.mrb[40].mxu1 }
 0x146   :  { %v949_v26 = vadd.f32 %v9294_v5, %v933_v22  ;;  %v885_v28 = vpop.f32.mrb[41].mxu1  ;;  %v11985_v7 = vpop.f32.mrb[34].mxu0 }
 0x147   :  { %v948_v54 = vadd.f32 %v932_v41, %v885_v28  ;;  %v11989_v33 = vpop.f32.mrb[35].mxu0  ;;  %v938_v28 = vld [vmem:[#allocation5 + $0x70] sm:$0xff] }
 0x148   :  { %965 = vst.msk [vmem:[#allocation5 + $0x48] sm:$0xff] %vm381_vm5, %v949_v26 }
 0x149   :  { %964 = vst.msk [vmem:[#allocation5 + $0x40] sm:$0xff] %vm381_vm5, %v948_v54  ;;  %v9297_v60 = vpop.f32.mrb[42].mxu1  ;;  %v1129_v54 = vld [vmem:[#allocation5 + $0x8] sm:$0xff] }
 0x14a   :  { %v951_v3 = vadd.f32 %v9297_v60, %v935_v43  ;;  %v895_v35 = vpop.f32.mrb[43].mxu1  ;;  %v11992_v37 = vpop.f32.mrb[36].mxu0 }
 0x14b   :  { %v950_v29 = vadd.f32 %v934_v16, %v895_v35  ;;  %v11995_v5 = vpop.f32.mrb[37].mxu0  ;;  %v12006_v35 = vpack.c.bf16 %v8149_v10, %v8148_v40 }
 0x14c   :  { %967 = vst.msk [vmem:[#allocation5 + $0x58] sm:$0xff] %vm381_vm5, %v951_v3  ;;  %v1128_v3 = vld [vmem:[#allocation5] sm:$0xff] }
 0x14d   :  { %966 = vst.msk [vmem:[#allocation5 + $0x50] sm:$0xff] %vm381_vm5, %v950_v29  ;;  %v9300_v57 = vpop.f32.mrb[44].mxu1  ;;  %10326 = vmatprep.subr.bf16.mxu1 %v12006_v35  ;;  %v1131_v29 = vld [vmem:[#allocation5 + $0x18] sm:$0xff] }
 0x14e   :  { %v953_v15 = vadd.f32 %v9300_v57, %v937_v11  ;;  %v905_v46 = vpop.f32.mrb[45].mxu1 }
 0x14f   :  { %v952_v14 = vadd.f32 %v936_v8, %v905_v46 }
 0x150   :  { %969 = vst.msk [vmem:[#allocation5 + $0x68] sm:$0xff] %vm381_vm5, %v953_v15  ;;  %v1130_v15 = vld [vmem:[#allocation5 + $0x10] sm:$0xff] }
 0x151   :  { %968 = vst.msk [vmem:[#allocation5 + $0x60] sm:$0xff] %vm381_vm5, %v952_v14  ;;  %v9303_v22 = vpop.f32.mrb[46].mxu1  ;;  %v1133_v14 = vld [vmem:[#allocation5 + $0x28] sm:$0xff] }
 0x152   :  { %v955_v25 = vadd.f32 %v9303_v22, %v939_v23  ;;  %v915_v26 = vpop.f32.mrb[47].mxu1 }
 0x153   :  { %v954_v41 = vadd.f32 %v938_v28, %v915_v26  ;;  %v8168_v26 = vld [vmem:[%s14548_s3 + $0x60] sm:$0xff]  ;;  %v8169_v28 = vld [vmem:[%s14548_s3 + $0x68] sm:$0xff] }
 0x154   :  { %971 = vst.msk [vmem:[#allocation5 + $0x78] sm:$0xff] %vm381_vm5, %v955_v25  ;;  %v1132_v25 = vld [vmem:[#allocation5 + $0x20] sm:$0xff] }
 0x155   :  { %970 = vst.msk [vmem:[#allocation5 + $0x70] sm:$0xff] %vm381_vm5, %v954_v41  ;;  %v9308_v53 = vpop.f32.mrb[48].mxu1 }
 0x156   :  { %v1145_v60 = vadd.f32 %v9308_v53, %v1129_v54  ;;  %v1049_v43 = vpop.f32.mrb[49].mxu1  ;;  %v12019_v54 = vpack.c.bf16 %v8169_v28, %v8168_v26  ;;  %v1136_v26 = vld [vmem:[#allocation5 + $0x40] sm:$0xff] }
 0x157   :  { %v1144_v16 = vadd.f32 %v1128_v3, %v1049_v43  ;;  %v1135_v3 = vld [vmem:[#allocation5 + $0x38] sm:$0xff] }
 0x158   :  { %1161 = vst.msk [vmem:[#allocation5 + $0x8] sm:$0xff] %vm381_vm5, %v1145_v60  ;;  %10334 = vmatprep.subr.bf16.mxu0 %v12019_v54 }
 0x159   :  { %1160 = vst.msk [vmem:[#allocation5] sm:$0xff] %vm381_vm5, %v1144_v16  ;;  %v9311_v48 = vpop.f32.mrb[50].mxu1 }
 0x15a   :  { %v1147_v57 = vadd.f32 %v9311_v48, %v1131_v29  ;;  %v1059_v11 = vpop.f32.mrb[51].mxu1  ;;  %v1134_v29 = vld [vmem:[#allocation5 + $0x30] sm:$0xff] }
 0x15b   :  { %v1146_v46 = vadd.f32 %v1130_v15, %v1059_v11 }
 0x15c   :  { %1163 = vst.msk [vmem:[#allocation5 + $0x18] sm:$0xff] %vm381_vm5, %v1147_v57 }
 0x15d   :  { %1162 = vst.msk [vmem:[#allocation5 + $0x10] sm:$0xff] %vm381_vm5, %v1146_v46  ;;  %v9314_v8 = vpop.f32.mrb[52].mxu1 }
 0x15e   :  { %v1149_v22 = vadd.f32 %v9314_v8, %v1133_v14  ;;  %v1069_v23 = vpop.f32.mrb[53].mxu1  ;;  %v1137_v14 = vld [vmem:[#allocation5 + $0x48] sm:$0xff] }
 0x15f   :  { %v1148_v41 = vadd.f32 %v1132_v25, %v1069_v23  ;;  %v1339_v53 = vld [vmem:[#allocation5 + $0x8] sm:$0xff] }
 0x160   :  { %1165 = vst.msk [vmem:[#allocation5 + $0x28] sm:$0xff] %vm381_vm5, %v1149_v22  ;;  %v1355_v40 = vadd.f32 %v11806_v1, %v1339_v53  ;;  %v1338_v10 = vld [vmem:[#allocation5] sm:$0xff]  ;;  %v2861_v1 = vrot.slane %v11972_v58, 2  ;;  %v2862_v22 = vrot.slane %v11974_v61, 2 }
 0x161   :  { %1164 = vst.msk [vmem:[#allocation5 + $0x20] sm:$0xff] %vm381_vm5, %v1148_v41  ;;  %v1354_v60 = vadd.f32 %v1338_v10, %v11808_v17  ;;  %v9317_v43 = vpop.f32.mrb[54].mxu1 }
 0x162   :  { %1371 = vst.msk [vmem:[#allocation5 + $0x8] sm:$0xff] %vm381_vm5, %v1355_v40  ;;  %v1151_v16 = vadd.f32 %v9317_v43, %v1135_v3  ;;  %v1079_v48 = vpop.f32.mrb[55].mxu1  ;;  %v1139_v40 = vld [vmem:[#allocation5 + $0x58] sm:$0xff]  ;;  %v1138_v43 = vld [vmem:[#allocation5 + $0x50] sm:$0xff] }
 0x163   :  { %1370 = vst.msk [vmem:[#allocation5] sm:$0xff] %vm381_vm5, %v1354_v60  ;;  %v1150_v57 = vadd.f32 %v1134_v29, %v1079_v48  ;;  %v1341_v11 = vld [vmem:[#allocation5 + $0x18] sm:$0xff] }
 0x164   :  { %1167 = vst.msk [vmem:[#allocation5 + $0x38] sm:$0xff] %vm381_vm5, %v1151_v16  ;;  %v1357_v15 = vadd.f32 %v11812_v62, %v1341_v11  ;;  %v1340_v17 = vld [vmem:[#allocation5 + $0x10] sm:$0xff]  ;;  %v12037_v62 = vsel %vm693_vm4, %v2861_v1, %v2862_v22  ;;  %v1141_v16 = vld [vmem:[#allocation5 + $0x68] sm:$0xff]  ;;  %v1143_v1 = vld [vmem:[#allocation5 + $0x78] sm:$0xff] }
 0x165   :  { %1166 = vst.msk [vmem:[#allocation5 + $0x30] sm:$0xff] %vm381_vm5, %v1150_v57  ;;  %v1356_v46 = vadd.f32 %v1340_v17, %v11814_v19  ;;  %v9320_v8 = vpop.f32.mrb[56].mxu1  ;;  %v1140_v57 = vld [vmem:[#allocation5 + $0x60] sm:$0xff] }
 0x166   :  { %1373 = vst.msk [vmem:[#allocation5 + $0x18] sm:$0xff] %vm381_vm5, %v1357_v15  ;;  %v1153_v23 = vadd.f32 %v9320_v8, %v1137_v14  ;;  %v1089_v25 = vpop.f32.mrb[57].mxu1 }
 0x167   :  { %1372 = vst.msk [vmem:[#allocation5 + $0x10] sm:$0xff] %vm381_vm5, %v1356_v46  ;;  %v1152_v58 = vadd.f32 %v1136_v26, %v1089_v25  ;;  %v1343_v28 = vld [vmem:[#allocation5 + $0x28] sm:$0xff]  ;;  %v1142_v46 = vld [vmem:[#allocation5 + $0x70] sm:$0xff] }
 0x168   :  { %1169 = vst.msk [vmem:[#allocation5 + $0x48] sm:$0xff] %vm381_vm5, %v1153_v23  ;;  %v1359_v19 = vadd.f32 %v11818_v0, %v1343_v28  ;;  %v1342_v41 = vld [vmem:[#allocation5 + $0x20] sm:$0xff] }
 0x169   :  { %1168 = vst.msk [vmem:[#allocation5 + $0x40] sm:$0xff] %vm381_vm5, %v1152_v58  ;;  %v1358_v61 = vadd.f32 %v1342_v41, %v11820_v9  ;;  %v9323_v53 = vpop.f32.mrb[58].mxu1 }
 0x16a   :  { %1375 = vst.msk [vmem:[#allocation5 + $0x28] sm:$0xff] %vm381_vm5, %v1359_v19  ;;  %v1155_v10 = vadd.f32 %v9323_v53, %v1139_v40  ;;  %v1099_v60 = vpop.f32.mrb[59].mxu1 }
 0x16b   :  { %1374 = vst.msk [vmem:[#allocation5 + $0x20] sm:$0xff] %vm381_vm5, %v1358_v61  ;;  %v1154_v3 = vadd.f32 %v1138_v43, %v1099_v60  ;;  %v1345_v22 = vld [vmem:[#allocation5 + $0x38] sm:$0xff] }
 0x16c   :  { %1171 = vst.msk [vmem:[#allocation5 + $0x58] sm:$0xff] %vm381_vm5, %v1155_v10  ;;  %v1344_v26 = vld [vmem:[#allocation5 + $0x30] sm:$0xff] }
 0x16d   :  { %1170 = vst.msk [vmem:[#allocation5 + $0x50] sm:$0xff] %vm381_vm5, %v1154_v3  ;;  %v9326_v0 = vpop.f32.mrb[60].mxu1 }
 0x16e   :  { %v1157_v48 = vadd.f32 %v9326_v0, %v1141_v16  ;;  %v1109_v29 = vpop.f32.mrb[61].mxu1 }
 0x16f   :  { %v1156_v9 = vadd.f32 %v1140_v57, %v1109_v29  ;;  %v1347_v19 = vld [vmem:[#allocation5 + $0x48] sm:$0xff] }
 0x170   :  { %1173 = vst.msk [vmem:[#allocation5 + $0x68] sm:$0xff] %vm381_vm5, %v1157_v48  ;;  %v1346_v53 = vld [vmem:[#allocation5 + $0x40] sm:$0xff] }
 0x171   :  { %1172 = vst.msk [vmem:[#allocation5 + $0x60] sm:$0xff] %vm381_vm5, %v1156_v9  ;;  %v9329_v11 = vpop.f32.mrb[62].mxu1 }
 0x172   :  { %v1159_v15 = vadd.f32 %v9329_v11, %v1143_v1  ;;  %v1119_v17 = vpop.f32.mrb[63].mxu1 }
 0x173   :  { %v1158_v8 = vadd.f32 %v1142_v46, %v1119_v17  ;;  %v1349_v60 = vld [vmem:[#allocation5 + $0x58] sm:$0xff] }
 0x174   :  { %1175 = vst.msk [vmem:[#allocation5 + $0x78] sm:$0xff] %vm381_vm5, %v1159_v15  ;;  %v1348_v0 = vld [vmem:[#allocation5 + $0x50] sm:$0xff] }
 0x175   :  { %1174 = vst.msk [vmem:[#allocation5 + $0x70] sm:$0xff] %vm381_vm5, %v1158_v8  ;;  %v9343_v14 = vpop.f32.mrb[64].mxu1 }
 0x176   :  { %v1361_v23 = vadd.f32 %v9343_v14, %v1345_v22  ;;  %v1289_v25 = vpop.f32.mrb[65].mxu1 }
 0x177   :  { %v1360_v58 = vadd.f32 %v1344_v26, %v1289_v25  ;;  %v1351_v29 = vld [vmem:[#allocation5 + $0x68] sm:$0xff] }
 0x178   :  { %1377 = vst.msk [vmem:[#allocation5 + $0x38] sm:$0xff] %vm381_vm5, %v1361_v23  ;;  %v1350_v11 = vld [vmem:[#allocation5 + $0x60] sm:$0xff]  ;;  %v1547_v25 = vld [vmem:[#allocation5 + $0x8] sm:$0xff] }
 0x179   :  { %1376 = vst.msk [vmem:[#allocation5 + $0x30] sm:$0xff] %vm381_vm5, %v1360_v58  ;;  %v9346_v28 = vpop.f32.mrb[66].mxu1 }
 0x17a   :  { %v1363_v41 = vadd.f32 %v9346_v28, %v1347_v19  ;;  %v1299_v61 = vpop.f32.mrb[67].mxu1  ;;  %v1546_v28 = vld [vmem:[#allocation5] sm:$0xff] }
 0x17b   :  { %v1362_v40 = vadd.f32 %v1346_v53, %v1299_v61  ;;  %v1353_v17 = vld [vmem:[#allocation5 + $0x78] sm:$0xff] }
 0x17c   :  { %1379 = vst.msk [vmem:[#allocation5 + $0x48] sm:$0xff] %vm381_vm5, %v1363_v41  ;;  %v1352_v14 = vld [vmem:[#allocation5 + $0x70] sm:$0xff]  ;;  %v1549_v61 = vld [vmem:[#allocation5 + $0x18] sm:$0xff] }
 0x17d   :  { %1378 = vst.msk [vmem:[#allocation5 + $0x40] sm:$0xff] %vm381_vm5, %v1362_v40  ;;  %v9349_v10 = vpop.f32.mrb[68].mxu1 }
 0x17e   :  { %v1365_v43 = vadd.f32 %v9349_v10, %v1349_v60  ;;  %v1309_v3 = vpop.f32.mrb[69].mxu1  ;;  %v1548_v10 = vld [vmem:[#allocation5 + $0x10] sm:$0xff] }
 0x17f   :  { %v1364_v16 = vadd.f32 %v1348_v0, %v1309_v3  ;;  %v1551_v3 = vld [vmem:[#allocation5 + $0x28] sm:$0xff] }
 0x180   :  { %1381 = vst.msk [vmem:[#allocation5 + $0x58] sm:$0xff] %vm381_vm5, %v1365_v43 }
 0x181   :  { %1380 = vst.msk [vmem:[#allocation5 + $0x50] sm:$0xff] %vm381_vm5, %v1364_v16  ;;  %v9352_v48 = vpop.f32.mrb[70].mxu1 }
 0x182   :  { %v1367_v57 = vadd.f32 %v9352_v48, %v1351_v29  ;;  %v1319_v9 = vpop.f32.mrb[71].mxu1  ;;  %v1550_v48 = vld [vmem:[#allocation5 + $0x20] sm:$0xff] }
 0x183   :  { %v1366_v1 = vadd.f32 %v1350_v11, %v1319_v9 }
 0x184   :  { %1383 = vst.msk [vmem:[#allocation5 + $0x68] sm:$0xff] %vm381_vm5, %v1367_v57 }
 0x185   :  { %1382 = vst.msk [vmem:[#allocation5 + $0x60] sm:$0xff] %vm381_vm5, %v1366_v1  ;;  %v9355_v15 = vpop.f32.mrb[72].mxu1 }
 0x186   :  { %v1369_v46 = vadd.f32 %v9355_v15, %v1353_v17  ;;  %v1329_v8 = vpop.f32.mrb[73].mxu1  ;;  %v1553_v17 = vld [vmem:[#allocation5 + $0x38] sm:$0xff] }
 0x187   :  { %v1368_v22 = vadd.f32 %v1352_v14, %v1329_v8  ;;  %v1552_v14 = vld [vmem:[#allocation5 + $0x30] sm:$0xff] }
 0x188   :  { %1385 = vst.msk [vmem:[#allocation5 + $0x78] sm:$0xff] %vm381_vm5, %v1369_v46 }
 0x189   :  { %1384 = vst.msk [vmem:[#allocation5 + $0x70] sm:$0xff] %vm381_vm5, %v1368_v22  ;;  %v9360_v23 = vpop.f32.mrb[74].mxu1 }
 0x18a   :  { %v1563_v26 = vadd.f32 %v9360_v23, %v1547_v25  ;;  %v1467_v58 = vpop.f32.mrb[75].mxu1 }
 0x18b   :  { %v1562_v19 = vadd.f32 %v1546_v28, %v1467_v58  ;;  %v1555_v58 = vld [vmem:[#allocation5 + $0x48] sm:$0xff] }
 0x18c   :  { %1579 = vst.msk [vmem:[#allocation5 + $0x8] sm:$0xff] %vm381_vm5, %v1563_v26 }
 0x18d   :  { %1578 = vst.msk [vmem:[#allocation5] sm:$0xff] %vm381_vm5, %v1562_v19  ;;  %v9363_v41 = vpop.f32.mrb[76].mxu1 }
 0x18e   :  { %v1565_v53 = vadd.f32 %v9363_v41, %v1549_v61  ;;  %v1477_v40 = vpop.f32.mrb[77].mxu1  ;;  %v1554_v41 = vld [vmem:[#allocation5 + $0x40] sm:$0xff] }
 0x18f   :  { %v1564_v60 = vadd.f32 %v1548_v10, %v1477_v40 }
 0x190   :  { %1581 = vst.msk [vmem:[#allocation5 + $0x18] sm:$0xff] %vm381_vm5, %v1565_v53 }
 0x191   :  { %1580 = vst.msk [vmem:[#allocation5 + $0x10] sm:$0xff] %vm381_vm5, %v1564_v60  ;;  %v9366_v43 = vpop.f32.mrb[78].mxu1  ;;  %v1557_v60 = vld [vmem:[#allocation5 + $0x58] sm:$0xff] }
 0x192   :  { %v1567_v0 = vadd.f32 %v9366_v43, %v1551_v3  ;;  %v1487_v16 = vpop.f32.mrb[79].mxu1 }
 0x193   :  { %v1566_v29 = vadd.f32 %v1550_v48, %v1487_v16  ;;  %v1751_v57 = vld [vmem:[#allocation5 + $0x8] sm:$0xff] }
 0x194   :  { %1583 = vst.msk [vmem:[#allocation5 + $0x28] sm:$0xff] %vm381_vm5, %v1567_v0  ;;  %v1767_v9 = vadd.f32 %v11828_v32, %v1751_v57  ;;  %v1750_v11 = vld [vmem:[#allocation5] sm:$0xff]  ;;  %v1556_v0 = vld [vmem:[#allocation5 + $0x50] sm:$0xff] }
 0x195   :  { %1582 = vst.msk [vmem:[#allocation5 + $0x20] sm:$0xff] %vm381_vm5, %v1566_v29  ;;  %v1766_v1 = vadd.f32 %v1750_v11, %v11830_v12  ;;  %v9369_v15 = vpop.f32.mrb[80].mxu1 }
 0x196   :  { %1783 = vst.msk [vmem:[#allocation5 + $0x8] sm:$0xff] %vm381_vm5, %v1767_v9  ;;  %v1569_v46 = vadd.f32 %v9369_v15, %v1553_v17  ;;  %v1497_v8 = vpop.f32.mrb[81].mxu1  ;;  %v1559_v9 = vld [vmem:[#allocation5 + $0x68] sm:$0xff]  ;;  %v1558_v15 = vld [vmem:[#allocation5 + $0x60] sm:$0xff] }
 0x197   :  { %1782 = vst.msk [vmem:[#allocation5] sm:$0xff] %vm381_vm5, %v1766_v1  ;;  %v1568_v22 = vadd.f32 %v1552_v14, %v1497_v8  ;;  %v1753_v23 = vld [vmem:[#allocation5 + $0x18] sm:$0xff] }
 0x198   :  { %1585 = vst.msk [vmem:[#allocation5 + $0x38] sm:$0xff] %vm381_vm5, %v1569_v46  ;;  %v1769_v32 = vadd.f32 %v11834_v20, %v1753_v23  ;;  %v1752_v25 = vld [vmem:[#allocation5 + $0x10] sm:$0xff] }
 0x199   :  { %1584 = vst.msk [vmem:[#allocation5 + $0x30] sm:$0xff] %vm381_vm5, %v1568_v22  ;;  %v1768_v12 = vadd.f32 %v1752_v25, %v11836_v27  ;;  %v9372_v26 = vpop.f32.mrb[82].mxu1  ;;  %v1561_v22 = vld [vmem:[#allocation5 + $0x78] sm:$0xff]  ;;  %v1560_v25 = vld [vmem:[#allocation5 + $0x70] sm:$0xff] }
 0x19a   :  { %1785 = vst.msk [vmem:[#allocation5 + $0x18] sm:$0xff] %vm381_vm5, %v1769_v32  ;;  %v1571_v28 = vadd.f32 %v9372_v26, %v1555_v58  ;;  %v1507_v19 = vpop.f32.mrb[83].mxu1 }
 0x19b   :  { %1784 = vst.msk [vmem:[#allocation5 + $0x10] sm:$0xff] %vm381_vm5, %v1768_v12  ;;  %v1570_v61 = vadd.f32 %v1554_v41, %v1507_v19  ;;  %v1755_v53 = vld [vmem:[#allocation5 + $0x28] sm:$0xff] }
 0x19c   :  { %1587 = vst.msk [vmem:[#allocation5 + $0x48] sm:$0xff] %vm381_vm5, %v1571_v28  ;;  %v1771_v20 = vadd.f32 %v11840_v13, %v1755_v53  ;;  %v1754_v40 = vld [vmem:[#allocation5 + $0x20] sm:$0xff] }
 0x19d   :  { %1586 = vst.msk [vmem:[#allocation5 + $0x40] sm:$0xff] %vm381_vm5, %v1570_v61  ;;  %v1770_v27 = vadd.f32 %v1754_v40, %v11842_v18  ;;  %v9375_v10 = vpop.f32.mrb[84].mxu1  ;;  %v1961_v19 = vld [vmem:[#allocation5 + $0x8] sm:$0xff] }
 0x19e   :  { %1787 = vst.msk [vmem:[#allocation5 + $0x28] sm:$0xff] %vm381_vm5, %v1771_v20  ;;  %v1573_v43 = vadd.f32 %v9375_v10, %v1557_v60  ;;  %v1517_v3 = vpop.f32.mrb[85].mxu1  ;;  %v1960_v53 = vld [vmem:[#allocation5] sm:$0xff] }
 0x19f   :  { %1786 = vst.msk [vmem:[#allocation5 + $0x20] sm:$0xff] %vm381_vm5, %v1770_v27  ;;  %v1572_v16 = vadd.f32 %v1556_v0, %v1517_v3  ;;  %v1757_v48 = vld [vmem:[#allocation5 + $0x38] sm:$0xff] }
 0x1a0   :  { %1589 = vst.msk [vmem:[#allocation5 + $0x58] sm:$0xff] %vm381_vm5, %v1573_v43  ;;  %v1773_v13 = vadd.f32 %v11846_v38, %v1757_v48  ;;  %v1756_v29 = vld [vmem:[#allocation5 + $0x30] sm:$0xff] }
 0x1a1   :  { %1588 = vst.msk [vmem:[#allocation5 + $0x50] sm:$0xff] %vm381_vm5, %v1572_v16  ;;  %v1772_v18 = vadd.f32 %v1756_v29, %v11848_v44  ;;  %v9378_v57 = vpop.f32.mrb[86].mxu1  ;;  %v1963_v60 = vld [vmem:[#allocation5 + $0x18] sm:$0xff] }
 0x1a2   :  { %1789 = vst.msk [vmem:[#allocation5 + $0x38] sm:$0xff] %vm381_vm5, %v1773_v13  ;;  %v1575_v11 = vadd.f32 %v9378_v57, %v1559_v9  ;;  %v1527_v1 = vpop.f32.mrb[87].mxu1  ;;  %v1962_v0 = vld [vmem:[#allocation5 + $0x10] sm:$0xff] }
 0x1a3   :  { %1788 = vst.msk [vmem:[#allocation5 + $0x30] sm:$0xff] %vm381_vm5, %v1772_v18  ;;  %v1574_v17 = vadd.f32 %v1558_v15, %v1527_v1  ;;  %v1759_v46 = vld [vmem:[#allocation5 + $0x48] sm:$0xff] }
 0x1a4   :  { %1591 = vst.msk [vmem:[#allocation5 + $0x68] sm:$0xff] %vm381_vm5, %v1575_v11  ;;  %v1775_v38 = vadd.f32 %v11852_v56, %v1759_v46  ;;  %v1758_v8 = vld [vmem:[#allocation5 + $0x40] sm:$0xff] }
 0x1a5   :  { %1590 = vst.msk [vmem:[#allocation5 + $0x60] sm:$0xff] %vm381_vm5, %v1574_v17  ;;  %v1774_v44 = vadd.f32 %v1758_v8, %v11854_v59  ;;  %v9381_v14 = vpop.f32.mrb[88].mxu1  ;;  %v1965_v18 = vld [vmem:[#allocation5 + $0x28] sm:$0xff] }
 0x1a6   :  { %1791 = vst.msk [vmem:[#allocation5 + $0x48] sm:$0xff] %vm381_vm5, %v1775_v38  ;;  %v1577_v23 = vadd.f32 %v9381_v14, %v1561_v22  ;;  %v1537_v32 = vpop.f32.mrb[89].mxu1  ;;  %v1964_v11 = vld [vmem:[#allocation5 + $0x20] sm:$0xff] }
 0x1a7   :  { %1790 = vst.msk [vmem:[#allocation5 + $0x40] sm:$0xff] %vm381_vm5, %v1774_v44  ;;  %v1576_v12 = vadd.f32 %v1560_v25, %v1537_v32  ;;  %v1761_v26 = vld [vmem:[#allocation5 + $0x58] sm:$0xff] }
 0x1a8   :  { %1593 = vst.msk [vmem:[#allocation5 + $0x78] sm:$0xff] %vm381_vm5, %v1577_v23  ;;  %v1777_v56 = vadd.f32 %v11858_v51, %v1761_v26  ;;  %v1760_v58 = vld [vmem:[#allocation5 + $0x50] sm:$0xff] }
 0x1a9   :  { %1592 = vst.msk [vmem:[#allocation5 + $0x70] sm:$0xff] %vm381_vm5, %v1576_v12  ;;  %v1776_v59 = vadd.f32 %v1760_v58, %v11860_v24  ;;  %v9412_v28 = vpop.f32.mrb[90].mxu1  ;;  %v1967_v38 = vld [vmem:[#allocation5 + $0x38] sm:$0xff] }
 0x1aa   :  { %1793 = vst.msk [vmem:[#allocation5 + $0x58] sm:$0xff] %vm381_vm5, %v1777_v56  ;;  %v1977_v41 = vadd.f32 %v9412_v28, %v1961_v19  ;;  %v1881_v61 = vpop.f32.mrb[91].mxu1  ;;  %v1966_v14 = vld [vmem:[#allocation5 + $0x30] sm:$0xff] }
 0x1ab   :  { %1792 = vst.msk [vmem:[#allocation5 + $0x50] sm:$0xff] %vm381_vm5, %v1776_v59  ;;  %v1763_v20 = vld [vmem:[#allocation5 + $0x68] sm:$0xff]  ;;  %v1976_v40 = vadd.f32 %v1960_v53, %v1881_v61 }
 0x1ac   :  { %1993 = vst.msk [vmem:[#allocation5 + $0x8] sm:$0xff] %vm381_vm5, %v1977_v41  ;;  %v1779_v51 = vadd.f32 %v11864_v36, %v1763_v20  ;;  %v1762_v27 = vld [vmem:[#allocation5 + $0x60] sm:$0xff] }
 0x1ad   :  { %1992 = vst.msk [vmem:[#allocation5] sm:$0xff] %vm381_vm5, %v1976_v40  ;;  %v1778_v24 = vadd.f32 %v1762_v27, %v11866_v30  ;;  %v9415_v10 = vpop.f32.mrb[92].mxu1  ;;  %v1969_v12 = vld [vmem:[#allocation5 + $0x48] sm:$0xff] }
 0x1ae   :  { %1795 = vst.msk [vmem:[#allocation5 + $0x68] sm:$0xff] %vm381_vm5, %v1779_v51  ;;  %v1979_v43 = vadd.f32 %v9415_v10, %v1963_v60  ;;  %v1891_v3 = vpop.f32.mrb[93].mxu1  ;;  %v1968_v58 = vld [vmem:[#allocation5 + $0x40] sm:$0xff] }
 0x1af   :  { %1794 = vst.msk [vmem:[#allocation5 + $0x60] sm:$0xff] %vm381_vm5, %v1778_v24  ;;  %v1765_v16 = vld [vmem:[#allocation5 + $0x78] sm:$0xff]  ;;  %v1978_v48 = vadd.f32 %v1962_v0, %v1891_v3 }
 0x1b0   :  { %1995 = vst.msk [vmem:[#allocation5 + $0x18] sm:$0xff] %vm381_vm5, %v1979_v43  ;;  %v1781_v36 = vadd.f32 %v11876_v49, %v1765_v16  ;;  %v1764_v13 = vld [vmem:[#allocation5 + $0x70] sm:$0xff] }
 0x1b1   :  { %1994 = vst.msk [vmem:[#allocation5 + $0x10] sm:$0xff] %vm381_vm5, %v1978_v48  ;;  %v1780_v30 = vadd.f32 %v1764_v13, %v11878_v47  ;;  %v9418_v29 = vpop.f32.mrb[94].mxu1  ;;  %v1971_v53 = vld [vmem:[#allocation5 + $0x58] sm:$0xff] }
 0x1b2   :  { %1797 = vst.msk [vmem:[#allocation5 + $0x78] sm:$0xff] %vm381_vm5, %v1781_v36  ;;  %v1981_v57 = vadd.f32 %v9418_v29, %v1965_v18  ;;  %v1901_v9 = vpop.f32.mrb[95].mxu1  ;;  %v1970_v24 = vld [vmem:[#allocation5 + $0x50] sm:$0xff] }
 0x1b3   :  { %1796 = vst.msk [vmem:[#allocation5 + $0x70] sm:$0xff] %vm381_vm5, %v1780_v30  ;;  %v1980_v1 = vadd.f32 %v1964_v11, %v1901_v9  ;;  %v2169_v15 = vld [vmem:[#allocation5 + $0x8] sm:$0xff] }
 0x1b4   :  { %1997 = vst.msk [vmem:[#allocation5 + $0x28] sm:$0xff] %vm381_vm5, %v1981_v57  ;;  %v2185_v49 = vadd.f32 %v11882_v42, %v2169_v15  ;;  %v2168_v17 = vld [vmem:[#allocation5] sm:$0xff]  ;;  %v8151_v15 = vld [vmem:[%s14548_s3 + $0x58] sm:$0xff] }
 0x1b5   :  { %1996 = vst.msk [vmem:[#allocation5 + $0x20] sm:$0xff] %vm381_vm5, %v1980_v1  ;;  %v2184_v47 = vadd.f32 %v2168_v17, %v11884_v52  ;;  %v9421_v46 = vpop.f32.mrb[96].mxu1  ;;  %v1973_v48 = vld [vmem:[#allocation5 + $0x68] sm:$0xff]  ;;  %v8150_v1 = vld [vmem:[%s14548_s3 + $0x50] sm:$0xff] }
 0x1b6   :  { %2201 = vst.msk [vmem:[#allocation5 + $0x8] sm:$0xff] %vm381_vm5, %v2185_v49  ;;  %v1983_v8 = vadd.f32 %v9421_v46, %v1967_v38  ;;  %v1911_v44 = vpop.f32.mrb[97].mxu1  ;;  %v1972_v18 = vld [vmem:[#allocation5 + $0x60] sm:$0xff] }
 0x1b7   :  { %2200 = vst.msk [vmem:[#allocation5] sm:$0xff] %vm381_vm5, %v2184_v47  ;;  %v1982_v22 = vadd.f32 %v1966_v14, %v1911_v44  ;;  %v2171_v23 = vld [vmem:[#allocation5 + $0x18] sm:$0xff] }
 0x1b8   :  { %1999 = vst.msk [vmem:[#allocation5 + $0x38] sm:$0xff] %vm381_vm5, %v1983_v8  ;;  %v2187_v42 = vadd.f32 %v11888_v45, %v2171_v23  ;;  %v2170_v32 = vld [vmem:[#allocation5 + $0x10] sm:$0xff]  ;;  %v8171_v23 = vld [vmem:[%s14548_s3 + $0x78] sm:$0xff] }
 0x1b9   :  { %1998 = vst.msk [vmem:[#allocation5 + $0x30] sm:$0xff] %vm381_vm5, %v1982_v22  ;;  %v2186_v52 = vadd.f32 %v2170_v32, %v11891_v50  ;;  %v9424_v25 = vpop.f32.mrb[98].mxu1  ;;  %v1975_v46 = vld [vmem:[#allocation5 + $0x78] sm:$0xff]  ;;  %v8170_v22 = vld [vmem:[%s14548_s3 + $0x70] sm:$0xff] }
 0x1ba   :  { %2203 = vst.msk [vmem:[#allocation5 + $0x18] sm:$0xff] %vm381_vm5, %v2187_v42  ;;  %v1985_v26 = vadd.f32 %v9424_v25, %v1969_v12  ;;  %v1921_v56 = vpop.f32.mrb[99].mxu1  ;;  %v1974_v14 = vld [vmem:[#allocation5 + $0x70] sm:$0xff]  ;;  %v8189_v42 = vld [vmem:[%s14548_s3 + $0x88] sm:$0xff] }
 0x1bb   :  { %2202 = vst.msk [vmem:[#allocation5 + $0x10] sm:$0xff] %vm381_vm5, %v2186_v52  ;;  %v1984_v59 = vadd.f32 %v1968_v58, %v1921_v56  ;;  %v2173_v28 = vld [vmem:[#allocation5 + $0x28] sm:$0xff]  ;;  %v10329_v56 = vpack.c.bf16 %v8151_v15, %v8150_v1 }
 0x1bc   :  { %2001 = vst.msk [vmem:[#allocation5 + $0x48] sm:$0xff] %vm381_vm5, %v1985_v26  ;;  %v2189_v45 = vadd.f32 %v11894_v6, %v2173_v28  ;;  %v2172_v19 = vld [vmem:[#allocation5 + $0x20] sm:$0xff] }
 0x1bd   :  { %v2217_v41 = vld [vmem:[#allocation5 + $0x8] sm:$0xff]  ;;  %2000 = vst.msk [vmem:[#allocation5 + $0x40] sm:$0xff] %vm381_vm5, %v1984_v59  ;;  %v2188_v50 = vadd.f32 %v2172_v19, %v11897_v34  ;;  %v9427_v61 = vpop.f32.mrb[100].mxu1 }
 0x1be   :  { %v2233_v20 = vmax.f32 %v2217_v41, 0.0  ;;  %v2216_v40 = vld [vmem:[#allocation5] sm:$0xff]  ;;  %2205 = vst.msk [vmem:[#allocation5 + $0x28] sm:$0xff] %vm381_vm5, %v2189_v45  ;;  %v1987_v51 = vadd.f32 %v9427_v61, %v1971_v53  ;;  %v1931_v27 = vpop.f32.mrb[101].mxu1 }
 0x1bf   :  { %v2232_v10 = vmax.f32 %v2216_v40, 0.0  ;;  %2204 = vst.msk [vmem:[#allocation5 + $0x20] sm:$0xff] %vm381_vm5, %v2188_v50  ;;  %v1986_v60 = vadd.f32 %v1970_v24, %v1931_v27  ;;  %v2175_v6 = vld [vmem:[#allocation5 + $0x38] sm:$0xff] }
 0x1c0   :  { %2003 = vst.msk [vmem:[#allocation5 + $0x58] sm:$0xff] %vm381_vm5, %v1987_v51  ;;  %v2191_v43 = vadd.f32 %v11900_v39, %v2175_v6  ;;  %v2174_v3 = vld [vmem:[#allocation5 + $0x30] sm:$0xff]  ;;  %2291 = vst.msk [vmem:[#allocation3 + $0x21] sm:$0xff] %vm381_vm5, %v2233_v20  ;;  %v8209_v51 = vld [vmem:[%s14548_s3 + $0xa8] sm:$0xff] }
 0x1c1   :  { %v2219_v34 = vld [vmem:[#allocation5 + $0x18] sm:$0xff]  ;;  %2002 = vst.msk [vmem:[#allocation5 + $0x50] sm:$0xff] %vm381_vm5, %v1986_v60  ;;  %v2190_v0 = vadd.f32 %v2174_v3, %v11943_v21  ;;  %v9430_v16 = vpop.f32.mrb[102].mxu1  ;;  %2290 = vst.msk [vmem:[#allocation3 + $0x11] sm:$0xff] %vm381_vm5, %v2232_v10 }
 0x1c2   :  { %v2235_v36 = vmax.f32 %v2219_v34, 0.0  ;;  %v2218_v13 = vld [vmem:[#allocation5 + $0x10] sm:$0xff]  ;;  %2207 = vst.msk [vmem:[#allocation5 + $0x38] sm:$0xff] %vm381_vm5, %v2191_v43  ;;  %v1989_v30 = vadd.f32 %v9430_v16, %v1973_v48  ;;  %v1941_v29 = vpop.f32.mrb[103].mxu1 }
 0x1c3   :  { %v2234_v39 = vmax.f32 %v2218_v13, 0.0  ;;  %2206 = vst.msk [vmem:[#allocation5 + $0x30] sm:$0xff] %vm381_vm5, %v2190_v0  ;;  %v1988_v57 = vadd.f32 %v1972_v18, %v1941_v29  ;;  %v2177_v9 = vld [vmem:[#allocation5 + $0x48] sm:$0xff] }
 0x1c4   :  { %2005 = vst.msk [vmem:[#allocation5 + $0x68] sm:$0xff] %vm381_vm5, %v1989_v30  ;;  %v2193_v21 = vadd.f32 %v11958_v4, %v2177_v9  ;;  %v2176_v11 = vld [vmem:[#allocation5 + $0x40] sm:$0xff]  ;;  %2293 = vst.msk [vmem:[#allocation3 + $0x41] sm:$0xff] %vm381_vm5, %v2235_v36 }
 0x1c5   :  { %v2221_v49 = vld [vmem:[#allocation5 + $0x28] sm:$0xff]  ;;  %2004 = vst.msk [vmem:[#allocation5 + $0x60] sm:$0xff] %vm381_vm5, %v1988_v57  ;;  %v2192_v17 = vadd.f32 %v2176_v11, %v11961_v31  ;;  %v9433_v47 = vpop.f32.mrb[104].mxu1  ;;  %2292 = vst.msk [vmem:[#allocation3 + $0x31] sm:$0xff] %vm381_vm5, %v2234_v39  ;;  %v8188_v31 = vld [vmem:[%s14548_s3 + $0x80] sm:$0xff] }
 0x1c6   :  { %v2237_v4 = vmax.f32 %v2221_v49, 0.0  ;;  %v2220_v38 = vld [vmem:[#allocation5 + $0x20] sm:$0xff]  ;;  %2209 = vst.msk [vmem:[#allocation5 + $0x48] sm:$0xff] %vm381_vm5, %v2193_v21  ;;  %v1991_v8 = vadd.f32 %v9433_v47, %v1975_v46  ;;  %v1951_v44 = vpop.f32.mrb[105].mxu1  ;;  %v12203_v43 = vpack.c.bf16 %v8189_v42, %v8188_v31 }
 0x1c7   :  { %v2236_v32 = vmax.f32 %v2220_v38, 0.0  ;;  %2208 = vst.msk [vmem:[#allocation5 + $0x40] sm:$0xff] %vm381_vm5, %v2192_v17  ;;  %v1990_v52 = vadd.f32 %v1974_v14, %v1951_v44  ;;  %v2179_v25 = vld [vmem:[#allocation5 + $0x58] sm:$0xff]  ;;  %v12165_v12 = vld [vmem:[#allocation3 + $0x20] sm:$0xff]  ;;  %v12167_v26 = vld [vmem:[#allocation3 + $0x28] sm:$0x3] }
 0x1c8   :  { %2007 = vst.msk [vmem:[#allocation5 + $0x78] sm:$0xff] %vm381_vm5, %v1991_v8  ;;  %v2195_v58 = vadd.f32 %v11970_v55, %v2179_v25  ;;  %v2178_v59 = vld [vmem:[#allocation5 + $0x50] sm:$0xff]  ;;  %2295 = vst.msk [vmem:[#allocation3 + $0x61] sm:$0xff] %vm381_vm5, %v2237_v4  ;;  %v12174_v45 = vld [vmem:[#allocation3 + $0x18] sm:$0x3]  ;;  %v2589_v19 = vrot.slane %v12165_v12, 1 }
 0x1c9   :  { %v12171_v28 = vld [vmem:[#allocation3 + $0x10] sm:$0xff]  ;;  %v2590_v41 = vrot.slane %v12167_v26, 1  ;;  %v2223_v50 = vld [vmem:[#allocation5 + $0x38] sm:$0xff]  ;;  %2006 = vst.msk [vmem:[#allocation5 + $0x70] sm:$0xff] %vm381_vm5, %v1990_v52  ;;  %v2194_v61 = vadd.f32 %v2178_v59, %v11977_v63  ;;  %2294 = vst.msk [vmem:[#allocation3 + $0x51] sm:$0xff] %vm381_vm5, %v2236_v32  ;;  %v2587_v53 = vrot.slane %v12174_v45, 1 }
 0x1ca   :  { %9469 = vmatmul.mubr.msk.f32.vlgmr.msra.gmra.mrb[106].mxu1 %vm381_vm5, %v12171_v28  ;;  %v2586_v55 = vrot.slane %v12171_v28, 1  ;;  %v2239_v20 = vmax.f32 %v2223_v50, 0.0  ;;  %v2222_v40 = vld [vmem:[#allocation5 + $0x30] sm:$0xff]  ;;  %2211 = vst.msk [vmem:[#allocation5 + $0x58] sm:$0xff] %vm381_vm5, %v2195_v58  ;;  %v8208_v63 = vld [vmem:[%s14548_s3 + $0xa0] sm:$0xff] }
 0x1cb   :  { %9471 = vmatprep.mubr.msk.f32.mxu1 %vm381_vm5, %v12165_v12  ;;  %10328 = vmatpush3.bf16.msra.mxu1 %v12006_v35  ;;  %v2238_v27 = vmax.f32 %v2222_v40, 0.0  ;;  %2210 = vst.msk [vmem:[#allocation5 + $0x50] sm:$0xff] %vm381_vm5, %v2194_v61  ;;  %v2181_v24 = vld [vmem:[#allocation5 + $0x68] sm:$0xff]  ;;  %v12199_v60 = vld [vmem:[#allocation3 + $0x40] sm:$0xff]  ;;  %v10337_v35 = vpack.c.bf16 %v8171_v23, %v8170_v22  ;;  %v12212_v16 = vsel %vm414_vm3, %v2589_v19, %v2590_v41 }
 0x1cc   :  { %v12197_v10 = vsel %vm414_vm3, %v2586_v55, %v2587_v53  ;;  %v12201_v6 = vld [vmem:[#allocation3 + $0x48] sm:$0x3]  ;;  %10330 = vmatprep.subr.bf16.mxu1 %v10329_v56  ;;  %2297 = vst.msk [vmem:[#allocation3 + $0x81] sm:$0xff] %vm381_vm5, %v2239_v20  ;;  %v2197_v3 = vadd.f32 %v11985_v7, %v2181_v24  ;;  %v2180_v34 = vld [vmem:[#allocation5 + $0x60] sm:$0xff]  ;;  %v12209_v0 = vld [vmem:[#allocation3 + $0x30] sm:$0xff]  ;;  %v2595_v36 = vrot.slane %v12199_v60, 1  ;;  %v12243_v17 = vpack.c.bf16 %v8209_v51, %v8208_v63 }
 0x1cd   :  { %9501 = vmatmul.mubr.msk.f32.vlgmr.msra.gmra.mrb[38].mxu0 %vm381_vm5, %v12197_v10  ;;  %v12214_v48 = vld [vmem:[#allocation3 + $0x38] sm:$0x3]  ;;  %v2596_v13 = vrot.slane %v12201_v6, 1  ;;  %v2225_v30 = vld [vmem:[#allocation5 + $0x48] sm:$0xff]  ;;  %2296 = vst.msk [vmem:[#allocation3 + $0x71] sm:$0xff] %vm381_vm5, %v2238_v27  ;;  %v2196_v7 = vadd.f32 %v2180_v34, %v11989_v33  ;;  %v2592_v29 = vrot.slane %v12209_v0, 1 }
 0x1ce   :  { %9472 = vmatmul.mubr.msk.f32.gmra.mrb[108].mxu1 %vm381_vm5, %v12209_v0  ;;  %9503 = vmatprep.mubr.msk.f32.mxu0 %vm381_vm5, %v12212_v16  ;;  %v2593_v18 = vrot.slane %v12214_v48, 1  ;;  %v2241_v39 = vmax.f32 %v2225_v30, 0.0  ;;  %v2224_v57 = vld [vmem:[#allocation5 + $0x40] sm:$0xff]  ;;  %2213 = vst.msk [vmem:[#allocation5 + $0x68] sm:$0xff] %vm381_vm5, %v2197_v3  ;;  %v12231_v33 = vld [vmem:[#allocation3 + $0xa8] sm:$0x3] }
 0x1cf   :  { %9474 = vmatprep.mubr.msk.f32.mxu1 %vm381_vm5, %v12199_v60  ;;  %v12229_v9 = vld [vmem:[#allocation3 + $0xa0] sm:$0xff]  ;;  %10332 = vmatpush3.bf16.msra.mxu1 %v10329_v56  ;;  %v2240_v21 = vmax.f32 %v2224_v57, 0.0  ;;  %2212 = vst.msk [vmem:[#allocation5 + $0x60] sm:$0xff] %vm381_vm5, %v2196_v7  ;;  %v2183_v11 = vld [vmem:[#allocation5 + $0x78] sm:$0xff]  ;;  %v12239_v49 = vld [vmem:[#allocation3 + $0x68] sm:$0x3]  ;;  %v12252_v38 = vsel %vm414_vm3, %v2595_v36, %v2596_v13 }
 0x1d0   :  { %v12235_v1 = vsel %vm414_vm3, %v2592_v29, %v2593_v18  ;;  %v12237_v15 = vld [vmem:[#allocation3 + $0x60] sm:$0xff]  ;;  %10336 = vmatpush3.bf16.msra.mxu0 %v12019_v54  ;;  %10342 = vmatprep.subr.bf16.mxu1 %v12203_v43  ;;  %2299 = vst.msk [vmem:[#allocation3 + $0xc1] sm:$0xff] %vm381_vm5, %v2241_v39  ;;  %v2199_v47 = vadd.f32 %v11992_v37, %v2183_v11  ;;  %v2182_v46 = vld [vmem:[#allocation5 + $0x70] sm:$0xff]  ;;  %v12254_v8 = vld [vmem:[#allocation3 + $0x58] sm:$0x3]  ;;  %v2602_v44 = vrot.slane %v12239_v49, 1 }
 0x1d1   :  { %9504 = vmatmul.mubr.msk.f32.gmra.mrb[40].mxu0 %vm381_vm5, %v12235_v1  ;;  %v12249_v4 = vld [vmem:[#allocation3 + $0x50] sm:$0xff]  ;;  %v2601_v54 = vrot.slane %v12237_v15, 1  ;;  %10338 = vmatprep.subr.bf16.mxu0 %v10337_v35  ;;  %v2227_v14 = vld [vmem:[#allocation5 + $0x58] sm:$0xff]  ;;  %2298 = vst.msk [vmem:[#allocation3 + $0xb1] sm:$0xff] %vm381_vm5, %v2240_v21  ;;  %v2198_v37 = vadd.f32 %v2182_v46, %v11995_v5  ;;  %v2599_v23 = vrot.slane %v12254_v8, 1  ;;  %v2607_v32 = vrot.slane %v12229_v9, 1 }
 0x1d2   :  { %9475 = vmatmul.mubr.msk.f32.gmra.mrb[110].mxu1 %vm381_vm5, %v12249_v4  ;;  %9506 = vmatprep.mubr.msk.f32.mxu0 %vm381_vm5, %v12252_v38  ;;  %v2598_v22 = vrot.slane %v12249_v4, 1  ;;  %v2243_v31 = vmax.f32 %v2227_v14, 0.0  ;;  %v2226_v42 = vld [vmem:[#allocation5 + $0x50] sm:$0xff]  ;;  %2215 = vst.msk [vmem:[#allocation5 + $0x78] sm:$0xff] %vm381_vm5, %v2199_v47  ;;  %v2608_v5 = vrot.slane %v12231_v33, 1 }
 0x1d3   :  { %9477 = vmatprep.mubr.msk.f32.mxu1 %vm381_vm5, %v12237_v15  ;;  %v2242_v52 = vmax.f32 %v2226_v42, 0.0  ;;  %2214 = vst.msk [vmem:[#allocation5 + $0x70] sm:$0xff] %vm381_vm5, %v2198_v37  ;;  %v12281_v58 = vsel %vm414_vm3, %v2601_v54, %v2602_v44 }
 0x1d4   :  { %v12273_v25 = vsel %vm414_vm3, %v2598_v22, %v2599_v23  ;;  %10340 = vmatpush3.bf16.msra.mxu0 %v10337_v35  ;;  %2301 = vst.msk [vmem:[#allocation3 + $0xe1] sm:$0xff] %vm381_vm5, %v2243_v31  ;;  %v12278_v56 = vld [vmem:[#allocation3 + $0x70] sm:$0xff]  ;;  %v12283_v59 = vld [vmem:[#allocation3 + $0x78] sm:$0x3]  ;;  %v2609_v53 = vsel %vm414_vm3, %v2607_v32, %v2608_v5 }
 0x1d5   :  { %9507 = vmatmul.mubr.msk.f32.gmra.mrb[42].mxu0 %vm381_vm5, %v12273_v25  ;;  %10350 = vmatprep.subr.bf16.mxu0 %v12243_v17  ;;  %2300 = vst.msk [vmem:[#allocation3 + $0xd1] sm:$0xff] %vm381_vm5, %v2242_v52  ;;  %v2229_v19 = vld [vmem:[#allocation5 + $0x68] sm:$0xff]  ;;  %v2604_v41 = vrot.slane %v12278_v56, 1  ;;  %v2605_v50 = vrot.slane %v12283_v59, 1 }
 0x1d6   :  { %9478 = vmatmul.mubr.msk.f32.gmra.mrb[112].mxu1 %vm381_vm5, %v12278_v56  ;;  %9509 = vmatprep.mubr.msk.f32.mxu0 %vm381_vm5, %v12281_v58  ;;  %v2245_v61 = vmax.f32 %v2229_v19, 0.0  ;;  %v2228_v55 = vld [vmem:[#allocation5 + $0x60] sm:$0xff] }
 0x1d7   :  { %9480 = vmatprep.mubr.msk.f32.mxu1 %vm381_vm5, %v12229_v9  ;;  %v2244_v20 = vmax.f32 %v2228_v55, 0.0  ;;  %v12297_v40 = vsel %vm414_vm3, %v2604_v41, %v2605_v50  ;;  %v12299_v63 = vld [vmem:[#allocation3 + $0xc0] sm:$0xff]  ;;  %v12301_v51 = vld [vmem:[#allocation3 + $0xc8] sm:$0x3]  ;;  %v2864_v55 = vrot.slane %v12171_v28, 2 }
 0x1d8   :  { %2303 = vst.msk [vmem:[#allocation3 + $0x101] sm:$0xff] %vm381_vm5, %v2245_v61  ;;  %v12306_v27 = vld [vmem:[#allocation3 + $0xb0] sm:$0xff]  ;;  %v12308_v24 = vld [vmem:[#allocation3 + $0xb8] sm:$0x3]  ;;  %v2613_v35 = vrot.slane %v12299_v63, 1  ;;  %v2614_v3 = vrot.slane %v12301_v51, 1 }
 0x1d9   :  { %9510 = vmatmul.mubr.msk.f32.gmra.mrb[44].mxu0 %vm381_vm5, %v12297_v40  ;;  %2302 = vst.msk [vmem:[#allocation3 + $0xf1] sm:$0xff] %vm381_vm5, %v2244_v20  ;;  %v2231_v34 = vld [vmem:[#allocation5 + $0x78] sm:$0xff]  ;;  %v2610_v36 = vrot.slane %v12306_v27, 1  ;;  %v2611_v13 = vrot.slane %v12308_v24, 1  ;;  %v8190_v61 = vld [vmem:[%s14548_s3 + $0x90] sm:$0xff] }
 0x1da   :  { %9481 = vmatmul.mubr.msk.f32.gmra.mrb[114].mxu1 %vm381_vm5, %v12306_v27  ;;  %9512 = vmatprep.mubr.msk.f32.mxu0 %vm381_vm5, %v2609_v53  ;;  %v2247_v30 = vmax.f32 %v2231_v34, 0.0  ;;  %v2230_v7 = vld [vmem:[#allocation5 + $0x70] sm:$0xff]  ;;  %v12333_v11 = vsel %vm414_vm3, %v2613_v35, %v2614_v3  ;;  %v2865_v3 = vrot.slane %v12174_v45, 2  ;;  %v8191_v34 = vld [vmem:[%s14548_s3 + $0x98] sm:$0xff] }
 0x1db   :  { %9483 = vmatprep.mubr.msk.f32.mxu1 %vm381_vm5, %v12299_v63  ;;  %v2246_v29 = vmax.f32 %v2230_v7, 0.0  ;;  %v12321_v18 = vsel %vm414_vm3, %v2610_v36, %v2611_v13  ;;  %v12323_v39 = vld [vmem:[#allocation3 + $0xe0] sm:$0xff]  ;;  %v12325_v57 = vld [vmem:[#allocation3 + $0xe8] sm:$0x3]  ;;  %v2868_v7 = vrot.slane %v12167_v26, 2 }
 0x1dc   :  { %2305 = vst.msk [vmem:[#allocation3 + $0x121] sm:$0xff] %vm381_vm5, %v2247_v30  ;;  %v12330_v21 = vld [vmem:[#allocation3 + $0xd0] sm:$0xff]  ;;  %v12335_v47 = vld [vmem:[#allocation3 + $0xd8] sm:$0x3]  ;;  %v2619_v46 = vrot.slane %v12323_v39, 1  ;;  %v2620_v54 = vrot.slane %v12325_v57, 1 }
 0x1dd   :  { %9513 = vmatmul.mubr.msk.f32.gmra.mrb[46].mxu0 %vm381_vm5, %v12321_v18  ;;  %2304 = vst.msk [vmem:[#allocation3 + $0x111] sm:$0xff] %vm381_vm5, %v2246_v29  ;;  %v2616_v44 = vrot.slane %v12330_v21, 1  ;;  %v2617_v14 = vrot.slane %v12335_v47, 1  ;;  %v2867_v30 = vrot.slane %v12165_v12, 2  ;;  %v10345_v29 = vpack.c.bf16 %v8191_v34, %v8190_v61  ;;  %v8228_v26 = vld [vmem:[%s14548_s3 + $0xc0] sm:$0xff] }
 0x1de   :  { %9484 = vmatmul.mubr.msk.f32.gmra.mrb[116].mxu1 %vm381_vm5, %v12330_v21  ;;  %9515 = vmatprep.mubr.msk.f32.mxu0 %vm381_vm5, %v12333_v11  ;;  %v12360_v42 = vsel %vm414_vm3, %v2619_v46, %v2620_v54  ;;  %v12410_v46 = vsel %vm693_vm4, %v2864_v55, %v2865_v3  ;;  %v2870_v54 = vrot.slane %v12209_v0, 2  ;;  %v2877_v61 = vrot.slane %v12254_v8, 2  ;;  %v8249_v8 = vld [vmem:[%s14548_s3 + $0xe8] sm:$0xff] }
 0x1df   :  { %9486 = vmatprep.mubr.msk.f32.mxu1 %vm381_vm5, %v12323_v39  ;;  %v12349_v37 = vsel %vm414_vm3, %v2616_v44, %v2617_v14  ;;  %v12351_v22 = vld [vmem:[#allocation3 + $0x100] sm:$0xff]  ;;  %v12353_v23 = vld [vmem:[#allocation3 + $0x108] sm:$0x3]  ;;  %v2871_v44 = vrot.slane %v12214_v48, 2  ;;  %v12425_v14 = vsel %vm693_vm4, %v2867_v30, %v2868_v7  ;;  %v2874_v48 = vrot.slane %v12201_v6, 2 }
 0x1e0   :  { %v12357_v31 = vld [vmem:[#allocation3 + $0xf0] sm:$0xff]  ;;  %v12362_v32 = vld [vmem:[#allocation3 + $0xf8] sm:$0x3]  ;;  %v2625_v5 = vrot.slane %v12351_v22, 1  ;;  %v2626_v52 = vrot.slane %v12353_v23, 1  ;;  %v2879_v3 = vrot.slane %v12237_v15, 2 }
 0x1e1   :  { %9516 = vmatmul.mubr.msk.f32.gmra.mrb[48].mxu0 %vm381_vm5, %v12349_v37  ;;  %v2622_v19 = vrot.slane %v12357_v31, 1  ;;  %v2623_v41 = vrot.slane %v12362_v32, 1  ;;  %v12443_v6 = vsel %vm693_vm4, %v2870_v54, %v2871_v44  ;;  %v2880_v34 = vrot.slane %v12239_v49, 2 }
 0x1e2   :  { %9487 = vmatmul.mubr.msk.f32.gmra.mrb[118].mxu1 %vm381_vm5, %v12357_v31  ;;  %9518 = vmatprep.mubr.msk.f32.mxu0 %vm381_vm5, %v12360_v42  ;;  %v12386_v20 = vsel %vm414_vm3, %v2625_v5, %v2626_v52  ;;  %v2873_v5 = vrot.slane %v12199_v60, 2  ;;  %v8210_v52 = vld [vmem:[%s14548_s3 + $0xb0] sm:$0xff]  ;;  %v2886_v30 = vrot.slane %v12231_v33, 2  ;;  %v2882_v7 = vrot.slane %v12278_v56, 2 }
 0x1e3   :  { %9489 = vmatprep.mubr.msk.f32.mxu1 %vm381_vm5, %v12351_v22  ;;  %v12375_v50 = vsel %vm414_vm3, %v2622_v19, %v2623_v41  ;;  %v8211_v19 = vld [vmem:[%s14548_s3 + $0xb8] sm:$0xff]  ;;  %v2876_v41 = vrot.slane %v12249_v4, 2  ;;  %v2883_v54 = vrot.slane %v12283_v59, 2  ;;  %v2889_v44 = vrot.slane %v12308_v24, 2 }
 0x1e4   :  { %v12383_v53 = vld [vmem:[#allocation3 + $0x110] sm:$0xff]  ;;  %v12388_v35 = vld [vmem:[#allocation3 + $0x118] sm:$0x3]  ;;  %v10353_v55 = vpack.c.bf16 %v8211_v19, %v8210_v52  ;;  %v2895_v52 = vrot.slane %v12335_v47, 2  ;;  %v2897_v19 = vrot.slane %v12323_v39, 2 }
 0x1e5   :  { %9519 = vmatmul.mubr.msk.f32.gmra.mrb[50].mxu0 %vm381_vm5, %v12375_v50  ;;  %v2628_v36 = vrot.slane %v12383_v53, 1  ;;  %v2629_v13 = vrot.slane %v12388_v35, 1  ;;  %v12471_v49 = vsel %vm693_vm4, %v2876_v41, %v2877_v61  ;;  %v12491_v59 = vsel %vm693_vm4, %v2882_v7, %v2883_v54  ;;  %v8268_v54 = vld [vmem:[%s14548_s3 + $0x100] sm:$0xff] }
 0x1e6   :  { %9490 = vmatmul.mubr.msk.f32.gmra.mrb[120].mxu1 %vm381_vm5, %v12383_v53  ;;  %9521 = vmatprep.mubr.msk.f32.mxu0 %vm381_vm5, %v12386_v20  ;;  %v2898_v41 = vrot.slane %v12325_v57, 2  ;;  %v2900_v61 = vrot.slane %v12357_v31, 2 }
 0x1e7   :  { %9532 = vmatprep.mubr.msk.f32.mxu1 %vm381_vm5, %v12037_v62  ;;  %v12405_v45 = vsel %vm414_vm3, %v2628_v36, %v2629_v13  ;;  %v8229_v62 = vld [vmem:[%s14548_s3 + $0xc8] sm:$0xff]  ;;  %v8248_v36 = vld [vmem:[%s14548_s3 + $0xe0] sm:$0xff]  ;;  %v2885_v13 = vrot.slane %v12229_v9, 2  ;;  %v12482_v9 = vsel %vm693_vm4, %v2879_v3, %v2880_v34  ;;  %v2904_v3 = vrot.slane %v12353_v23, 2 }
 0x1e8   :  { %v12534_v57 = vsel %vm693_vm4, %v2897_v19, %v2898_v41  ;;  %v2906_v34 = vrot.slane %v12383_v53, 2 }
 0x1e9   :  { %9522 = vmatmul.mubr.msk.f32.gmra.mrb[52].mxu0 %vm381_vm5, %v12405_v45  ;;  %v2887_v33 = vsel %vm693_vm4, %v2885_v13, %v2886_v30  ;;  %v8231_v13 = vld [vmem:[%s14548_s3 + $0xd8] sm:$0xff]  ;;  %v12573_v30 = vld [vmem:[#allocation3 + $0x120] sm:$0xff] }
 0x1ea   :  { %9533 = vmatmul.mubr.msk.f32.vlgmr.msra.gmra.mrb[122].mxu1 %vm381_vm5, %v12410_v46  ;;  %9564 = vmatprep.mubr.msk.f32.mxu0 %vm381_vm5, %v12171_v28  ;;  %v12438_v28 = vpack.c.bf16 %v8229_v62, %v8228_v26  ;;  %v2891_v26 = vrot.slane %v12299_v63, 2  ;;  %v2892_v62 = vrot.slane %v12301_v51, 2 }
 0x1eb   :  { %9535 = vmatprep.mubr.msk.f32.mxu1 %vm381_vm5, %v12425_v14  ;;  %10344 = vmatpush3.bf16.msra.mxu1 %v12203_v43  ;;  %v12452_v43 = vsel %vm693_vm4, %v2873_v5, %v2874_v48  ;;  %v12502_v5 = vld [vmem:[#allocation3 + $0x80] sm:$0xff]  ;;  %v2894_v48 = vrot.slane %v12330_v21, 2 }
 0x1ec   :  { %10346 = vmatprep.subr.bf16.mxu1 %v10345_v29  ;;  %v12516_v51 = vsel %vm693_vm4, %v2891_v26, %v2892_v62  ;;  %v2323_v26 = vld [vmem:[#allocation3 + $0x88] sm:$0x3] }
 0x1ed   :  { %9565 = vmatmul.mubr.msk.f32.vlgmr.msra.gmra.mrb[54].mxu0 %vm381_vm5, %v12165_v12  ;;  %v12525_v47 = vsel %vm693_vm4, %v2894_v48, %v2895_v52  ;;  %v3346_v62 = vrot.slane %v2323_v26, 1  ;;  %v3554_v48 = vrot.slane %v2323_v26, 2 }
 0x1ee   :  { %9536 = vmatmul.mubr.msk.f32.gmra.mrb[124].mxu1 %vm381_vm5, %v12443_v6  ;;  %9567 = vmatprep.mubr.msk.f32.mxu0 %vm381_vm5, %v12209_v0 }
 0x1ef   :  { %9538 = vmatprep.mubr.msk.f32.mxu1 %vm381_vm5, %v12452_v43  ;;  %10348 = vmatpush3.bf16.msra.mxu1 %v10345_v29  ;;  %v12475_v29 = vpack.c.bf16 %v8249_v8, %v8248_v36  ;;  %v2907_v36 = vrot.slane %v12388_v35, 2  ;;  %v8230_v35 = vld [vmem:[%s14548_s3 + $0xd0] sm:$0xff] }
 0x1f0   :  { %10352 = vmatpush3.bf16.msra.mxu0 %v12243_v17  ;;  %10358 = vmatprep.subr.bf16.mxu1 %v12438_v28  ;;  %v2888_v17 = vrot.slane %v12306_v27, 2  ;;  %v10361_v7 = vpack.c.bf16 %v8231_v13, %v8230_v35 }
 0x1f1   :  { %9568 = vmatmul.mubr.msk.f32.gmra.mrb[56].mxu0 %vm381_vm5, %v12199_v60  ;;  %10354 = vmatprep.subr.bf16.mxu0 %v10353_v55  ;;  %v12559_v8 = vsel %vm693_vm4, %v2906_v34, %v2907_v36  ;;  %v8271_v34 = vld [vmem:[%s14548_s3 + $0x118] sm:$0xff] }
 0x1f2   :  { %9539 = vmatmul.mubr.msk.f32.gmra.mrb[126].mxu1 %vm381_vm5, %v12471_v49  ;;  %9570 = vmatprep.mubr.msk.f32.mxu0 %vm381_vm5, %v12249_v4  ;;  %v12507_v24 = vsel %vm693_vm4, %v2888_v17, %v2889_v44  ;;  %v8251_v17 = vld [vmem:[%s14548_s3 + $0xf8] sm:$0xff] }
 0x1f3   :  { %9541 = vmatprep.mubr.msk.f32.mxu1 %vm381_vm5, %v12482_v9 }
 0x1f4   :  { %10356 = vmatpush3.bf16.msra.mxu0 %v10353_v55  ;;  %v2903_v55 = vrot.slane %v12351_v22, 2 }
 0x1f5   :  { %9571 = vmatmul.mubr.msk.f32.gmra.mrb[58].mxu0 %vm381_vm5, %v12237_v15  ;;  %10366 = vmatprep.subr.bf16.mxu0 %v12475_v29 }
 0x1f6   :  { %9542 = vmatmul.mubr.msk.f32.gmra.mrb[128].mxu1 %vm381_vm5, %v12491_v59  ;;  %9573 = vmatprep.mubr.msk.f32.mxu0 %vm381_vm5, %v12278_v56  ;;  %v12552_v23 = vsel %vm693_vm4, %v2903_v55, %v2904_v3  ;;  %v8270_v3 = vld [vmem:[%s14548_s3 + $0x110] sm:$0xff] }
 0x1f7   :  { %9544 = vmatprep.mubr.msk.f32.mxu1 %vm381_vm5, %v2887_v33  ;;  %v8269_v33 = vld [vmem:[%s14548_s3 + $0x108] sm:$0xff]  ;;  %v10377_v35 = vpack.c.bf16 %v8271_v34, %v8270_v3 }
 0x1f8   :  { %v12596_v44 = vpack.c.bf16 %v8269_v33, %v8268_v54 }
 0x1f9   :  { %9574 = vmatmul.mubr.msk.f32.gmra.mrb[60].mxu0 %vm381_vm5, %v12502_v5 }
 0x1fa   :  { %9545 = vmatmul.mubr.msk.f32.gmra.mrb[130].mxu1 %vm381_vm5, %v12507_v24  ;;  %9576 = vmatprep.mubr.msk.f32.mxu0 %vm381_vm5, %v12306_v27  ;;  %v2901_v27 = vrot.slane %v12362_v32, 2 }
 0x1fb   :  { %9547 = vmatprep.mubr.msk.f32.mxu1 %vm381_vm5, %v12516_v51 }
 0x1fc   :  { %v12543_v32 = vsel %vm693_vm4, %v2900_v61, %v2901_v27  ;;  %v3556_v61 = vrot.slane %v12573_v30, 2 }
 0x1fd   :  { %9577 = vmatmul.mubr.msk.f32.gmra.mrb[62].mxu0 %vm381_vm5, %v12299_v63 }
 0x1fe   :  { %9548 = vmatmul.mubr.msk.f32.gmra.mrb[132].mxu1 %vm381_vm5, %v12525_v47  ;;  %9579 = vmatprep.mubr.msk.f32.mxu0 %vm381_vm5, %v12330_v21 }
 0x1ff   :  { %9550 = vmatprep.mubr.msk.f32.mxu1 %vm381_vm5, %v12534_v57 }
 0x201   :  { %9580 = vmatmul.mubr.msk.f32.gmra.mrb[64].mxu0 %vm381_vm5, %v12323_v39 }
 0x202   :  { %9551 = vmatmul.mubr.msk.f32.gmra.mrb[134].mxu1 %vm381_vm5, %v12543_v32  ;;  %9582 = vmatprep.mubr.msk.f32.mxu0 %vm381_vm5, %v12357_v31 }
 0x203   :  { %9553 = vmatprep.mubr.msk.f32.mxu1 %vm381_vm5, %v12552_v23 }
 0x205   :  { %9583 = vmatmul.mubr.msk.f32.gmra.mrb[66].mxu0 %vm381_vm5, %v12351_v22 }
 0x206   :  { %9554 = vmatmul.mubr.msk.f32.gmra.mrb[136].mxu1 %vm381_vm5, %v12559_v8  ;;  %9585 = vmatprep.mubr.msk.f32.mxu0 %vm381_vm5, %v12383_v53 }
 0x207   :  { %9596 = vmatprep.mubr.msk.f32.mxu1 %vm381_vm5, %v12197_v10  ;;  %v8250_v10 = vld [vmem:[%s14548_s3 + $0xf0] sm:$0xff] }
 0x209   :  { %9586 = vmatmul.mubr.msk.f32.gmra.mrb[68].mxu0 %vm381_vm5, %v12573_v30 }
 0x20a   :  { %9597 = vmatmul.mubr.msk.f32.vlgmr.msra.gmra.mrb[138].mxu1 %vm381_vm5, %v12212_v16  ;;  %9628 = vmatprep.mubr.msk.f32.mxu0 %vm381_vm5, %v12410_v46  ;;  %v10369_v46 = vpack.c.bf16 %v8251_v17, %v8250_v10 }
 0x20b   :  { %9599 = vmatprep.mubr.msk.f32.mxu1 %vm381_vm5, %v12235_v1  ;;  %10360 = vmatpush3.bf16.msra.mxu1 %v12438_v28  ;;  %v3345_v28 = vrot.slane %v12502_v5, 1 }
 0x20c   :  { %10362 = vmatprep.subr.bf16.mxu1 %v10361_v7 }
 0x20d   :  { %9629 = vmatmul.mubr.msk.f32.vlgmr.msra.gmra.mrb[70].mxu0 %vm381_vm5, %v12425_v14  ;;  %v12621_v52 = vsel %vm414_vm3, %v3345_v28, %v3346_v62 }
 0x20e   :  { %9600 = vmatmul.mubr.msk.f32.gmra.mrb[140].mxu1 %vm381_vm5, %v12252_v38  ;;  %9631 = vmatprep.mubr.msk.f32.mxu0 %vm381_vm5, %v12443_v6 }
 0x20f   :  { %9602 = vmatprep.mubr.msk.f32.mxu1 %vm381_vm5, %v12273_v25  ;;  %10364 = vmatpush3.bf16.msra.mxu1 %v10361_v7 }
 0x210   :  { %10368 = vmatpush3.bf16.msra.mxu0 %v12475_v29  ;;  %10374 = vmatprep.subr.bf16.mxu1 %v12596_v44  ;;  %v3553_v29 = vrot.slane %v12502_v5, 2 }
 0x211   :  { %9632 = vmatmul.mubr.msk.f32.gmra.mrb[72].mxu0 %vm381_vm5, %v12452_v43  ;;  %10370 = vmatprep.subr.bf16.mxu0 %v10369_v46 }
 0x212   :  { %9603 = vmatmul.mubr.msk.f32.gmra.mrb[142].mxu1 %vm381_vm5, %v12281_v58  ;;  %9634 = vmatprep.mubr.msk.f32.mxu0 %vm381_vm5, %v12471_v49  ;;  %v12630_v19 = vsel %vm693_vm4, %v3553_v29, %v3554_v48 }
 0x213   :  { %9605 = vmatprep.mubr.msk.f32.mxu1 %vm381_vm5, %v12297_v40 }
 0x214   :  { %10372 = vmatpush3.bf16.msra.mxu0 %v10369_v46 }
 0x215   :  { %9635 = vmatmul.mubr.msk.f32.gmra.mrb[74].mxu0 %vm381_vm5, %v12482_v9 }
 0x216   :  { %9606 = vmatmul.mubr.msk.f32.gmra.mrb[144].mxu1 %vm381_vm5, %v12621_v52  ;;  %9637 = vmatprep.mubr.msk.f32.mxu0 %vm381_vm5, %v12491_v59 }
 0x217   :  { %9608 = vmatprep.mubr.msk.f32.mxu1 %vm381_vm5, %v12321_v18  ;;  %v2343_v18 = vld [vmem:[#allocation3 + $0x128] sm:$0x3] }
 0x218   :  { %v3349_v41 = vrot.slane %v2343_v18, 1  ;;  %v3557_v27 = vrot.slane %v2343_v18, 2 }
 0x219   :  { %9638 = vmatmul.mubr.msk.f32.gmra.mrb[76].mxu0 %vm381_vm5, %v12630_v19 }
 0x21a   :  { %9609 = vmatmul.mubr.msk.f32.gmra.mrb[146].mxu1 %vm381_vm5, %v12333_v11  ;;  %9640 = vmatprep.mubr.msk.f32.mxu0 %vm381_vm5, %v12507_v24  ;;  %v3348_v24 = vrot.slane %v12573_v30, 1  ;;  %v12713_v36 = vsel %vm693_vm4, %v3556_v61, %v3557_v27  ;;  %v4517_v61 = vld [vmem:[%s14550_s5 + $0x20] sm:$0xff]  ;;  %v4518_v27 = vld [vmem:[%s14550_s5 + $0x28] sm:$0xff] }
 0x21b   :  { %9611 = vmatprep.mubr.msk.f32.mxu1 %vm381_vm5, %v12349_v37  ;;  %v10389_v34 = vpack.c.bf16 %v4518_v27, %v4517_v61 }
 0x21c   :  { %v3350_v55 = vsel %vm414_vm3, %v3348_v24, %v3349_v41 }
 0x21d   :  { %9641 = vmatmul.mubr.msk.f32.gmra.mrb[78].mxu0 %vm381_vm5, %v12516_v51 }
 0x21e   :  { %9612 = vmatmul.mubr.msk.f32.gmra.mrb[148].mxu1 %vm381_vm5, %v12360_v42  ;;  %9643 = vmatprep.mubr.msk.f32.mxu0 %vm381_vm5, %v12525_v47 }
 0x21f   :  { %9614 = vmatprep.mubr.msk.f32.mxu1 %vm381_vm5, %v12375_v50 }
 0x221   :  { %9644 = vmatmul.mubr.msk.f32.gmra.mrb[80].mxu0 %vm381_vm5, %v12534_v57 }
 0x222   :  { %9615 = vmatmul.mubr.msk.f32.gmra.mrb[150].mxu1 %vm381_vm5, %v12386_v20  ;;  %9646 = vmatprep.mubr.msk.f32.mxu0 %vm381_vm5, %v12543_v32 }
 0x223   :  { %9617 = vmatprep.mubr.msk.f32.mxu1 %vm381_vm5, %v12405_v45 }
 0x225   :  { %9647 = vmatmul.mubr.msk.f32.gmra.mrb[82].mxu0 %vm381_vm5, %v12552_v23 }
 0x226   :  { %9618 = vmatmul.mubr.msk.f32.gmra.mrb[152].mxu1 %vm381_vm5, %v3350_v55  ;;  %9649 = vmatprep.mubr.msk.f32.mxu0 %vm381_vm5, %v12559_v8 }
 0x227   :  { %9660 = vmatprep.mubr.msk.f32.mxu1 %vm381_vm5, %v12165_v12  ;;  %v2324_v12 = vld [vmem:[#allocation3 + $0x90] sm:$0xff] }
 0x229   :  { %9650 = vmatmul.mubr.msk.f32.gmra.mrb[84].mxu0 %vm381_vm5, %v12713_v36 }
 0x22a   :  { %9661 = vmatmul.mubr.msk.f32.vlgmr.msra.gmra.mrb[154].mxu1 %vm381_vm5, %v12209_v0  ;;  %9692 = vmatprep.mubr.msk.f32.mxu0 %vm381_vm5, %v12212_v16  ;;  %v2325_v0 = vld [vmem:[#allocation3 + $0x98] sm:$0x3] }
 0x22b   :  { %9663 = vmatprep.mubr.msk.f32.mxu1 %vm381_vm5, %v12199_v60  ;;  %10376 = vmatpush3.bf16.msra.mxu1 %v12596_v44  ;;  %v3967_v60 = vrot.slane %v2324_v12, 1  ;;  %v3968_v16 = vrot.slane %v2325_v0, 1 }
 0x22c   :  { %10378 = vmatprep.subr.bf16.mxu1 %v10377_v35 }
 0x22d   :  { %9693 = vmatmul.mubr.msk.f32.vlgmr.msra.gmra.mrb[86].mxu0 %vm381_vm5, %v12235_v1  ;;  %v3969_v1 = vsel %vm414_vm3, %v3967_v60, %v3968_v16 }
 0x22e   :  { %9664 = vmatmul.mubr.msk.f32.gmra.mrb[156].mxu1 %vm381_vm5, %v12249_v4  ;;  %9695 = vmatprep.mubr.msk.f32.mxu0 %vm381_vm5, %v12252_v38  ;;  %v2344_v4 = vld [vmem:[#allocation3 + $0x130] sm:$0xff] }
 0x22f   :  { %9666 = vmatprep.mubr.msk.f32.mxu1 %vm381_vm5, %v12237_v15  ;;  %10380 = vmatpush3.bf16.msra.mxu1 %v10377_v35  ;;  %v2345_v15 = vld [vmem:[#allocation3 + $0x138] sm:$0x3]  ;;  %v3970_v38 = vrot.slane %v2344_v4, 1 }
 0x231   :  { %9696 = vmatmul.mubr.msk.f32.gmra.mrb[88].mxu0 %vm381_vm5, %v12273_v25  ;;  %v3971_v25 = vrot.slane %v2345_v15, 1 }
 0x232   :  { %9667 = vmatmul.mubr.msk.f32.gmra.mrb[158].mxu1 %vm381_vm5, %v12278_v56  ;;  %9698 = vmatprep.mubr.msk.f32.mxu0 %vm381_vm5, %v12281_v58  ;;  %v4175_v58 = vrot.slane %v2324_v12, 2 }
 0x233   :  { %9669 = vmatprep.mubr.msk.f32.mxu1 %vm381_vm5, %v12502_v5  ;;  %v3972_v56 = vsel %vm414_vm3, %v3970_v38, %v3971_v25  ;;  %v4515_v5 = vld [vmem:[%s14550_s5 + $0x10] sm:$0xff]  ;;  %v4520_v38 = vld [vmem:[%s14550_s5 + $0x38] sm:$0xff] }
 0x235   :  { %9699 = vmatmul.mubr.msk.f32.gmra.mrb[90].mxu0 %vm381_vm5, %v12297_v40  ;;  %v4176_v40 = vrot.slane %v2325_v0, 2 }
 0x236   :  { %9670 = vmatmul.mubr.msk.f32.gmra.mrb[160].mxu1 %vm381_vm5, %v2324_v12  ;;  %9701 = vmatprep.mubr.msk.f32.mxu0 %vm381_vm5, %v12621_v52 }
 0x237   :  { %9672 = vmatprep.mubr.msk.f32.mxu1 %vm381_vm5, %v12299_v63  ;;  %v4177_v63 = vsel %vm693_vm4, %v4175_v58, %v4176_v40 }
 0x239   :  { %9702 = vmatmul.mubr.msk.f32.gmra.mrb[92].mxu0 %vm381_vm5, %v3969_v1 }
 0x23a   :  { %9673 = vmatmul.mubr.msk.f32.gmra.mrb[162].mxu1 %vm381_vm5, %v12330_v21  ;;  %9704 = vmatprep.mubr.msk.f32.mxu0 %vm381_vm5, %v12333_v11  ;;  %v4179_v21 = vrot.slane %v2345_v15, 2 }
 0x23b   :  { %9675 = vmatprep.mubr.msk.f32.mxu1 %vm381_vm5, %v12323_v39  ;;  %v4178_v39 = vrot.slane %v2344_v4, 2 }
 0x23d   :  { %9705 = vmatmul.mubr.msk.f32.gmra.mrb[94].mxu0 %vm381_vm5, %v12349_v37  ;;  %v4180_v11 = vsel %vm693_vm4, %v4178_v39, %v4179_v21  ;;  %v12812_v37 = vld [vmem:[%s14549_s4] ss:$0 sm:$0xff] }
 0x23e   :  { %9676 = vmatmul.mubr.msk.f32.gmra.mrb[164].mxu1 %vm381_vm5, %v12357_v31  ;;  %9707 = vmatprep.mubr.msk.f32.mxu0 %vm381_vm5, %v12360_v42  ;;  %v4514_v31 = vld [vmem:[%s14550_s5 + $0x8] sm:$0xff] }
 0x23f   :  { %9678 = vmatprep.mubr.msk.f32.mxu1 %vm381_vm5, %v12351_v22  ;;  %v4513_v22 = vld [vmem:[%s14550_s5] sm:$0xff] }
 0x240   :  { %v10381_v42 = vpack.c.bf16 %v4514_v31, %v4513_v22 }
 0x241   :  { %9708 = vmatmul.mubr.msk.f32.gmra.mrb[96].mxu0 %vm381_vm5, %v12375_v50 }
 0x242   :  { %9679 = vmatmul.mubr.msk.f32.gmra.mrb[166].mxu1 %vm381_vm5, %v12383_v53  ;;  %9710 = vmatprep.mubr.msk.f32.mxu0 %vm381_vm5, %v12386_v20 }
 0x243   :  { %9681 = vmatprep.mubr.msk.f32.mxu1 %vm381_vm5, %v12573_v30  ;;  %10382 = vmatprep.subr.bf16.mxu0 %v10381_v42 }
 0x244   :  { %10384 = vmatpush3.bf16.msra.mxu0 %v10381_v42 }
 0x245   :  { %9711 = vmatmul.mubr.msk.f32.gmra.mrb[98].mxu0 %vm381_vm5, %v12405_v45 }
 0x246   :  { %9682 = vmatmul.mubr.msk.f32.gmra.mrb[168].mxu1 %vm381_vm5, %v2344_v4  ;;  %9713 = vmatprep.mubr.msk.f32.mxu0 %vm381_vm5, %v3350_v55  ;;  %v4519_v4 = vld [vmem:[%s14550_s5 + $0x30] sm:$0xff] }
 0x247   :  { %9724 = vmatprep.mubr.msk.f32.mxu1 %vm381_vm5, %v12425_v14  ;;  %v10393_v58 = vpack.c.bf16 %v4520_v38, %v4519_v4 }
 0x249   :  { %9714 = vmatmul.mubr.msk.f32.gmra.mrb[100].mxu0 %vm381_vm5, %v3972_v56 }
 0x24a   :  { %9725 = vmatmul.mubr.msk.f32.vlgmr.msra.gmra.mrb[170].mxu1 %vm381_vm5, %v12443_v6 }
 0x24b   :  { %9727 = vmatprep.mubr.msk.f32.mxu1 %vm381_vm5, %v12452_v43 }
 0x24e   :  { %9728 = vmatmul.mubr.msk.f32.gmra.mrb[172].mxu1 %vm381_vm5, %v12471_v49 }
 0x24f   :  { %9730 = vmatprep.mubr.msk.f32.mxu1 %vm381_vm5, %v12482_v9 }
 0x252   :  { %9731 = vmatmul.mubr.msk.f32.gmra.mrb[174].mxu1 %vm381_vm5, %v12491_v59 }
 0x253   :  { %9733 = vmatprep.mubr.msk.f32.mxu1 %vm381_vm5, %v12630_v19 }
 0x256   :  { %9734 = vmatmul.mubr.msk.f32.gmra.mrb[176].mxu1 %vm381_vm5, %v4177_v63 }
 0x257   :  { %9736 = vmatprep.mubr.msk.f32.mxu1 %vm381_vm5, %v12516_v51  ;;  %v4516_v51 = vld [vmem:[%s14550_s5 + $0x18] sm:$0xff] }
 0x25a   :  { %9737 = vmatmul.mubr.msk.f32.gmra.mrb[178].mxu1 %vm381_vm5, %v12525_v47 }
 0x25b   :  { %9739 = vmatprep.mubr.msk.f32.mxu1 %vm381_vm5, %v12534_v57  ;;  %v10385_v57 = vpack.c.bf16 %v4516_v51, %v4515_v5 }
 0x25d   :  { %10386 = vmatprep.subr.bf16.mxu0 %v10385_v57 }
 0x25e   :  { %9740 = vmatmul.mubr.msk.f32.gmra.mrb[180].mxu1 %vm381_vm5, %v12543_v32  ;;  %10388 = vmatpush3.bf16.msra.mxu0 %v10385_v57 }
 0x25f   :  { %9742 = vmatprep.mubr.msk.f32.mxu1 %vm381_vm5, %v12552_v23  ;;  %10390 = vmatprep.subr.bf16.mxu0 %v10389_v34 }
 0x262   :  { %9743 = vmatmul.mubr.msk.f32.gmra.mrb[182].mxu1 %vm381_vm5, %v12559_v8  ;;  %10392 = vmatpush3.bf16.msra.mxu0 %v10389_v34 }
 0x263   :  { %9745 = vmatprep.mubr.msk.f32.mxu1 %vm381_vm5, %v12713_v36  ;;  %10394 = vmatprep.subr.bf16.mxu0 %v10393_v58 }
 0x266   :  { %9746 = vmatmul.mubr.msk.f32.gmra.mrb[184].mxu1 %vm381_vm5, %v4180_v11  ;;  %10396 = vmatpush3.bf16.msra.mxu0 %v10393_v58 }
 0x29d   :  { %v9470_v50 = vpop.f32.mrb[106].mxu1 }
 0x29e   :  { %v2477_v53 = vadd.f32 %v9470_v50, %v12812_v37  ;;  %v2471_v20 = vpop.f32.mrb[107].mxu1 }
 0x29f   :  { %v2472_v45 = vadd.f32 %v12812_v37, %v2471_v20  ;;  %v4473_v20 = vld [vmem:[#allocation4] sm:$0xff] }
 0x2a0   :  { %2552 = vst.msk [vmem:[#allocation6 + $0x8] sm:$0xff] %vm2550_vm7, %v2477_v53  ;;  %v9502_v14 = vpop.f32.mrb[38].mxu0  ;;  %9764 = vmatprep.mubr.msk.f32.mxu0 %vm2550_vm7, %v4473_v20 }
 0x2a1   :  { %2551 = vst.msk [vmem:[#allocation6] sm:$0xff] %vm2550_vm7, %v2472_v45  ;;  %v9473_v6 = vpop.f32.mrb[108].mxu1  ;;  %v2734_v43 = vpop.f32.mrb[39].mxu0 }
 0x2a2   :  { %v2487_v49 = vadd.f32 %v9473_v6, %v12812_v37  ;;  %v2481_v9 = vpop.f32.mrb[109].mxu1 }
 0x2a3   :  { %v2482_v59 = vadd.f32 %v12812_v37, %v2481_v9 }
 0x2a4   :  { %2554 = vst.msk [vmem:[#allocation6 + $0x18] sm:$0xff] %vm2550_vm7, %v2487_v49  ;;  %v9505_v47 = vpop.f32.mrb[40].mxu0 }
 0x2a5   :  { %2553 = vst.msk [vmem:[#allocation6 + $0x10] sm:$0xff] %vm2550_vm7, %v2482_v59  ;;  %v9476_v32 = vpop.f32.mrb[110].mxu1  ;;  %v2744_v23 = vpop.f32.mrb[41].mxu0 }
 0x2a6   :  { %v2497_v8 = vadd.f32 %v9476_v32, %v12812_v37  ;;  %v2491_v13 = vpop.f32.mrb[111].mxu1 }
 0x2a7   :  { %v2814_v30 = vld [vmem:[#allocation6 + $0x8] sm:$0xff]  ;;  %v2492_v7 = vadd.f32 %v12812_v37, %v2491_v13 }
 0x2a8   :  { %v2830_v54 = vadd.f32 %v9502_v14, %v2814_v30  ;;  %v2813_v33 = vld [vmem:[#allocation6] sm:$0xff]  ;;  %2556 = vst.msk [vmem:[#allocation6 + $0x28] sm:$0xff] %vm2550_vm7, %v2497_v8  ;;  %v9508_v10 = vpop.f32.mrb[42].mxu0 }
 0x2a9   :  { %v2829_v17 = vadd.f32 %v2813_v33, %v2734_v43  ;;  %2555 = vst.msk [vmem:[#allocation6 + $0x20] sm:$0xff] %vm2550_vm7, %v2492_v7  ;;  %v9479_v44 = vpop.f32.mrb[112].mxu1  ;;  %v2754_v46 = vpop.f32.mrb[43].mxu0 }
 0x2aa   :  { %2846 = vst.msk [vmem:[#allocation6 + $0x8] sm:$0xff] %vm2550_vm7, %v2830_v54  ;;  %v2507_v26 = vadd.f32 %v9479_v44, %v12812_v37  ;;  %v2501_v28 = vpop.f32.mrb[113].mxu1 }
 0x2ab   :  { %2845 = vst.msk [vmem:[#allocation6] sm:$0xff] %vm2550_vm7, %v2829_v17  ;;  %v2816_v62 = vld [vmem:[#allocation6 + $0x18] sm:$0xff]  ;;  %v2502_v29 = vadd.f32 %v12812_v37, %v2501_v28 }
 0x2ac   :  { %v2832_v48 = vadd.f32 %v9505_v47, %v2816_v62  ;;  %v2815_v52 = vld [vmem:[#allocation6 + $0x10] sm:$0xff]  ;;  %2558 = vst.msk [vmem:[#allocation6 + $0x38] sm:$0xff] %vm2550_vm7, %v2507_v26  ;;  %v9511_v19 = vpop.f32.mrb[44].mxu0 }
 0x2ad   :  { %v2831_v18 = vadd.f32 %v2815_v52, %v2744_v23  ;;  %2557 = vst.msk [vmem:[#allocation6 + $0x30] sm:$0xff] %vm2550_vm7, %v2502_v29  ;;  %v9482_v24 = vpop.f32.mrb[114].mxu1  ;;  %v2764_v41 = vpop.f32.mrb[45].mxu0 }
 0x2ae   :  { %2848 = vst.msk [vmem:[#allocation6 + $0x18] sm:$0xff] %vm2550_vm7, %v2832_v48  ;;  %v2517_v55 = vadd.f32 %v9482_v24, %v12812_v37  ;;  %v2511_v3 = vpop.f32.mrb[115].mxu1 }
 0x2af   :  { %2847 = vst.msk [vmem:[#allocation6 + $0x10] sm:$0xff] %vm2550_vm7, %v2831_v18  ;;  %v2818_v36 = vld [vmem:[#allocation6 + $0x28] sm:$0xff]  ;;  %v2512_v35 = vadd.f32 %v12812_v37, %v2511_v3 }
 0x2b0   :  { %v2834_v12 = vadd.f32 %v9508_v10, %v2818_v36  ;;  %v2817_v0 = vld [vmem:[#allocation6 + $0x20] sm:$0xff]  ;;  %2560 = vst.msk [vmem:[#allocation6 + $0x48] sm:$0xff] %vm2550_vm7, %v2517_v55  ;;  %v9514_v60 = vpop.f32.mrb[46].mxu0 }
 0x2b1   :  { %v2833_v16 = vadd.f32 %v2817_v0, %v2754_v46  ;;  %2559 = vst.msk [vmem:[#allocation6 + $0x40] sm:$0xff] %vm2550_vm7, %v2512_v35  ;;  %v9485_v1 = vpop.f32.mrb[116].mxu1  ;;  %v2774_v15 = vpop.f32.mrb[47].mxu0  ;;  %v3092_v33 = vld [vmem:[#allocation6 + $0x8] sm:$0xff]  ;;  %v8305_v10 = vld [vmem:[%s14550_s5 + $0x40] sm:$0xff] }
 0x2b2   :  { %2850 = vst.msk [vmem:[#allocation6 + $0x28] sm:$0xff] %vm2550_vm7, %v2834_v12  ;;  %v2527_v25 = vadd.f32 %v9485_v1, %v12812_v37  ;;  %v2521_v56 = vpop.f32.mrb[117].mxu1  ;;  %v8306_v46 = vld [vmem:[%s14550_s5 + $0x48] sm:$0xff] }
 0x2b3   :  { %2849 = vst.msk [vmem:[#allocation6 + $0x20] sm:$0xff] %vm2550_vm7, %v2833_v16  ;;  %v2820_v40 = vld [vmem:[#allocation6 + $0x38] sm:$0xff]  ;;  %v2522_v63 = vadd.f32 %v12812_v37, %v2521_v56  ;;  %v12929_v62 = vpack.c.bf16 %v8306_v46, %v8305_v10 }
 0x2b4   :  { %v2836_v39 = vadd.f32 %v9511_v19, %v2820_v40  ;;  %v2819_v21 = vld [vmem:[#allocation6 + $0x30] sm:$0xff]  ;;  %2562 = vst.msk [vmem:[#allocation6 + $0x58] sm:$0xff] %vm2550_vm7, %v2527_v25  ;;  %v9517_v11 = vpop.f32.mrb[48].mxu0 }
 0x2b5   :  { %v2835_v22 = vadd.f32 %v2819_v21, %v2764_v41  ;;  %2561 = vst.msk [vmem:[#allocation6 + $0x50] sm:$0xff] %vm2550_vm7, %v2522_v63  ;;  %v9488_v31 = vpop.f32.mrb[118].mxu1  ;;  %v2784_v42 = vpop.f32.mrb[49].mxu0  ;;  %v3094_v24 = vld [vmem:[#allocation6 + $0x18] sm:$0xff]  ;;  %10398 = vmatprep.subr.bf16.mxu0 %v12929_v62 }
 0x2b6   :  { %2852 = vst.msk [vmem:[#allocation6 + $0x38] sm:$0xff] %vm2550_vm7, %v2836_v39  ;;  %v2537_v50 = vadd.f32 %v9488_v31, %v12812_v37  ;;  %v2531_v53 = vpop.f32.mrb[119].mxu1  ;;  %v3093_v55 = vld [vmem:[#allocation6 + $0x10] sm:$0xff] }
 0x2b7   :  { %2851 = vst.msk [vmem:[#allocation6 + $0x30] sm:$0xff] %vm2550_vm7, %v2835_v22  ;;  %v2822_v45 = vld [vmem:[#allocation6 + $0x48] sm:$0xff]  ;;  %v2532_v14 = vadd.f32 %v12812_v37, %v2531_v53 }
 0x2b8   :  { %v2838_v6 = vadd.f32 %v9514_v60, %v2822_v45  ;;  %v2821_v43 = vld [vmem:[#allocation6 + $0x40] sm:$0xff]  ;;  %2564 = vst.msk [vmem:[#allocation6 + $0x68] sm:$0xff] %vm2550_vm7, %v2537_v50  ;;  %v9520_v49 = vpop.f32.mrb[50].mxu0 }
 0x2b9   :  { %v2837_v9 = vadd.f32 %v2821_v43, %v2774_v15  ;;  %2563 = vst.msk [vmem:[#allocation6 + $0x60] sm:$0xff] %vm2550_vm7, %v2532_v14  ;;  %v9491_v59 = vpop.f32.mrb[120].mxu1  ;;  %v2794_v5 = vpop.f32.mrb[51].mxu0  ;;  %v3096_v16 = vld [vmem:[#allocation6 + $0x28] sm:$0xff] }
 0x2ba   :  { %2854 = vst.msk [vmem:[#allocation6 + $0x48] sm:$0xff] %vm2550_vm7, %v2838_v6  ;;  %v2547_v51 = vadd.f32 %v9491_v59, %v12812_v37  ;;  %v2541_v47 = vpop.f32.mrb[121].mxu1  ;;  %v3095_v38 = vld [vmem:[#allocation6 + $0x20] sm:$0xff] }
 0x2bb   :  { %2853 = vst.msk [vmem:[#allocation6 + $0x40] sm:$0xff] %vm2550_vm7, %v2837_v9  ;;  %v2824_v57 = vld [vmem:[#allocation6 + $0x58] sm:$0xff]  ;;  %v2542_v32 = vadd.f32 %v12812_v37, %v2541_v47  ;;  %v3091_v37 = vld [vmem:[#allocation6] sm:$0xff] }
 0x2bc   :  { %v2840_v23 = vadd.f32 %v9517_v11, %v2824_v57  ;;  %v2823_v8 = vld [vmem:[#allocation6 + $0x50] sm:$0xff]  ;;  %2566 = vst.msk [vmem:[#allocation6 + $0x78] sm:$0xff] %vm2550_vm7, %v2547_v51  ;;  %v9523_v13 = vpop.f32.mrb[52].mxu0 }
 0x2bd   :  { %v2839_v30 = vadd.f32 %v2823_v8, %v2784_v42  ;;  %2565 = vst.msk [vmem:[#allocation6 + $0x70] sm:$0xff] %vm2550_vm7, %v2542_v32  ;;  %v2804_v7 = vpop.f32.mrb[53].mxu0  ;;  %v9534_v54 = vpop.f32.mrb[122].mxu1  ;;  %v3098_v11 = vld [vmem:[#allocation6 + $0x38] sm:$0xff] }
 0x2be   :  { %2856 = vst.msk [vmem:[#allocation6 + $0x58] sm:$0xff] %vm2550_vm7, %v2840_v23  ;;  %v3108_v17 = vadd.f32 %v9534_v54, %v3092_v33  ;;  %v3012_v44 = vpop.f32.mrb[123].mxu1  ;;  %v3097_v50 = vld [vmem:[#allocation6 + $0x30] sm:$0xff] }
 0x2bf   :  { %2855 = vst.msk [vmem:[#allocation6 + $0x50] sm:$0xff] %vm2550_vm7, %v2839_v30  ;;  %v2826_v26 = vld [vmem:[#allocation6 + $0x68] sm:$0xff]  ;;  %v3107_v28 = vadd.f32 %v3091_v37, %v3012_v44 }
 0x2c0   :  { %v2842_v29 = vadd.f32 %v9520_v49, %v2826_v26  ;;  %v2825_v48 = vld [vmem:[#allocation6 + $0x60] sm:$0xff]  ;;  %3124 = vst.msk [vmem:[#allocation6 + $0x8] sm:$0xff] %vm2550_vm7, %v3108_v17  ;;  %v9566_v52 = vpop.f32.mrb[54].mxu0 }
 0x2c1   :  { %v2841_v19 = vadd.f32 %v2825_v48, %v2794_v5  ;;  %3123 = vst.msk [vmem:[#allocation6] sm:$0xff] %vm2550_vm7, %v3107_v28  ;;  %v9537_v18 = vpop.f32.mrb[124].mxu1  ;;  %v3216_v41 = vpop.f32.mrb[55].mxu0  ;;  %v3100_v9 = vld [vmem:[#allocation6 + $0x48] sm:$0xff] }
 0x2c2   :  { %2858 = vst.msk [vmem:[#allocation6 + $0x68] sm:$0xff] %vm2550_vm7, %v2842_v29  ;;  %v3110_v61 = vadd.f32 %v9537_v18, %v3094_v24  ;;  %v3022_v27 = vpop.f32.mrb[125].mxu1  ;;  %v3099_v47 = vld [vmem:[#allocation6 + $0x40] sm:$0xff] }
 0x2c3   :  { %2857 = vst.msk [vmem:[#allocation6 + $0x60] sm:$0xff] %vm2550_vm7, %v2841_v19  ;;  %v2828_v3 = vld [vmem:[#allocation6 + $0x78] sm:$0xff]  ;;  %v3109_v34 = vadd.f32 %v3093_v55, %v3022_v27 }
 0x2c4   :  { %v2844_v36 = vadd.f32 %v9523_v13, %v2828_v3  ;;  %v2827_v35 = vld [vmem:[#allocation6 + $0x70] sm:$0xff]  ;;  %3126 = vst.msk [vmem:[#allocation6 + $0x18] sm:$0xff] %vm2550_vm7, %v3110_v61  ;;  %v9569_v12 = vpop.f32.mrb[56].mxu0 }
 0x2c5   :  { %v2843_v0 = vadd.f32 %v2827_v35, %v2804_v7  ;;  %3125 = vst.msk [vmem:[#allocation6 + $0x10] sm:$0xff] %vm2550_vm7, %v3109_v34  ;;  %v9540_v60 = vpop.f32.mrb[126].mxu1  ;;  %v3226_v1 = vpop.f32.mrb[57].mxu0  ;;  %v3102_v54 = vld [vmem:[#allocation6 + $0x58] sm:$0xff] }
 0x2c6   :  { %2860 = vst.msk [vmem:[#allocation6 + $0x78] sm:$0xff] %vm2550_vm7, %v2844_v36  ;;  %v3112_v15 = vadd.f32 %v9540_v60, %v3096_v16  ;;  %v3032_v4 = vpop.f32.mrb[127].mxu1  ;;  %v3101_v44 = vld [vmem:[#allocation6 + $0x50] sm:$0xff] }
 0x2c7   :  { %2859 = vst.msk [vmem:[#allocation6 + $0x70] sm:$0xff] %vm2550_vm7, %v2843_v0  ;;  %v3296_v25 = vld [vmem:[#allocation6 + $0x8] sm:$0xff]  ;;  %v3111_v56 = vadd.f32 %v3095_v38, %v3032_v4 }
 0x2c8   :  { %v3312_v58 = vadd.f32 %v9566_v52, %v3296_v25  ;;  %v3295_v40 = vld [vmem:[#allocation6] sm:$0xff]  ;;  %3128 = vst.msk [vmem:[#allocation6 + $0x28] sm:$0xff] %vm2550_vm7, %v3112_v15  ;;  %v9572_v63 = vpop.f32.mrb[58].mxu0 }
 0x2c9   :  { %v3311_v39 = vadd.f32 %v3295_v40, %v3216_v41  ;;  %3127 = vst.msk [vmem:[#allocation6 + $0x20] sm:$0xff] %vm2550_vm7, %v3111_v56  ;;  %v9543_v21 = vpop.f32.mrb[128].mxu1  ;;  %v3236_v22 = vpop.f32.mrb[59].mxu0  ;;  %v3104_v19 = vld [vmem:[#allocation6 + $0x68] sm:$0xff] }
 0x2ca   :  { %3328 = vst.msk [vmem:[#allocation6 + $0x8] sm:$0xff] %vm2550_vm7, %v3312_v58  ;;  %v3114_v31 = vadd.f32 %v9543_v21, %v3098_v11  ;;  %v3042_v42 = vpop.f32.mrb[129].mxu1  ;;  %v3103_v61 = vld [vmem:[#allocation6 + $0x60] sm:$0xff] }
 0x2cb   :  { %3327 = vst.msk [vmem:[#allocation6] sm:$0xff] %vm2550_vm7, %v3311_v39  ;;  %v3298_v53 = vld [vmem:[#allocation6 + $0x18] sm:$0xff]  ;;  %v3113_v20 = vadd.f32 %v3097_v50, %v3042_v42 }
 0x2cc   :  { %v3314_v45 = vadd.f32 %v9569_v12, %v3298_v53  ;;  %v3297_v14 = vld [vmem:[#allocation6 + $0x10] sm:$0xff]  ;;  %3130 = vst.msk [vmem:[#allocation6 + $0x38] sm:$0xff] %vm2550_vm7, %v3114_v31  ;;  %v9575_v6 = vpop.f32.mrb[60].mxu0 }
 0x2cd   :  { %v3313_v43 = vadd.f32 %v3297_v14, %v3226_v1  ;;  %3129 = vst.msk [vmem:[#allocation6 + $0x30] sm:$0xff] %vm2550_vm7, %v3113_v20  ;;  %v9546_v49 = vpop.f32.mrb[130].mxu1  ;;  %v3246_v59 = vpop.f32.mrb[61].mxu0  ;;  %v3106_v0 = vld [vmem:[#allocation6 + $0x78] sm:$0xff] }
 0x2ce   :  { %3330 = vst.msk [vmem:[#allocation6 + $0x18] sm:$0xff] %vm2550_vm7, %v3314_v45  ;;  %v3116_v5 = vadd.f32 %v9546_v49, %v3100_v9  ;;  %v3052_v51 = vpop.f32.mrb[131].mxu1  ;;  %v3105_v15 = vld [vmem:[#allocation6 + $0x70] sm:$0xff] }
 0x2cf   :  { %3329 = vst.msk [vmem:[#allocation6 + $0x10] sm:$0xff] %vm2550_vm7, %v3313_v43  ;;  %v3300_v57 = vld [vmem:[#allocation6 + $0x28] sm:$0xff]  ;;  %v3115_v32 = vadd.f32 %v3099_v47, %v3052_v51 }
 0x2d0   :  { %v3316_v23 = vadd.f32 %v9572_v63, %v3300_v57  ;;  %v3299_v8 = vld [vmem:[#allocation6 + $0x20] sm:$0xff]  ;;  %3132 = vst.msk [vmem:[#allocation6 + $0x48] sm:$0xff] %vm2550_vm7, %v3116_v5  ;;  %v9578_v13 = vpop.f32.mrb[62].mxu0 }
 0x2d1   :  { %v3315_v30 = vadd.f32 %v3299_v8, %v3236_v22  ;;  %3131 = vst.msk [vmem:[#allocation6 + $0x40] sm:$0xff] %vm2550_vm7, %v3115_v32  ;;  %v9549_v7 = vpop.f32.mrb[132].mxu1  ;;  %v3256_v33 = vpop.f32.mrb[63].mxu0  ;;  %v3506_v21 = vld [vmem:[#allocation6 + $0x8] sm:$0xff] }
 0x2d2   :  { %3332 = vst.msk [vmem:[#allocation6 + $0x28] sm:$0xff] %vm2550_vm7, %v3316_v23  ;;  %v3118_v10 = vadd.f32 %v9549_v7, %v3102_v54  ;;  %v3062_v17 = vpop.f32.mrb[133].mxu1  ;;  %v3505_v31 = vld [vmem:[#allocation6] sm:$0xff] }
 0x2d3   :  { %3331 = vst.msk [vmem:[#allocation6 + $0x20] sm:$0xff] %vm2550_vm7, %v3315_v30  ;;  %v3302_v37 = vld [vmem:[#allocation6 + $0x38] sm:$0xff]  ;;  %v3117_v46 = vadd.f32 %v3101_v44, %v3062_v17 }
 0x2d4   :  { %v3318_v26 = vadd.f32 %v9575_v6, %v3302_v37  ;;  %v3301_v28 = vld [vmem:[#allocation6 + $0x30] sm:$0xff]  ;;  %3134 = vst.msk [vmem:[#allocation6 + $0x58] sm:$0xff] %vm2550_vm7, %v3118_v10  ;;  %v9581_v29 = vpop.f32.mrb[64].mxu0 }
 0x2d5   :  { %v3317_v48 = vadd.f32 %v3301_v28, %v3246_v59  ;;  %3133 = vst.msk [vmem:[#allocation6 + $0x50] sm:$0xff] %vm2550_vm7, %v3117_v46  ;;  %v9552_v52 = vpop.f32.mrb[134].mxu1  ;;  %v3266_v18 = vpop.f32.mrb[65].mxu0  ;;  %v3508_v43 = vld [vmem:[#allocation6 + $0x18] sm:$0xff] }
 0x2d6   :  { %3334 = vst.msk [vmem:[#allocation6 + $0x38] sm:$0xff] %vm2550_vm7, %v3318_v26  ;;  %v3120_v24 = vadd.f32 %v9552_v52, %v3104_v19  ;;  %v3072_v41 = vpop.f32.mrb[135].mxu1  ;;  %v3507_v5 = vld [vmem:[#allocation6 + $0x10] sm:$0xff] }
 0x2d7   :  { %3333 = vst.msk [vmem:[#allocation6 + $0x30] sm:$0xff] %vm2550_vm7, %v3317_v48  ;;  %v3304_v27 = vld [vmem:[#allocation6 + $0x48] sm:$0xff]  ;;  %v3119_v55 = vadd.f32 %v3103_v61, %v3072_v41 }
 0x2d8   :  { %v3320_v3 = vadd.f32 %v9578_v13, %v3304_v27  ;;  %v3303_v34 = vld [vmem:[#allocation6 + $0x40] sm:$0xff]  ;;  %3136 = vst.msk [vmem:[#allocation6 + $0x68] sm:$0xff] %vm2550_vm7, %v3120_v24  ;;  %v9584_v36 = vpop.f32.mrb[66].mxu0 }
 0x2d9   :  { %v3319_v35 = vadd.f32 %v3303_v34, %v3256_v33  ;;  %3135 = vst.msk [vmem:[#allocation6 + $0x60] sm:$0xff] %vm2550_vm7, %v3119_v55  ;;  %v9555_v12 = vpop.f32.mrb[136].mxu1  ;;  %v3276_v60 = vpop.f32.mrb[67].mxu0  ;;  %v3510_v30 = vld [vmem:[#allocation6 + $0x28] sm:$0xff] }
 0x2da   :  { %3336 = vst.msk [vmem:[#allocation6 + $0x48] sm:$0xff] %vm2550_vm7, %v3320_v3  ;;  %v3122_v16 = vadd.f32 %v9555_v12, %v3106_v0  ;;  %v3082_v1 = vpop.f32.mrb[137].mxu1  ;;  %v3509_v10 = vld [vmem:[#allocation6 + $0x20] sm:$0xff] }
 0x2db   :  { %3335 = vst.msk [vmem:[#allocation6 + $0x40] sm:$0xff] %vm2550_vm7, %v3319_v35  ;;  %v3306_v4 = vld [vmem:[#allocation6 + $0x58] sm:$0xff]  ;;  %v3121_v38 = vadd.f32 %v3105_v15, %v3082_v1 }
 0x2dc   :  { %v3322_v25 = vadd.f32 %v9581_v29, %v3306_v4  ;;  %v3305_v56 = vld [vmem:[#allocation6 + $0x50] sm:$0xff]  ;;  %3138 = vst.msk [vmem:[#allocation6 + $0x78] sm:$0xff] %vm2550_vm7, %v3122_v16  ;;  %v9587_v58 = vpop.f32.mrb[68].mxu0 }
 0x2dd   :  { %v3321_v40 = vadd.f32 %v3305_v56, %v3266_v18  ;;  %3137 = vst.msk [vmem:[#allocation6 + $0x70] sm:$0xff] %vm2550_vm7, %v3121_v38  ;;  %v3286_v63 = vpop.f32.mrb[69].mxu0  ;;  %v9598_v39 = vpop.f32.mrb[138].mxu1  ;;  %v3512_v48 = vld [vmem:[#allocation6 + $0x38] sm:$0xff] }
 0x2de   :  { %3338 = vst.msk [vmem:[#allocation6 + $0x58] sm:$0xff] %vm2550_vm7, %v3322_v25  ;;  %v3522_v11 = vadd.f32 %v9598_v39, %v3506_v21  ;;  %v3426_v22 = vpop.f32.mrb[139].mxu1  ;;  %v3511_v24 = vld [vmem:[#allocation6 + $0x30] sm:$0xff] }
 0x2df   :  { %3337 = vst.msk [vmem:[#allocation6 + $0x50] sm:$0xff] %vm2550_vm7, %v3321_v40  ;;  %v3308_v42 = vld [vmem:[#allocation6 + $0x68] sm:$0xff]  ;;  %v3521_v50 = vadd.f32 %v3505_v31, %v3426_v22 }
 0x2e0   :  { %v3324_v53 = vadd.f32 %v9584_v36, %v3308_v42  ;;  %v3307_v20 = vld [vmem:[#allocation6 + $0x60] sm:$0xff]  ;;  %3538 = vst.msk [vmem:[#allocation6 + $0x8] sm:$0xff] %vm2550_vm7, %v3522_v11  ;;  %v9630_v45 = vpop.f32.mrb[70].mxu0 }
 0x2e1   :  { %v3323_v14 = vadd.f32 %v3307_v20, %v3276_v60  ;;  %3537 = vst.msk [vmem:[#allocation6] sm:$0xff] %vm2550_vm7, %v3521_v50  ;;  %v9601_v6 = vpop.f32.mrb[140].mxu1  ;;  %v3634_v49 = vpop.f32.mrb[71].mxu0  ;;  %v3514_v35 = vld [vmem:[#allocation6 + $0x48] sm:$0xff] }
 0x2e2   :  { %3340 = vst.msk [vmem:[#allocation6 + $0x68] sm:$0xff] %vm2550_vm7, %v3324_v53  ;;  %v3524_v9 = vadd.f32 %v9601_v6, %v3508_v43  ;;  %v3436_v59 = vpop.f32.mrb[141].mxu1  ;;  %v3513_v16 = vld [vmem:[#allocation6 + $0x40] sm:$0xff] }
 0x2e3   :  { %3339 = vst.msk [vmem:[#allocation6 + $0x60] sm:$0xff] %vm2550_vm7, %v3323_v14  ;;  %v3310_v51 = vld [vmem:[#allocation6 + $0x78] sm:$0xff]  ;;  %v3523_v47 = vadd.f32 %v3507_v5, %v3436_v59 }
 0x2e4   :  { %v3326_v57 = vadd.f32 %v9587_v58, %v3310_v51  ;;  %v3309_v32 = vld [vmem:[#allocation6 + $0x70] sm:$0xff]  ;;  %3540 = vst.msk [vmem:[#allocation6 + $0x18] sm:$0xff] %vm2550_vm7, %v3524_v9  ;;  %v9633_v23 = vpop.f32.mrb[72].mxu0 }
 0x2e5   :  { %v3325_v8 = vadd.f32 %v3309_v32, %v3286_v63  ;;  %3539 = vst.msk [vmem:[#allocation6 + $0x10] sm:$0xff] %vm2550_vm7, %v3523_v47  ;;  %v9604_v13 = vpop.f32.mrb[142].mxu1  ;;  %v3644_v7 = vpop.f32.mrb[73].mxu0  ;;  %v3516_v40 = vld [vmem:[#allocation6 + $0x58] sm:$0xff] }
 0x2e6   :  { %3342 = vst.msk [vmem:[#allocation6 + $0x78] sm:$0xff] %vm2550_vm7, %v3326_v57  ;;  %v3526_v54 = vadd.f32 %v9604_v13, %v3510_v30  ;;  %v3446_v33 = vpop.f32.mrb[143].mxu1  ;;  %v3515_v11 = vld [vmem:[#allocation6 + $0x50] sm:$0xff] }
 0x2e7   :  { %3341 = vst.msk [vmem:[#allocation6 + $0x70] sm:$0xff] %vm2550_vm7, %v3325_v8  ;;  %v3714_v17 = vld [vmem:[#allocation6 + $0x8] sm:$0xff]  ;;  %v3525_v44 = vadd.f32 %v3509_v10, %v3446_v33 }
 0x2e8   :  { %v3730_v37 = vadd.f32 %v9630_v45, %v3714_v17  ;;  %v3713_v46 = vld [vmem:[#allocation6] sm:$0xff]  ;;  %3542 = vst.msk [vmem:[#allocation6 + $0x28] sm:$0xff] %vm2550_vm7, %v3526_v54  ;;  %v9636_v26 = vpop.f32.mrb[74].mxu0 }
 0x2e9   :  { %v3729_v28 = vadd.f32 %v3713_v46, %v3634_v49  ;;  %3541 = vst.msk [vmem:[#allocation6 + $0x20] sm:$0xff] %vm2550_vm7, %v3525_v44  ;;  %v9607_v29 = vpop.f32.mrb[144].mxu1  ;;  %v3654_v52 = vpop.f32.mrb[75].mxu0  ;;  %v3518_v14 = vld [vmem:[#allocation6 + $0x68] sm:$0xff] }
 0x2ea   :  { %3746 = vst.msk [vmem:[#allocation6 + $0x8] sm:$0xff] %vm2550_vm7, %v3730_v37  ;;  %v3528_v19 = vadd.f32 %v9607_v29, %v3512_v48  ;;  %v3456_v18 = vpop.f32.mrb[145].mxu1  ;;  %v3517_v9 = vld [vmem:[#allocation6 + $0x60] sm:$0xff] }
 0x2eb   :  { %3745 = vst.msk [vmem:[#allocation6] sm:$0xff] %vm2550_vm7, %v3729_v28  ;;  %v3716_v41 = vld [vmem:[#allocation6 + $0x18] sm:$0xff]  ;;  %v3527_v61 = vadd.f32 %v3511_v24, %v3456_v18 }
 0x2ec   :  { %v3732_v27 = vadd.f32 %v9633_v23, %v3716_v41  ;;  %v3715_v55 = vld [vmem:[#allocation6 + $0x10] sm:$0xff]  ;;  %3544 = vst.msk [vmem:[#allocation6 + $0x38] sm:$0xff] %vm2550_vm7, %v3528_v19  ;;  %v9639_v3 = vpop.f32.mrb[76].mxu0 }
 0x2ed   :  { %v3731_v34 = vadd.f32 %v3715_v55, %v3644_v7  ;;  %3543 = vst.msk [vmem:[#allocation6 + $0x30] sm:$0xff] %vm2550_vm7, %v3527_v61  ;;  %v9610_v36 = vpop.f32.mrb[146].mxu1  ;;  %v3664_v12 = vpop.f32.mrb[77].mxu0  ;;  %v3520_v8 = vld [vmem:[#allocation6 + $0x78] sm:$0xff] }
 0x2ee   :  { %3748 = vst.msk [vmem:[#allocation6 + $0x18] sm:$0xff] %vm2550_vm7, %v3732_v27  ;;  %v3530_v0 = vadd.f32 %v9610_v36, %v3514_v35  ;;  %v3466_v60 = vpop.f32.mrb[147].mxu1  ;;  %v3519_v54 = vld [vmem:[#allocation6 + $0x70] sm:$0xff] }
 0x2ef   :  { %3747 = vst.msk [vmem:[#allocation6 + $0x10] sm:$0xff] %vm2550_vm7, %v3731_v34  ;;  %v3718_v1 = vld [vmem:[#allocation6 + $0x28] sm:$0xff]  ;;  %v3529_v15 = vadd.f32 %v3513_v16, %v3466_v60 }
 0x2f0   :  { %v3734_v4 = vadd.f32 %v9636_v26, %v3718_v1  ;;  %v3717_v38 = vld [vmem:[#allocation6 + $0x20] sm:$0xff]  ;;  %3546 = vst.msk [vmem:[#allocation6 + $0x48] sm:$0xff] %vm2550_vm7, %v3530_v0  ;;  %v9642_v25 = vpop.f32.mrb[78].mxu0 }
 0x2f1   :  { %v3733_v56 = vadd.f32 %v3717_v38, %v3654_v52  ;;  %3545 = vst.msk [vmem:[#allocation6 + $0x40] sm:$0xff] %vm2550_vm7, %v3529_v15  ;;  %v9613_v58 = vpop.f32.mrb[148].mxu1  ;;  %v3674_v63 = vpop.f32.mrb[79].mxu0  ;;  %v3918_v29 = vld [vmem:[#allocation6 + $0x8] sm:$0xff] }
 0x2f2   :  { %3750 = vst.msk [vmem:[#allocation6 + $0x28] sm:$0xff] %vm2550_vm7, %v3734_v4  ;;  %v3532_v39 = vadd.f32 %v9613_v58, %v3516_v40  ;;  %v3476_v21 = vpop.f32.mrb[149].mxu1  ;;  %v3917_v19 = vld [vmem:[#allocation6] sm:$0xff] }
 0x2f3   :  { %3749 = vst.msk [vmem:[#allocation6 + $0x20] sm:$0xff] %vm2550_vm7, %v3733_v56  ;;  %v3720_v22 = vld [vmem:[#allocation6 + $0x38] sm:$0xff]  ;;  %v3531_v31 = vadd.f32 %v3515_v11, %v3476_v21 }
 0x2f4   :  { %v3736_v42 = vadd.f32 %v9639_v3, %v3720_v22  ;;  %v3719_v50 = vld [vmem:[#allocation6 + $0x30] sm:$0xff]  ;;  %3548 = vst.msk [vmem:[#allocation6 + $0x58] sm:$0xff] %vm2550_vm7, %v3532_v39  ;;  %v9645_v53 = vpop.f32.mrb[80].mxu0 }
 0x2f5   :  { %v3735_v20 = vadd.f32 %v3719_v50, %v3664_v12  ;;  %3547 = vst.msk [vmem:[#allocation6 + $0x50] sm:$0xff] %vm2550_vm7, %v3531_v31  ;;  %v9616_v45 = vpop.f32.mrb[150].mxu1  ;;  %v3684_v6 = vpop.f32.mrb[81].mxu0  ;;  %v3920_v34 = vld [vmem:[#allocation6 + $0x18] sm:$0xff] }
 0x2f6   :  { %3752 = vst.msk [vmem:[#allocation6 + $0x38] sm:$0xff] %vm2550_vm7, %v3736_v42  ;;  %v3534_v43 = vadd.f32 %v9616_v45, %v3518_v14  ;;  %v3486_v49 = vpop.f32.mrb[151].mxu1  ;;  %v3919_v0 = vld [vmem:[#allocation6 + $0x10] sm:$0xff] }
 0x2f7   :  { %3751 = vst.msk [vmem:[#allocation6 + $0x30] sm:$0xff] %vm2550_vm7, %v3735_v20  ;;  %v3722_v59 = vld [vmem:[#allocation6 + $0x48] sm:$0xff]  ;;  %v3533_v5 = vadd.f32 %v3517_v9, %v3486_v49 }
 0x2f8   :  { %v3738_v51 = vadd.f32 %v9642_v25, %v3722_v59  ;;  %v3721_v47 = vld [vmem:[#allocation6 + $0x40] sm:$0xff]  ;;  %3550 = vst.msk [vmem:[#allocation6 + $0x68] sm:$0xff] %vm2550_vm7, %v3534_v43  ;;  %v9648_v57 = vpop.f32.mrb[82].mxu0 }
 0x2f9   :  { %v3737_v32 = vadd.f32 %v3721_v47, %v3674_v63  ;;  %3549 = vst.msk [vmem:[#allocation6 + $0x60] sm:$0xff] %vm2550_vm7, %v3533_v5  ;;  %v9619_v23 = vpop.f32.mrb[152].mxu1  ;;  %v3694_v13 = vpop.f32.mrb[83].mxu0  ;;  %v3922_v56 = vld [vmem:[#allocation6 + $0x28] sm:$0xff] }
 0x2fa   :  { %3754 = vst.msk [vmem:[#allocation6 + $0x48] sm:$0xff] %vm2550_vm7, %v3738_v51  ;;  %v3536_v30 = vadd.f32 %v9619_v23, %v3520_v8  ;;  %v3496_v7 = vpop.f32.mrb[153].mxu1  ;;  %v3921_v39 = vld [vmem:[#allocation6 + $0x20] sm:$0xff] }
 0x2fb   :  { %3753 = vst.msk [vmem:[#allocation6 + $0x40] sm:$0xff] %vm2550_vm7, %v3737_v32  ;;  %v3724_v33 = vld [vmem:[#allocation6 + $0x58] sm:$0xff]  ;;  %v3535_v10 = vadd.f32 %v3519_v54, %v3496_v7 }
 0x2fc   :  { %v3740_v17 = vadd.f32 %v9645_v53, %v3724_v33  ;;  %v3723_v44 = vld [vmem:[#allocation6 + $0x50] sm:$0xff]  ;;  %3552 = vst.msk [vmem:[#allocation6 + $0x78] sm:$0xff] %vm2550_vm7, %v3536_v30  ;;  %v9651_v37 = vpop.f32.mrb[84].mxu0 }
 0x2fd   :  { %v3739_v46 = vadd.f32 %v3723_v44, %v3684_v6  ;;  %3551 = vst.msk [vmem:[#allocation6 + $0x70] sm:$0xff] %vm2550_vm7, %v3535_v10  ;;  %v3704_v26 = vpop.f32.mrb[85].mxu0  ;;  %v9662_v28 = vpop.f32.mrb[154].mxu1  ;;  %v3924_v20 = vld [vmem:[#allocation6 + $0x38] sm:$0xff] }
 0x2fe   :  { %3756 = vst.msk [vmem:[#allocation6 + $0x58] sm:$0xff] %vm2550_vm7, %v3740_v17  ;;  %v3934_v48 = vadd.f32 %v9662_v28, %v3918_v29  ;;  %v3838_v52 = vpop.f32.mrb[155].mxu1  ;;  %v3923_v43 = vld [vmem:[#allocation6 + $0x30] sm:$0xff] }
 0x2ff   :  { %3755 = vst.msk [vmem:[#allocation6 + $0x50] sm:$0xff] %vm2550_vm7, %v3739_v46  ;;  %v3726_v18 = vld [vmem:[#allocation6 + $0x68] sm:$0xff]  ;;  %v3933_v24 = vadd.f32 %v3917_v19, %v3838_v52 }
 0x300   :  { %v3742_v41 = vadd.f32 %v9648_v57, %v3726_v18  ;;  %v3725_v61 = vld [vmem:[#allocation6 + $0x60] sm:$0xff]  ;;  %3950 = vst.msk [vmem:[#allocation6 + $0x8] sm:$0xff] %vm2550_vm7, %v3934_v48  ;;  %v9694_v27 = vpop.f32.mrb[86].mxu0 }
 0x301   :  { %v3741_v55 = vadd.f32 %v3725_v61, %v3694_v13  ;;  %3949 = vst.msk [vmem:[#allocation6] sm:$0xff] %vm2550_vm7, %v3933_v24  ;;  %v9665_v3 = vpop.f32.mrb[156].mxu1  ;;  %v4048_v36 = vpop.f32.mrb[87].mxu0  ;;  %v3926_v32 = vld [vmem:[#allocation6 + $0x48] sm:$0xff] }
 0x302   :  { %3758 = vst.msk [vmem:[#allocation6 + $0x68] sm:$0xff] %vm2550_vm7, %v3742_v41  ;;  %v3936_v35 = vadd.f32 %v9665_v3, %v3920_v34  ;;  %v3848_v12 = vpop.f32.mrb[157].mxu1  ;;  %v3925_v30 = vld [vmem:[#allocation6 + $0x40] sm:$0xff] }
 0x303   :  { %3757 = vst.msk [vmem:[#allocation6 + $0x60] sm:$0xff] %vm2550_vm7, %v3741_v55  ;;  %v3728_v60 = vld [vmem:[#allocation6 + $0x78] sm:$0xff]  ;;  %v3935_v16 = vadd.f32 %v3919_v0, %v3848_v12 }
 0x304   :  { %v3744_v1 = vadd.f32 %v9651_v37, %v3728_v60  ;;  %v3727_v15 = vld [vmem:[#allocation6 + $0x70] sm:$0xff]  ;;  %3952 = vst.msk [vmem:[#allocation6 + $0x18] sm:$0xff] %vm2550_vm7, %v3936_v35  ;;  %v9697_v4 = vpop.f32.mrb[88].mxu0 }
 0x305   :  { %v3743_v38 = vadd.f32 %v3727_v15, %v3704_v26  ;;  %3951 = vst.msk [vmem:[#allocation6 + $0x10] sm:$0xff] %vm2550_vm7, %v3935_v16  ;;  %v9668_v25 = vpop.f32.mrb[158].mxu1  ;;  %v4058_v58 = vpop.f32.mrb[89].mxu0  ;;  %v3928_v46 = vld [vmem:[#allocation6 + $0x58] sm:$0xff] }
 0x306   :  { %3760 = vst.msk [vmem:[#allocation6 + $0x78] sm:$0xff] %vm2550_vm7, %v3744_v1  ;;  %v3938_v40 = vadd.f32 %v9668_v25, %v3922_v56  ;;  %v3858_v63 = vpop.f32.mrb[159].mxu1  ;;  %v3927_v48 = vld [vmem:[#allocation6 + $0x50] sm:$0xff] }
 0x307   :  { %3759 = vst.msk [vmem:[#allocation6 + $0x70] sm:$0xff] %vm2550_vm7, %v3743_v38  ;;  %v4128_v21 = vld [vmem:[#allocation6 + $0x8] sm:$0xff]  ;;  %v3937_v11 = vadd.f32 %v3921_v39, %v3858_v63 }
 0x308   :  { %v4144_v22 = vadd.f32 %v9694_v27, %v4128_v21  ;;  %v4127_v31 = vld [vmem:[#allocation6] sm:$0xff]  ;;  %3954 = vst.msk [vmem:[#allocation6 + $0x28] sm:$0xff] %vm2550_vm7, %v3938_v40  ;;  %v9700_v42 = vpop.f32.mrb[90].mxu0 }
 0x309   :  { %v4143_v50 = vadd.f32 %v4127_v31, %v4048_v36  ;;  %3953 = vst.msk [vmem:[#allocation6 + $0x20] sm:$0xff] %vm2550_vm7, %v3937_v11  ;;  %v9671_v53 = vpop.f32.mrb[160].mxu1  ;;  %v4068_v45 = vpop.f32.mrb[91].mxu0  ;;  %v3930_v55 = vld [vmem:[#allocation6 + $0x68] sm:$0xff] }
 0x30a   :  { %4160 = vst.msk [vmem:[#allocation6 + $0x8] sm:$0xff] %vm2550_vm7, %v4144_v22  ;;  %v3940_v14 = vadd.f32 %v9671_v53, %v3924_v20  ;;  %v3868_v6 = vpop.f32.mrb[161].mxu1  ;;  %v3929_v35 = vld [vmem:[#allocation6 + $0x60] sm:$0xff] }
 0x30b   :  { %4159 = vst.msk [vmem:[#allocation6] sm:$0xff] %vm2550_vm7, %v4143_v50  ;;  %v4130_v49 = vld [vmem:[#allocation6 + $0x18] sm:$0xff]  ;;  %v3939_v9 = vadd.f32 %v3923_v43, %v3868_v6 }
 0x30c   :  { %v4146_v59 = vadd.f32 %v9697_v4, %v4130_v49  ;;  %v4129_v5 = vld [vmem:[#allocation6 + $0x10] sm:$0xff]  ;;  %3956 = vst.msk [vmem:[#allocation6 + $0x38] sm:$0xff] %vm2550_vm7, %v3940_v14  ;;  %v9703_v51 = vpop.f32.mrb[92].mxu0 }
 0x30d   :  { %v4145_v47 = vadd.f32 %v4129_v5, %v4058_v58  ;;  %3955 = vst.msk [vmem:[#allocation6 + $0x30] sm:$0xff] %vm2550_vm7, %v3939_v9  ;;  %v9674_v57 = vpop.f32.mrb[162].mxu1  ;;  %v4078_v23 = vpop.f32.mrb[93].mxu0  ;;  %v3932_v38 = vld [vmem:[#allocation6 + $0x78] sm:$0xff] }
 0x30e   :  { %4162 = vst.msk [vmem:[#allocation6 + $0x18] sm:$0xff] %vm2550_vm7, %v4146_v59  ;;  %v3942_v8 = vadd.f32 %v9674_v57, %v3926_v32  ;;  %v3878_v13 = vpop.f32.mrb[163].mxu1  ;;  %v3931_v40 = vld [vmem:[#allocation6 + $0x70] sm:$0xff] }
 0x30f   :  { %4161 = vst.msk [vmem:[#allocation6 + $0x10] sm:$0xff] %vm2550_vm7, %v4145_v47  ;;  %v4132_v7 = vld [vmem:[#allocation6 + $0x28] sm:$0xff]  ;;  %v3941_v54 = vadd.f32 %v3925_v30, %v3878_v13 }
 0x310   :  { %v4148_v33 = vadd.f32 %v9700_v42, %v4132_v7  ;;  %v4131_v10 = vld [vmem:[#allocation6 + $0x20] sm:$0xff]  ;;  %3958 = vst.msk [vmem:[#allocation6 + $0x48] sm:$0xff] %vm2550_vm7, %v3942_v8  ;;  %v9706_v17 = vpop.f32.mrb[94].mxu0 }
 0x311   :  { %v4147_v44 = vadd.f32 %v4131_v10, %v4068_v45  ;;  %3957 = vst.msk [vmem:[#allocation6 + $0x40] sm:$0xff] %vm2550_vm7, %v3941_v54  ;;  %v9677_v37 = vpop.f32.mrb[164].mxu1  ;;  %v4088_v26 = vpop.f32.mrb[95].mxu0  ;;  %v4336_v50 = vld [vmem:[#allocation6 + $0x8] sm:$0xff] }
 0x312   :  { %4164 = vst.msk [vmem:[#allocation6 + $0x28] sm:$0xff] %vm2550_vm7, %v4148_v33  ;;  %v3944_v28 = vadd.f32 %v9677_v37, %v3928_v46  ;;  %v3888_v29 = vpop.f32.mrb[165].mxu1  ;;  %v4335_v14 = vld [vmem:[#allocation6] sm:$0xff] }
 0x313   :  { %4163 = vst.msk [vmem:[#allocation6 + $0x20] sm:$0xff] %vm2550_vm7, %v4147_v44  ;;  %v4134_v52 = vld [vmem:[#allocation6 + $0x38] sm:$0xff]  ;;  %v3943_v19 = vadd.f32 %v3927_v48, %v3888_v29 }
 0x314   :  { %v4150_v18 = vadd.f32 %v9703_v51, %v4134_v52  ;;  %v4133_v24 = vld [vmem:[#allocation6 + $0x30] sm:$0xff]  ;;  %3960 = vst.msk [vmem:[#allocation6 + $0x58] sm:$0xff] %vm2550_vm7, %v3944_v28  ;;  %v9709_v41 = vpop.f32.mrb[96].mxu0 }
 0x315   :  { %v4149_v61 = vadd.f32 %v4133_v24, %v4078_v23  ;;  %3959 = vst.msk [vmem:[#allocation6 + $0x50] sm:$0xff] %vm2550_vm7, %v3943_v19  ;;  %v9680_v27 = vpop.f32.mrb[166].mxu1  ;;  %v4098_v3 = vpop.f32.mrb[97].mxu0  ;;  %v4338_v51 = vld [vmem:[#allocation6 + $0x18] sm:$0xff] }
 0x316   :  { %4166 = vst.msk [vmem:[#allocation6 + $0x38] sm:$0xff] %vm2550_vm7, %v4150_v18  ;;  %v3946_v34 = vadd.f32 %v9680_v27, %v3930_v55  ;;  %v3898_v36 = vpop.f32.mrb[167].mxu1  ;;  %v4337_v32 = vld [vmem:[#allocation6 + $0x10] sm:$0xff] }
 0x317   :  { %4165 = vst.msk [vmem:[#allocation6 + $0x30] sm:$0xff] %vm2550_vm7, %v4149_v61  ;;  %v4136_v12 = vld [vmem:[#allocation6 + $0x48] sm:$0xff]  ;;  %v3945_v0 = vadd.f32 %v3929_v35, %v3898_v36 }
 0x318   :  { %v4152_v60 = vadd.f32 %v9706_v17, %v4136_v12  ;;  %v4135_v16 = vld [vmem:[#allocation6 + $0x40] sm:$0xff]  ;;  %3962 = vst.msk [vmem:[#allocation6 + $0x68] sm:$0xff] %vm2550_vm7, %v3946_v34  ;;  %v9712_v1 = vpop.f32.mrb[98].mxu0 }
 0x319   :  { %v4151_v15 = vadd.f32 %v4135_v16, %v4088_v26  ;;  %3961 = vst.msk [vmem:[#allocation6 + $0x60] sm:$0xff] %vm2550_vm7, %v3945_v0  ;;  %v9683_v4 = vpop.f32.mrb[168].mxu1  ;;  %v4108_v25 = vpop.f32.mrb[99].mxu0  ;;  %v4340_v33 = vld [vmem:[#allocation6 + $0x28] sm:$0xff]  ;;  %v8308_v16 = vld [vmem:[%s14550_s5 + $0x58] sm:$0xff] }
 0x31a   :  { %4168 = vst.msk [vmem:[#allocation6 + $0x48] sm:$0xff] %vm2550_vm7, %v4152_v60  ;;  %v3948_v56 = vadd.f32 %v9683_v4, %v3932_v38  ;;  %v3908_v58 = vpop.f32.mrb[169].mxu1  ;;  %v4339_v44 = vld [vmem:[#allocation6 + $0x20] sm:$0xff]  ;;  %v8307_v60 = vld [vmem:[%s14550_s5 + $0x50] sm:$0xff] }
 0x31b   :  { %4167 = vst.msk [vmem:[#allocation6 + $0x40] sm:$0xff] %vm2550_vm7, %v4151_v15  ;;  %v4138_v63 = vld [vmem:[#allocation6 + $0x58] sm:$0xff]  ;;  %v3947_v39 = vadd.f32 %v3931_v40, %v3908_v58  ;;  %v10401_v40 = vpack.c.bf16 %v8308_v16, %v8307_v60 }
 0x31c   :  { %v4154_v21 = vadd.f32 %v9709_v41, %v4138_v63  ;;  %v4137_v11 = vld [vmem:[#allocation6 + $0x50] sm:$0xff]  ;;  %3964 = vst.msk [vmem:[#allocation6 + $0x78] sm:$0xff] %vm2550_vm7, %v3948_v56  ;;  %v9715_v22 = vpop.f32.mrb[100].mxu0  ;;  %v8309_v63 = vld [vmem:[%s14550_s5 + $0x60] sm:$0xff] }
 0x31d   :  { %v4153_v31 = vadd.f32 %v4137_v11, %v4098_v3  ;;  %3963 = vst.msk [vmem:[#allocation6 + $0x70] sm:$0xff] %vm2550_vm7, %v3947_v39  ;;  %v9726_v42 = vpop.f32.mrb[170].mxu1  ;;  %v4118_v53 = vpop.f32.mrb[101].mxu0  ;;  %v4342_v52 = vld [vmem:[#allocation6 + $0x38] sm:$0xff] }
 0x31e   :  { %4170 = vst.msk [vmem:[#allocation6 + $0x58] sm:$0xff] %vm2550_vm7, %v4154_v21  ;;  %v4352_v20 = vadd.f32 %v9726_v42, %v4336_v50  ;;  %v4256_v45 = vpop.f32.mrb[171].mxu1  ;;  %v4341_v24 = vld [vmem:[#allocation6 + $0x30] sm:$0xff] }
 0x31f   :  { %4169 = vst.msk [vmem:[#allocation6 + $0x50] sm:$0xff] %vm2550_vm7, %v4153_v31  ;;  %v4140_v6 = vld [vmem:[#allocation6 + $0x68] sm:$0xff]  ;;  %v4351_v43 = vadd.f32 %v4335_v14, %v4256_v45 }
 0x320   :  { %v4156_v49 = vadd.f32 %v9712_v1, %v4140_v6  ;;  %v4139_v9 = vld [vmem:[#allocation6 + $0x60] sm:$0xff]  ;;  %4368 = vst.msk [vmem:[#allocation6 + $0x8] sm:$0xff] %vm2550_vm7, %v4352_v20  ;;  %v8310_v31 = vld [vmem:[%s14550_s5 + $0x68] sm:$0xff] }
 0x321   :  { %v4155_v59 = vadd.f32 %v4139_v9, %v4108_v25  ;;  %4367 = vst.msk [vmem:[#allocation6] sm:$0xff] %vm2550_vm7, %v4351_v43  ;;  %v9729_v5 = vpop.f32.mrb[172].mxu1  ;;  %v4344_v36 = vld [vmem:[#allocation6 + $0x48] sm:$0xff]  ;;  %v8311_v9 = vld [vmem:[%s14550_s5 + $0x70] sm:$0xff] }
 0x322   :  { %4172 = vst.msk [vmem:[#allocation6 + $0x68] sm:$0xff] %vm2550_vm7, %v4156_v49  ;;  %v4354_v47 = vadd.f32 %v9729_v5, %v4338_v51  ;;  %v4266_v57 = vpop.f32.mrb[173].mxu1  ;;  %v4343_v0 = vld [vmem:[#allocation6 + $0x40] sm:$0xff]  ;;  %v10405_v49 = vpack.c.bf16 %v8310_v31, %v8309_v63 }
 0x323   :  { %4171 = vst.msk [vmem:[#allocation6 + $0x60] sm:$0xff] %vm2550_vm7, %v4155_v59  ;;  %v4353_v23 = vadd.f32 %v4337_v32, %v4266_v57  ;;  %v4142_v8 = vld [vmem:[#allocation6 + $0x78] sm:$0xff] }
 0x324   :  { %4370 = vst.msk [vmem:[#allocation6 + $0x18] sm:$0xff] %vm2550_vm7, %v4354_v47  ;;  %v4158_v13 = vadd.f32 %v9715_v22, %v4142_v8  ;;  %v4141_v30 = vld [vmem:[#allocation6 + $0x70] sm:$0xff] }
 0x325   :  { %4369 = vst.msk [vmem:[#allocation6 + $0x10] sm:$0xff] %vm2550_vm7, %v4353_v23  ;;  %v4157_v7 = vadd.f32 %v4141_v30, %v4118_v53  ;;  %v9732_v54 = vpop.f32.mrb[174].mxu1  ;;  %v4346_v58 = vld [vmem:[#allocation6 + $0x58] sm:$0xff] }
 0x326   :  { %4174 = vst.msk [vmem:[#allocation6 + $0x78] sm:$0xff] %vm2550_vm7, %v4158_v13  ;;  %v4356_v10 = vadd.f32 %v9732_v54, %v4340_v33  ;;  %v4276_v17 = vpop.f32.mrb[175].mxu1  ;;  %v4345_v11 = vld [vmem:[#allocation6 + $0x50] sm:$0xff] }
 0x327   :  { %v4384_v37 = vld [vmem:[#allocation6 + $0x8] sm:$0xff]  ;;  %4173 = vst.msk [vmem:[#allocation6 + $0x70] sm:$0xff] %vm2550_vm7, %v4157_v7  ;;  %v4355_v46 = vadd.f32 %v4339_v44, %v4276_v17 }
 0x328   :  { %v4400_v26 = vmax.f32 %v4384_v37, 0.0  ;;  %v4383_v28 = vld [vmem:[#allocation6] sm:$0xff]  ;;  %4372 = vst.msk [vmem:[#allocation6 + $0x28] sm:$0xff] %vm2550_vm7, %v4356_v10 }
 0x329   :  { %v4399_v29 = vmax.f32 %v4383_v28, 0.0  ;;  %4371 = vst.msk [vmem:[#allocation6 + $0x20] sm:$0xff] %vm2550_vm7, %v4355_v46  ;;  %v9735_v48 = vpop.f32.mrb[176].mxu1  ;;  %v4348_v43 = vld [vmem:[#allocation6 + $0x68] sm:$0xff]  ;;  %v8329_v10 = vld [vmem:[%s14550_s5 + $0x80] sm:$0xff] }
 0x32a   :  { %v4358_v19 = vadd.f32 %v9735_v48, %v4342_v52  ;;  %v4286_v18 = vpop.f32.mrb[177].mxu1  ;;  %4458 = vst.msk [vmem:[#allocation4 + $0x21] sm:$0xff] %vm2550_vm7, %v4400_v26  ;;  %v4347_v51 = vld [vmem:[#allocation6 + $0x60] sm:$0xff]  ;;  %v8330_v26 = vld [vmem:[%s14550_s5 + $0x88] sm:$0xff] }
 0x32b   :  { %v4386_v41 = vld [vmem:[#allocation6 + $0x18] sm:$0xff]  ;;  %v4357_v61 = vadd.f32 %v4341_v24, %v4286_v18  ;;  %4457 = vst.msk [vmem:[#allocation4 + $0x11] sm:$0xff] %vm2550_vm7, %v4399_v29  ;;  %v13107_v24 = vld [vmem:[#allocation4 + $0xa0] sm:$0xff] }
 0x32c   :  { %v4402_v27 = vmax.f32 %v4386_v41, 0.0  ;;  %v4385_v55 = vld [vmem:[#allocation6 + $0x10] sm:$0xff]  ;;  %4374 = vst.msk [vmem:[#allocation6 + $0x38] sm:$0xff] %vm2550_vm7, %v4358_v19  ;;  %v10413_v41 = vpack.c.bf16 %v8330_v26, %v8329_v10 }
 0x32d   :  { %v4401_v3 = vmax.f32 %v4385_v55, 0.0  ;;  %4373 = vst.msk [vmem:[#allocation6 + $0x30] sm:$0xff] %vm2550_vm7, %v4357_v61  ;;  %v9738_v34 = vpop.f32.mrb[178].mxu1  ;;  %v4350_v54 = vld [vmem:[#allocation6 + $0x78] sm:$0xff] }
 0x32e   :  { %v4360_v35 = vadd.f32 %v9738_v34, %v4344_v36  ;;  %v4296_v12 = vpop.f32.mrb[179].mxu1  ;;  %4460 = vst.msk [vmem:[#allocation4 + $0x41] sm:$0xff] %vm2550_vm7, %v4402_v27  ;;  %v4349_v37 = vld [vmem:[#allocation6 + $0x70] sm:$0xff] }
 0x32f   :  { %v4388_v1 = vld [vmem:[#allocation6 + $0x28] sm:$0xff]  ;;  %v4359_v15 = vadd.f32 %v4343_v0, %v4296_v12  ;;  %4459 = vst.msk [vmem:[#allocation4 + $0x31] sm:$0xff] %vm2550_vm7, %v4401_v3 }
 0x330   :  { %v4404_v4 = vmax.f32 %v4388_v1, 0.0  ;;  %v4387_v38 = vld [vmem:[#allocation6 + $0x20] sm:$0xff]  ;;  %4376 = vst.msk [vmem:[#allocation6 + $0x48] sm:$0xff] %vm2550_vm7, %v4360_v35 }
 0x331   :  { %v4403_v25 = vmax.f32 %v4387_v38, 0.0  ;;  %4375 = vst.msk [vmem:[#allocation6 + $0x40] sm:$0xff] %vm2550_vm7, %v4359_v15  ;;  %v9741_v56 = vpop.f32.mrb[180].mxu1  ;;  %v13064_v53 = vld [vmem:[#allocation4 + $0x20] sm:$0xff]  ;;  %v13130_v15 = vld [vmem:[#allocation4 + $0x8] sm:$0x3] }
 0x332   :  { %v4362_v39 = vadd.f32 %v9741_v56, %v4346_v58  ;;  %v4306_v21 = vpop.f32.mrb[181].mxu1  ;;  %v13055_v22 = vld [vmem:[#allocation4 + $0x10] sm:$0xff]  ;;  %4462 = vst.msk [vmem:[#allocation4 + $0x61] sm:$0xff] %vm2550_vm7, %v4404_v4  ;;  %v13139_v38 = vld [vmem:[#allocation4] sm:$0xff]  ;;  %v4754_v56 = vrot.slane %v13130_v15, 1 }
 0x333   :  { %v4390_v42 = vld [vmem:[#allocation6 + $0x38] sm:$0xff]  ;;  %v4361_v50 = vadd.f32 %v4345_v11, %v4306_v21  ;;  %9765 = vmatmul.mubr.msk.f32.vlgmr.msra.gmra.mrb[102].mxu0 %vm2550_vm7, %v13055_v22  ;;  %4461 = vst.msk [vmem:[#allocation4 + $0x51] sm:$0xff] %vm2550_vm7, %v4403_v25  ;;  %v4753_v25 = vrot.slane %v13139_v38, 1  ;;  %v4756_v11 = vrot.slane %v13055_v22, 1 }
 0x334   :  { %v4406_v20 = vmax.f32 %v4390_v42, 0.0  ;;  %v4389_v45 = vld [vmem:[#allocation6 + $0x30] sm:$0xff]  ;;  %4378 = vst.msk [vmem:[#allocation6 + $0x58] sm:$0xff] %vm2550_vm7, %v4362_v39  ;;  %9767 = vmatprep.mubr.msk.f32.mxu0 %vm2550_vm7, %v13064_v53  ;;  %10400 = vmatpush3.bf16.msra.mxu0 %v12929_v62  ;;  %v8312_v62 = vld [vmem:[%s14550_s5 + $0x78] sm:$0xff]  ;;  %v13153_v39 = vld [vmem:[#allocation4 + $0x28] sm:$0x3] }
 0x335   :  { %v4405_v14 = vmax.f32 %v4389_v45, 0.0  ;;  %4377 = vst.msk [vmem:[#allocation6 + $0x50] sm:$0xff] %vm2550_vm7, %v4361_v50  ;;  %v9744_v6 = vpop.f32.mrb[182].mxu1  ;;  %10402 = vmatprep.subr.bf16.mxu0 %v10401_v40  ;;  %v13083_v23 = vld [vmem:[#allocation4 + $0x40] sm:$0xff]  ;;  %v10409_v33 = vpack.c.bf16 %v8312_v62, %v8311_v9  ;;  %v13149_v63 = vld [vmem:[#allocation4 + $0x18] sm:$0x3]  ;;  %v4755_v21 = vsel %vm414_vm3, %v4753_v25, %v4754_v56 }
 0x336   :  { %4464 = vst.msk [vmem:[#allocation4 + $0x81] sm:$0xff] %vm2550_vm7, %v4406_v20  ;;  %v4364_v59 = vadd.f32 %v9744_v6, %v4348_v43  ;;  %v4316_v5 = vpop.f32.mrb[183].mxu1  ;;  %v13075_v47 = vld [vmem:[#allocation4 + $0x30] sm:$0xff]  ;;  %v4757_v42 = vrot.slane %v13149_v63, 1  ;;  %v8332_v20 = vld [vmem:[%s14550_s5 + $0x98] sm:$0xff]  ;;  %v4759_v45 = vrot.slane %v13064_v53, 1 }
 0x337   :  { %v4392_v57 = vld [vmem:[#allocation6 + $0x48] sm:$0xff]  ;;  %4463 = vst.msk [vmem:[#allocation4 + $0x71] sm:$0xff] %vm2550_vm7, %v4405_v14  ;;  %v4363_v32 = vadd.f32 %v4347_v51, %v4316_v5  ;;  %9768 = vmatmul.mubr.msk.f32.gmra.mrb[104].mxu0 %vm2550_vm7, %v13075_v47  ;;  %v8331_v50 = vld [vmem:[%s14550_s5 + $0x90] sm:$0xff]  ;;  %v4760_v14 = vrot.slane %v13153_v39, 1  ;;  %v13170_v6 = vld [vmem:[#allocation4 + $0x38] sm:$0x3] }
 0x338   :  { %v4408_v8 = vmax.f32 %v4392_v57, 0.0  ;;  %v4391_v13 = vld [vmem:[#allocation6 + $0x40] sm:$0xff]  ;;  %4380 = vst.msk [vmem:[#allocation6 + $0x68] sm:$0xff] %vm2550_vm7, %v4364_v59  ;;  %9770 = vmatprep.mubr.msk.f32.mxu0 %vm2550_vm7, %v13083_v23  ;;  %10404 = vmatpush3.bf16.msra.mxu0 %v10401_v40  ;;  %v13173_v43 = vld [vmem:[#allocation4 + $0x48] sm:$0x3]  ;;  %v13176_v9 = vsel %vm414_vm3, %v4756_v11, %v4757_v42  ;;  %v4762_v59 = vrot.slane %v13075_v47, 1 }
 0x339   :  { %v4407_v30 = vmax.f32 %v4391_v13, 0.0  ;;  %4379 = vst.msk [vmem:[#allocation6 + $0x60] sm:$0xff] %vm2550_vm7, %v4363_v32  ;;  %v9747_v7 = vpop.f32.mrb[184].mxu1  ;;  %10406 = vmatprep.subr.bf16.mxu0 %v10405_v49  ;;  %v13101_v48 = vld [vmem:[#allocation4 + $0x60] sm:$0xff]  ;;  %v4763_v5 = vrot.slane %v13170_v6, 1  ;;  %v8334_v62 = vld [vmem:[%s14550_s5 + $0xa8] sm:$0xff]  ;;  %v13189_v57 = vsel %vm414_vm3, %v4759_v45, %v4760_v14 }
 0x33a   :  { %4466 = vst.msk [vmem:[#allocation4 + $0xc1] sm:$0xff] %vm2550_vm7, %v4408_v8  ;;  %v4366_v17 = vadd.f32 %v9747_v7, %v4350_v54  ;;  %v4326_v44 = vpop.f32.mrb[185].mxu1  ;;  %v13093_v46 = vld [vmem:[#allocation4 + $0x50] sm:$0xff]  ;;  %v8333_v51 = vld [vmem:[%s14550_s5 + $0xa0] sm:$0xff]  ;;  %v4765_v32 = vrot.slane %v13083_v23, 1  ;;  %v4766_v8 = vrot.slane %v13173_v43, 1 }
 0x33b   :  { %v4394_v28 = vld [vmem:[#allocation6 + $0x58] sm:$0xff]  ;;  %4465 = vst.msk [vmem:[#allocation4 + $0xb1] sm:$0xff] %vm2550_vm7, %v4407_v30  ;;  %v4365_v29 = vadd.f32 %v4349_v37, %v4326_v44  ;;  %9771 = vmatmul.mubr.msk.f32.gmra.mrb[106].mxu0 %vm2550_vm7, %v13093_v46  ;;  %v13197_v30 = vld [vmem:[#allocation4 + $0x68] sm:$0x3]  ;;  %v10421_v7 = vpack.c.bf16 %v8334_v62, %v8333_v51  ;;  %v13200_v54 = vsel %vm414_vm3, %v4762_v59, %v4763_v5  ;;  %v8335_v44 = vld [vmem:[%s14550_s5 + $0xb0] sm:$0xff] }
 0x33c   :  { %v4410_v52 = vmax.f32 %v4394_v28, 0.0  ;;  %v4393_v19 = vld [vmem:[#allocation6 + $0x50] sm:$0xff]  ;;  %4382 = vst.msk [vmem:[#allocation6 + $0x78] sm:$0xff] %vm2550_vm7, %v4366_v17  ;;  %9773 = vmatprep.mubr.msk.f32.mxu0 %vm2550_vm7, %v13101_v48  ;;  %10408 = vmatpush3.bf16.msra.mxu0 %v10405_v49  ;;  %v10417_v49 = vpack.c.bf16 %v8332_v20, %v8331_v50  ;;  %v13193_v13 = vld [vmem:[#allocation4 + $0x58] sm:$0x3]  ;;  %v13215_v26 = vsel %vm414_vm3, %v4765_v32, %v4766_v8  ;;  %v4771_v28 = vrot.slane %v13101_v48, 1 }
 0x33d   :  { %v4409_v18 = vmax.f32 %v4393_v19, 0.0  ;;  %4381 = vst.msk [vmem:[#allocation6 + $0x70] sm:$0xff] %vm2550_vm7, %v4365_v29  ;;  %10410 = vmatprep.subr.bf16.mxu0 %v10409_v33  ;;  %v4769_v10 = vrot.slane %v13193_v13, 1  ;;  %v13204_v17 = vld [vmem:[#allocation4 + $0xa8] sm:$0x3]  ;;  %v8336_v37 = vld [vmem:[%s14550_s5 + $0xb8] sm:$0xff] }
 0x33e   :  { %4468 = vst.msk [vmem:[#allocation4 + $0xe1] sm:$0xff] %vm2550_vm7, %v4410_v52  ;;  %v13110_v61 = vld [vmem:[#allocation4 + $0x70] sm:$0xff]  ;;  %v4772_v29 = vrot.slane %v13197_v30, 1  ;;  %v13219_v52 = vld [vmem:[#allocation4 + $0x78] sm:$0x3]  ;;  %v4777_v19 = vrot.slane %v13107_v24, 1 }
 0x33f   :  { %4467 = vst.msk [vmem:[#allocation4 + $0xd1] sm:$0xff] %vm2550_vm7, %v4409_v18  ;;  %v4396_v27 = vld [vmem:[#allocation6 + $0x68] sm:$0xff]  ;;  %9774 = vmatmul.mubr.msk.f32.gmra.mrb[108].mxu0 %vm2550_vm7, %v13110_v61  ;;  %v4778_v18 = vrot.slane %v13204_v17, 1 }
 0x340   :  { %v4412_v55 = vmax.f32 %v4396_v27, 0.0  ;;  %v4395_v3 = vld [vmem:[#allocation6 + $0x60] sm:$0xff]  ;;  %9776 = vmatprep.mubr.msk.f32.mxu0 %vm2550_vm7, %v13107_v24  ;;  %10412 = vmatpush3.bf16.msra.mxu0 %v10409_v33  ;;  %v4768_v33 = vrot.slane %v13093_v46, 1 }
 0x341   :  { %v4411_v34 = vmax.f32 %v4395_v3, 0.0  ;;  %10414 = vmatprep.subr.bf16.mxu0 %v10413_v41  ;;  %v13123_v12 = vld [vmem:[#allocation4 + $0xc0] sm:$0xff]  ;;  %v4775_v3 = vrot.slane %v13219_v52, 1  ;;  %v4779_v25 = vsel %vm414_vm3, %v4777_v19, %v4778_v18  ;;  %v5035_v18 = vrot.slane %v13139_v38, 2 }
 0x342   :  { %4470 = vst.msk [vmem:[#allocation4 + $0x101] sm:$0xff] %vm2550_vm7, %v4412_v55  ;;  %v13118_v36 = vld [vmem:[#allocation4 + $0xb0] sm:$0xff]  ;;  %v13226_v27 = vsel %vm414_vm3, %v4768_v33, %v4769_v10  ;;  %v4774_v55 = vrot.slane %v13110_v61, 1  ;;  %v4783_v50 = vrot.slane %v13123_v12, 1 }
 0x343   :  { %4469 = vst.msk [vmem:[#allocation4 + $0xf1] sm:$0xff] %vm2550_vm7, %v4411_v34  ;;  %v4398_v35 = vld [vmem:[#allocation6 + $0x78] sm:$0xff]  ;;  %9777 = vmatmul.mubr.msk.f32.gmra.mrb[110].mxu0 %vm2550_vm7, %v13118_v36  ;;  %v8353_v34 = vld [vmem:[%s14550_s5 + $0xc0] sm:$0xff] }
 0x344   :  { %v4414_v0 = vmax.f32 %v4398_v35, 0.0  ;;  %v4397_v60 = vld [vmem:[#allocation6 + $0x70] sm:$0xff]  ;;  %9779 = vmatprep.mubr.msk.f32.mxu0 %vm2550_vm7, %v13123_v12  ;;  %v8354_v35 = vld [vmem:[%s14550_s5 + $0xc8] sm:$0xff]  ;;  %v13250_v11 = vsel %vm414_vm3, %v4774_v55, %v4775_v3 }
 0x345   :  { %v4413_v16 = vmax.f32 %v4397_v60, 0.0  ;;  %v13135_v4 = vld [vmem:[#allocation4 + $0xe0] sm:$0xff]  ;;  %v13241_v60 = vld [vmem:[#allocation4 + $0xb8] sm:$0x3]  ;;  %v10429_v56 = vpack.c.bf16 %v8354_v35, %v8353_v34  ;;  %v13260_v14 = vld [vmem:[#allocation4 + $0xe8] sm:$0x3] }
 0x346   :  { %4472 = vst.msk [vmem:[#allocation4 + $0x121] sm:$0xff] %vm2550_vm7, %v4414_v0  ;;  %v13128_v1 = vld [vmem:[#allocation4 + $0xd0] sm:$0xff]  ;;  %v13239_v0 = vsel %vm414_vm3, %v4771_v28, %v4772_v29  ;;  %v4781_v42 = vrot.slane %v13241_v60, 1  ;;  %v13257_v45 = vld [vmem:[#allocation4 + $0xd8] sm:$0x3]  ;;  %v4789_v62 = vrot.slane %v13135_v4, 1 }
 0x347   :  { %4471 = vst.msk [vmem:[#allocation4 + $0x111] sm:$0xff] %vm2550_vm7, %v4413_v16  ;;  %9780 = vmatmul.mubr.msk.f32.gmra.mrb[112].mxu0 %vm2550_vm7, %v13128_v1  ;;  %v13245_v16 = vld [vmem:[#allocation4 + $0xc8] sm:$0x3]  ;;  %v4786_v59 = vrot.slane %v13128_v1, 1  ;;  %v4787_v5 = vrot.slane %v13257_v45, 1  ;;  %v4790_v32 = vrot.slane %v13260_v14, 1 }
 0x348   :  { %9782 = vmatprep.mubr.msk.f32.mxu0 %vm2550_vm7, %v13135_v4  ;;  %v4784_v20 = vrot.slane %v13245_v16, 1 }
 0x349   :  { %v13147_v40 = vld [vmem:[#allocation4 + $0x100] sm:$0xff]  ;;  %v13281_v33 = vsel %vm414_vm3, %v4786_v59, %v4787_v5  ;;  %v5042_v59 = vrot.slane %v13153_v39, 2 }
 0x34a   :  { %v13143_v58 = vld [vmem:[#allocation4 + $0xf0] sm:$0xff]  ;;  %v13270_v51 = vsel %vm414_vm3, %v4783_v50, %v4784_v20  ;;  %v13274_v8 = vld [vmem:[#allocation4 + $0xf8] sm:$0x3]  ;;  %v4795_v28 = vrot.slane %v13147_v40, 1  ;;  %v5041_v20 = vrot.slane %v13064_v53, 2 }
 0x34b   :  { %9783 = vmatmul.mubr.msk.f32.gmra.mrb[114].mxu0 %vm2550_vm7, %v13143_v58  ;;  %v4792_v10 = vrot.slane %v13143_v58, 1  ;;  %v8356_v50 = vld [vmem:[%s14550_s5 + $0xd8] sm:$0xff] }
 0x34c   :  { %9785 = vmatprep.mubr.msk.f32.mxu0 %vm2550_vm7, %v13147_v40  ;;  %v13341_v39 = vsel %vm693_vm4, %v5041_v20, %v5042_v59  ;;  %v5056_v20 = vrot.slane %v13110_v61, 2  ;;  %v5057_v59 = vrot.slane %v13219_v52, 2 }
 0x34e   :  { %v13157_v31 = vld [vmem:[#allocation4 + $0x110] sm:$0xff]  ;;  %v13292_v19 = vld [vmem:[#allocation4 + $0x118] sm:$0x3] }
 0x34f   :  { %9786 = vmatmul.mubr.msk.f32.gmra.mrb[116].mxu0 %vm2550_vm7, %v13157_v31  ;;  %v4798_v3 = vrot.slane %v13157_v31, 1  ;;  %v4799_v34 = vrot.slane %v13292_v19, 1 }
 0x350   :  { %9804 = vmatprep.mubr.msk.f32.mxu0 %vm2550_vm7, %v4755_v21  ;;  %v4780_v21 = vrot.slane %v13118_v36, 1 }
 0x353   :  { %9805 = vmatmul.mubr.msk.f32.vlgmr.msra.gmra.mrb[102].mxu0 %vm2550_vm7, %v13176_v9 }
 0x354   :  { %9807 = vmatprep.mubr.msk.f32.mxu0 %vm2550_vm7, %v13189_v57  ;;  %10416 = vmatpush3.bf16.msra.mxu0 %v10413_v41  ;;  %v10425_v41 = vpack.c.bf16 %v8336_v37, %v8335_v44  ;;  %v4793_v44 = vrot.slane %v13274_v8, 1  ;;  %v13288_v37 = vsel %vm414_vm3, %v4789_v62, %v4790_v32  ;;  %v5044_v62 = vrot.slane %v13075_v47, 2 }
 0x355   :  { %10418 = vmatprep.subr.bf16.mxu0 %v10417_v49  ;;  %v5045_v32 = vrot.slane %v13170_v6, 2 }
 0x356   :  { %v13299_v55 = vsel %vm414_vm3, %v4792_v10, %v4793_v44  ;;  %v8357_v10 = vld [vmem:[%s14550_s5 + $0xe0] sm:$0xff]  ;;  %v8358_v44 = vld [vmem:[%s14550_s5 + $0xe8] sm:$0xff] }
 0x357   :  { %9808 = vmatmul.mubr.msk.f32.gmra.mrb[104].mxu0 %vm2550_vm7, %v13200_v54  ;;  %v10437_v6 = vpack.c.bf16 %v8358_v44, %v8357_v10  ;;  %v5063_v10 = vrot.slane %v13241_v60, 2  ;;  %v5065_v44 = vrot.slane %v13123_v12, 2 }
 0x358   :  { %9810 = vmatprep.mubr.msk.f32.mxu0 %vm2550_vm7, %v13215_v26  ;;  %10420 = vmatpush3.bf16.msra.mxu0 %v10417_v49  ;;  %v13263_v49 = vsel %vm414_vm3, %v4780_v21, %v4781_v42  ;;  %v5039_v21 = vrot.slane %v13149_v63, 2  ;;  %v8355_v42 = vld [vmem:[%s14550_s5 + $0xd0] sm:$0xff] }
 0x359   :  { %10422 = vmatprep.subr.bf16.mxu0 %v10421_v7  ;;  %v10433_v5 = vpack.c.bf16 %v8356_v50, %v8355_v42 }
 0x35b   :  { %9811 = vmatmul.mubr.msk.f32.gmra.mrb[106].mxu0 %vm2550_vm7, %v13226_v27 }
 0x35c   :  { %9813 = vmatprep.mubr.msk.f32.mxu0 %vm2550_vm7, %v13239_v0  ;;  %10424 = vmatpush3.bf16.msra.mxu0 %v10421_v7  ;;  %v13278_v7 = vld [vmem:[#allocation4 + $0x108] sm:$0x3] }
 0x35d   :  { %10426 = vmatprep.subr.bf16.mxu0 %v10425_v41  ;;  %v4796_v29 = vrot.slane %v13278_v7, 1 }
 0x35f   :  { %9814 = vmatmul.mubr.msk.f32.gmra.mrb[108].mxu0 %vm2550_vm7, %v13250_v11  ;;  %v13306_v35 = vsel %vm414_vm3, %v4795_v28, %v4796_v29  ;;  %v5047_v28 = vrot.slane %v13083_v23, 2  ;;  %v5048_v29 = vrot.slane %v13173_v43, 2  ;;  %v8360_v43 = vld [vmem:[%s14550_s5 + $0xf8] sm:$0xff] }
 0x360   :  { %9816 = vmatprep.mubr.msk.f32.mxu0 %vm2550_vm7, %v4779_v25  ;;  %10428 = vmatpush3.bf16.msra.mxu0 %v10425_v41  ;;  %v5036_v41 = vrot.slane %v13130_v15, 2  ;;  %v5038_v15 = vrot.slane %v13055_v22, 2  ;;  %v13313_v25 = vsel %vm414_vm3, %v4798_v3, %v4799_v34  ;;  %v5051_v3 = vrot.slane %v13193_v13, 2  ;;  %v8359_v34 = vld [vmem:[%s14550_s5 + $0xf0] sm:$0xff] }
 0x361   :  { %10430 = vmatprep.subr.bf16.mxu0 %v10429_v56  ;;  %v5059_v13 = vrot.slane %v13107_v24, 2  ;;  %v10441_v42 = vpack.c.bf16 %v8360_v43, %v8359_v34  ;;  %v5074_v43 = vrot.slane %v13143_v58, 2 }
 0x362   :  { %v5037_v38 = vsel %vm693_vm4, %v5035_v18, %v5036_v41  ;;  %v13328_v63 = vsel %vm693_vm4, %v5038_v15, %v5039_v21  ;;  %v13348_v18 = vsel %vm693_vm4, %v5044_v62, %v5045_v32  ;;  %v5050_v41 = vrot.slane %v13093_v46, 2 }
 0x363   :  { %9817 = vmatmul.mubr.msk.f32.gmra.mrb[110].mxu0 %vm2550_vm7, %v13263_v49  ;;  %v5054_v15 = vrot.slane %v13197_v30, 2  ;;  %v5060_v21 = vrot.slane %v13204_v17, 2  ;;  %v8377_v30 = vld [vmem:[%s14550_s5 + $0x100] sm:$0xff]  ;;  %v5062_v62 = vrot.slane %v13118_v36, 2  ;;  %v13390_v32 = vsel %vm693_vm4, %v5056_v20, %v5057_v59  ;;  %v8379_v20 = vld [vmem:[%s14550_s5 + $0x110] sm:$0xff] }
 0x364   :  { %9819 = vmatprep.mubr.msk.f32.mxu0 %vm2550_vm7, %v13270_v51  ;;  %v13370_v50 = vsel %vm693_vm4, %v5050_v41, %v5051_v3  ;;  %v5069_v41 = vrot.slane %v13257_v45, 2  ;;  %v5071_v3 = vrot.slane %v13135_v4, 2  ;;  %v5075_v45 = vrot.slane %v13274_v8, 2 }
 0x365   :  { %v5061_v17 = vsel %vm693_vm4, %v5059_v13, %v5060_v21  ;;  %v5080_v21 = vrot.slane %v13157_v31, 2  ;;  %v5081_v8 = vrot.slane %v13292_v19, 2  ;;  %v8380_v19 = vld [vmem:[%s14550_s5 + $0x118] sm:$0xff] }
 0x366   :  { %v13427_v13 = vsel %vm693_vm4, %v5074_v43, %v5075_v45  ;;  %v10449_v59 = vpack.c.bf16 %v8380_v19, %v8379_v20  ;;  %v8405_v43 = vld [vmem:[%s14550_s5 + $0x160] sm:$0xff]  ;;  %v8406_v45 = vld [vmem:[%s14550_s5 + $0x168] sm:$0xff] }
 0x367   :  { %9820 = vmatmul.mubr.msk.f32.gmra.mrb[112].mxu0 %vm2550_vm7, %v13281_v33 }
 0x368   :  { %9822 = vmatprep.mubr.msk.f32.mxu0 %vm2550_vm7, %v13288_v37 }
 0x36b   :  { %9823 = vmatmul.mubr.msk.f32.gmra.mrb[114].mxu0 %vm2550_vm7, %v13299_v55 }
 0x36c   :  { %9825 = vmatprep.mubr.msk.f32.mxu0 %vm2550_vm7, %v13306_v35 }
 0x36f   :  { %9826 = vmatmul.mubr.msk.f32.gmra.mrb[116].mxu0 %vm2550_vm7, %v13313_v25 }
 0x370   :  { %9844 = vmatprep.mubr.msk.f32.mxu0 %vm2550_vm7, %v5037_v38  ;;  %v5053_v38 = vrot.slane %v13101_v48, 2 }
 0x372   :  { %v13383_v24 = vsel %vm693_vm4, %v5053_v38, %v5054_v15  ;;  %v5077_v15 = vrot.slane %v13147_v40, 2 }
 0x373   :  { %9845 = vmatmul.mubr.msk.f32.vlgmr.msra.gmra.mrb[102].mxu0 %vm2550_vm7, %v13328_v63 }
 0x374   :  { %9847 = vmatprep.mubr.msk.f32.mxu0 %vm2550_vm7, %v13341_v39  ;;  %10432 = vmatpush3.bf16.msra.mxu0 %v10429_v56  ;;  %v13361_v56 = vsel %vm693_vm4, %v5047_v28, %v5048_v29  ;;  %v5066_v28 = vrot.slane %v13245_v16, 2  ;;  %v13399_v29 = vsel %vm693_vm4, %v5062_v62, %v5063_v10  ;;  %v5072_v16 = vrot.slane %v13260_v14, 2  ;;  %v8384_v62 = vld [vmem:[%s14550_s5 + $0x138] sm:$0xff] }
 0x375   :  { %10434 = vmatprep.subr.bf16.mxu0 %v10433_v5  ;;  %v5078_v14 = vrot.slane %v13278_v7, 2  ;;  %v13439_v7 = vsel %vm693_vm4, %v5080_v21, %v5081_v8  ;;  %v13529_v21 = vld [vmem:[#allocation4 + $0x88] sm:$0x3] }
 0x376   :  { %v13406_v60 = vsel %vm693_vm4, %v5065_v44, %v5066_v28  ;;  %v13420_v38 = vsel %vm693_vm4, %v5071_v3, %v5072_v16  ;;  %v8402_v44 = vld [vmem:[%s14550_s5 + $0x148] sm:$0xff]  ;;  %v8404_v3 = vld [vmem:[%s14550_s5 + $0x158] sm:$0xff]  ;;  %v5528_v19 = vrot.slane %v13529_v21, 1 }
 0x377   :  { %9848 = vmatmul.mubr.msk.f32.gmra.mrb[104].mxu0 %vm2550_vm7, %v13348_v18 }
 0x378   :  { %9850 = vmatprep.mubr.msk.f32.mxu0 %vm2550_vm7, %v13361_v56  ;;  %10436 = vmatpush3.bf16.msra.mxu0 %v10433_v5  ;;  %v8378_v5 = vld [vmem:[%s14550_s5 + $0x108] sm:$0xff] }
 0x379   :  { %10438 = vmatprep.subr.bf16.mxu0 %v10437_v6  ;;  %v10445_v52 = vpack.c.bf16 %v8378_v5, %v8377_v30  ;;  %v8381_v30 = vld [vmem:[%s14550_s5 + $0x120] sm:$0xff]  ;;  %v8382_v5 = vld [vmem:[%s14550_s5 + $0x128] sm:$0xff] }
 0x37b   :  { %9851 = vmatmul.mubr.msk.f32.gmra.mrb[106].mxu0 %vm2550_vm7, %v13370_v50 }
 0x37c   :  { %9853 = vmatprep.mubr.msk.f32.mxu0 %vm2550_vm7, %v13383_v24  ;;  %10440 = vmatpush3.bf16.msra.mxu0 %v10437_v6  ;;  %v5068_v6 = vrot.slane %v13128_v1, 2 }
 0x37d   :  { %10442 = vmatprep.subr.bf16.mxu0 %v10441_v42 }
 0x37e   :  { %v13413_v34 = vsel %vm693_vm4, %v5068_v6, %v5069_v41  ;;  %v13481_v6 = vld [vmem:[#allocation4 + $0x80] sm:$0xff]  ;;  %v8403_v41 = vld [vmem:[%s14550_s5 + $0x150] sm:$0xff] }
 0x37f   :  { %9854 = vmatmul.mubr.msk.f32.gmra.mrb[108].mxu0 %vm2550_vm7, %v13390_v32  ;;  %v10465_v16 = vpack.c.bf16 %v8404_v3, %v8403_v41  ;;  %v5527_v20 = vrot.slane %v13481_v6, 1  ;;  %v6629_v41 = vld [vmem:[%s14552_s7 + $0x8] sm:$0xff]  ;;  %v6630_v3 = vld [vmem:[%s14552_s7 + $0x10] sm:$0xff] }
 0x380   :  { %9856 = vmatprep.mubr.msk.f32.mxu0 %vm2550_vm7, %v5061_v17  ;;  %10444 = vmatpush3.bf16.msra.mxu0 %v10441_v42  ;;  %v13434_v42 = vsel %vm693_vm4, %v5077_v15, %v5078_v14  ;;  %v10453_v17 = vpack.c.bf16 %v8382_v5, %v8381_v30  ;;  %v10469_v15 = vpack.c.bf16 %v8406_v45, %v8405_v43  ;;  %v8408_v14 = vld [vmem:[%s14550_s5 + $0x178] sm:$0xff]  ;;  %v8426_v30 = vld [vmem:[%s14550_s5 + $0x188] sm:$0xff] }
 0x381   :  { %10446 = vmatprep.subr.bf16.mxu0 %v10445_v52  ;;  %v6631_v43 = vld [vmem:[%s14552_s7 + $0x18] sm:$0xff] }
 0x383   :  { %9857 = vmatmul.mubr.msk.f32.gmra.mrb[110].mxu0 %vm2550_vm7, %v13399_v29 }
 0x384   :  { %9859 = vmatprep.mubr.msk.f32.mxu0 %vm2550_vm7, %v13406_v60 }
 0x387   :  { %9860 = vmatmul.mubr.msk.f32.gmra.mrb[112].mxu0 %vm2550_vm7, %v13413_v34 }
 0x388   :  { %9862 = vmatprep.mubr.msk.f32.mxu0 %vm2550_vm7, %v13420_v38 }
 0x38b   :  { %9863 = vmatmul.mubr.msk.f32.gmra.mrb[114].mxu0 %vm2550_vm7, %v13427_v13 }
 0x38c   :  { %9865 = vmatprep.mubr.msk.f32.mxu0 %vm2550_vm7, %v13434_v42 }
 0x38f   :  { %9866 = vmatmul.mubr.msk.f32.gmra.mrb[116].mxu0 %vm2550_vm7, %v13439_v7 }
 0x390   :  { %9884 = vmatprep.mubr.msk.f32.mxu0 %vm2550_vm7, %v13055_v22  ;;  %v8383_v22 = vld [vmem:[%s14550_s5 + $0x130] sm:$0xff] }
 0x391   :  { %v10457_v10 = vpack.c.bf16 %v8384_v62, %v8383_v22  ;;  %v13558_v22 = vld [vmem:[#allocation4 + $0x128] sm:$0x3] }
 0x393   :  { %9885 = vmatmul.mubr.msk.f32.vlgmr.msra.gmra.mrb[102].mxu0 %vm2550_vm7, %v13064_v53 }
 0x394   :  { %9887 = vmatprep.mubr.msk.f32.mxu0 %vm2550_vm7, %v13075_v47  ;;  %10448 = vmatpush3.bf16.msra.mxu0 %v10445_v52  ;;  %v8401_v52 = vld [vmem:[%s14550_s5 + $0x140] sm:$0xff] }
 0x395   :  { %10450 = vmatprep.subr.bf16.mxu0 %v10449_v59  ;;  %v10461_v28 = vpack.c.bf16 %v8402_v44, %v8401_v52  ;;  %v8427_v52 = vld [vmem:[%s14550_s5 + $0x190] sm:$0xff]  ;;  %v8428_v44 = vld [vmem:[%s14550_s5 + $0x198] sm:$0xff] }
 0x396   :  { %v10481_v45 = vpack.c.bf16 %v8428_v44, %v8427_v52  ;;  %v8449_v52 = vld [vmem:[%s14550_s5 + $0x1c0] sm:$0xff] }
 0x397   :  { %9888 = vmatmul.mubr.msk.f32.gmra.mrb[104].mxu0 %vm2550_vm7, %v13083_v23 }
 0x398   :  { %9890 = vmatprep.mubr.msk.f32.mxu0 %vm2550_vm7, %v13093_v46  ;;  %10452 = vmatpush3.bf16.msra.mxu0 %v10449_v59  ;;  %v8425_v59 = vld [vmem:[%s14550_s5 + $0x180] sm:$0xff] }
 0x399   :  { %10454 = vmatprep.subr.bf16.mxu0 %v10453_v17  ;;  %v10477_v5 = vpack.c.bf16 %v8426_v30, %v8425_v59  ;;  %v8432_v30 = vld [vmem:[%s14550_s5 + $0x1b8] sm:$0xff] }
 0x39b   :  { %9891 = vmatmul.mubr.msk.f32.gmra.mrb[106].mxu0 %vm2550_vm7, %v13101_v48 }
 0x39c   :  { %9893 = vmatprep.mubr.msk.f32.mxu0 %vm2550_vm7, %v13110_v61  ;;  %10456 = vmatpush3.bf16.msra.mxu0 %v10453_v17  ;;  %v13546_v17 = vsel %vm414_vm3, %v5527_v20, %v5528_v19  ;;  %v8431_v19 = vld [vmem:[%s14550_s5 + $0x1b0] sm:$0xff] }
 0x39d   :  { %10458 = vmatprep.subr.bf16.mxu0 %v10457_v10 }
 0x39f   :  { %9894 = vmatmul.mubr.msk.f32.gmra.mrb[108].mxu0 %vm2550_vm7, %v13481_v6 }
 0x3a0   :  { %9896 = vmatprep.mubr.msk.f32.mxu0 %vm2550_vm7, %v13118_v36  ;;  %10460 = vmatpush3.bf16.msra.mxu0 %v10457_v10  ;;  %v13499_v36 = vld [vmem:[#allocation4 + $0x120] sm:$0xff] }
 0x3a1   :  { %10462 = vmatprep.subr.bf16.mxu0 %v10461_v28  ;;  %v5530_v62 = vrot.slane %v13499_v36, 1 }
 0x3a3   :  { %9897 = vmatmul.mubr.msk.f32.gmra.mrb[110].mxu0 %vm2550_vm7, %v13123_v12 }
 0x3a4   :  { %9899 = vmatprep.mubr.msk.f32.mxu0 %vm2550_vm7, %v13128_v1 }
 0x3a7   :  { %9900 = vmatmul.mubr.msk.f32.gmra.mrb[112].mxu0 %vm2550_vm7, %v13135_v4 }
 0x3a8   :  { %9902 = vmatprep.mubr.msk.f32.mxu0 %vm2550_vm7, %v13143_v58 }
 0x3ab   :  { %9903 = vmatmul.mubr.msk.f32.gmra.mrb[114].mxu0 %vm2550_vm7, %v13147_v40 }
 0x3ac   :  { %9905 = vmatprep.mubr.msk.f32.mxu0 %vm2550_vm7, %v13157_v31 }
 0x3af   :  { %9906 = vmatmul.mubr.msk.f32.gmra.mrb[116].mxu0 %vm2550_vm7, %v13499_v36 }
 0x3b0   :  { %9924 = vmatprep.mubr.msk.f32.mxu0 %vm2550_vm7, %v13176_v9  ;;  %v8407_v9 = vld [vmem:[%s14550_s5 + $0x170] sm:$0xff] }
 0x3b1   :  { %v10473_v8 = vpack.c.bf16 %v8408_v14, %v8407_v9  ;;  %v10529_v9 = vpack.c.bf16 %v6631_v43, %v6630_v3  ;;  %v8430_v14 = vld [vmem:[%s14550_s5 + $0x1a8] sm:$0xff] }
 0x3b2   :  { %v8450_v3 = vld [vmem:[%s14550_s5 + $0x1c8] sm:$0xff] }
 0x3b3   :  { %9925 = vmatmul.mubr.msk.f32.vlgmr.msra.gmra.mrb[102].mxu0 %vm2550_vm7, %v13189_v57  ;;  %v6637_v43 = vld [vmem:[%s14552_s7 + $0x48] sm:$0xff] }
 0x3b4   :  { %9927 = vmatprep.mubr.msk.f32.mxu0 %vm2550_vm7, %v13200_v54  ;;  %10464 = vmatpush3.bf16.msra.mxu0 %v10461_v28  ;;  %v6628_v28 = vld [vmem:[%s14552_s7] sm:$0xff] }
 0x3b5   :  { %10466 = vmatprep.subr.bf16.mxu0 %v10465_v16 }
 0x3b7   :  { %9928 = vmatmul.mubr.msk.f32.gmra.mrb[104].mxu0 %vm2550_vm7, %v13215_v26 }
 0x3b8   :  { %9930 = vmatprep.mubr.msk.f32.mxu0 %vm2550_vm7, %v13226_v27  ;;  %10468 = vmatpush3.bf16.msra.mxu0 %v10465_v16  ;;  %v10525_v16 = vpack.c.bf16 %v6629_v41, %v6628_v28  ;;  %v5739_v28 = vrot.slane %v13481_v6, 2  ;;  %v5740_v41 = vrot.slane %v13529_v21, 2  ;;  %v10493_v21 = vpack.c.bf16 %v8450_v3, %v8449_v52  ;;  %v8454_v52 = vld [vmem:[%s14550_s5 + $0x1e8] sm:$0xff] }
 0x3b9   :  { %10470 = vmatprep.subr.bf16.mxu0 %v10469_v15 }
 0x3ba   :  { %10526 = vmatprep.subr.bf16.mxu1 %v10525_v16 }
 0x3bb   :  { %9931 = vmatmul.mubr.msk.f32.gmra.mrb[106].mxu0 %vm2550_vm7, %v13239_v0  ;;  %10528 = vmatpush3.bf16.msra.mxu1 %v10525_v16  ;;  %v6636_v16 = vld [vmem:[%s14552_s7 + $0x40] sm:$0xff] }
 0x3bc   :  { %9933 = vmatprep.mubr.msk.f32.mxu0 %vm2550_vm7, %v13250_v11  ;;  %10472 = vmatpush3.bf16.msra.mxu0 %v10469_v15  ;;  %v8429_v15 = vld [vmem:[%s14550_s5 + $0x1a0] sm:$0xff] }
 0x3bd   :  { %10474 = vmatprep.subr.bf16.mxu0 %v10473_v8  ;;  %v10485_v20 = vpack.c.bf16 %v8430_v14, %v8429_v15  ;;  %10530 = vmatprep.subr.bf16.mxu1 %v10529_v9  ;;  %v6638_v15 = vld [vmem:[%s14552_s7 + $0x50] sm:$0xff]  ;;  %v13650_v14 = vsel %vm693_vm4, %v5739_v28, %v5740_v41  ;;  %v8456_v28 = vld [vmem:[%s14550_s5 + $0x1f8] sm:$0xff]  ;;  %v8474_v41 = vld [vmem:[%s14550_s5 + $0x208] sm:$0xff] }
 0x3bf   :  { %9934 = vmatmul.mubr.msk.f32.gmra.mrb[108].mxu0 %vm2550_vm7, %v13546_v17  ;;  %10532 = vmatpush3.bf16.msra.mxu1 %v10529_v9  ;;  %v6639_v9 = vld [vmem:[%s14552_s7 + $0x58] sm:$0xff] }
 0x3c0   :  { %9936 = vmatprep.mubr.msk.f32.mxu0 %vm2550_vm7, %v13263_v49  ;;  %10476 = vmatpush3.bf16.msra.mxu0 %v10473_v8  ;;  %v5531_v49 = vrot.slane %v13558_v22, 1  ;;  %v6633_v8 = vld [vmem:[%s14552_s7 + $0x28] sm:$0xff] }
 0x3c1   :  { %10478 = vmatprep.subr.bf16.mxu0 %v10477_v5 }
 0x3c2   :  { %v13569_v10 = vsel %vm414_vm3, %v5530_v62, %v5531_v49  ;;  %v6634_v62 = vld [vmem:[%s14552_s7 + $0x30] sm:$0xff]  ;;  %v10489_v49 = vpack.c.bf16 %v8432_v30, %v8431_v19  ;;  %v5742_v19 = vrot.slane %v13499_v36, 2 }
 0x3c3   :  { %9937 = vmatmul.mubr.msk.f32.gmra.mrb[110].mxu0 %vm2550_vm7, %v13270_v51 }
 0x3c4   :  { %9939 = vmatprep.mubr.msk.f32.mxu0 %vm2550_vm7, %v13281_v33 }
 0x3c7   :  { %9940 = vmatmul.mubr.msk.f32.gmra.mrb[112].mxu0 %vm2550_vm7, %v13288_v37 }
 0x3c8   :  { %9942 = vmatprep.mubr.msk.f32.mxu0 %vm2550_vm7, %v13299_v55 }
 0x3cb   :  { %9943 = vmatmul.mubr.msk.f32.gmra.mrb[114].mxu0 %vm2550_vm7, %v13306_v35 }
 0x3cc   :  { %9945 = vmatprep.mubr.msk.f32.mxu0 %vm2550_vm7, %v13313_v25 }
 0x3cf   :  { %9946 = vmatmul.mubr.msk.f32.gmra.mrb[116].mxu0 %vm2550_vm7, %v13569_v10 }
 0x3d0   :  { %9964 = vmatprep.mubr.msk.f32.mxu0 %vm2550_vm7, %v13328_v63  ;;  %v6632_v63 = vld [vmem:[%s14552_s7 + $0x20] sm:$0xff] }
 0x3d1   :  { %v10533_v59 = vpack.c.bf16 %v6633_v8, %v6632_v63  ;;  %v10545_v63 = vpack.c.bf16 %v6639_v9, %v6638_v15  ;;  %v6640_v8 = vld [vmem:[%s14552_s7 + $0x60] sm:$0xff] }
 0x3d3   :  { %9965 = vmatmul.mubr.msk.f32.vlgmr.msra.gmra.mrb[102].mxu0 %vm2550_vm7, %v13341_v39  ;;  %10534 = vmatprep.subr.bf16.mxu1 %v10533_v59 }
 0x3d4   :  { %9967 = vmatprep.mubr.msk.f32.mxu0 %vm2550_vm7, %v13348_v18  ;;  %10480 = vmatpush3.bf16.msra.mxu0 %v10477_v5  ;;  %v6635_v5 = vld [vmem:[%s14552_s7 + $0x38] sm:$0xff] }
 0x3d5   :  { %10482 = vmatprep.subr.bf16.mxu0 %v10481_v45  ;;  %v10537_v44 = vpack.c.bf16 %v6635_v5, %v6634_v62  ;;  %10536 = vmatpush3.bf16.msra.mxu1 %v10533_v59  ;;  %v5743_v59 = vrot.slane %v13558_v22, 2  ;;  %v8451_v62 = vld [vmem:[%s14550_s5 + $0x1d0] sm:$0xff]  ;;  %v8452_v5 = vld [vmem:[%s14550_s5 + $0x1d8] sm:$0xff] }
 0x3d6   :  { %v10497_v22 = vpack.c.bf16 %v8452_v5, %v8451_v62 }
 0x3d7   :  { %9968 = vmatmul.mubr.msk.f32.gmra.mrb[104].mxu0 %vm2550_vm7, %v13361_v56  ;;  %10538 = vmatprep.subr.bf16.mxu1 %v10537_v44  ;;  %v13677_v30 = vsel %vm693_vm4, %v5742_v19, %v5743_v59 }
 0x3d8   :  { %9970 = vmatprep.mubr.msk.f32.mxu0 %vm2550_vm7, %v13370_v50  ;;  %10484 = vmatpush3.bf16.msra.mxu0 %v10481_v45  ;;  %v10541_v45 = vpack.c.bf16 %v6637_v43, %v6636_v16 }
 0x3d9   :  { %10486 = vmatprep.subr.bf16.mxu0 %v10485_v20  ;;  %10540 = vmatpush3.bf16.msra.mxu1 %v10537_v44 }
 0x3da   :  { %10542 = vmatprep.subr.bf16.mxu1 %v10541_v45 }
 0x3db   :  { %9971 = vmatmul.mubr.msk.f32.gmra.mrb[106].mxu0 %vm2550_vm7, %v13383_v24 }
 0x3dc   :  { %9973 = vmatprep.mubr.msk.f32.mxu0 %vm2550_vm7, %v13390_v32  ;;  %10488 = vmatpush3.bf16.msra.mxu0 %v10485_v20  ;;  %v6641_v20 = vld [vmem:[%s14552_s7 + $0x68] sm:$0xff] }
 0x3dd   :  { %10490 = vmatprep.subr.bf16.mxu0 %v10489_v49  ;;  %10544 = vmatpush3.bf16.msra.mxu1 %v10541_v45 }
 0x3de   :  { %10546 = vmatprep.subr.bf16.mxu1 %v10545_v63 }
 0x3df   :  { %9974 = vmatmul.mubr.msk.f32.gmra.mrb[108].mxu0 %vm2550_vm7, %v13650_v14 }
 0x3e0   :  { %9976 = vmatprep.mubr.msk.f32.mxu0 %vm2550_vm7, %v13399_v29  ;;  %10492 = vmatpush3.bf16.msra.mxu0 %v10489_v49  ;;  %v10549_v29 = vpack.c.bf16 %v6641_v20, %v6640_v8  ;;  %v8453_v49 = vld [vmem:[%s14550_s5 + $0x1e0] sm:$0xff] }
 0x3e1   :  { %10494 = vmatprep.subr.bf16.mxu0 %v10493_v21  ;;  %10548 = vmatpush3.bf16.msra.mxu1 %v10545_v63  ;;  %v10501_v44 = vpack.c.bf16 %v8454_v52, %v8453_v49 }
 0x3e2   :  { %10550 = vmatprep.subr.bf16.mxu1 %v10549_v29 }
 0x3e3   :  { %9977 = vmatmul.mubr.msk.f32.gmra.mrb[110].mxu0 %vm2550_vm7, %v13406_v60 }
 0x3e4   :  { %9979 = vmatprep.mubr.msk.f32.mxu0 %vm2550_vm7, %v13413_v34 }
 0x3e5   :  { %10552 = vmatpush3.bf16.msra.mxu1 %v10549_v29 }
 0x3e7   :  { %9980 = vmatmul.mubr.msk.f32.gmra.mrb[112].mxu0 %vm2550_vm7, %v13420_v38 }
 0x3e8   :  { %9982 = vmatprep.mubr.msk.f32.mxu0 %vm2550_vm7, %v13427_v13 }
 0x3eb   :  { %9983 = vmatmul.mubr.msk.f32.gmra.mrb[114].mxu0 %vm2550_vm7, %v13434_v42 }
 0x3ec   :  { %9985 = vmatprep.mubr.msk.f32.mxu0 %vm2550_vm7, %v13439_v7 }
 0x3ef   :  { %9986 = vmatmul.mubr.msk.f32.gmra.mrb[116].mxu0 %vm2550_vm7, %v13677_v30 }
 0x3f0   :  { %10004 = vmatprep.mubr.msk.f32.mxu0 %vm2550_vm7, %v13064_v53  ;;  %v8455_v53 = vld [vmem:[%s14550_s5 + $0x1f0] sm:$0xff] }
 0x3f3   :  { %10005 = vmatmul.mubr.msk.f32.vlgmr.msra.gmra.mrb[102].mxu0 %vm2550_vm7, %v13075_v47  ;;  %v10505_v47 = vpack.c.bf16 %v8456_v28, %v8455_v53 }
 0x3f4   :  { %10007 = vmatprep.mubr.msk.f32.mxu0 %vm2550_vm7, %v13083_v23  ;;  %10496 = vmatpush3.bf16.msra.mxu0 %v10493_v21  ;;  %v8473_v23 = vld [vmem:[%s14550_s5 + $0x200] sm:$0xff] }
 0x3f5   :  { %10498 = vmatprep.subr.bf16.mxu0 %v10497_v22 }
 0x3f7   :  { %10008 = vmatmul.mubr.msk.f32.gmra.mrb[104].mxu0 %vm2550_vm7, %v13093_v46  ;;  %v13719_v46 = vld [vmem:[#allocation4 + $0x90] sm:$0xff] }
 0x3f8   :  { %10010 = vmatprep.mubr.msk.f32.mxu0 %vm2550_vm7, %v13101_v48  ;;  %10500 = vmatpush3.bf16.msra.mxu0 %v10497_v22  ;;  %v10509_v48 = vpack.c.bf16 %v8474_v41, %v8473_v23 }
 0x3f9   :  { %10502 = vmatprep.subr.bf16.mxu0 %v10501_v44 }
 0x3fb   :  { %10011 = vmatmul.mubr.msk.f32.gmra.mrb[106].mxu0 %vm2550_vm7, %v13110_v61  ;;  %v13737_v61 = vld [vmem:[#allocation4 + $0x130] sm:$0xff] }
 0x3fc   :  { %10013 = vmatprep.mubr.msk.f32.mxu0 %vm2550_vm7, %v13481_v6  ;;  %10504 = vmatpush3.bf16.msra.mxu0 %v10501_v44 }
 0x3fd   :  { %10506 = vmatprep.subr.bf16.mxu0 %v10505_v47 }
 0x3ff   :  { %10014 = vmatmul.mubr.msk.f32.gmra.mrb[108].mxu0 %vm2550_vm7, %v13719_v46 }
 0x400   :  { %10016 = vmatprep.mubr.msk.f32.mxu0 %vm2550_vm7, %v13123_v12  ;;  %10508 = vmatpush3.bf16.msra.mxu0 %v10505_v47  ;;  %v8475_v12 = vld [vmem:[%s14550_s5 + $0x210] sm:$0xff] }
 0x401   :  { %10510 = vmatprep.subr.bf16.mxu0 %v10509_v48 }
 0x403   :  { %10017 = vmatmul.mubr.msk.f32.gmra.mrb[110].mxu0 %vm2550_vm7, %v13128_v1  ;;  %v8476_v1 = vld [vmem:[%s14550_s5 + $0x218] sm:$0xff] }
 0x404   :  { %10019 = vmatprep.mubr.msk.f32.mxu0 %vm2550_vm7, %v13135_v4  ;;  %v10513_v4 = vpack.c.bf16 %v8476_v1, %v8475_v12 }
 0x407   :  { %10020 = vmatmul.mubr.msk.f32.gmra.mrb[112].mxu0 %vm2550_vm7, %v13143_v58  ;;  %v8477_v58 = vld [vmem:[%s14550_s5 + $0x220] sm:$0xff] }
 0x408   :  { %10022 = vmatprep.mubr.msk.f32.mxu0 %vm2550_vm7, %v13147_v40  ;;  %v8478_v40 = vld [vmem:[%s14550_s5 + $0x228] sm:$0xff] }
 0x409   :  { %v10517_v6 = vpack.c.bf16 %v8478_v40, %v8477_v58 }
 0x40b   :  { %10023 = vmatmul.mubr.msk.f32.gmra.mrb[114].mxu0 %vm2550_vm7, %v13157_v31  ;;  %v4492_v31 = vld [vmem:[#allocation4 + $0x98] sm:$0x3] }
 0x40c   :  { %10025 = vmatprep.mubr.msk.f32.mxu0 %vm2550_vm7, %v13499_v36  ;;  %v8480_v36 = vld [vmem:[%s14550_s5 + $0x238] sm:$0xff] }
 0x40f   :  { %10026 = vmatmul.mubr.msk.f32.gmra.mrb[116].mxu0 %vm2550_vm7, %v13737_v61 }
 0x410   :  { %10044 = vmatprep.mubr.msk.f32.mxu0 %vm2550_vm7, %v13189_v57  ;;  %v8479_v57 = vld [vmem:[%s14550_s5 + $0x230] sm:$0xff] }
 0x411   :  { %v10521_v3 = vpack.c.bf16 %v8480_v36, %v8479_v57 }
 0x413   :  { %10045 = vmatmul.mubr.msk.f32.vlgmr.msra.gmra.mrb[102].mxu0 %vm2550_vm7, %v13200_v54  ;;  %v6161_v54 = vrot.slane %v13719_v46, 1 }
 0x414   :  { %10047 = vmatprep.mubr.msk.f32.mxu0 %vm2550_vm7, %v13215_v26  ;;  %10512 = vmatpush3.bf16.msra.mxu0 %v10509_v48  ;;  %v6162_v26 = vrot.slane %v4492_v31, 1 }
 0x415   :  { %10514 = vmatprep.subr.bf16.mxu0 %v10513_v4 }
 0x416   :  { %v6163_v16 = vsel %vm414_vm3, %v6161_v54, %v6162_v26 }
 0x417   :  { %10048 = vmatmul.mubr.msk.f32.gmra.mrb[104].mxu0 %vm2550_vm7, %v13226_v27  ;;  %v4512_v27 = vld [vmem:[#allocation4 + $0x138] sm:$0x3] }
 0x418   :  { %10050 = vmatprep.mubr.msk.f32.mxu0 %vm2550_vm7, %v13239_v0  ;;  %10516 = vmatpush3.bf16.msra.mxu0 %v10513_v4  ;;  %v6164_v0 = vrot.slane %v13737_v61, 1 }
 0x419   :  { %10518 = vmatprep.subr.bf16.mxu0 %v10517_v6 }
 0x41b   :  { %10051 = vmatmul.mubr.msk.f32.gmra.mrb[106].mxu0 %vm2550_vm7, %v13250_v11  ;;  %v6165_v11 = vrot.slane %v4512_v27, 1 }
 0x41c   :  { %10053 = vmatprep.mubr.msk.f32.mxu0 %vm2550_vm7, %v13546_v17  ;;  %10520 = vmatpush3.bf16.msra.mxu0 %v10517_v6 }
 0x41d   :  { %10522 = vmatprep.subr.bf16.mxu0 %v10521_v3 }
 0x41f   :  { %10054 = vmatmul.mubr.msk.f32.gmra.mrb[108].mxu0 %vm2550_vm7, %v6163_v16  ;;  %v10918_v16 = vmov 1  }
 0x420   :  { %10056 = vmatprep.mubr.msk.f32.mxu0 %vm2550_vm7, %v13270_v51  ;;  %10524 = vmatpush3.bf16.msra.mxu0 %v10521_v3  ;;  %v6166_v51 = vsel %vm414_vm3, %v6164_v0, %v6165_v11  ;;  %v13921_v0 = vld [vmem:[%s14553_s8] ss:$0 sm:$0xff] }
 0x421   :  { %10805 = vset.pattern.permute.xlu1 %v10918_v16 }
 0x423   :  { %10057 = vmatmul.mubr.msk.f32.gmra.mrb[110].mxu0 %vm2550_vm7, %v13281_v33  ;;  %v6373_v33 = vrot.slane %v13719_v46, 2 }
 0x424   :  { %10059 = vmatprep.mubr.msk.f32.mxu0 %vm2550_vm7, %v13288_v37  ;;  %v6374_v37 = vrot.slane %v4492_v31, 2 }
 0x427   :  { %10060 = vmatmul.mubr.msk.f32.gmra.mrb[112].mxu0 %vm2550_vm7, %v13299_v55  ;;  %v6375_v55 = vsel %vm693_vm4, %v6373_v33, %v6374_v37 }
 0x428   :  { %10062 = vmatprep.mubr.msk.f32.mxu0 %vm2550_vm7, %v13306_v35  ;;  %v6376_v35 = vrot.slane %v13737_v61, 2 }
 0x42b   :  { %10063 = vmatmul.mubr.msk.f32.gmra.mrb[114].mxu0 %vm2550_vm7, %v13313_v25  ;;  %v6377_v25 = vrot.slane %v4512_v27, 2  ;;  %v10919_v27 = vmov 0  }
 0x42c   :  { %10065 = vmatprep.mubr.msk.f32.mxu0 %vm2550_vm7, %v13569_v10  ;;  %10804 = vset.pattern.permute.xlu0 %v10919_v27 }
 0x42f   :  { %10066 = vmatmul.mubr.msk.f32.gmra.mrb[116].mxu0 %vm2550_vm7, %v6166_v51 }
 0x430   :  { %10084 = vmatprep.mubr.msk.f32.mxu0 %vm2550_vm7, %v13341_v39  ;;  %v6378_v39 = vsel %vm693_vm4, %v6376_v35, %v6377_v25 }
 0x433   :  { %10085 = vmatmul.mubr.msk.f32.vlgmr.msra.gmra.mrb[102].mxu0 %vm2550_vm7, %v13348_v18  ;;  %v6642_v18 = vld [vmem:[%s14552_s7 + $0x70] sm:$0xff] }
 0x434   :  { %10087 = vmatprep.mubr.msk.f32.mxu0 %vm2550_vm7, %v13361_v56  ;;  %v6643_v56 = vld [vmem:[%s14552_s7 + $0x78] sm:$0xff] }
 0x437   :  { %10088 = vmatmul.mubr.msk.f32.gmra.mrb[104].mxu0 %vm2550_vm7, %v13370_v50  ;;  %v10553_v50 = vpack.c.bf16 %v6643_v56, %v6642_v18  ;;  %v10920_v56 = vmov 2  }
 0x438   :  { %10090 = vmatprep.mubr.msk.f32.mxu0 %vm2550_vm7, %v13383_v24  ;;  %v8288_v24 = vld [vmem:[%s14551_s6] ss:$0 sm:$0xff] }
 0x439   :  { %10554 = vmatprep.subr.bf16.mxu1 %v10553_v50 }
 0x43a   :  { %10556 = vmatpush3.bf16.msra.mxu1 %v10553_v50 }
 0x43b   :  { %10091 = vmatmul.mubr.msk.f32.gmra.mrb[106].mxu0 %vm2550_vm7, %v13390_v32 }
 0x43c   :  { %10093 = vmatprep.mubr.msk.f32.mxu0 %vm2550_vm7, %v13650_v14 }
 0x43f   :  { %10094 = vmatmul.mubr.msk.f32.gmra.mrb[108].mxu0 %vm2550_vm7, %v6375_v55 }
 0x440   :  { %10096 = vmatprep.mubr.msk.f32.mxu0 %vm2550_vm7, %v13406_v60 }
 0x443   :  { %10097 = vmatmul.mubr.msk.f32.gmra.mrb[110].mxu0 %vm2550_vm7, %v13413_v34 }
 0x444   :  { %10099 = vmatprep.mubr.msk.f32.mxu0 %vm2550_vm7, %v13420_v38 }
 0x447   :  { %10100 = vmatmul.mubr.msk.f32.gmra.mrb[112].mxu0 %vm2550_vm7, %v13427_v13 }
 0x448   :  { %10102 = vmatprep.mubr.msk.f32.mxu0 %vm2550_vm7, %v13434_v42 }
 0x44b   :  { %10103 = vmatmul.mubr.msk.f32.gmra.mrb[114].mxu0 %vm2550_vm7, %v13439_v7 }
 0x44c   :  { %10105 = vmatprep.mubr.msk.f32.mxu0 %vm2550_vm7, %v13677_v30 }
 0x44f   :  { %10106 = vmatmul.mubr.msk.f32.gmra.mrb[116].mxu0 %vm2550_vm7, %v6378_v39 }
 0x506   :  { %v10086_v32 = vpop.f32.mrb[102].mxu0 }
 0x507   :  { %v13836_v60 = vadd.f32 %v10086_v32, %v8288_v24  ;;  %v6458_v34 = vpop.f32.mrb[103].mxu0 }
 0x508   :  { %v13838_v38 = vadd.f32 %v8288_v24, %v6458_v34  ;;  %v10921_v34 = vmov 3  }
 0x509   :  { %v6602_v7 = vmax.f32 %v13836_v60, 0.0 }
 0x50a   :  { %v6601_v13 = vmax.f32 %v13838_v38, 0.0  ;;  %v10089_v42 = vpop.f32.mrb[104].mxu0  ;;  %v7362_v38 = vld [vmem:[%s14556_s11 + $0x48] sm:$0xff] }
 0x50b   :  { %v13842_v17 = vadd.f32 %v10089_v42, %v8288_v24  ;;  %v6468_v10 = vpop.f32.mrb[105].mxu0 }
 0x50c   :  { %v13844_v43 = vadd.f32 %v8288_v24, %v6468_v10  ;;  %10140 = vmatprep.mubr.f32.mxu1 %v6601_v13 }
 0x50d   :  { %10141 = vmatmul.mubr.f32.vlgmr.msra.gmra.mrb[186].mxu1 %v6602_v7  ;;  %v6604_v15 = vmax.f32 %v13842_v17, 0.0 }
 0x50e   :  { %v6603_v21 = vmax.f32 %v13844_v43, 0.0  ;;  %v10092_v45 = vpop.f32.mrb[106].mxu0 }
 0x50f   :  { %v13852_v9 = vadd.f32 %v10092_v45, %v8288_v24  ;;  %v6478_v14 = vpop.f32.mrb[107].mxu0 }
 0x510   :  { %v13854_v63 = vadd.f32 %v8288_v24, %v6478_v14  ;;  %10143 = vmatprep.mubr.f32.mxu1 %v6603_v21 }
 0x511   :  { %10144 = vmatmul.mubr.f32.gmra.mrb[188].mxu1 %v6604_v15  ;;  %v6606_v29 = vmax.f32 %v13852_v9, 0.0  ;;  %v14338_v9 = vld [vmem:[%s14557_s12] ss:$0 sm:$0xff] }
 0x512   :  { %v6605_v8 = vmax.f32 %v13854_v63, 0.0  ;;  %v10095_v20 = vpop.f32.mrb[108].mxu0 }
 0x513   :  { %v13862_v19 = vadd.f32 %v10095_v20, %v8288_v24  ;;  %v6488_v59 = vpop.f32.mrb[109].mxu0 }
 0x514   :  { %v13864_v30 = vadd.f32 %v8288_v24, %v6488_v59  ;;  %10146 = vmatprep.mubr.f32.mxu1 %v6605_v8 }
 0x515   :  { %10147 = vmatmul.mubr.f32.gmra.mrb[190].mxu1 %v6606_v29  ;;  %v6608_v22 = vmax.f32 %v13862_v19, 0.0 }
 0x516   :  { %v6607_v62 = vmax.f32 %v13864_v30, 0.0  ;;  %v10098_v5 = vpop.f32.mrb[110].mxu0 }
 0x517   :  { %v13872_v49 = vadd.f32 %v10098_v5, %v8288_v24  ;;  %v6498_v52 = vpop.f32.mrb[111].mxu0 }
 0x518   :  { %v13874_v44 = vadd.f32 %v8288_v24, %v6498_v52  ;;  %10149 = vmatprep.mubr.f32.mxu1 %v6607_v62 }
 0x519   :  { %10150 = vmatmul.mubr.f32.gmra.mrb[192].mxu1 %v6608_v22  ;;  %v6610_v47 = vmax.f32 %v13872_v49, 0.0 }
 0x51a   :  { %v6609_v53 = vmax.f32 %v13874_v44, 0.0  ;;  %v10101_v28 = vpop.f32.mrb[112].mxu0 }
 0x51b   :  { %v13882_v23 = vadd.f32 %v10101_v28, %v8288_v24  ;;  %v6508_v41 = vpop.f32.mrb[113].mxu0 }
 0x51c   :  { %v13884_v46 = vadd.f32 %v8288_v24, %v6508_v41  ;;  %10152 = vmatprep.mubr.f32.mxu1 %v6609_v53 }
 0x51d   :  { %10153 = vmatmul.mubr.f32.gmra.mrb[194].mxu1 %v6610_v47  ;;  %v6612_v12 = vmax.f32 %v13882_v23, 0.0 }
 0x51e   :  { %v6611_v48 = vmax.f32 %v13884_v46, 0.0  ;;  %v10104_v61 = vpop.f32.mrb[114].mxu0 }
 0x51f   :  { %v13892_v1 = vadd.f32 %v10104_v61, %v8288_v24  ;;  %v6518_v4 = vpop.f32.mrb[115].mxu0 }
 0x520   :  { %v13894_v58 = vadd.f32 %v8288_v24, %v6518_v4  ;;  %10155 = vmatprep.mubr.f32.mxu1 %v6611_v48 }
 0x521   :  { %10156 = vmatmul.mubr.f32.gmra.mrb[196].mxu1 %v6612_v12  ;;  %v14568_v6 = vmax.f32 %v13892_v1, 0.0 }
 0x522   :  { %v14569_v40 = vmax.f32 %v13894_v58, 0.0  ;;  %v10107_v31 = vpop.f32.mrb[116].mxu0  ;;  %v14578_v60 = vmax.f32 %v13894_v58, 0.0 }
 0x523   :  { %v13902_v57 = vadd.f32 %v10107_v31, %v8288_v24  ;;  %v6528_v36 = vpop.f32.mrb[117].mxu0 }
 0x524   :  { %v13904_v54 = vadd.f32 %v8288_v24, %v6528_v36  ;;  %10158 = vmatprep.mubr.f32.mxu1 %v14569_v40 }
 0x525   :  { %10159 = vmatmul.mubr.f32.gmra.mrb[198].mxu1 %v14568_v6  ;;  %v14566_v3 = vmax.f32 %v13902_v57, 0.0  ;;  %v14581_v43 = vmax.f32 %v13902_v57, 0.0 }
 0x526   :  { %v14567_v26 = vmax.f32 %v13904_v54, 0.0  ;;  %v14580_v17 = vmax.f32 %v13904_v54, 0.0 }
 0x528   :  { %10161 = vmatprep.mubr.f32.mxu1 %v14567_v26 }
 0x529   :  { %10162 = vmatmul.mubr.f32.gmra.mrb[200].mxu1 %v14566_v3 }
 0x52a   :  { %10196 = vmatprep.mubr.msk.f32.mxu1 %vm10923_vm9, %v10917_v2 }
 0x5e0   :  { %v10142_v11 = vpop.f32.mrb[186].mxu1 }
 0x5e1   :  { %v6723_v51 = vadd.f32 %v10142_v11, %v13921_v0  ;;  %v6717_v33 = vpop.f32.mrb[187].mxu1 }
 0x5e2   :  { %v6718_v55 = vadd.f32 %v13921_v0, %v6717_v33 }
 0x5e3   :  { %v6797_v37 = vmax.f32 %v6723_v51, 0.0 }
 0x5e4   :  { %v10145_v35 = vpop.f32.mrb[188].mxu1  ;;  %v6796_v39 = vmax.f32 %v6718_v55, 0.0 }
 0x5e5   :  { %6946 = vperm.xlu1 %10805, %v6797_v37   ;;  %6835 = vperm.xlu0 %10804, %v6797_v37   ;;  %v6727_v25 = vpop.f32.mrb[189].mxu1  ;;  %v6733_v45 = vadd.f32 %v10145_v35, %v13921_v0  ;;  %v10922_v35 = vmov 0.0|0.0  }
 0x5e6   :  { %v6728_v41 = vadd.f32 %v13921_v0, %v6727_v25  ;;  %10557 = vmatprep.subr.bf16.mxu1 %v10922_v35 }
 0x5e7   :  { %v6799_v52 = vmax.f32 %v6733_v45, 0.0 }
 0x5e8   :  { %v10148_v18 = vpop.f32.mrb[190].mxu1  ;;  %v6798_v11 = vmax.f32 %v6728_v41, 0.0 }
 0x5e9   :  { %10806 = vset.pattern.permute.xlu1 %v10920_v56  ;;  %6830 = vperm.xlu0 %10804, %v6796_v39   ;;  %v6737_v50 = vpop.f32.mrb[191].mxu1 }
 0x5ea   :  { %7059 = vperm.xlu1 %10806, %v6797_v37   ;;  %v6738_v25 = vadd.f32 %v13921_v0, %v6737_v50  ;;  %v6743_v50 = vadd.f32 %v10148_v18, %v13921_v0 }
 0x5ec   :  { %v10151_v24 = vpop.f32.mrb[192].mxu1 }
 0x5ed   :  { %10809 = vset.pattern.permute.xlu0 %v10920_v56  ;;  %v6747_v32 = vpop.f32.mrb[193].mxu1 }
 0x5ee   :  { %10807 = vset.pattern.permute.xlu1 %v10921_v34  ;;  %7055 = vperm.xlu0 %10809, %v6796_v39  }
 0x5ef   :  { %7172 = vperm.xlu1 %10807, %v6797_v37  }
 0x5f0   :  { %v10154_v42 = vpop.f32.mrb[194].mxu1 }
 0x5f1   :  { %v6757_v10 = vpop.f32.mrb[195].mxu1  ;;  %v6763_v18 = vadd.f32 %v10154_v42, %v13921_v0 }
 0x5f2   :  { %v13930_v14 = vadd.f32 %v13921_v0, %v6757_v10  ;;  %10810 = vset.pattern.permute.xlu0 %v10921_v34  ;;  %v6753_v10 = vadd.f32 %v10151_v24, %v13921_v0 }
 0x5f3   :  { %10808 = vset.pattern.permute.xlu1 %v10918_v16  ;;  %7168 = vperm.xlu0 %10810, %v6796_v39   ;;  %v6805_v24 = vmax.f32 %v6763_v18, 0.0 }
 0x5f4   :  { %6942 = vperm.xlu1 %10808, %v6796_v39   ;;  %v10157_v20 = vpop.f32.mrb[196].mxu1  ;;  %v6800_v39 = vmax.f32 %v6738_v25, 0.0  ;;  %v6803_v45 = vmax.f32 %v6753_v10, 0.0  ;;  %v6804_v41 = vmax.f32 %v13930_v14, 0.0  ;;  %v8516_v25 = vld [vmem:[%s14554_s9 + $0x108] sm:$0xff] }
 0x5f5   :  { %v13935_v59 = vadd.f32 %v10157_v20, %v13921_v0  ;;  %v6767_v5 = vpop.f32.mrb[197].mxu1  ;;  %v6748_v20 = vadd.f32 %v13921_v0, %v6747_v32 }
 0x5f6   :  { %v13938_v28 = vadd.f32 %v13921_v0, %v6767_v5 }
 0x5f7   :  { %10811 = vset.pattern.permute.xlu0 %v10919_v27  ;;  %v6802_v5 = vmax.f32 %v6748_v20, 0.0  ;;  %v6807_v14 = vmax.f32 %v13935_v59, 0.0  ;;  %v8500_v59 = vld [vmem:[%s14554_s9 + $0x88] sm:$0xff]  ;;  %v8515_v20 = vld [vmem:[%s14554_s9 + $0x100] sm:$0xff] }
 0x5f8   :  { %6954 = vperm.xlu1 %10808, %v6799_v52   ;;  %6845 = vperm.xlu0 %10811, %v6799_v52   ;;  %v10160_v61 = vpop.f32.mrb[198].mxu1 }
 0x5f9   :  { %v13943_v4 = vadd.f32 %v10160_v61, %v13921_v0  ;;  %v6777_v31 = vpop.f32.mrb[199].mxu1 }
 0x5fa   :  { %v13946_v36 = vadd.f32 %v13921_v0, %v6777_v31 }
 0x5fb   :  { %v13986_v32 = vmax.f32 %v13943_v4, 0.0 }
 0x5fc   :  { %10814 = vset.pattern.permute.xlu1 %v10919_v27  ;;  %10812 = vset.pattern.permute.xlu0 %v10920_v56  ;;  %v10163_v51 = vpop.f32.mrb[200].mxu1  ;;  %v13991_v42 = vmax.f32 %v13946_v36, 0.0 }
 0x5fd   :  { %v13951_v33 = vadd.f32 %v10163_v51, %v13921_v0  ;;  %7067 = vperm.xlu0 %10812, %v6799_v52   ;;  %6840 = vperm.xlu1 %10814, %v6798_v11   ;;  %v6787_v37 = vpop.f32.mrb[201].mxu1  ;;  %v6813_v51 = vld [vmem:[%s14554_s9 + $0x8] sm:$0xff] }
 0x5fe   :  { %v13954_v55 = vadd.f32 %v13921_v0, %v6787_v37  ;;  %v13980_v0 = vmax.f32 %v13938_v28, 0.0  ;;  %v6812_v37 = vld [vmem:[%s14554_s9] sm:$0xff] }
 0x5ff   :  { %v14003_v28 = vmax.f32 %v13951_v33, 0.0 }
 0x601   :  { %10813 = vset.pattern.permute.xlu0 %v10921_v34  ;;  %10815 = vset.pattern.permute.xlu1 %v10918_v16 }
 0x602   :  { %7180 = vperm.xlu0 %10813, %v6799_v52   ;;  %6950 = vperm.xlu1 %10815, %v6798_v11   ;;  %v6801_v52 = vmax.f32 %v6743_v50, 0.0  ;;  %v8532_v50 = vld [vmem:[%s14554_s9 + $0x188] sm:$0xff] }
 0x606   :  { %10823 = vset.pattern.permute.xlu0 %v10918_v16  ;;  %10816 = vset.pattern.permute.xlu1 %v10920_v56 }
 0x607   :  { %7063 = vperm.xlu1 %10816, %v6798_v11   ;;  %6958 = vperm.xlu0 %10823, %v6800_v39  }
 0x60b   :  { %10817 = vset.pattern.permute.xlu1 %v10921_v34  ;;  %6970 = vperm.xlu0 %10823, %v6803_v45  }
 0x60c   :  { %7176 = vperm.xlu1 %10817, %v6798_v11  }
 0x60f   :  { %10829 = vset.pattern.permute.xlu0 %v10919_v27 }
 0x610   :  { %10818 = vset.pattern.permute.xlu1 %v10919_v27  ;;  %6860 = vperm.xlu0 %10829, %v6802_v5  }
 0x611   :  { %6855 = vperm.xlu1 %10818, %v6801_v52  }
 0x614   :  { %10831 = vset.pattern.permute.xlu0 %v10920_v56 }
 0x615   :  { %10819 = vset.pattern.permute.xlu1 %v10918_v16  ;;  %7079 = vperm.xlu0 %10831, %v6802_v5  }
 0x616   :  { %6962 = vperm.xlu1 %10819, %v6801_v52  }
 0x619   :  { %10832 = vset.pattern.permute.xlu0 %v10921_v34 }
 0x61a   :  { %10820 = vset.pattern.permute.xlu1 %v10920_v56  ;;  %7192 = vperm.xlu0 %10832, %v6802_v5  }
 0x61b   :  { %7075 = vperm.xlu1 %10820, %v6801_v52  }
 0x61e   :  { %10833 = vset.pattern.permute.xlu0 %v10919_v27 }
 0x61f   :  { %10821 = vset.pattern.permute.xlu1 %v10921_v34  ;;  %6875 = vperm.xlu0 %10833, %v6805_v24  }
 0x620   :  { %7188 = vperm.xlu1 %10821, %v6801_v52  }
 0x623   :  { %10834 = vset.pattern.permute.xlu0 %v10920_v56 }
 0x624   :  { %10822 = vset.pattern.permute.xlu1 %v10919_v27  ;;  %7091 = vperm.xlu0 %10834, %v6805_v24  }
 0x625   :  { %6850 = vperm.xlu1 %10822, %v6800_v39  }
 0x628   :  { %10835 = vset.pattern.permute.xlu0 %v10921_v34 }
 0x629   :  { %10824 = vset.pattern.permute.xlu1 %v10920_v56  ;;  %7204 = vperm.xlu0 %10835, %v6805_v24  }
 0x62a   :  { %7071 = vperm.xlu1 %10824, %v6800_v39  }
 0x62d   :  { %10845 = vset.pattern.permute.xlu0 %v10918_v16 }
 0x62e   :  { %10825 = vset.pattern.permute.xlu1 %v10921_v34  ;;  %6982 = vperm.xlu0 %10845, %v13980_v0  }
 0x62f   :  { %7184 = vperm.xlu1 %10825, %v6800_v39   ;;  %v8499_v39 = vld [vmem:[%s14554_s9 + $0x80] sm:$0xff] }
 0x632   :  { %6994 = vperm.xlu0 %10845, %v13986_v32  }
 0x633   :  { %10826 = vset.pattern.permute.xlu1 %v10919_v27 }
 0x634   :  { %6865 = vperm.xlu1 %10826, %v6803_v45  }
 0x636   :  { %10851 = vset.pattern.permute.xlu0 %v10919_v27 }
 0x637   :  { %6890 = vperm.xlu0 %10851, %v13991_v42  }
 0x638   :  { %10827 = vset.pattern.permute.xlu1 %v10920_v56 }
 0x639   :  { %7083 = vperm.xlu1 %10827, %v6803_v45  }
 0x63b   :  { %10853 = vset.pattern.permute.xlu0 %v10920_v56 }
 0x63c   :  { %7103 = vperm.xlu0 %10853, %v13991_v42  }
 0x63d   :  { %10828 = vset.pattern.permute.xlu1 %v10921_v34 }
 0x63e   :  { %7196 = vperm.xlu1 %10828, %v6803_v45  }
 0x640   :  { %10854 = vset.pattern.permute.xlu0 %v10921_v34 }
 0x641   :  { %7216 = vperm.xlu0 %10854, %v13991_v42  }
 0x642   :  { %10830 = vset.pattern.permute.xlu1 %v10918_v16 }
 0x643   :  { %6966 = vperm.xlu1 %10830, %v6802_v5  }
 0x645   :  { %10855 = vset.pattern.permute.xlu0 %v10919_v27 }
 0x646   :  { %6905 = vperm.xlu0 %10855, %v14003_v28  }
 0x647   :  { %6978 = vperm.xlu1 %10830, %v6805_v24  }
 0x64a   :  { %10856 = vset.pattern.permute.xlu0 %v10920_v56 }
 0x64b   :  { %10836 = vset.pattern.permute.xlu1 %v10919_v27  ;;  %7115 = vperm.xlu0 %10856, %v14003_v28  }
 0x64c   :  { %6870 = vperm.xlu1 %10836, %v6804_v41  }
 0x64f   :  { %10862 = vset.pattern.permute.xlu0 %v10918_v16 }
 0x650   :  { %10837 = vset.pattern.permute.xlu1 %v10918_v16 }
 0x651   :  { %6974 = vperm.xlu1 %10837, %v6804_v41  }
 0x655   :  { %10838 = vset.pattern.permute.xlu1 %v10920_v56 }
 0x656   :  { %7087 = vperm.xlu1 %10838, %v6804_v41  }
 0x65a   :  { %10839 = vset.pattern.permute.xlu1 %v10921_v34 }
 0x65b   :  { %7200 = vperm.xlu1 %10839, %v6804_v41   ;;  %v8531_v41 = vld [vmem:[%s14554_s9 + $0x180] sm:$0xff] }
 0x65f   :  { %10840 = vset.pattern.permute.xlu1 %v10919_v27 }
 0x660   :  { %6885 = vperm.xlu1 %10840, %v6807_v14  }
 0x664   :  { %v6947_v61 = vpop.permute.xlu1 %6946  ;;  %v6836_v4 = vpop.permute.xlu0 %6835  ;;  %10841 = vset.pattern.permute.xlu1 %v10918_v16 }
 0x665   :  { %6986 = vperm.xlu1 %10841, %v6807_v14   ;;  %v7006_v10 = vmul.f32 %v8500_v59, %v6947_v61  ;;  %v6909_v45 = vmul.f32 %v6836_v4, %v6813_v51 }
 0x667   :  { %v7022_v61 = vadd.f32 %v7006_v10, %v6909_v45  ;;  %v8502_v10 = vld [vmem:[%s14554_s9 + $0x98] sm:$0xff]  ;;  %v8517_v45 = vld [vmem:[%s14554_s9 + $0x110] sm:$0xff] }
 0x668   :  { %v6831_v31 = vpop.permute.xlu0 %6830 }
 0x669   :  { %v7060_v36 = vpop.permute.xlu1 %7059  ;;  %10842 = vset.pattern.permute.xlu1 %v10920_v56  ;;  %v6908_v52 = vmul.f32 %v6831_v31, %v6812_v37 }
 0x66a   :  { %7099 = vperm.xlu1 %10842, %v6807_v14   ;;  %v7119_v18 = vmul.f32 %v8516_v25, %v7060_v36 }
 0x66c   :  { %v7135_v26 = vadd.f32 %v7119_v18, %v7022_v61  ;;  %v8534_v18 = vld [vmem:[%s14554_s9 + $0x198] sm:$0xff] }
 0x66d   :  { %v7056_v33 = vpop.permute.xlu0 %7055 }
 0x66e   :  { %v7173_v11 = vpop.permute.xlu1 %7172  ;;  %10843 = vset.pattern.permute.xlu1 %v10921_v34  ;;  %v7118_v4 = vmul.f32 %v8515_v20, %v7056_v33 }
 0x66f   :  { %7212 = vperm.xlu1 %10843, %v6807_v14   ;;  %v7232_v59 = vmul.f32 %v8532_v50, %v7173_v11 }
 0x671   :  { %v7248_v31 = vadd.f32 %v7232_v59, %v7135_v26  ;;  %v8518_v26 = vld [vmem:[%s14554_s9 + $0x118] sm:$0xff] }
 0x672   :  { %v7169_v14 = vpop.permute.xlu0 %7168 }
 0x673   :  { %v6943_v5 = vpop.permute.xlu1 %6942  ;;  %10844 = vset.pattern.permute.xlu1 %v10919_v27  ;;  %v7231_v6 = vmul.f32 %v8531_v41, %v7169_v14 }
 0x674   :  { %v7005_v24 = vmul.f32 %v8499_v39, %v6943_v5  ;;  %6880 = vperm.xlu1 %10844, %v13980_v0  }
 0x676   :  { %v7021_v51 = vadd.f32 %v7005_v24, %v6908_v52 }
 0x677   :  { %v6955_v3 = vpop.permute.xlu1 %6954  ;;  %v6846_v37 = vpop.permute.xlu0 %6845 }
 0x678   :  { %v7134_v40 = vadd.f32 %v7118_v4, %v7021_v51  ;;  %10846 = vset.pattern.permute.xlu1 %v10920_v56  ;;  %v7008_v20 = vmul.f32 %v8502_v10, %v6955_v3  ;;  %v8533_v4 = vld [vmem:[%s14554_s9 + $0x190] sm:$0xff] }
 0x679   :  { %7095 = vperm.xlu1 %10846, %v13980_v0  }
 0x67a   :  { %v7247_v36 = vadd.f32 %v7231_v6, %v7134_v40  ;;  %v6815_v40 = vld [vmem:[%s14554_s9 + $0x18] sm:$0xff]  ;;  %v8501_v6 = vld [vmem:[%s14554_s9 + $0x90] sm:$0xff] }
 0x67b   :  { %v6911_v50 = vmul.f32 %v6846_v37, %v6815_v40 }
 0x67c   :  { %v6841_v25 = vpop.permute.xlu1 %6840  ;;  %v10558_v39 = vpack.c.bf16 %v7248_v31, %v7247_v36  ;;  %v7068_v11 = vpop.permute.xlu0 %7067 }
 0x67d   :  { %10847 = vset.pattern.permute.xlu1 %v10921_v34  ;;  %v7121_v41 = vmul.f32 %v8518_v26, %v7068_v11  ;;  %v7024_v3 = vadd.f32 %v7008_v20, %v6911_v50  ;;  %v6817_v50 = vld [vmem:[%s14554_s9 + $0x28] sm:$0xff] }
 0x67e   :  { %10559 = vmatpush3.bf16.msra.mxu1 %v10558_v39  ;;  %7208 = vperm.xlu1 %10847, %v13980_v0   ;;  %v6814_v0 = vld [vmem:[%s14554_s9 + $0x10] sm:$0xff] }
 0x67f   :  { %10560 = vmatprep.subr.bf16.mxu1 %v10922_v35  ;;  %v6910_v14 = vmul.f32 %v6841_v25, %v6814_v0  ;;  %v7137_v36 = vadd.f32 %v7121_v41, %v7024_v3  ;;  %v8536_v41 = vld [vmem:[%s14554_s9 + $0x1a8] sm:$0xff] }
 0x681   :  { %v6951_v33 = vpop.permute.xlu1 %6950  ;;  %v7181_v24 = vpop.permute.xlu0 %7180 }
 0x682   :  { %10848 = vset.pattern.permute.xlu1 %v10919_v27  ;;  %v7007_v5 = vmul.f32 %v8501_v6, %v6951_v33  ;;  %v7234_v59 = vmul.f32 %v8534_v18, %v7181_v24  ;;  %v6810_v6 = vmax.f32 %v13954_v55, 0.0  ;;  %v6816_v55 = vld [vmem:[%s14554_s9 + $0x20] sm:$0xff] }
 0x683   :  { %6895 = vperm.xlu1 %10848, %v13986_v32  }
 0x684   :  { %v7023_v51 = vadd.f32 %v7007_v5, %v6910_v14  ;;  %v7250_v11 = vadd.f32 %v7234_v59, %v7137_v36  ;;  %v8519_v5 = vld [vmem:[%s14554_s9 + $0x120] sm:$0xff] }
 0x685   :  { %v8535_v59 = vld [vmem:[%s14554_s9 + $0x1a0] sm:$0xff] }
 0x686   :  { %v7064_v52 = vpop.permute.xlu1 %7063  ;;  %v6959_v20 = vpop.permute.xlu0 %6958 }
 0x687   :  { %10849 = vset.pattern.permute.xlu1 %v10920_v56  ;;  %v7120_v61 = vmul.f32 %v8517_v45, %v7064_v52  ;;  %v8503_v45 = vld [vmem:[%s14554_s9 + $0xa0] sm:$0xff] }
 0x688   :  { %7107 = vperm.xlu1 %10849, %v13986_v32   ;;  %v7009_v14 = vmul.f32 %v8503_v45, %v6959_v20  ;;  %v6818_v45 = vld [vmem:[%s14554_s9 + $0x30] sm:$0xff]  ;;  %v8522_v20 = vld [vmem:[%s14554_s9 + $0x138] sm:$0xff] }
 0x689   :  { %v7136_v37 = vadd.f32 %v7120_v61, %v7023_v51 }
 0x68b   :  { %v7177_v31 = vpop.permute.xlu1 %7176 }
 0x68c   :  { %v7233_v39 = vmul.f32 %v8533_v4, %v7177_v31  ;;  %10850 = vset.pattern.permute.xlu1 %v10921_v34 }
 0x68d   :  { %7220 = vperm.xlu1 %10850, %v13986_v32  }
 0x68e   :  { %v7249_v25 = vadd.f32 %v7233_v39, %v7136_v37 }
 0x690   :  { %v10561_v33 = vpack.c.bf16 %v7250_v11, %v7249_v25  ;;  %v6856_v10 = vpop.permute.xlu1 %6855 }
 0x691   :  { %10852 = vset.pattern.permute.xlu1 %v10918_v16  ;;  %v6913_v61 = vmul.f32 %v6856_v10, %v6817_v50  ;;  %v8505_v50 = vld [vmem:[%s14554_s9 + $0xb0] sm:$0xff] }
 0x692   :  { %10562 = vmatpush3.bf16.msra.mxu1 %v10561_v33  ;;  %6990 = vperm.xlu1 %10852, %v13991_v42   ;;  %v8504_v42 = vld [vmem:[%s14554_s9 + $0xa8] sm:$0xff] }
 0x693   :  { %10563 = vmatprep.subr.bf16.mxu1 %v10922_v35 }
 0x695   :  { %v6963_v40 = vpop.permute.xlu1 %6962 }
 0x696   :  { %7002 = vperm.xlu1 %10852, %v14003_v28   ;;  %v7010_v52 = vmul.f32 %v8504_v42, %v6963_v40  ;;  %v6971_v40 = vpop.permute.xlu0 %6970  ;;  %v6819_v42 = vld [vmem:[%s14554_s9 + $0x38] sm:$0xff] }
 0x698   :  { %v7026_v51 = vadd.f32 %v7010_v52, %v6913_v61  ;;  %v8538_v52 = vld [vmem:[%s14554_s9 + $0x1b8] sm:$0xff] }
 0x69a   :  { %v7076_v26 = vpop.permute.xlu1 %7075  ;;  %10857 = vset.pattern.permute.xlu1 %v10919_v27 }
 0x69b   :  { %6900 = vperm.xlu1 %10857, %v6810_v6  }
 0x69f   :  { %v7189_v32 = vpop.permute.xlu1 %7188  ;;  %10858 = vset.pattern.permute.xlu1 %v10918_v16 }
 0x6a0   :  { %6998 = vperm.xlu1 %10858, %v6810_v6   ;;  %v7236_v31 = vmul.f32 %v8536_v41, %v7189_v32 }
 0x6a4   :  { %v6851_v0 = vpop.permute.xlu1 %6850  ;;  %10859 = vset.pattern.permute.xlu1 %v10920_v56  ;;  %v8520_v56 = vld [vmem:[%s14554_s9 + $0x128] sm:$0xff] }
 0x6a5   :  { %7111 = vperm.xlu1 %10859, %v6810_v6   ;;  %v6912_v18 = vmul.f32 %v6851_v0, %v6816_v55  ;;  %v7123_v4 = vmul.f32 %v8520_v56, %v7076_v26  ;;  %v6861_v26 = vpop.permute.xlu0 %6860  ;;  %v8506_v55 = vld [vmem:[%s14554_s9 + $0xb8] sm:$0xff] }
 0x6a6   :  { %v6914_v41 = vmul.f32 %v6861_v26, %v6818_v45  ;;  %v8508_v26 = vld [vmem:[%s14554_s9 + $0xc8] sm:$0xff] }
 0x6a7   :  { %v7025_v36 = vadd.f32 %v7009_v14, %v6912_v18 }
 0x6a9   :  { %v7072_v24 = vpop.permute.xlu1 %7071  ;;  %10860 = vset.pattern.permute.xlu1 %v10921_v34  ;;  %v7139_v34 = vadd.f32 %v7123_v4, %v7026_v51  ;;  %v7080_v0 = vpop.permute.xlu0 %7079  ;;  %v8537_v4 = vld [vmem:[%s14554_s9 + $0x1b0] sm:$0xff] }
 0x6aa   :  { %7224 = vperm.xlu1 %10860, %v6810_v6   ;;  %v7122_v3 = vmul.f32 %v8519_v5, %v7072_v24  ;;  %v8521_v5 = vld [vmem:[%s14554_s9 + $0x130] sm:$0xff]  ;;  %v7012_v24 = vmul.f32 %v8506_v55, %v6971_v40  ;;  %v8507_v55 = vld [vmem:[%s14554_s9 + $0xc0] sm:$0xff] }
 0x6ab   :  { %v7252_v25 = vadd.f32 %v7236_v31, %v7139_v34 }
 0x6ac   :  { %v7138_v39 = vadd.f32 %v7122_v3, %v7025_v36 }
 0x6ad   :  { %v7193_v3 = vpop.permute.xlu0 %7192 }
 0x6ae   :  { %v7185_v37 = vpop.permute.xlu1 %7184  ;;  %7228 = vperm.xlu1 %10860, %v14003_v28   ;;  %v7237_v34 = vmul.f32 %v8537_v4, %v7193_v3  ;;  %v8539_v3 = vld [vmem:[%s14554_s9 + $0x1c0] sm:$0xff] }
 0x6af   :  { %v7235_v11 = vmul.f32 %v8535_v59, %v7185_v37  ;;  %v7124_v59 = vmul.f32 %v8521_v5, %v7080_v0 }
 0x6b1   :  { %v7251_v33 = vadd.f32 %v7235_v11, %v7138_v39 }
 0x6b2   :  { %10861 = vset.pattern.permute.xlu1 %v10919_v27 }
 0x6b3   :  { %v10564_v10 = vpack.c.bf16 %v7252_v25, %v7251_v33  ;;  %v6866_v6 = vpop.permute.xlu1 %6865 }
 0x6b4   :  { %v6915_v56 = vmul.f32 %v6866_v6, %v6819_v42  ;;  %v6876_v6 = vpop.permute.xlu0 %6875 }
 0x6b5   :  { %10565 = vmatpush3.bf16.msra.mxu1 %v10564_v10 }
 0x6b6   :  { %10566 = vmatprep.subr.bf16.mxu1 %v10922_v35  ;;  %v7028_v51 = vadd.f32 %v7012_v24, %v6915_v56  ;;  %v8523_v56 = vld [vmem:[%s14554_s9 + $0x140] sm:$0xff] }
 0x6b8   :  { %v7084_v32 = vpop.permute.xlu1 %7083  ;;  %v7092_v42 = vpop.permute.xlu0 %7091 }
 0x6b9   :  { %v7125_v14 = vmul.f32 %v8522_v20, %v7084_v32  ;;  %v6821_v32 = vld [vmem:[%s14554_s9 + $0x48] sm:$0xff] }
 0x6ba   :  { %v6917_v45 = vmul.f32 %v6876_v6, %v6821_v32  ;;  %v8524_v20 = vld [vmem:[%s14554_s9 + $0x148] sm:$0xff]  ;;  %v8510_v32 = vld [vmem:[%s14554_s9 + $0xd8] sm:$0xff] }
 0x6bb   :  { %v7141_v39 = vadd.f32 %v7125_v14, %v7028_v51  ;;  %v7127_v24 = vmul.f32 %v8524_v20, %v7092_v42  ;;  %v8525_v20 = vld [vmem:[%s14554_s9 + $0x150] sm:$0xff] }
 0x6bc   :  { %v7205_v4 = vpop.permute.xlu0 %7204 }
 0x6bd   :  { %v7197_v28 = vpop.permute.xlu1 %7196 }
 0x6be   :  { %v7238_v31 = vmul.f32 %v8538_v52, %v7197_v28 }
 0x6c0   :  { %v7254_v25 = vadd.f32 %v7238_v31, %v7141_v39  ;;  %v6983_v42 = vpop.permute.xlu0 %6982 }
 0x6c2   :  { %v6967_v18 = vpop.permute.xlu1 %6966 }
 0x6c3   :  { %v7011_v61 = vmul.f32 %v8505_v50, %v6967_v18  ;;  %v6820_v50 = vld [vmem:[%s14554_s9 + $0x40] sm:$0xff] }
 0x6c5   :  { %v7027_v36 = vadd.f32 %v7011_v61, %v6914_v41  ;;  %v8540_v61 = vld [vmem:[%s14554_s9 + $0x1c8] sm:$0xff] }
 0x6c6   :  { %v6979_v37 = vpop.permute.xlu1 %6978 }
 0x6c7   :  { %v7140_v11 = vadd.f32 %v7124_v59, %v7027_v36  ;;  %v7014_v0 = vmul.f32 %v8508_v26, %v6979_v37  ;;  %v7240_v36 = vmul.f32 %v8540_v61, %v7205_v4  ;;  %v8541_v61 = vld [vmem:[%s14554_s9 + $0x1d0] sm:$0xff] }
 0x6c9   :  { %v7253_v33 = vadd.f32 %v7237_v34, %v7140_v11  ;;  %v7030_v5 = vadd.f32 %v7014_v0, %v6917_v45  ;;  %v8509_v0 = vld [vmem:[%s14554_s9 + $0xd0] sm:$0xff]  ;;  %v8526_v45 = vld [vmem:[%s14554_s9 + $0x158] sm:$0xff] }
 0x6cb   :  { %v6871_v10 = vpop.permute.xlu1 %6870  ;;  %v10567_v40 = vpack.c.bf16 %v7254_v25, %v7253_v33  ;;  %v7143_v59 = vadd.f32 %v7127_v24, %v7030_v5 }
 0x6cc   :  { %v6916_v41 = vmul.f32 %v6871_v10, %v6820_v50 }
 0x6cd   :  { %10568 = vmatpush3.bf16.msra.mxu1 %v10567_v40  ;;  %v7256_v39 = vadd.f32 %v7240_v36, %v7143_v59 }
 0x6ce   :  { %10569 = vmatprep.subr.bf16.mxu1 %v10922_v35 }
 0x6d0   :  { %v6975_v28 = vpop.permute.xlu1 %6974 }
 0x6d1   :  { %v7013_v52 = vmul.f32 %v8507_v55, %v6975_v28  ;;  %v6822_v28 = vld [vmem:[%s14554_s9 + $0x50] sm:$0xff]  ;;  %v6823_v55 = vld [vmem:[%s14554_s9 + $0x58] sm:$0xff] }
 0x6d3   :  { %v7029_v51 = vadd.f32 %v7013_v52, %v6916_v41  ;;  %v8542_v52 = vld [vmem:[%s14554_s9 + $0x1d8] sm:$0xff] }
 0x6d5   :  { %v7088_v18 = vpop.permute.xlu1 %7087 }
 0x6d6   :  { %v7126_v14 = vmul.f32 %v8523_v56, %v7088_v18  ;;  %v7015_v18 = vmul.f32 %v8509_v0, %v6983_v42  ;;  %v6824_v0 = vld [vmem:[%s14554_s9 + $0x60] sm:$0xff]  ;;  %v8528_v42 = vld [vmem:[%s14554_s9 + $0x168] sm:$0xff] }
 0x6d8   :  { %v7142_v37 = vadd.f32 %v7126_v14, %v7029_v51 }
 0x6da   :  { %v7201_v31 = vpop.permute.xlu1 %7200 }
 0x6db   :  { %v7239_v34 = vmul.f32 %v8539_v3, %v7201_v31 }
 0x6dd   :  { %v7255_v11 = vadd.f32 %v7239_v34, %v7142_v37 }
 0x6df   :  { %v10570_v25 = vpack.c.bf16 %v7256_v39, %v7255_v11  ;;  %v6886_v33 = vpop.permute.xlu1 %6885  ;;  %v6995_v11 = vpop.permute.xlu0 %6994 }
 0x6e0   :  { %v6919_v24 = vmul.f32 %v6886_v33, %v6823_v55  ;;  %v8511_v55 = vld [vmem:[%s14554_s9 + $0xe0] sm:$0xff] }
 0x6e1   :  { %10571 = vmatpush3.bf16.msra.mxu1 %v10570_v25 }
 0x6e2   :  { %10572 = vmatprep.subr.bf16.mxu1 %v10922_v35 }
 0x6e3   :  { %v6891_v33 = vpop.permute.xlu0 %6890 }
 0x6e4   :  { %v6987_v10 = vpop.permute.xlu1 %6986 }
 0x6e5   :  { %v7016_v50 = vmul.f32 %v8510_v32, %v6987_v10 }
 0x6e7   :  { %v7032_v4 = vadd.f32 %v7016_v50, %v6919_v24  ;;  %v7104_v32 = vpop.permute.xlu0 %7103  ;;  %v8544_v50 = vld [vmem:[%s14554_s9 + $0x1e8] sm:$0xff] }
 0x6e9   :  { %v7100_v40 = vpop.permute.xlu1 %7099 }
 0x6ea   :  { %v7129_v41 = vmul.f32 %v8526_v45, %v7100_v40 }
 0x6ec   :  { %v7145_v31 = vadd.f32 %v7129_v41, %v7032_v4  ;;  %v8543_v41 = vld [vmem:[%s14554_s9 + $0x1e0] sm:$0xff] }
 0x6ee   :  { %v7213_v6 = vpop.permute.xlu1 %7212 }
 0x6ef   :  { %v7242_v3 = vmul.f32 %v8542_v52, %v7213_v6  ;;  %v6825_v6 = vld [vmem:[%s14554_s9 + $0x68] sm:$0xff]  ;;  %v6920_v52 = vmul.f32 %v6891_v33, %v6824_v0  ;;  %v6617_v33 = vlaneseq }
 0x6f1   :  { %v7258_v34 = vadd.f32 %v7242_v3, %v7145_v31  ;;  %v6620_v0 = vshrl.u32 %v6617_v33, 7 }
 0x6f3   :  { %v6881_v26 = vpop.permute.xlu1 %6880 }
 0x6f4   :  { %v6918_v56 = vmul.f32 %v6881_v26, %v6822_v28  ;;  %v8512_v28 = vld [vmem:[%s14554_s9 + $0xe8] sm:$0xff] }
 0x6f6   :  { %v7031_v59 = vadd.f32 %v7015_v18, %v6918_v56 }
 0x6f8   :  { %v7096_v5 = vpop.permute.xlu1 %7095 }
 0x6f9   :  { %v7128_v14 = vmul.f32 %v8525_v20, %v7096_v5  ;;  %v8527_v20 = vld [vmem:[%s14554_s9 + $0x160] sm:$0xff]  ;;  %v7018_v5 = vmul.f32 %v8512_v28, %v6995_v11  ;;  %v8513_v28 = vld [vmem:[%s14554_s9 + $0xf0] sm:$0xff] }
 0x6fb   :  { %v7144_v36 = vadd.f32 %v7128_v14, %v7031_v59  ;;  %v7217_v14 = vpop.permute.xlu0 %7216 }
 0x6fc   :  { %v7243_v31 = vmul.f32 %v8543_v41, %v7217_v14 }
 0x6fd   :  { %v7209_v51 = vpop.permute.xlu1 %7208 }
 0x6fe   :  { %v7241_v37 = vmul.f32 %v8541_v61, %v7209_v51  ;;  %v7130_v61 = vmul.f32 %v8527_v20, %v7104_v32  ;;  %v8514_v32 = vld [vmem:[%s14554_s9 + $0xf8] sm:$0xff] }
 0x700   :  { %v7257_v39 = vadd.f32 %v7241_v37, %v7144_v36 }
 0x702   :  { %v10573_v25 = vpack.c.bf16 %v7258_v34, %v7257_v39  ;;  %v6896_v10 = vpop.permute.xlu1 %6895 }
 0x703   :  { %v6921_v45 = vmul.f32 %v6896_v10, %v6825_v6  ;;  %v6827_v6 = vld [vmem:[%s14554_s9 + $0x78] sm:$0xff] }
 0x704   :  { %10574 = vmatpush3.bf16.msra.mxu1 %v10573_v25 }
 0x705   :  { %10575 = vmatprep.subr.bf16.mxu1 %v10922_v35  ;;  %v7034_v4 = vadd.f32 %v7018_v5, %v6921_v45  ;;  %v8529_v45 = vld [vmem:[%s14554_s9 + $0x170] sm:$0xff] }
 0x707   :  { %v7108_v40 = vpop.permute.xlu1 %7107 }
 0x708   :  { %v7131_v18 = vmul.f32 %v8528_v42, %v7108_v40  ;;  %v6906_v40 = vpop.permute.xlu0 %6905 }
 0x709   :  { %v6923_v20 = vmul.f32 %v6906_v40, %v6827_v6 }
 0x70a   :  { %v7147_v36 = vadd.f32 %v7131_v18, %v7034_v4  ;;  %v8546_v4 = vld [vmem:[%s14554_s9 + $0x1f8] sm:$0xff] }
 0x70c   :  { %v7221_v26 = vpop.permute.xlu1 %7220  ;;  %v7116_v5 = vpop.permute.xlu0 %7115 }
 0x70d   :  { %v7244_v3 = vmul.f32 %v8544_v50, %v7221_v26 }
 0x70f   :  { %v7260_v34 = vadd.f32 %v7244_v3, %v7147_v36  ;;  %v6618_v36 = vand.u32 127, %v6617_v33  ;;  %v7355_v33 = vld [vmem:[%s14556_s11 + $0x10] sm:$0xff] }
 0x711   :  { %v6991_v56 = vpop.permute.xlu1 %6990 }
 0x712   :  { %v7017_v24 = vmul.f32 %v8511_v55, %v6991_v56  ;;  %v6826_v55 = vld [vmem:[%s14554_s9 + $0x70] sm:$0xff]  ;;  %v8530_v56 = vld [vmem:[%s14554_s9 + $0x178] sm:$0xff] }
 0x713   :  { %v7133_v3 = vmul.f32 %v8530_v56, %v7116_v5  ;;  %v7359_v56 = vld [vmem:[%s14556_s11 + $0x30] sm:$0xff]  ;;  %v7360_v5 = vld [vmem:[%s14556_s11 + $0x38] sm:$0xff] }
 0x714   :  { %v7033_v59 = vadd.f32 %v7017_v24, %v6920_v52  ;;  %v8545_v52 = vld [vmem:[%s14554_s9 + $0x1f0] sm:$0xff]  ;;  %v6621_v24 = vmul.u32 64, %v6620_v0 }
 0x715   :  { %v7003_v51 = vpop.permute.xlu1 %7002  ;;  %v7842_v0 = vld [vmem:[%s14560_s15 + $0x10] sm:$0xff] }
 0x716   :  { %v7146_v37 = vadd.f32 %v7130_v61, %v7033_v59  ;;  %v7020_v42 = vmul.f32 %v8514_v32, %v7003_v51  ;;  %vm6622_vm10 = vcmp.ge.s32.totalorder %v6618_v36, %v6621_v24 }
 0x718   :  { %v7259_v39 = vadd.f32 %v7243_v31, %v7146_v37  ;;  %v7036_v41 = vadd.f32 %v7020_v42, %v6923_v20  ;;  %v6623_v37 = vadd.s32 64, %v6621_v24  ;;  %v10924_v20 = vmov 1.0   ;;  %v7363_v24 = vld [vmem:[%s14556_s11 + $0x50] sm:$0xff] }
 0x71a   :  { %v6901_v25 = vpop.permute.xlu1 %6900  ;;  %v10576_v11 = vpack.c.bf16 %v7260_v34, %v7259_v39  ;;  %v7149_v39 = vadd.f32 %v7133_v3, %v7036_v41  ;;  %vm6624_vm11 = vcmp.lt.s32.totalorder %v6618_v36, %v6623_v37  ;;  %v7364_v41 = vld [vmem:[%s14556_s11 + $0x58] sm:$0xff] }
 0x71b   :  { %v6922_v14 = vmul.f32 %v6901_v25, %v6826_v55  ;;  %v7354_v25 = vld [vmem:[%s14556_s11 + $0x8] sm:$0xff]  ;;  %vm14255_vm12 = vmand %vm6622_vm10, %vm6624_vm11  ;;  %v7357_v55 = vld [vmem:[%s14556_s11 + $0x20] sm:$0xff] }
 0x71c   :  { %10577 = vmatpush3.bf16.msra.mxu1 %v10576_v11 }
 0x71d   :  { %10578 = vmatprep.subr.bf16.mxu1 %v10922_v35 }
 0x71f   :  { %v6999_v10 = vpop.permute.xlu1 %6998 }
 0x720   :  { %v7019_v50 = vmul.f32 %v8513_v28, %v6999_v10  ;;  %v7353_v10 = vld [vmem:[%s14556_s11] sm:$0xff]  ;;  %v7356_v28 = vld [vmem:[%s14556_s11 + $0x18] sm:$0xff] }
 0x721   :  { %v10585_v42 = vpack.c.bf16 %v7356_v28, %v7355_v33 }
 0x722   :  { %v7035_v59 = vadd.f32 %v7019_v50, %v6922_v14  ;;  %v10601_v14 = vpack.c.bf16 %v7364_v41, %v7363_v24 }
 0x724   :  { %v7112_v26 = vpop.permute.xlu1 %7111 }
 0x725   :  { %v7132_v61 = vmul.f32 %v8529_v45, %v7112_v26  ;;  %v10581_v26 = vpack.c.bf16 %v7354_v25, %v7353_v10  ;;  %v7358_v45 = vld [vmem:[%s14556_s11 + $0x28] sm:$0xff] }
 0x726   :  { %v10589_v50 = vpack.c.bf16 %v7358_v45, %v7357_v55 }
 0x727   :  { %v7148_v34 = vadd.f32 %v7132_v61, %v7035_v59  ;;  %v7365_v61 = vld [vmem:[%s14556_s11 + $0x60] sm:$0xff]  ;;  %v7367_v59 = vld [vmem:[%s14556_s11 + $0x70] sm:$0xff] }
 0x729   :  { %v7225_v18 = vpop.permute.xlu1 %7224 }
 0x72a   :  { %v7245_v51 = vmul.f32 %v8545_v52, %v7225_v18  ;;  %v10593_v52 = vpack.c.bf16 %v7360_v5, %v7359_v56  ;;  %v7361_v18 = vld [vmem:[%s14556_s11 + $0x40] sm:$0xff] }
 0x72c   :  { %v7261_v40 = vadd.f32 %v7245_v51, %v7148_v34  ;;  %v7368_v51 = vld [vmem:[%s14556_s11 + $0x78] sm:$0xff] }
 0x72d   :  { %v7229_v31 = vpop.permute.xlu1 %7228 }
 0x72e   :  { %v7246_v11 = vmul.f32 %v8546_v4, %v7229_v31  ;;  %v7366_v4 = vld [vmem:[%s14556_s11 + $0x68] sm:$0xff]  ;;  %v10609_v31 = vpack.c.bf16 %v7368_v51, %v7367_v59 }
 0x72f   :  { %v10605_v3 = vpack.c.bf16 %v7366_v4, %v7365_v61 }
 0x730   :  { %v7262_v32 = vadd.f32 %v7246_v11, %v7149_v39 }
 0x732   :  { %v10579_v6 = vpack.c.bf16 %v7262_v32, %v7261_v40 }
 0x734   :  { %10580 = vmatpush3.bf16.msra.mxu1 %v10579_v6 }
 0x735   :  { %10582 = vmatprep.subr.bf16.mxu1 %v10581_v26 }
 0x737   :  { %10197 = vmatmul.mubr.msk.f32.vlgmr.msra.gmra.mrb[202].mxu1 %vm14255_vm12, %v10924_v20 }
 0x738   :  { %10584 = vmatpush3.bf16.msra.mxu1 %v10581_v26  ;;  %10231 = vmatprep.mubr.f32.mxu1 %v6601_v13  ;;  %v10597_v13 = vpack.c.bf16 %v7362_v38, %v7361_v18 }
 0x739   :  { %10586 = vmatprep.subr.bf16.mxu1 %v10585_v42 }
 0x73c   :  { %10588 = vmatpush3.bf16.msra.mxu1 %v10585_v42 }
 0x73d   :  { %10590 = vmatprep.subr.bf16.mxu1 %v10589_v50 }
 0x740   :  { %10592 = vmatpush3.bf16.msra.mxu1 %v10589_v50 }
 0x741   :  { %10594 = vmatprep.subr.bf16.mxu1 %v10593_v52 }
 0x744   :  { %10596 = vmatpush3.bf16.msra.mxu1 %v10593_v52 }
 0x745   :  { %10598 = vmatprep.subr.bf16.mxu1 %v10597_v13 }
 0x748   :  { %10600 = vmatpush3.bf16.msra.mxu1 %v10597_v13 }
 0x749   :  { %10602 = vmatprep.subr.bf16.mxu1 %v10601_v14 }
 0x74c   :  { %10604 = vmatpush3.bf16.msra.mxu1 %v10601_v14 }
 0x74d   :  { %10606 = vmatprep.subr.bf16.mxu1 %v10605_v3 }
 0x750   :  { %10608 = vmatpush3.bf16.msra.mxu1 %v10605_v3  ;;  %v8547_v3 = vld [vmem:[%s14555_s10] ss:$0 sm:$0xff] }
 0x751   :  { %10610 = vmatprep.subr.bf16.mxu1 %v10609_v31 }
 0x754   :  { %10612 = vmatpush3.bf16.msra.mxu1 %v10609_v31 }
 0x755   :  { %10613 = vmatprep.subr.bf16.mxu1 %v10922_v35 }
 0x757   :  { %10232 = vmatmul.mubr.f32.vlgmr.msra.gmra.mrb[204].mxu1 %v6602_v7  ;;  %v14579_v7 = vmax.f32 %v13892_v1, 0.0 }
 0x758   :  { %10234 = vmatprep.mubr.f32.mxu1 %v6603_v21 }
 0x75b   :  { %10235 = vmatmul.mubr.f32.gmra.mrb[206].mxu1 %v6604_v15 }
 0x75c   :  { %10237 = vmatprep.mubr.f32.mxu1 %v6605_v8 }
 0x75f   :  { %10238 = vmatmul.mubr.f32.gmra.mrb[208].mxu1 %v6606_v29 }
 0x760   :  { %10240 = vmatprep.mubr.f32.mxu1 %v6607_v62 }
 0x763   :  { %10241 = vmatmul.mubr.f32.gmra.mrb[210].mxu1 %v6608_v22 }
 0x764   :  { %10243 = vmatprep.mubr.f32.mxu1 %v6609_v53 }
 0x767   :  { %10244 = vmatmul.mubr.f32.gmra.mrb[212].mxu1 %v6610_v47 }
 0x768   :  { %10246 = vmatprep.mubr.f32.mxu1 %v6611_v48 }
 0x76b   :  { %10247 = vmatmul.mubr.f32.gmra.mrb[214].mxu1 %v6612_v12 }
 0x76c   :  { %10249 = vmatprep.mubr.f32.mxu1 %v14578_v60 }
 0x76f   :  { %10250 = vmatmul.mubr.f32.gmra.mrb[216].mxu1 %v14579_v7 }
 0x770   :  { %10252 = vmatprep.mubr.f32.mxu1 %v14580_v17  ;;  %v8551_v17 = vld [vmem:[%s14558_s13 + $0x88] sm:$0xff] }
 0x773   :  { %10253 = vmatmul.mubr.f32.gmra.mrb[218].mxu1 %v14581_v43  ;;  %v7538_v43 = vld [vmem:[%s14558_s13 + $0x8] sm:$0xff] }
 0x774   :  { %10287 = vmatprep.mubr.msk.f32.mxu1 %vm10923_vm9, %v10917_v2 }
 0x80a   :  { %v14333_v21 = vpop.f32.mrb[202].mxu1 }
 0x80b   :  { %v10198_v15 = vpop.f32.mrb[203].mxu1  ;;  %v14381_v59 = vadd.f32 %v8547_v3, %v14333_v21  ;;  %v7537_v21 = vld [vmem:[%s14558_s13] sm:$0xff] }
 0x80d   :  { %v7340_v31 = vsel %vm4416_vm8, %v14381_v59, -inf }
 0x82a   :  { %v10233_v63 = vpop.f32.mrb[204].mxu1 }
 0x82b   :  { %v7448_v8 = vadd.f32 %v10233_v63, %v14338_v9  ;;  %v7442_v29 = vpop.f32.mrb[205].mxu1 }
 0x82c   :  { %v7443_v30 = vadd.f32 %v14338_v9, %v7442_v29 }
 0x82d   :  { %v7522_v19 = vmax.f32 %v7448_v8, 0.0 }
 0x82e   :  { %v10236_v62 = vpop.f32.mrb[206].mxu1  ;;  %v7521_v49 = vmax.f32 %v7443_v30, 0.0 }
 0x82f   :  { %7671 = vperm.xlu0 %10862, %v7522_v19   ;;  %7560 = vperm.xlu1 %10861, %v7522_v19   ;;  %v7452_v22 = vpop.f32.mrb[207].mxu1  ;;  %v7458_v53 = vadd.f32 %v10236_v62, %v14338_v9 }
 0x830   :  { %v7453_v47 = vadd.f32 %v14338_v9, %v7452_v22 }
 0x831   :  { %v7524_v48 = vmax.f32 %v7458_v53, 0.0  ;;  %v8553_v53 = vld [vmem:[%s14558_s13 + $0x98] sm:$0xff] }
 0x832   :  { %v10239_v44 = vpop.f32.mrb[208].mxu1  ;;  %v7523_v12 = vmax.f32 %v7453_v47, 0.0  ;;  %v7540_v47 = vld [vmem:[%s14558_s13 + $0x18] sm:$0xff] }
 0x833   :  { %10863 = vset.pattern.permute.xlu0 %v10919_v27  ;;  %10864 = vset.pattern.permute.xlu1 %v10918_v16  ;;  %v7462_v23 = vpop.f32.mrb[209].mxu1  ;;  %v7468_v1 = vadd.f32 %v10239_v44, %v14338_v9 }
 0x834   :  { %7667 = vperm.xlu1 %10864, %v7521_v49   ;;  %7555 = vperm.xlu0 %10863, %v7521_v49   ;;  %v7463_v37 = vadd.f32 %v14338_v9, %v7462_v23  ;;  %v8552_v23 = vld [vmem:[%s14558_s13 + $0x90] sm:$0xff] }
 0x835   :  { %v7526_v54 = vmax.f32 %v7468_v1, 0.0 }
 0x836   :  { %v10242_v46 = vpop.f32.mrb[210].mxu1  ;;  %v7525_v11 = vmax.f32 %v7463_v37, 0.0 }
 0x837   :  { %v7472_v58 = vpop.f32.mrb[211].mxu1  ;;  %v7478_v45 = vadd.f32 %v10242_v46, %v14338_v9  ;;  %v7539_v46 = vld [vmem:[%s14558_s13 + $0x10] sm:$0xff] }
 0x838   :  { %10865 = vset.pattern.permute.xlu1 %v10919_v27  ;;  %10868 = vset.pattern.permute.xlu0 %v10918_v16  ;;  %v7473_v10 = vadd.f32 %v14338_v9, %v7472_v58 }
 0x839   :  { %7570 = vperm.xlu1 %10865, %v7524_v48   ;;  %7675 = vperm.xlu0 %10868, %v7523_v12   ;;  %v7528_v56 = vmax.f32 %v7478_v45, 0.0 }
 0x83a   :  { %v10245_v57 = vpop.f32.mrb[212].mxu1  ;;  %v7527_v32 = vmax.f32 %v7473_v10, 0.0  ;;  %v8555_v10 = vld [vmem:[%s14558_s13 + $0xa8] sm:$0xff] }
 0x83b   :  { %v7482_v36 = vpop.f32.mrb[213].mxu1  ;;  %v7488_v26 = vadd.f32 %v10245_v57, %v14338_v9 }
 0x83c   :  { %v7483_v55 = vadd.f32 %v14338_v9, %v7482_v36 }
 0x83d   :  { %10866 = vset.pattern.permute.xlu1 %v10918_v16  ;;  %7687 = vperm.xlu0 %10868, %v7526_v54   ;;  %v7530_v42 = vmax.f32 %v7488_v26, 0.0 }
 0x83e   :  { %v10248_v34 = vpop.f32.mrb[214].mxu1  ;;  %7679 = vperm.xlu1 %10866, %v7524_v48   ;;  %v7529_v50 = vmax.f32 %v7483_v55, 0.0 }
 0x83f   :  { %v7492_v39 = vpop.f32.mrb[215].mxu1  ;;  %v7498_v61 = vadd.f32 %v10248_v34, %v14338_v9 }
 0x840   :  { %v7493_v5 = vadd.f32 %v14338_v9, %v7492_v39 }
 0x841   :  { %10869 = vset.pattern.permute.xlu0 %v10919_v27  ;;  %v7532_v4 = vmax.f32 %v7498_v61, 0.0 }
 0x842   :  { %v10251_v25 = vpop.f32.mrb[216].mxu1  ;;  %10867 = vset.pattern.permute.xlu1 %v10919_v27  ;;  %7575 = vperm.xlu0 %10869, %v7525_v11   ;;  %v7531_v52 = vmax.f32 %v7493_v5, 0.0 }
 0x843   :  { %v7502_v40 = vpop.f32.mrb[217].mxu1  ;;  %7565 = vperm.xlu1 %10867, %v7523_v12   ;;  %v7508_v18 = vadd.f32 %v10251_v25, %v14338_v9  ;;  %v7541_v25 = vld [vmem:[%s14558_s13 + $0x20] sm:$0xff] }
 0x844   :  { %v7503_v13 = vadd.f32 %v14338_v9, %v7502_v40 }
 0x845   :  { %v7534_v38 = vmax.f32 %v7508_v18, 0.0  ;;  %v8557_v18 = vld [vmem:[%s14558_s13 + $0xb8] sm:$0xff] }
 0x846   :  { %v10254_v6 = vpop.f32.mrb[218].mxu1  ;;  %10874 = vset.pattern.permute.xlu0 %v10918_v16  ;;  %v7533_v24 = vmax.f32 %v7503_v13, 0.0  ;;  %v7544_v13 = vld [vmem:[%s14558_s13 + $0x38] sm:$0xff] }
 0x847   :  { %v7518_v33 = vadd.f32 %v10254_v6, %v14338_v9  ;;  %v7512_v28 = vpop.f32.mrb[219].mxu1  ;;  %7580 = vperm.xlu1 %10867, %v7526_v54   ;;  %7691 = vperm.xlu0 %10874, %v7527_v32  }
 0x848   :  { %v7513_v41 = vadd.f32 %v14338_v9, %v7512_v28 }
 0x849   :  { %v7536_v51 = vmax.f32 %v7518_v33, 0.0 }
 0x84a   :  { %v7535_v14 = vmax.f32 %v7513_v41, 0.0 }
 0x84b   :  { %10870 = vset.pattern.permute.xlu1 %v10918_v16  ;;  %7703 = vperm.xlu0 %10874, %v7530_v42  }
 0x84c   :  { %7683 = vperm.xlu1 %10870, %v7525_v11   ;;  %v7542_v11 = vld [vmem:[%s14558_s13 + $0x28] sm:$0xff] }
 0x84f   :  { %10875 = vset.pattern.permute.xlu0 %v10919_v27 }
 0x850   :  { %10871 = vset.pattern.permute.xlu1 %v10919_v27  ;;  %7595 = vperm.xlu0 %10875, %v7529_v50  }
 0x851   :  { %7590 = vperm.xlu1 %10871, %v7528_v56  }
 0x854   :  { %10880 = vset.pattern.permute.xlu0 %v10918_v16 }
 0x855   :  { %10872 = vset.pattern.permute.xlu1 %v10918_v16  ;;  %7707 = vperm.xlu0 %10880, %v7531_v52  }
 0x856   :  { %7695 = vperm.xlu1 %10872, %v7528_v56  }
 0x859   :  { %7719 = vperm.xlu0 %10880, %v7534_v38  }
 0x85a   :  { %10873 = vset.pattern.permute.xlu1 %v10919_v27 }
 0x85b   :  { %7585 = vperm.xlu1 %10873, %v7527_v32   ;;  %v8554_v32 = vld [vmem:[%s14558_s13 + $0xa0] sm:$0xff] }
 0x85d   :  { %10881 = vset.pattern.permute.xlu0 %v10919_v27 }
 0x85e   :  { %7615 = vperm.xlu0 %10881, %v7533_v24  }
 0x85f   :  { %7600 = vperm.xlu1 %10873, %v7530_v42  }
 0x862   :  { %10884 = vset.pattern.permute.xlu0 %v10918_v16 }
 0x863   :  { %10876 = vset.pattern.permute.xlu1 %v10918_v16  ;;  %7723 = vperm.xlu0 %10884, %v7535_v14  }
 0x864   :  { %7699 = vperm.xlu1 %10876, %v7529_v50  }
 0x868   :  { %10877 = vset.pattern.permute.xlu1 %v10919_v27 }
 0x869   :  { %7610 = vperm.xlu1 %10877, %v7532_v4  }
 0x86d   :  { %10878 = vset.pattern.permute.xlu1 %v10918_v16 }
 0x86e   :  { %7711 = vperm.xlu1 %10878, %v7532_v4  }
 0x872   :  { %10879 = vset.pattern.permute.xlu1 %v10919_v27 }
 0x873   :  { %7605 = vperm.xlu1 %10879, %v7531_v52  }
 0x877   :  { %7620 = vperm.xlu1 %10879, %v7534_v38   ;;  %v8556_v38 = vld [vmem:[%s14558_s13 + $0xb0] sm:$0xff] }
 0x87b   :  { %10882 = vset.pattern.permute.xlu1 %v10918_v16 }
 0x87c   :  { %7715 = vperm.xlu1 %10882, %v7533_v24   ;;  %v7543_v24 = vld [vmem:[%s14558_s13 + $0x30] sm:$0xff] }
 0x880   :  { %10883 = vset.pattern.permute.xlu1 %v10919_v27  ;;  %v8550_v27 = vld [vmem:[%s14558_s13 + $0x80] sm:$0xff] }
 0x881   :  { %7630 = vperm.xlu1 %10883, %v7536_v51  }
 0x882   :  { %7341 = vmax.xlane.f32.xlu0 %v7340_v31 }
 0x885   :  { %7625 = vperm.xlu1 %10883, %v7535_v14  }
 0x889   :  { %10885 = vset.pattern.permute.xlu1 %v10918_v16 }
 0x88a   :  { %7727 = vperm.xlu1 %10885, %v7536_v51  }
 0x8ae   :  { %v7672_v60 = vpop.permute.xlu0 %7671  ;;  %v7561_v7 = vpop.permute.xlu1 %7560 }
 0x8af   :  { %v7731_v16 = vmul.f32 %v8551_v17, %v7672_v60  ;;  %v7634_v15 = vmul.f32 %v7561_v7, %v7538_v43  ;;  %v7546_v43 = vld [vmem:[%s14558_s13 + $0x48] sm:$0xff] }
 0x8b1   :  { %v7747_v19 = vadd.f32 %v7731_v16, %v7634_v15  ;;  %v8558_v15 = vld [vmem:[%s14558_s13 + $0xc0] sm:$0xff] }
 0x8b3   :  { %v7668_v9 = vpop.permute.xlu1 %7667  ;;  %v7556_v63 = vpop.permute.xlu0 %7555 }
 0x8b4   :  { %v7730_v8 = vmul.f32 %v8550_v27, %v7668_v9  ;;  %v7633_v29 = vmul.f32 %v7556_v63, %v7537_v21  ;;  %v8559_v27 = vld [vmem:[%s14558_s13 + $0xc8] sm:$0xff]  ;;  %v7545_v21 = vld [vmem:[%s14558_s13 + $0x40] sm:$0xff] }
 0x8b6   :  { %v7746_v30 = vadd.f32 %v7730_v8, %v7633_v29 }
 0x8b8   :  { %v10614_v62 = vpack.c.bf16 %v7747_v19, %v7746_v30  ;;  %v7571_v22 = vpop.permute.xlu1 %7570  ;;  %v7676_v49 = vpop.permute.xlu0 %7675 }
 0x8b9   :  { %v7636_v1 = vmul.f32 %v7571_v22, %v7540_v47  ;;  %v7732_v58 = vmul.f32 %v8552_v23, %v7676_v49  ;;  %v8561_v47 = vld [vmem:[%s14558_s13 + $0xd8] sm:$0xff]  ;;  %v8560_v23 = vld [vmem:[%s14558_s13 + $0xd0] sm:$0xff] }
 0x8ba   :  { %10615 = vmatpush3.bf16.msra.mxu1 %v10614_v62 }
 0x8bb   :  { %10616 = vmatprep.subr.bf16.mxu1 %v10922_v35 }
 0x8bc   :  { %v7688_v57 = vpop.permute.xlu0 %7687 }
 0x8bd   :  { %v7680_v44 = vpop.permute.xlu1 %7679  ;;  %v7735_v33 = vmul.f32 %v8555_v10, %v7688_v57  ;;  %v7550_v10 = vld [vmem:[%s14558_s13 + $0x68] sm:$0xff] }
 0x8be   :  { %v7733_v48 = vmul.f32 %v8553_v53, %v7680_v44 }
 0x8c0   :  { %v7749_v36 = vadd.f32 %v7733_v48, %v7636_v1  ;;  %v7547_v48 = vld [vmem:[%s14558_s13 + $0x50] sm:$0xff] }
 0x8c1   :  { %v7576_v40 = vpop.permute.xlu0 %7575 }
 0x8c2   :  { %v7566_v12 = vpop.permute.xlu1 %7565  ;;  %v7637_v28 = vmul.f32 %v7576_v40, %v7541_v25  ;;  %v8563_v25 = vld [vmem:[%s14558_s13 + $0xe8] sm:$0xff]  ;;  %v7549_v40 = vld [vmem:[%s14558_s13 + $0x60] sm:$0xff] }
 0x8c3   :  { %v7635_v54 = vmul.f32 %v7566_v12, %v7539_v46  ;;  %v7548_v46 = vld [vmem:[%s14558_s13 + $0x58] sm:$0xff] }
 0x8c5   :  { %v7748_v37 = vadd.f32 %v7732_v58, %v7635_v54 }
 0x8c6   :  { %v7581_v34 = vpop.permute.xlu1 %7580  ;;  %v7692_v5 = vpop.permute.xlu0 %7691 }
 0x8c7   :  { %v10617_v39 = vpack.c.bf16 %v7749_v36, %v7748_v37  ;;  %v7638_v26 = vmul.f32 %v7581_v34, %v7542_v11  ;;  %v7736_v61 = vmul.f32 %v8556_v38, %v7692_v5  ;;  %v8564_v38 = vld [vmem:[%s14558_s13 + $0xf0] sm:$0xff] }
 0x8c9   :  { %10618 = vmatpush3.bf16.msra.mxu1 %v10617_v39  ;;  %v7751_v55 = vadd.f32 %v7735_v33, %v7638_v26  ;;  %v8562_v26 = vld [vmem:[%s14558_s13 + $0xe0] sm:$0xff] }
 0x8ca   :  { %10619 = vmatprep.subr.bf16.mxu1 %v10922_v35  ;;  %v7704_v4 = vpop.permute.xlu0 %7703 }
 0x8cb   :  { %v7684_v6 = vpop.permute.xlu1 %7683  ;;  %v7739_v8 = vmul.f32 %v8559_v27, %v7704_v4 }
 0x8cc   :  { %v7734_v42 = vmul.f32 %v8554_v32, %v7684_v6 }
 0x8ce   :  { %v7750_v45 = vadd.f32 %v7734_v42, %v7637_v28 }
 0x8cf   :  { %v7596_v16 = vpop.permute.xlu0 %7595 }
 0x8d0   :  { %v10620_v50 = vpack.c.bf16 %v7751_v55, %v7750_v45  ;;  %v7591_v56 = vpop.permute.xlu1 %7590  ;;  %v7641_v29 = vmul.f32 %v7596_v16, %v7545_v21 }
 0x8d1   :  { %v7640_v3 = vmul.f32 %v7591_v56, %v7544_v13 }
 0x8d2   :  { %10621 = vmatpush3.bf16.msra.mxu1 %v10620_v50 }
 0x8d3   :  { %10622 = vmatprep.subr.bf16.mxu1 %v10922_v35 }
 0x8d4   :  { %v7708_v44 = vpop.permute.xlu0 %7707 }
 0x8d5   :  { %v7696_v52 = vpop.permute.xlu1 %7695  ;;  %v7740_v58 = vmul.f32 %v8560_v23, %v7708_v44 }
 0x8d6   :  { %v7737_v41 = vmul.f32 %v8557_v18, %v7696_v52  ;;  %v7551_v18 = vld [vmem:[%s14558_s13 + $0x70] sm:$0xff] }
 0x8d8   :  { %v7753_v31 = vadd.f32 %v7737_v41, %v7640_v3  ;;  %v7720_v57 = vpop.permute.xlu0 %7719  ;;  %v8565_v41 = vld [vmem:[%s14558_s13 + $0xf8] sm:$0xff] }
 0x8d9   :  { %v7743_v28 = vmul.f32 %v8563_v25, %v7720_v57 }
 0x8da   :  { %v7586_v14 = vpop.permute.xlu1 %7585 }
 0x8db   :  { %v7639_v51 = vmul.f32 %v7586_v14, %v7543_v24  ;;  %v7552_v24 = vld [vmem:[%s14558_s13 + $0x78] sm:$0xff] }
 0x8dd   :  { %v7752_v60 = vadd.f32 %v7736_v61, %v7639_v51  ;;  %v7616_v32 = vpop.permute.xlu0 %7615 }
 0x8de   :  { %v7601_v7 = vpop.permute.xlu1 %7600  ;;  %v7645_v42 = vmul.f32 %v7616_v32, %v7549_v40 }
 0x8df   :  { %v10623_v17 = vpack.c.bf16 %v7753_v31, %v7752_v60  ;;  %v7642_v9 = vmul.f32 %v7601_v7, %v7546_v43 }
 0x8e1   :  { %10624 = vmatpush3.bf16.msra.mxu1 %v10623_v17  ;;  %v7755_v30 = vadd.f32 %v7739_v8, %v7642_v9  ;;  %v7845_v8 = vld [vmem:[%s14560_s15 + $0x28] sm:$0xff] }
 0x8e2   :  { %10625 = vmatprep.subr.bf16.mxu1 %v10922_v35  ;;  %v7724_v13 = vpop.permute.xlu0 %7723 }
 0x8e3   :  { %v7700_v63 = vpop.permute.xlu1 %7699  ;;  %v7744_v4 = vmul.f32 %v8564_v38, %v7724_v13 }
 0x8e4   :  { %v7738_v19 = vmul.f32 %v8558_v15, %v7700_v63  ;;  %v7841_v15 = vld [vmem:[%s14560_s15 + $0x8] sm:$0xff]  ;;  %v7844_v63 = vld [vmem:[%s14560_s15 + $0x20] sm:$0xff] }
 0x8e6   :  { %v7754_v62 = vadd.f32 %v7738_v19, %v7641_v29  ;;  %v10644_v29 = vpack.c.bf16 %v7845_v8, %v7844_v63  ;;  %v7846_v19 = vld [vmem:[%s14560_s15 + $0x30] sm:$0xff] }
 0x8e8   :  { %v10626_v22 = vpack.c.bf16 %v7755_v30, %v7754_v62  ;;  %v7611_v49 = vpop.permute.xlu1 %7610  ;;  %v7847_v30 = vld [vmem:[%s14560_s15 + $0x38] sm:$0xff] }
 0x8e9   :  { %v7644_v54 = vmul.f32 %v7611_v49, %v7548_v46  ;;  %v10647_v62 = vpack.c.bf16 %v7847_v30, %v7846_v19 }
 0x8ea   :  { %10627 = vmatpush3.bf16.msra.mxu1 %v10626_v22 }
 0x8eb   :  { %10628 = vmatprep.subr.bf16.mxu1 %v10922_v35 }
 0x8ed   :  { %v7712_v53 = vpop.permute.xlu1 %7711 }
 0x8ee   :  { %v7741_v12 = vmul.f32 %v8561_v47, %v7712_v53 }
 0x8f0   :  { %v7757_v37 = vadd.f32 %v7741_v12, %v7644_v54 }
 0x8f2   :  { %v7606_v1 = vpop.permute.xlu1 %7605 }
 0x8f3   :  { %v7643_v36 = vmul.f32 %v7606_v1, %v7547_v48 }
 0x8f5   :  { %v7756_v34 = vadd.f32 %v7740_v58, %v7643_v36 }
 0x8f6   :  { %v7621_v39 = vpop.permute.xlu1 %7620 }
 0x8f7   :  { %v10629_v11 = vpack.c.bf16 %v7757_v37, %v7756_v34  ;;  %v7646_v6 = vmul.f32 %v7621_v39, %v7550_v10 }
 0x8f9   :  { %10630 = vmatpush3.bf16.msra.mxu1 %v10629_v11  ;;  %v7759_v45 = vadd.f32 %v7743_v28, %v7646_v6 }
 0x8fa   :  { %10631 = vmatprep.subr.bf16.mxu1 %v10922_v35 }
 0x8fb   :  { %v7716_v33 = vpop.permute.xlu1 %7715 }
 0x8fc   :  { %v7742_v55 = vmul.f32 %v8562_v26, %v7716_v33 }
 0x8fe   :  { %v7758_v50 = vadd.f32 %v7742_v55, %v7645_v42 }
 0x900   :  { %v10632_v56 = vpack.c.bf16 %v7759_v45, %v7758_v50  ;;  %v7631_v5 = vpop.permute.xlu1 %7630 }
 0x901   :  { %v7648_v3 = vmul.f32 %v7631_v5, %v7552_v24 }
 0x902   :  { %10633 = vmatpush3.bf16.msra.mxu1 %v10632_v56 }
 0x903   :  { %10634 = vmatprep.subr.bf16.mxu1 %v10922_v35 }
 0x904   :  { %v7626_v52 = vpop.permute.xlu1 %7625 }
 0x905   :  { %v7647_v14 = vmul.f32 %v7626_v52, %v7551_v18 }
 0x907   :  { %v7760_v31 = vadd.f32 %v7744_v4, %v7647_v14 }
 0x909   :  { %v7728_v61 = vpop.permute.xlu1 %7727 }
 0x90a   :  { %v7745_v51 = vmul.f32 %v8565_v41, %v7728_v61 }
 0x90c   :  { %v7761_v60 = vadd.f32 %v7745_v51, %v7648_v3 }
 0x90e   :  { %v10635_v7 = vpack.c.bf16 %v7761_v60, %v7760_v31 }
 0x90f   :  { %v7342_v17 = vpop.xlane.xlu0 %7341 }
 0x910   :  { %v7343_v43 = vsub.f32 %v14381_v59, %v7342_v17  ;;  %10636 = vmatpush3.bf16.msra.mxu1 %v10635_v7  ;;  %v7840_v59 = vld [vmem:[%s14560_s15] sm:$0xff] }
 0x911   :  { %10637 = vmatprep.subr.bf16.mxu1 %v10922_v35 }
 0x912   :  { %v7344_v27 = vmul.f32 1.442695, %v7343_v43 }
 0x913   :  { %10288 = vmatmul.mubr.msk.f32.vlgmr.msra.gmra.mrb[220].mxu1 %vm14255_vm12, %v10924_v20  ;;  %v10638_v20 = vpack.c.bf16 %v7841_v15, %v7840_v59 }
 0x914   :  { %10886 = vpow2.f32 %v7344_v27  ;;  %10306 = vmatprep.mubr.msk.f32.mxu1 %vm10923_vm9, %v10917_v2  ;;  %v7843_v2 = vld [vmem:[%s14560_s15 + $0x18] sm:$0xff]  ;;  %s10925_s15 = smov [#allocation9]  }
 0x915   :  { %10639 = vmatpush3.bf16.msra.mxu1 %v10638_v20  ;;  %v10641_v9 = vpack.c.bf16 %v7843_v2, %v7842_v0  ;;  %s7937_s4 = sshll.u32 %s10925_s15, 4  ;;  %s7938_s4 = int_to_ptr.vmem [resolvable:$true] %s7937_s4 }
 0x916   :  { %10640 = vmatprep.subr.bf16.mxu1 %v10922_v35  ;;  %s10893_s0 = scalar_lea.vmem %s7938_s4, 32  ;;  %p10898_p1 = scmp.lt.s32.totalorder %s7938_s4, %s7938_s4 }
 0x917   :  { %p10894_p0 = scmp.ne.s32.totalorder %s7938_s4, %s10893_s0  ;;  %p10899_p2 = scmp.lt.s32.totalorder %s10893_s0, %s10893_s0 }
 0x919   :  { %10642 = vmatpush3.bf16.msra.mxu1 %v10641_v9  ;;  %p10900_p3 = por %p10899_p2, %p10898_p1 }
 0x91a   :  { %10643 = vmatprep.subr.bf16.mxu1 %v10922_v35 }
 0x91b   :  { %p10901_p4 = pnand %p10900_p3, %p10894_p0 }
 0x91d   :  { %10645 = vmatpush3.bf16.msra.mxu1 %v10644_v29 }
 0x91e   :  { %v10887_v21 = vpop.eup %10886  ;;  %10646 = vmatprep.subr.bf16.mxu1 %v10922_v35  ;;  %v8566_v35 = vld [vmem:[%s14559_s14] ss:$0 sm:$0xff] }
 0x91f   :  { %v7346_v16 = vsel %vm4416_vm8, %v10887_v21, 0.0 }
 0x920   :  { %7347 = vadd.xlane.f32.xlu1 %v7346_v16 }
 0x921   :  { %10648 = vmatpush3.bf16.msra.mxu1 %v10647_v62 }
 0x9ad   :  { %v7348_v22 = vpop.xlane.xlu1 %7347 }
 0x9ae   :  { %10888 = vlog2.f32 %v7348_v22 }
 0x9b8   :  { %v10889_v49 = vpop.eup %10888 }
 0x9b9   :  { %v7350_v44 = vmul.f32 0.6931472, %v10889_v49 }
 0x9bb   :  { %v7351_v53 = vsub.f32 %v7343_v43, %v7350_v44 }
 0x9bd   :  { %7352 = vst.msk [vmem:[#allocation9] sm:$0x3] %vm4416_vm8, %v7351_v53 }
 0x9e6   :  { %v7835_v47 = vpop.f32.mrb[220].mxu1 }
 0x9e7   :  { %v7836_v23 = vadd.f32 %v8566_v35, %v7835_v47  ;;  %v10289_v46 = vpop.f32.mrb[221].mxu1 }
 0x9e9   :  { %v7839_v48 = vmax.f32 %v7836_v23, 0.0 }
 0x9eb   :  { %10307 = vmatmul.mubr.msk.f32.vlgmr.msra.gmra.mrb[222].mxu1 %vm2550_vm7, %v7839_v48 }
 0x9ec   :  { %10904 = shalt.err (!%p10901_p4)
}
 0x9ed   :  { %s10905_s14 = scalar_lea.hbm %s14562_s17, 32 }
 0x9ee   :  { %p10906_p5 = scmp.ne.s32.totalorder %s14562_s17, %s10905_s14  ;;  %p10909_p6 = scmp.lt.u32.totalorder %s10905_s14, %s14562_s17 }
 0x9f0   :  { %p10911_p7 = pnand %p10909_p6, %p10906_p5 }
 0x9f2   :  { %10914 = shalt.err (!%p10911_p7)
}
 0x9f3   :  { %7940 = dma.vmem_to_hbm [thread:$0]  %s7938_s4, 32, %s14562_s17, [#allocation10]   ;;  %v8568_v12 = vld [vmem:[#allocation8] ss:$0 sm:$0xff]  ;;  %vm7929_vm13 = vcmask 1024  }
 0xabe   :  { %v7924_v1 = vpop.f32.mrb[222].mxu1 }
 0xabf   :  { %v7925_v58 = vadd.f32 %v8568_v12, %v7924_v1  ;;  %v10308_v57 = vpop.f32.mrb[223].mxu1 }
 0xac1   :  { %10890 = vtanh.f32 %v7925_v58 }
 0xacb   :  { %v10891_v54 = vpop.eup %10890 }
 0xacc   :  { %7930 = vst.msk [vmem:[%s14563_s18] sm:$0x3] %vm7929_vm13, %v10891_v54 }
 0xacd   :  { %10915 = dma.done.wait [#allocation10], 32  }
 0xace   :  { %10916 = vsyncadd [#allocation10], 4294967264 }
 0xacf   :  { %7948 = vsyncpa [#allocation10], 1 }

</bundles_post_ra>
